<compile_context>
chip_gen: v6e
topology: v6e:2x2x1
jax: 0.10.0
libtpu: 0.0.40
codegen_flags: <defaults>
</compile_context>

<pallas_src>
import jax
import jax.numpy as jnp
from jax.experimental import pallas as pl
from jax.experimental.pallas import tpu as pltpu

C1 = 32    # conv1 out channels
C2 = 64    # conv2 out channels
FC1 = 128  # fc1 hidden width


def _branch_kernel(x_ref, w1_ref, b1_ref, w2_ref, b2_ref,
                   wf1_ref, bf1_ref, wf2_ref, bf2_ref,
                   out_ref,
                   xpad_ref, y1_ref, p1pad_ref, t2_ref, y2_ref, p2_ref, pf_ref):
    """One modality branch: conv1 -> pool -> conv2 -> pool -> fc1 -> relu -> fc2."""
    B, H, W, _ = x_ref.shape
    Hp, Wp = H // 2, W // 2
    Hq, Wq = H // 4, W // 4

    # --- x[torch.isnan(x)] = 0 (functional), write into padded-input interior ---
    xin = x_ref[...]
    xin = jnp.where(jnp.isnan(xin), jnp.zeros_like(xin), xin)
    xpad_ref[:, 1:H + 1, 1:W + 1, :] = xin

    # --- zero ONLY the 1-pixel borders of the padded buffers (interiors are
    #     fully overwritten every step).  Done every step, not just at
    #     program_id==0, so the kernel stays correct when the "parallel" dims
    #     axis is sharded across TensorCores (each core has its own scratch). ---
    xpad_ref[:, 0:1, :, :] = jnp.zeros((B, 1, W + 2, 1), jnp.float32)
    xpad_ref[:, H + 1:H + 2, :, :] = jnp.zeros((B, 1, W + 2, 1), jnp.float32)
    xpad_ref[:, :, 0:1, :] = jnp.zeros((B, H + 2, 1, 1), jnp.float32)
    xpad_ref[:, :, W + 1:W + 2, :] = jnp.zeros((B, H + 2, 1, 1), jnp.float32)
    p1pad_ref[:, 0:1, :, :] = jnp.zeros((B, 1, Wp + 2, C1), jnp.float32)
    p1pad_ref[:, Hp + 1:Hp + 2, :, :] = jnp.zeros((B, 1, Wp + 2, C1), jnp.float32)
    p1pad_ref[:, :, 0:1, :] = jnp.zeros((B, Hp + 2, 1, C1), jnp.float32)
    p1pad_ref[:, :, Wp + 1:Wp + 2, :] = jnp.zeros((B, Hp + 2, 1, C1), jnp.float32)

    # --- conv1: 1 -> 32, 3x3, pad 1.  Register-tiled over 4-row chunks so the
    #     f32 accumulator stays ~16 vregs (no spills), one store per chunk
    #     (no full-buffer read-modify-write). ---
    HC = 4
    for h0 in range(0, H, HC):
        acc = jnp.zeros((B, HC, W, C1), jnp.float32)
        for kh in range(3):
            for kw in range(3):
                tap = xpad_ref[:, h0 + kh:h0 + kh + HC, kw:kw + W, :]   # (B,HC,W,1)
                acc = acc + tap * w1_ref[kh, kw, :]                     # -> (B,HC,W,32)
        y1_ref[:, h0:h0 + HC, :, :] = acc                               # bias added post-pool

    # --- maxpool 2x2 stride 2 on conv1 output, fused strided-slice max.
    #     conv1 bias is per-channel, so max(y + b) == max(y) + b; add it here. ---
    for h0 in range(0, H, 8):                                           # 8-row chunks (reg friendly)
        ev = y1_ref[:, h0:h0 + 8, pl.ds(0, Wp, stride=2), :]            # (B,8,Wp,32)
        od = y1_ref[:, h0:h0 + 8, pl.ds(1, Wp, stride=2), :]
        mw = jnp.maximum(ev, od).reshape(B, 4, 2, Wp, C1)
        p1c = jnp.maximum(mw[:, :, 0], mw[:, :, 1])                     # (B,4,Wp,32)
        p1pad_ref[:, 1 + h0 // 2:1 + h0 // 2 + 4, 1:Wp + 1, :] = p1c + b1_ref[...]

    # --- conv2: 32 -> 64, 3x3, pad 1, as ONE im2col matmul on the MXU.
    #     Pack the 9 taps into a lane-dense (B*Hp*Wp, 288) bf16 scratch. ---
    for kh in range(3):
        for kw in range(3):
            kt = kh * 3 + kw
            tap = p1pad_ref[:, kh:kh + Hp, kw:kw + Wp, :]               # (B,Hp,Wp,32)
            t2_ref[:, kt * C1:(kt + 1) * C1] = (
                tap.reshape(B * Hp * Wp, C1).astype(jnp.bfloat16))
    y2 = jnp.dot(t2_ref[...], w2_ref[...],
                 preferred_element_type=jnp.float32)                    # (B*Hp*Wp, 64)
    y2_ref[...] = y2.reshape(B, Hp, Wp, C2) + b2_ref[...]

    # --- maxpool 2x2 stride 2 on conv2 output, fused strided-slice max ---
    ev2 = y2_ref[:, :, pl.ds(0, Wq, stride=2), :]                       # (B,Hp,Wq,64)
    od2 = y2_ref[:, :, pl.ds(1, Wq, stride=2), :]
    mw2 = jnp.maximum(ev2, od2).reshape(B, Hq, 2, Wq, C2)
    p2_ref[...] = jnp.maximum(mw2[:, :, 0], mw2[:, :, 1])               # (B,Hq,Wq,64)

    # --- flatten (h, w, c) into a lane-dense (B, Hq*Wq*C2) buffer, then fc1 as
    #     ONE (B,1024)@(1024,128) matmul (weights pre-permuted to this order). ---
    for h in range(Hq):
        for w in range(Wq):
            s = (h * Wq + w) * C2
            pf_ref[:, s:s + C2] = p2_ref[:, h, w, :]
    hid = jnp.dot(pf_ref[...].astype(jnp.bfloat16), wf1_ref[...],
                  preferred_element_type=jnp.float32) + bf1_ref[...]
    hid = jnp.maximum(hid, 0.0)                                         # ReLU, (B,128)

    # --- fc2: 128 -> 1 on the VPU/XLU (multiply + lane reduction; no N=1 MXU push) ---
    out_ref[...] = jnp.sum(hid * wf2_ref[...], axis=-1, keepdims=True) + bf2_ref[...]


def parallel_cnnet_forward(x, params):
    """x: (B, dims, H, W) float32 (PyTorch NCHW convention; 'dims' = modalities)."""
    B, dims, H, W = x.shape
    assert H % 8 == 0 and W % 4 == 0, "spatial dims must be multiples of 8 (H) / 4 (W)"
    Hp, Wp, Hq, Wq = H // 2, W // 2, H // 4, W // 4
    K2 = 9 * C1
    F = Hq * Wq * C2
    (w1, b1, w2f, b2, wf1, bf1, wf2, bf2, w3, b3) = params

    # glue: per-modality, channels-last input with trailing singleton channel
    # (input is ~2 KB; its DMA cost is immaterial next to the bf16 weight streams)
    x5 = jnp.transpose(x, (1, 0, 2, 3))[..., None]            # (dims, B, H, W, 1)

    branch = pl.pallas_call(
        _branch_kernel,
        out_shape=jax.ShapeDtypeStruct((dims, B, 1), jnp.float32),
        grid=(dims,),
        in_specs=[
            pl.BlockSpec((None, B, H, W, 1), lambda d: (d, 0, 0, 0, 0)),   # x
            pl.BlockSpec((None, 3, 3, C1), lambda d: (d, 0, 0, 0)),        # conv1 w (f32)
            pl.BlockSpec((None, 1, C1), lambda d: (d, 0, 0)),              # conv1 b
            pl.BlockSpec((None, K2, C2), lambda d: (d, 0, 0)),             # conv2 w (bf16, im2col)
            pl.BlockSpec((None, 1, C2), lambda d: (d, 0, 0)),              # conv2 b
            pl.BlockSpec((None, F, FC1), lambda d: (d, 0, 0)),             # fc1 w (bf16)
            pl.BlockSpec((None, 1, FC1), lambda d: (d, 0, 0)),             # fc1 b
            pl.BlockSpec((None, 1, FC1), lambda d: (d, 0, 0)),             # fc2 w (f32 row)
            pl.BlockSpec((None, 1, 1), lambda d: (d, 0, 0)),               # fc2 b
        ],
        out_specs=pl.BlockSpec((None, B, 1), lambda d: (d, 0, 0)),
        scratch_shapes=[
            pltpu.VMEM((B, H + 2, W + 2, 1), jnp.float32),      # padded input
            pltpu.VMEM((B, H, W, C1), jnp.float32),             # conv1 out
            pltpu.VMEM((B, Hp + 2, Wp + 2, C1), jnp.float32),   # padded pooled conv1
            pltpu.VMEM((B * Hp * Wp, K2), jnp.bfloat16),        # conv2 im2col taps
            pltpu.VMEM((B, Hp, Wp, C2), jnp.float32),           # conv2 out
            pltpu.VMEM((B, Hq, Wq, C2), jnp.float32),           # pooled conv2
            pltpu.VMEM((B, F), jnp.float32),                    # flattened features (lane-dense)
        ],
        compiler_params=pltpu.CompilerParams(
            dimension_semantics=("parallel",)),                 # branches shard across TCs on v7x
    )(x5, w1, b1, w2f, b2, wf1, bf1, wf2, bf2)

    # head in plain JAX (tiny): torch.cat -> relu -> fc3 -> sigmoid
    xii = jnp.transpose(branch[:, :, 0])                        # (B, dims)
    logits = jnp.maximum(xii, 0.0) @ w3 + b3                    # (B, 1)
    return jax.nn.sigmoid(logits)


def init_params(key, input_size):
    """Deterministic, PyTorch-shaped parameters, permuted to the kernel layout."""
    dims, H, W = input_size
    F = C2 * (H * W // 16)          # 64 * prod(input_size[1:]) // 16
    Hq, Wq = H // 4, W // 4
    assert F == C2 * Hq * Wq

    def uni(k, shape, fan_in):
        b = 1.0 / float(fan_in) ** 0.5
        return jax.random.uniform(k, shape, jnp.float32, -b, b)

    ks = jax.random.split(key, 10)
    # PyTorch-layout parameters (per-modality stacked on a leading dims axis)
    conv1_w = uni(ks[0], (dims, C1, 1, 3, 3), 9)          # (out, in, kh, kw)
    conv1_b = uni(ks[1], (dims, C1), 9)
    conv2_w = uni(ks[2], (dims, C2, C1, 3, 3), C1 * 9)
    conv2_b = uni(ks[3], (dims, C2), C1 * 9)
    fc1_w = uni(ks[4], (dims, FC1, F), F)                 # in-axis indexed (c, h, w)
    fc1_b = uni(ks[5], (dims, FC1), F)
    fc2_w = uni(ks[6], (dims, 1, FC1), FC1)
    fc2_b = uni(ks[7], (dims, 1), FC1)
    fc3_w = uni(ks[8], (1, dims), dims)
    fc3_b = uni(ks[9], (1,), dims)

    # glue: permute to the kernel layouts
    w1 = jnp.transpose(conv1_w[:, :, 0], (0, 2, 3, 1))                    # (dims,3,3,32)
    b1 = conv1_b.reshape(dims, 1, C1)
    # conv2 as im2col weight: row index = (kh*3 + kw)*32 + c1
    w2f = jnp.transpose(conv2_w, (0, 3, 4, 2, 1)).reshape(
        dims, 9 * C1, C2).astype(jnp.bfloat16)                            # (dims,288,64) bf16
    b2 = conv2_b.reshape(dims, 1, C2)
    # fc1 with its K axis reordered to the kernel's (h, w, c) flatten order
    wf1 = jnp.transpose(fc1_w.reshape(dims, FC1, C2, Hq, Wq),
                        (0, 3, 4, 2, 1)).reshape(
        dims, Hq * Wq * C2, FC1).astype(jnp.bfloat16)                     # (dims,1024,128) bf16
    bf1 = fc1_b.reshape(dims, 1, FC1)
    wf2 = fc2_w                                                           # (dims,1,128) VPU row
    bf2 = fc2_b.reshape(dims, 1, 1)
    w3 = jnp.transpose(fc3_w)                                             # (dims,1)
    b3 = fc3_b                                                            # (1,)
    return (w1, b1, w2f, b2, wf1, bf1, wf2, bf2, w3, b3)


if __name__ == "__main__":
    input_size = (4, 16, 16)      # (dims, H, W) -> fc1 input = 64 * 16*16//16 = 1024
    B = 2
    key = jax.random.PRNGKey(0)
    kp, kx = jax.random.split(key)
    params = init_params(kp, input_size)
    x = jax.random.normal(kx, (B,) + input_size, dtype=jnp.float32)
    x = x.at[0, 0, 3, 5].set(jnp.nan)     # exercise the nan-zeroing path

    fwd = jax.jit(parallel_cnnet_forward)
    out = fwd(x, params)
    out = jax.block_until_ready(out)
    assert out.shape == (B, 1)
    assert bool(jnp.all(jnp.isfinite(out)))
    assert bool(jnp.all((out > 0.0) & (out < 1.0)))   # sigmoid output range
    print("KERNEL_OK")
</pallas_src>

<mosaic_0001>
module attributes {stable_mosaic.version = 11 : i64} {
  func.func @_branch_kernel(%arg0: i32, %arg1: memref<1x2x16x16x1xf32, #tpu.memory_space<vmem>>, %arg2: memref<1x3x3x32xf32, #tpu.memory_space<vmem>>, %arg3: memref<1x1x32xf32, #tpu.memory_space<vmem>>, %arg4: memref<1x288x64xbf16, #tpu.memory_space<vmem>>, %arg5: memref<1x1x64xf32, #tpu.memory_space<vmem>>, %arg6: memref<1x1024x128xbf16, #tpu.memory_space<vmem>>, %arg7: memref<1x1x128xf32, #tpu.memory_space<vmem>>, %arg8: memref<1x1x128xf32, #tpu.memory_space<vmem>>, %arg9: memref<1x1x1xf32, #tpu.memory_space<vmem>>, %arg10: memref<1x2x1xf32, #tpu.memory_space<vmem>>, %arg11: memref<2x18x18x1xf32, #tpu.memory_space<vmem>>, %arg12: memref<2x16x16x32xf32, #tpu.memory_space<vmem>>, %arg13: memref<2x10x10x32xf32, #tpu.memory_space<vmem>>, %arg14: memref<128x288xbf16, #tpu.memory_space<vmem>>, %arg15: memref<2x8x8x64xf32, #tpu.memory_space<vmem>>, %arg16: memref<2x4x4x64xf32, #tpu.memory_space<vmem>>, %arg17: memref<2x1024xf32, #tpu.memory_space<vmem>>) attributes {dimension_semantics = [#tpu.dimension_semantics<parallel>], iteration_bounds = array<i64: 4>, scalar_prefetch = 0 : i64, scratch_operands = 7 : i64, tpu.core_type = #tpu.core_type<tc>, window_params = [{transform_indices = @transform_0, window_bounds = array<i64: 1, 2, 16, 16, 1>}, {transform_indices = @transform_1, window_bounds = array<i64: 1, 3, 3, 32>}, {transform_indices = @transform_2, window_bounds = array<i64: 1, 1, 32>}, {transform_indices = @transform_3, window_bounds = array<i64: 1, 288, 64>}, {transform_indices = @transform_4, window_bounds = array<i64: 1, 1, 64>}, {transform_indices = @transform_5, window_bounds = array<i64: 1, 1024, 128>}, {transform_indices = @transform_6, window_bounds = array<i64: 1, 1, 128>}, {transform_indices = @transform_7, window_bounds = array<i64: 1, 1, 128>}, {transform_indices = @transform_8, window_bounds = array<i64: 1, 1, 1>}, {transform_indices = @transform_9, window_bounds = array<i64: 1, 2, 1>}]} {
    %c0 = arith.constant 0 : index
    %c0_0 = arith.constant 0 : index
    %c0_1 = arith.constant 0 : index
    %c0_2 = arith.constant 0 : index
    %c0_3 = arith.constant 0 : index
    %0 = vector.load %arg1[%c0, %c0_0, %c0_1, %c0_2, %c0_3] : memref<1x2x16x16x1xf32, #tpu.memory_space<vmem>>, vector<1x2x16x16x1xf32>
    %1 = vector.shape_cast %0 : vector<1x2x16x16x1xf32> to vector<2x16x16x1xf32>
    %2 = arith.cmpf one, %1, %1 : vector<2x16x16x1xf32>
    %cst = arith.constant 0.000000e+00 : f32
    %3 = vector.broadcast %cst : f32 to vector<2x16x16x1xf32>
    %4 = arith.select %2, %3, %1 : vector<2x16x16x1xi1>, vector<2x16x16x1xf32>
    %c0_4 = arith.constant 0 : index
    %c1 = arith.constant 1 : index
    %c1_5 = arith.constant 1 : index
    %c0_6 = arith.constant 0 : index
    %5 = vector.load %arg11[%c0_4, %c1, %c1_5, %c0_6] : memref<2x18x18x1xf32, #tpu.memory_space<vmem>>, vector<2x16x16x1xf32>
    tpu.vector_store %arg11[%c0_4, %c1, %c1_5, %c0_6], %4 {strides = array<i32>} : memref<2x18x18x1xf32, #tpu.memory_space<vmem>>, vector<2x16x16x1xf32>,
    %cst_7 = arith.constant 0.000000e+00 : f32
    %6 = vector.broadcast %cst_7 : f32 to vector<2x1x18x1xf32>
    %c0_8 = arith.constant 0 : index
    %c0_9 = arith.constant 0 : index
    %c0_10 = arith.constant 0 : index
    %c0_11 = arith.constant 0 : index
    %7 = vector.load %arg11[%c0_8, %c0_9, %c0_10, %c0_11] : memref<2x18x18x1xf32, #tpu.memory_space<vmem>>, vector<2x1x18x1xf32>
    tpu.vector_store %arg11[%c0_8, %c0_9, %c0_10, %c0_11], %6 {strides = array<i32>} : memref<2x18x18x1xf32, #tpu.memory_space<vmem>>, vector<2x1x18x1xf32>,
    %cst_12 = arith.constant 0.000000e+00 : f32
    %8 = vector.broadcast %cst_12 : f32 to vector<2x1x18x1xf32>
    %c0_13 = arith.constant 0 : index
    %c17 = arith.constant 17 : index
    %c0_14 = arith.constant 0 : index
    %c0_15 = arith.constant 0 : index
    %9 = vector.load %arg11[%c0_13, %c17, %c0_14, %c0_15] : memref<2x18x18x1xf32, #tpu.memory_space<vmem>>, vector<2x1x18x1xf32>
    tpu.vector_store %arg11[%c0_13, %c17, %c0_14, %c0_15], %8 {strides = array<i32>} : memref<2x18x18x1xf32, #tpu.memory_space<vmem>>, vector<2x1x18x1xf32>,
    %cst_16 = arith.constant 0.000000e+00 : f32
    %10 = vector.broadcast %cst_16 : f32 to vector<2x18x1x1xf32>
    %c0_17 = arith.constant 0 : index
    %c0_18 = arith.constant 0 : index
    %c0_19 = arith.constant 0 : index
    %c0_20 = arith.constant 0 : index
    %11 = vector.load %arg11[%c0_17, %c0_18, %c0_19, %c0_20] : memref<2x18x18x1xf32, #tpu.memory_space<vmem>>, vector<2x18x1x1xf32>
    tpu.vector_store %arg11[%c0_17, %c0_18, %c0_19, %c0_20], %10 {strides = array<i32>} : memref<2x18x18x1xf32, #tpu.memory_space<vmem>>, vector<2x18x1x1xf32>,
    %cst_21 = arith.constant 0.000000e+00 : f32
    %12 = vector.broadcast %cst_21 : f32 to vector<2x18x1x1xf32>
    %c0_22 = arith.constant 0 : index
    %c0_23 = arith.constant 0 : index
    %c17_24 = arith.constant 17 : index
    %c0_25 = arith.constant 0 : index
    %13 = vector.load %arg11[%c0_22, %c0_23, %c17_24, %c0_25] : memref<2x18x18x1xf32, #tpu.memory_space<vmem>>, vector<2x18x1x1xf32>
    tpu.vector_store %arg11[%c0_22, %c0_23, %c17_24, %c0_25], %12 {strides = array<i32>} : memref<2x18x18x1xf32, #tpu.memory_space<vmem>>, vector<2x18x1x1xf32>,
    %cst_26 = arith.constant 0.000000e+00 : f32
    %14 = vector.broadcast %cst_26 : f32 to vector<2x1x10x32xf32>
    %c0_27 = arith.constant 0 : index
    %c0_28 = arith.constant 0 : index
    %c0_29 = arith.constant 0 : index
    %c0_30 = arith.constant 0 : index
    %15 = vector.load %arg13[%c0_27, %c0_28, %c0_29, %c0_30] : memref<2x10x10x32xf32, #tpu.memory_space<vmem>>, vector<2x1x10x32xf32>
    tpu.vector_store %arg13[%c0_27, %c0_28, %c0_29, %c0_30], %14 {strides = array<i32>} : memref<2x10x10x32xf32, #tpu.memory_space<vmem>>, vector<2x1x10x32xf32>,
    %cst_31 = arith.constant 0.000000e+00 : f32
    %16 = vector.broadcast %cst_31 : f32 to vector<2x1x10x32xf32>
    %c0_32 = arith.constant 0 : index
    %c9 = arith.constant 9 : index
    %c0_33 = arith.constant 0 : index
    %c0_34 = arith.constant 0 : index
    %17 = vector.load %arg13[%c0_32, %c9, %c0_33, %c0_34] : memref<2x10x10x32xf32, #tpu.memory_space<vmem>>, vector<2x1x10x32xf32>
    tpu.vector_store %arg13[%c0_32, %c9, %c0_33, %c0_34], %16 {strides = array<i32>} : memref<2x10x10x32xf32, #tpu.memory_space<vmem>>, vector<2x1x10x32xf32>,
    %cst_35 = arith.constant 0.000000e+00 : f32
    %18 = vector.broadcast %cst_35 : f32 to vector<2x10x1x32xf32>
    %c0_36 = arith.constant 0 : index
    %c0_37 = arith.constant 0 : index
    %c0_38 = arith.constant 0 : index
    %c0_39 = arith.constant 0 : index
    %19 = vector.load %arg13[%c0_36, %c0_37, %c0_38, %c0_39] : memref<2x10x10x32xf32, #tpu.memory_space<vmem>>, vector<2x10x1x32xf32>
    tpu.vector_store %arg13[%c0_36, %c0_37, %c0_38, %c0_39], %18 {strides = array<i32>} : memref<2x10x10x32xf32, #tpu.memory_space<vmem>>, vector<2x10x1x32xf32>,
    %cst_40 = arith.constant 0.000000e+00 : f32
    %20 = vector.broadcast %cst_40 : f32 to vector<2x10x1x32xf32>
    %c0_41 = arith.constant 0 : index
    %c0_42 = arith.constant 0 : index
    %c9_43 = arith.constant 9 : index
    %c0_44 = arith.constant 0 : index
    %21 = vector.load %arg13[%c0_41, %c0_42, %c9_43, %c0_44] : memref<2x10x10x32xf32, #tpu.memory_space<vmem>>, vector<2x10x1x32xf32>
    tpu.vector_store %arg13[%c0_41, %c0_42, %c9_43, %c0_44], %20 {strides = array<i32>} : memref<2x10x10x32xf32, #tpu.memory_space<vmem>>, vector<2x10x1x32xf32>,
    %cst_45 = arith.constant 0.000000e+00 : f32
    %22 = vector.broadcast %cst_45 : f32 to vector<2x4x16x32xf32>
    %c0_46 = arith.constant 0 : index
    %c0_47 = arith.constant 0 : index
    %c0_48 = arith.constant 0 : index
    %c0_49 = arith.constant 0 : index
    %23 = vector.load %arg11[%c0_46, %c0_47, %c0_48, %c0_49] : memref<2x18x18x1xf32, #tpu.memory_space<vmem>>, vector<2x4x16x1xf32>
    %c0_50 = arith.constant 0 : index
    %c0_51 = arith.constant 0 : index
    %c0_52 = arith.constant 0 : index
    %c0_53 = arith.constant 0 : index
    %24 = vector.load %arg2[%c0_50, %c0_51, %c0_52, %c0_53] : memref<1x3x3x32xf32, #tpu.memory_space<vmem>>, vector<1x1x1x32xf32>
    %25 = vector.shape_cast %24 : vector<1x1x1x32xf32> to vector<32xf32>
    %26 = vector.shape_cast %25 : vector<32xf32> to vector<1x1x1x32xf32>
    %27 = vector.broadcast %23 : vector<2x4x16x1xf32> to vector<2x4x16x32xf32>
    %28 = vector.broadcast %26 : vector<1x1x1x32xf32> to vector<2x4x16x32xf32>
    %29 = arith.mulf %27, %28 : vector<2x4x16x32xf32>
    %30 = arith.addf %22, %29 : vector<2x4x16x32xf32>
    %c0_54 = arith.constant 0 : index
    %c0_55 = arith.constant 0 : index
    %c1_56 = arith.constant 1 : index
    %c0_57 = arith.constant 0 : index
    %31 = vector.load %arg11[%c0_54, %c0_55, %c1_56, %c0_57] : memref<2x18x18x1xf32, #tpu.memory_space<vmem>>, vector<2x4x16x1xf32>
    %c0_58 = arith.constant 0 : index
    %c0_59 = arith.constant 0 : index
    %c1_60 = arith.constant 1 : index
    %c0_61 = arith.constant 0 : index
    %32 = vector.load %arg2[%c0_58, %c0_59, %c1_60, %c0_61] : memref<1x3x3x32xf32, #tpu.memory_space<vmem>>, vector<1x1x1x32xf32>
    %33 = vector.shape_cast %32 : vector<1x1x1x32xf32> to vector<32xf32>
    %34 = vector.shape_cast %33 : vector<32xf32> to vector<1x1x1x32xf32>
    %35 = vector.broadcast %31 : vector<2x4x16x1xf32> to vector<2x4x16x32xf32>
    %36 = vector.broadcast %34 : vector<1x1x1x32xf32> to vector<2x4x16x32xf32>
    %37 = arith.mulf %35, %36 : vector<2x4x16x32xf32>
    %38 = arith.addf %30, %37 : vector<2x4x16x32xf32>
    %c0_62 = arith.constant 0 : index
    %c0_63 = arith.constant 0 : index
    %c2 = arith.constant 2 : index
    %c0_64 = arith.constant 0 : index
    %39 = vector.load %arg11[%c0_62, %c0_63, %c2, %c0_64] : memref<2x18x18x1xf32, #tpu.memory_space<vmem>>, vector<2x4x16x1xf32>
    %c0_65 = arith.constant 0 : index
    %c0_66 = arith.constant 0 : index
    %c2_67 = arith.constant 2 : index
    %c0_68 = arith.constant 0 : index
    %40 = vector.load %arg2[%c0_65, %c0_66, %c2_67, %c0_68] : memref<1x3x3x32xf32, #tpu.memory_space<vmem>>, vector<1x1x1x32xf32>
    %41 = vector.shape_cast %40 : vector<1x1x1x32xf32> to vector<32xf32>
    %42 = vector.shape_cast %41 : vector<32xf32> to vector<1x1x1x32xf32>
    %43 = vector.broadcast %39 : vector<2x4x16x1xf32> to vector<2x4x16x32xf32>
    %44 = vector.broadcast %42 : vector<1x1x1x32xf32> to vector<2x4x16x32xf32>
    %45 = arith.mulf %43, %44 : vector<2x4x16x32xf32>
    %46 = arith.addf %38, %45 : vector<2x4x16x32xf32>
    %c0_69 = arith.constant 0 : index
    %c1_70 = arith.constant 1 : index
    %c0_71 = arith.constant 0 : index
    %c0_72 = arith.constant 0 : index
    %47 = vector.load %arg11[%c0_69, %c1_70, %c0_71, %c0_72] : memref<2x18x18x1xf32, #tpu.memory_space<vmem>>, vector<2x4x16x1xf32>
    %c0_73 = arith.constant 0 : index
    %c1_74 = arith.constant 1 : index
    %c0_75 = arith.constant 0 : index
    %c0_76 = arith.constant 0 : index
    %48 = vector.load %arg2[%c0_73, %c1_74, %c0_75, %c0_76] : memref<1x3x3x32xf32, #tpu.memory_space<vmem>>, vector<1x1x1x32xf32>
    %49 = vector.shape_cast %48 : vector<1x1x1x32xf32> to vector<32xf32>
    %50 = vector.shape_cast %49 : vector<32xf32> to vector<1x1x1x32xf32>
    %51 = vector.broadcast %47 : vector<2x4x16x1xf32> to vector<2x4x16x32xf32>
    %52 = vector.broadcast %50 : vector<1x1x1x32xf32> to vector<2x4x16x32xf32>
    %53 = arith.mulf %51, %52 : vector<2x4x16x32xf32>
    %54 = arith.addf %46, %53 : vector<2x4x16x32xf32>
    %c0_77 = arith.constant 0 : index
    %c1_78 = arith.constant 1 : index
    %c1_79 = arith.constant 1 : index
    %c0_80 = arith.constant 0 : index
    %55 = vector.load %arg11[%c0_77, %c1_78, %c1_79, %c0_80] : memref<2x18x18x1xf32, #tpu.memory_space<vmem>>, vector<2x4x16x1xf32>
    %c0_81 = arith.constant 0 : index
    %c1_82 = arith.constant 1 : index
    %c1_83 = arith.constant 1 : index
    %c0_84 = arith.constant 0 : index
    %56 = vector.load %arg2[%c0_81, %c1_82, %c1_83, %c0_84] : memref<1x3x3x32xf32, #tpu.memory_space<vmem>>, vector<1x1x1x32xf32>
    %57 = vector.shape_cast %56 : vector<1x1x1x32xf32> to vector<32xf32>
    %58 = vector.shape_cast %57 : vector<32xf32> to vector<1x1x1x32xf32>
    %59 = vector.broadcast %55 : vector<2x4x16x1xf32> to vector<2x4x16x32xf32>
    %60 = vector.broadcast %58 : vector<1x1x1x32xf32> to vector<2x4x16x32xf32>
    %61 = arith.mulf %59, %60 : vector<2x4x16x32xf32>
    %62 = arith.addf %54, %61 : vector<2x4x16x32xf32>
    %c0_85 = arith.constant 0 : index
    %c1_86 = arith.constant 1 : index
    %c2_87 = arith.constant 2 : index
    %c0_88 = arith.constant 0 : index
    %63 = vector.load %arg11[%c0_85, %c1_86, %c2_87, %c0_88] : memref<2x18x18x1xf32, #tpu.memory_space<vmem>>, vector<2x4x16x1xf32>
    %c0_89 = arith.constant 0 : index
    %c1_90 = arith.constant 1 : index
    %c2_91 = arith.constant 2 : index
    %c0_92 = arith.constant 0 : index
    %64 = vector.load %arg2[%c0_89, %c1_90, %c2_91, %c0_92] : memref<1x3x3x32xf32, #tpu.memory_space<vmem>>, vector<1x1x1x32xf32>
    %65 = vector.shape_cast %64 : vector<1x1x1x32xf32> to vector<32xf32>
    %66 = vector.shape_cast %65 : vector<32xf32> to vector<1x1x1x32xf32>
    %67 = vector.broadcast %63 : vector<2x4x16x1xf32> to vector<2x4x16x32xf32>
    %68 = vector.broadcast %66 : vector<1x1x1x32xf32> to vector<2x4x16x32xf32>
    %69 = arith.mulf %67, %68 : vector<2x4x16x32xf32>
    %70 = arith.addf %62, %69 : vector<2x4x16x32xf32>
    %c0_93 = arith.constant 0 : index
    %c2_94 = arith.constant 2 : index
    %c0_95 = arith.constant 0 : index
    %c0_96 = arith.constant 0 : index
    %71 = vector.load %arg11[%c0_93, %c2_94, %c0_95, %c0_96] : memref<2x18x18x1xf32, #tpu.memory_space<vmem>>, vector<2x4x16x1xf32>
    %c0_97 = arith.constant 0 : index
    %c2_98 = arith.constant 2 : index
    %c0_99 = arith.constant 0 : index
    %c0_100 = arith.constant 0 : index
    %72 = vector.load %arg2[%c0_97, %c2_98, %c0_99, %c0_100] : memref<1x3x3x32xf32, #tpu.memory_space<vmem>>, vector<1x1x1x32xf32>
    %73 = vector.shape_cast %72 : vector<1x1x1x32xf32> to vector<32xf32>
    %74 = vector.shape_cast %73 : vector<32xf32> to vector<1x1x1x32xf32>
    %75 = vector.broadcast %71 : vector<2x4x16x1xf32> to vector<2x4x16x32xf32>
    %76 = vector.broadcast %74 : vector<1x1x1x32xf32> to vector<2x4x16x32xf32>
    %77 = arith.mulf %75, %76 : vector<2x4x16x32xf32>
    %78 = arith.addf %70, %77 : vector<2x4x16x32xf32>
    %c0_101 = arith.constant 0 : index
    %c2_102 = arith.constant 2 : index
    %c1_103 = arith.constant 1 : index
    %c0_104 = arith.constant 0 : index
    %79 = vector.load %arg11[%c0_101, %c2_102, %c1_103, %c0_104] : memref<2x18x18x1xf32, #tpu.memory_space<vmem>>, vector<2x4x16x1xf32>
    %c0_105 = arith.constant 0 : index
    %c2_106 = arith.constant 2 : index
    %c1_107 = arith.constant 1 : index
    %c0_108 = arith.constant 0 : index
    %80 = vector.load %arg2[%c0_105, %c2_106, %c1_107, %c0_108] : memref<1x3x3x32xf32, #tpu.memory_space<vmem>>, vector<1x1x1x32xf32>
    %81 = vector.shape_cast %80 : vector<1x1x1x32xf32> to vector<32xf32>
    %82 = vector.shape_cast %81 : vector<32xf32> to vector<1x1x1x32xf32>
    %83 = vector.broadcast %79 : vector<2x4x16x1xf32> to vector<2x4x16x32xf32>
    %84 = vector.broadcast %82 : vector<1x1x1x32xf32> to vector<2x4x16x32xf32>
    %85 = arith.mulf %83, %84 : vector<2x4x16x32xf32>
    %86 = arith.addf %78, %85 : vector<2x4x16x32xf32>
    %c0_109 = arith.constant 0 : index
    %c2_110 = arith.constant 2 : index
    %c2_111 = arith.constant 2 : index
    %c0_112 = arith.constant 0 : index
    %87 = vector.load %arg11[%c0_109, %c2_110, %c2_111, %c0_112] : memref<2x18x18x1xf32, #tpu.memory_space<vmem>>, vector<2x4x16x1xf32>
    %c0_113 = arith.constant 0 : index
    %c2_114 = arith.constant 2 : index
    %c2_115 = arith.constant 2 : index
    %c0_116 = arith.constant 0 : index
    %88 = vector.load %arg2[%c0_113, %c2_114, %c2_115, %c0_116] : memref<1x3x3x32xf32, #tpu.memory_space<vmem>>, vector<1x1x1x32xf32>
    %89 = vector.shape_cast %88 : vector<1x1x1x32xf32> to vector<32xf32>
    %90 = vector.shape_cast %89 : vector<32xf32> to vector<1x1x1x32xf32>
    %91 = vector.broadcast %87 : vector<2x4x16x1xf32> to vector<2x4x16x32xf32>
    %92 = vector.broadcast %90 : vector<1x1x1x32xf32> to vector<2x4x16x32xf32>
    %93 = arith.mulf %91, %92 : vector<2x4x16x32xf32>
    %94 = arith.addf %86, %93 : vector<2x4x16x32xf32>
    %c0_117 = arith.constant 0 : index
    %c0_118 = arith.constant 0 : index
    %c0_119 = arith.constant 0 : index
    %c0_120 = arith.constant 0 : index
    %95 = vector.load %arg12[%c0_117, %c0_118, %c0_119, %c0_120] : memref<2x16x16x32xf32, #tpu.memory_space<vmem>>, vector<2x4x16x32xf32>
    tpu.vector_store %arg12[%c0_117, %c0_118, %c0_119, %c0_120], %94 {strides = array<i32>} : memref<2x16x16x32xf32, #tpu.memory_space<vmem>>, vector<2x4x16x32xf32>,
    %cst_121 = arith.constant 0.000000e+00 : f32
    %96 = vector.broadcast %cst_121 : f32 to vector<2x4x16x32xf32>
    %c0_122 = arith.constant 0 : index
    %c4 = arith.constant 4 : index
    %c0_123 = arith.constant 0 : index
    %c0_124 = arith.constant 0 : index
    %97 = vector.load %arg11[%c0_122, %c4, %c0_123, %c0_124] : memref<2x18x18x1xf32, #tpu.memory_space<vmem>>, vector<2x4x16x1xf32>
    %c0_125 = arith.constant 0 : index
    %c0_126 = arith.constant 0 : index
    %c0_127 = arith.constant 0 : index
    %c0_128 = arith.constant 0 : index
    %98 = vector.load %arg2[%c0_125, %c0_126, %c0_127, %c0_128] : memref<1x3x3x32xf32, #tpu.memory_space<vmem>>, vector<1x1x1x32xf32>
    %99 = vector.shape_cast %98 : vector<1x1x1x32xf32> to vector<32xf32>
    %100 = vector.shape_cast %99 : vector<32xf32> to vector<1x1x1x32xf32>
    %101 = vector.broadcast %97 : vector<2x4x16x1xf32> to vector<2x4x16x32xf32>
    %102 = vector.broadcast %100 : vector<1x1x1x32xf32> to vector<2x4x16x32xf32>
    %103 = arith.mulf %101, %102 : vector<2x4x16x32xf32>
    %104 = arith.addf %96, %103 : vector<2x4x16x32xf32>
    %c0_129 = arith.constant 0 : index
    %c4_130 = arith.constant 4 : index
    %c1_131 = arith.constant 1 : index
    %c0_132 = arith.constant 0 : index
    %105 = vector.load %arg11[%c0_129, %c4_130, %c1_131, %c0_132] : memref<2x18x18x1xf32, #tpu.memory_space<vmem>>, vector<2x4x16x1xf32>
    %c0_133 = arith.constant 0 : index
    %c0_134 = arith.constant 0 : index
    %c1_135 = arith.constant 1 : index
    %c0_136 = arith.constant 0 : index
    %106 = vector.load %arg2[%c0_133, %c0_134, %c1_135, %c0_136] : memref<1x3x3x32xf32, #tpu.memory_space<vmem>>, vector<1x1x1x32xf32>
    %107 = vector.shape_cast %106 : vector<1x1x1x32xf32> to vector<32xf32>
    %108 = vector.shape_cast %107 : vector<32xf32> to vector<1x1x1x32xf32>
    %109 = vector.broadcast %105 : vector<2x4x16x1xf32> to vector<2x4x16x32xf32>
    %110 = vector.broadcast %108 : vector<1x1x1x32xf32> to vector<2x4x16x32xf32>
    %111 = arith.mulf %109, %110 : vector<2x4x16x32xf32>
    %112 = arith.addf %104, %111 : vector<2x4x16x32xf32>
    %c0_137 = arith.constant 0 : index
    %c4_138 = arith.constant 4 : index
    %c2_139 = arith.constant 2 : index
    %c0_140 = arith.constant 0 : index
    %113 = vector.load %arg11[%c0_137, %c4_138, %c2_139, %c0_140] : memref<2x18x18x1xf32, #tpu.memory_space<vmem>>, vector<2x4x16x1xf32>
    %c0_141 = arith.constant 0 : index
    %c0_142 = arith.constant 0 : index
    %c2_143 = arith.constant 2 : index
    %c0_144 = arith.constant 0 : index
    %114 = vector.load %arg2[%c0_141, %c0_142, %c2_143, %c0_144] : memref<1x3x3x32xf32, #tpu.memory_space<vmem>>, vector<1x1x1x32xf32>
    %115 = vector.shape_cast %114 : vector<1x1x1x32xf32> to vector<32xf32>
    %116 = vector.shape_cast %115 : vector<32xf32> to vector<1x1x1x32xf32>
    %117 = vector.broadcast %113 : vector<2x4x16x1xf32> to vector<2x4x16x32xf32>
    %118 = vector.broadcast %116 : vector<1x1x1x32xf32> to vector<2x4x16x32xf32>
    %119 = arith.mulf %117, %118 : vector<2x4x16x32xf32>
    %120 = arith.addf %112, %119 : vector<2x4x16x32xf32>
    %c0_145 = arith.constant 0 : index
    %c5 = arith.constant 5 : index
    %c0_146 = arith.constant 0 : index
    %c0_147 = arith.constant 0 : index
    %121 = vector.load %arg11[%c0_145, %c5, %c0_146, %c0_147] : memref<2x18x18x1xf32, #tpu.memory_space<vmem>>, vector<2x4x16x1xf32>
    %c0_148 = arith.constant 0 : index
    %c1_149 = arith.constant 1 : index
    %c0_150 = arith.constant 0 : index
    %c0_151 = arith.constant 0 : index
    %122 = vector.load %arg2[%c0_148, %c1_149, %c0_150, %c0_151] : memref<1x3x3x32xf32, #tpu.memory_space<vmem>>, vector<1x1x1x32xf32>
    %123 = vector.shape_cast %122 : vector<1x1x1x32xf32> to vector<32xf32>
    %124 = vector.shape_cast %123 : vector<32xf32> to vector<1x1x1x32xf32>
    %125 = vector.broadcast %121 : vector<2x4x16x1xf32> to vector<2x4x16x32xf32>
    %126 = vector.broadcast %124 : vector<1x1x1x32xf32> to vector<2x4x16x32xf32>
    %127 = arith.mulf %125, %126 : vector<2x4x16x32xf32>
    %128 = arith.addf %120, %127 : vector<2x4x16x32xf32>
    %c0_152 = arith.constant 0 : index
    %c5_153 = arith.constant 5 : index
    %c1_154 = arith.constant 1 : index
    %c0_155 = arith.constant 0 : index
    %129 = vector.load %arg11[%c0_152, %c5_153, %c1_154, %c0_155] : memref<2x18x18x1xf32, #tpu.memory_space<vmem>>, vector<2x4x16x1xf32>
    %c0_156 = arith.constant 0 : index
    %c1_157 = arith.constant 1 : index
    %c1_158 = arith.constant 1 : index
    %c0_159 = arith.constant 0 : index
    %130 = vector.load %arg2[%c0_156, %c1_157, %c1_158, %c0_159] : memref<1x3x3x32xf32, #tpu.memory_space<vmem>>, vector<1x1x1x32xf32>
    %131 = vector.shape_cast %130 : vector<1x1x1x32xf32> to vector<32xf32>
    %132 = vector.shape_cast %131 : vector<32xf32> to vector<1x1x1x32xf32>
    %133 = vector.broadcast %129 : vector<2x4x16x1xf32> to vector<2x4x16x32xf32>
    %134 = vector.broadcast %132 : vector<1x1x1x32xf32> to vector<2x4x16x32xf32>
    %135 = arith.mulf %133, %134 : vector<2x4x16x32xf32>
    %136 = arith.addf %128, %135 : vector<2x4x16x32xf32>
    %c0_160 = arith.constant 0 : index
    %c5_161 = arith.constant 5 : index
    %c2_162 = arith.constant 2 : index
    %c0_163 = arith.constant 0 : index
    %137 = vector.load %arg11[%c0_160, %c5_161, %c2_162, %c0_163] : memref<2x18x18x1xf32, #tpu.memory_space<vmem>>, vector<2x4x16x1xf32>
    %c0_164 = arith.constant 0 : index
    %c1_165 = arith.constant 1 : index
    %c2_166 = arith.constant 2 : index
    %c0_167 = arith.constant 0 : index
    %138 = vector.load %arg2[%c0_164, %c1_165, %c2_166, %c0_167] : memref<1x3x3x32xf32, #tpu.memory_space<vmem>>, vector<1x1x1x32xf32>
    %139 = vector.shape_cast %138 : vector<1x1x1x32xf32> to vector<32xf32>
    %140 = vector.shape_cast %139 : vector<32xf32> to vector<1x1x1x32xf32>
    %141 = vector.broadcast %137 : vector<2x4x16x1xf32> to vector<2x4x16x32xf32>
    %142 = vector.broadcast %140 : vector<1x1x1x32xf32> to vector<2x4x16x32xf32>
    %143 = arith.mulf %141, %142 : vector<2x4x16x32xf32>
    %144 = arith.addf %136, %143 : vector<2x4x16x32xf32>
    %c0_168 = arith.constant 0 : index
    %c6 = arith.constant 6 : index
    %c0_169 = arith.constant 0 : index
    %c0_170 = arith.constant 0 : index
    %145 = vector.load %arg11[%c0_168, %c6, %c0_169, %c0_170] : memref<2x18x18x1xf32, #tpu.memory_space<vmem>>, vector<2x4x16x1xf32>
    %c0_171 = arith.constant 0 : index
    %c2_172 = arith.constant 2 : index
    %c0_173 = arith.constant 0 : index
    %c0_174 = arith.constant 0 : index
    %146 = vector.load %arg2[%c0_171, %c2_172, %c0_173, %c0_174] : memref<1x3x3x32xf32, #tpu.memory_space<vmem>>, vector<1x1x1x32xf32>
    %147 = vector.shape_cast %146 : vector<1x1x1x32xf32> to vector<32xf32>
    %148 = vector.shape_cast %147 : vector<32xf32> to vector<1x1x1x32xf32>
    %149 = vector.broadcast %145 : vector<2x4x16x1xf32> to vector<2x4x16x32xf32>
    %150 = vector.broadcast %148 : vector<1x1x1x32xf32> to vector<2x4x16x32xf32>
    %151 = arith.mulf %149, %150 : vector<2x4x16x32xf32>
    %152 = arith.addf %144, %151 : vector<2x4x16x32xf32>
    %c0_175 = arith.constant 0 : index
    %c6_176 = arith.constant 6 : index
    %c1_177 = arith.constant 1 : index
    %c0_178 = arith.constant 0 : index
    %153 = vector.load %arg11[%c0_175, %c6_176, %c1_177, %c0_178] : memref<2x18x18x1xf32, #tpu.memory_space<vmem>>, vector<2x4x16x1xf32>
    %c0_179 = arith.constant 0 : index
    %c2_180 = arith.constant 2 : index
    %c1_181 = arith.constant 1 : index
    %c0_182 = arith.constant 0 : index
    %154 = vector.load %arg2[%c0_179, %c2_180, %c1_181, %c0_182] : memref<1x3x3x32xf32, #tpu.memory_space<vmem>>, vector<1x1x1x32xf32>
    %155 = vector.shape_cast %154 : vector<1x1x1x32xf32> to vector<32xf32>
    %156 = vector.shape_cast %155 : vector<32xf32> to vector<1x1x1x32xf32>
    %157 = vector.broadcast %153 : vector<2x4x16x1xf32> to vector<2x4x16x32xf32>
    %158 = vector.broadcast %156 : vector<1x1x1x32xf32> to vector<2x4x16x32xf32>
    %159 = arith.mulf %157, %158 : vector<2x4x16x32xf32>
    %160 = arith.addf %152, %159 : vector<2x4x16x32xf32>
    %c0_183 = arith.constant 0 : index
    %c6_184 = arith.constant 6 : index
    %c2_185 = arith.constant 2 : index
    %c0_186 = arith.constant 0 : index
    %161 = vector.load %arg11[%c0_183, %c6_184, %c2_185, %c0_186] : memref<2x18x18x1xf32, #tpu.memory_space<vmem>>, vector<2x4x16x1xf32>
    %c0_187 = arith.constant 0 : index
    %c2_188 = arith.constant 2 : index
    %c2_189 = arith.constant 2 : index
    %c0_190 = arith.constant 0 : index
    %162 = vector.load %arg2[%c0_187, %c2_188, %c2_189, %c0_190] : memref<1x3x3x32xf32, #tpu.memory_space<vmem>>, vector<1x1x1x32xf32>
    %163 = vector.shape_cast %162 : vector<1x1x1x32xf32> to vector<32xf32>
    %164 = vector.shape_cast %163 : vector<32xf32> to vector<1x1x1x32xf32>
    %165 = vector.broadcast %161 : vector<2x4x16x1xf32> to vector<2x4x16x32xf32>
    %166 = vector.broadcast %164 : vector<1x1x1x32xf32> to vector<2x4x16x32xf32>
    %167 = arith.mulf %165, %166 : vector<2x4x16x32xf32>
    %168 = arith.addf %160, %167 : vector<2x4x16x32xf32>
    %c0_191 = arith.constant 0 : index
    %c4_192 = arith.constant 4 : index
    %c0_193 = arith.constant 0 : index
    %c0_194 = arith.constant 0 : index
    %169 = vector.load %arg12[%c0_191, %c4_192, %c0_193, %c0_194] : memref<2x16x16x32xf32, #tpu.memory_space<vmem>>, vector<2x4x16x32xf32>
    tpu.vector_store %arg12[%c0_191, %c4_192, %c0_193, %c0_194], %168 {strides = array<i32>} : memref<2x16x16x32xf32, #tpu.memory_space<vmem>>, vector<2x4x16x32xf32>,
    %cst_195 = arith.constant 0.000000e+00 : f32
    %170 = vector.broadcast %cst_195 : f32 to vector<2x4x16x32xf32>
    %c0_196 = arith.constant 0 : index
    %c8 = arith.constant 8 : index
    %c0_197 = arith.constant 0 : index
    %c0_198 = arith.constant 0 : index
    %171 = vector.load %arg11[%c0_196, %c8, %c0_197, %c0_198] : memref<2x18x18x1xf32, #tpu.memory_space<vmem>>, vector<2x4x16x1xf32>
    %c0_199 = arith.constant 0 : index
    %c0_200 = arith.constant 0 : index
    %c0_201 = arith.constant 0 : index
    %c0_202 = arith.constant 0 : index
    %172 = vector.load %arg2[%c0_199, %c0_200, %c0_201, %c0_202] : memref<1x3x3x32xf32, #tpu.memory_space<vmem>>, vector<1x1x1x32xf32>
    %173 = vector.shape_cast %172 : vector<1x1x1x32xf32> to vector<32xf32>
    %174 = vector.shape_cast %173 : vector<32xf32> to vector<1x1x1x32xf32>
    %175 = vector.broadcast %171 : vector<2x4x16x1xf32> to vector<2x4x16x32xf32>
    %176 = vector.broadcast %174 : vector<1x1x1x32xf32> to vector<2x4x16x32xf32>
    %177 = arith.mulf %175, %176 : vector<2x4x16x32xf32>
    %178 = arith.addf %170, %177 : vector<2x4x16x32xf32>
    %c0_203 = arith.constant 0 : index
    %c8_204 = arith.constant 8 : index
    %c1_205 = arith.constant 1 : index
    %c0_206 = arith.constant 0 : index
    %179 = vector.load %arg11[%c0_203, %c8_204, %c1_205, %c0_206] : memref<2x18x18x1xf32, #tpu.memory_space<vmem>>, vector<2x4x16x1xf32>
    %c0_207 = arith.constant 0 : index
    %c0_208 = arith.constant 0 : index
    %c1_209 = arith.constant 1 : index
    %c0_210 = arith.constant 0 : index
    %180 = vector.load %arg2[%c0_207, %c0_208, %c1_209, %c0_210] : memref<1x3x3x32xf32, #tpu.memory_space<vmem>>, vector<1x1x1x32xf32>
    %181 = vector.shape_cast %180 : vector<1x1x1x32xf32> to vector<32xf32>
    %182 = vector.shape_cast %181 : vector<32xf32> to vector<1x1x1x32xf32>
    %183 = vector.broadcast %179 : vector<2x4x16x1xf32> to vector<2x4x16x32xf32>
    %184 = vector.broadcast %182 : vector<1x1x1x32xf32> to vector<2x4x16x32xf32>
    %185 = arith.mulf %183, %184 : vector<2x4x16x32xf32>
    %186 = arith.addf %178, %185 : vector<2x4x16x32xf32>
    %c0_211 = arith.constant 0 : index
    %c8_212 = arith.constant 8 : index
    %c2_213 = arith.constant 2 : index
    %c0_214 = arith.constant 0 : index
    %187 = vector.load %arg11[%c0_211, %c8_212, %c2_213, %c0_214] : memref<2x18x18x1xf32, #tpu.memory_space<vmem>>, vector<2x4x16x1xf32>
    %c0_215 = arith.constant 0 : index
    %c0_216 = arith.constant 0 : index
    %c2_217 = arith.constant 2 : index
    %c0_218 = arith.constant 0 : index
    %188 = vector.load %arg2[%c0_215, %c0_216, %c2_217, %c0_218] : memref<1x3x3x32xf32, #tpu.memory_space<vmem>>, vector<1x1x1x32xf32>
    %189 = vector.shape_cast %188 : vector<1x1x1x32xf32> to vector<32xf32>
    %190 = vector.shape_cast %189 : vector<32xf32> to vector<1x1x1x32xf32>
    %191 = vector.broadcast %187 : vector<2x4x16x1xf32> to vector<2x4x16x32xf32>
    %192 = vector.broadcast %190 : vector<1x1x1x32xf32> to vector<2x4x16x32xf32>
    %193 = arith.mulf %191, %192 : vector<2x4x16x32xf32>
    %194 = arith.addf %186, %193 : vector<2x4x16x32xf32>
    %c0_219 = arith.constant 0 : index
    %c9_220 = arith.constant 9 : index
    %c0_221 = arith.constant 0 : index
    %c0_222 = arith.constant 0 : index
    %195 = vector.load %arg11[%c0_219, %c9_220, %c0_221, %c0_222] : memref<2x18x18x1xf32, #tpu.memory_space<vmem>>, vector<2x4x16x1xf32>
    %c0_223 = arith.constant 0 : index
    %c1_224 = arith.constant 1 : index
    %c0_225 = arith.constant 0 : index
    %c0_226 = arith.constant 0 : index
    %196 = vector.load %arg2[%c0_223, %c1_224, %c0_225, %c0_226] : memref<1x3x3x32xf32, #tpu.memory_space<vmem>>, vector<1x1x1x32xf32>
    %197 = vector.shape_cast %196 : vector<1x1x1x32xf32> to vector<32xf32>
    %198 = vector.shape_cast %197 : vector<32xf32> to vector<1x1x1x32xf32>
    %199 = vector.broadcast %195 : vector<2x4x16x1xf32> to vector<2x4x16x32xf32>
    %200 = vector.broadcast %198 : vector<1x1x1x32xf32> to vector<2x4x16x32xf32>
    %201 = arith.mulf %199, %200 : vector<2x4x16x32xf32>
    %202 = arith.addf %194, %201 : vector<2x4x16x32xf32>
    %c0_227 = arith.constant 0 : index
    %c9_228 = arith.constant 9 : index
    %c1_229 = arith.constant 1 : index
    %c0_230 = arith.constant 0 : index
    %203 = vector.load %arg11[%c0_227, %c9_228, %c1_229, %c0_230] : memref<2x18x18x1xf32, #tpu.memory_space<vmem>>, vector<2x4x16x1xf32>
    %c0_231 = arith.constant 0 : index
    %c1_232 = arith.constant 1 : index
    %c1_233 = arith.constant 1 : index
    %c0_234 = arith.constant 0 : index
    %204 = vector.load %arg2[%c0_231, %c1_232, %c1_233, %c0_234] : memref<1x3x3x32xf32, #tpu.memory_space<vmem>>, vector<1x1x1x32xf32>
    %205 = vector.shape_cast %204 : vector<1x1x1x32xf32> to vector<32xf32>
    %206 = vector.shape_cast %205 : vector<32xf32> to vector<1x1x1x32xf32>
    %207 = vector.broadcast %203 : vector<2x4x16x1xf32> to vector<2x4x16x32xf32>
    %208 = vector.broadcast %206 : vector<1x1x1x32xf32> to vector<2x4x16x32xf32>
    %209 = arith.mulf %207, %208 : vector<2x4x16x32xf32>
    %210 = arith.addf %202, %209 : vector<2x4x16x32xf32>
    %c0_235 = arith.constant 0 : index
    %c9_236 = arith.constant 9 : index
    %c2_237 = arith.constant 2 : index
    %c0_238 = arith.constant 0 : index
    %211 = vector.load %arg11[%c0_235, %c9_236, %c2_237, %c0_238] : memref<2x18x18x1xf32, #tpu.memory_space<vmem>>, vector<2x4x16x1xf32>
    %c0_239 = arith.constant 0 : index
    %c1_240 = arith.constant 1 : index
    %c2_241 = arith.constant 2 : index
    %c0_242 = arith.constant 0 : index
    %212 = vector.load %arg2[%c0_239, %c1_240, %c2_241, %c0_242] : memref<1x3x3x32xf32, #tpu.memory_space<vmem>>, vector<1x1x1x32xf32>
    %213 = vector.shape_cast %212 : vector<1x1x1x32xf32> to vector<32xf32>
    %214 = vector.shape_cast %213 : vector<32xf32> to vector<1x1x1x32xf32>
    %215 = vector.broadcast %211 : vector<2x4x16x1xf32> to vector<2x4x16x32xf32>
    %216 = vector.broadcast %214 : vector<1x1x1x32xf32> to vector<2x4x16x32xf32>
    %217 = arith.mulf %215, %216 : vector<2x4x16x32xf32>
    %218 = arith.addf %210, %217 : vector<2x4x16x32xf32>
    %c0_243 = arith.constant 0 : index
    %c10 = arith.constant 10 : index
    %c0_244 = arith.constant 0 : index
    %c0_245 = arith.constant 0 : index
    %219 = vector.load %arg11[%c0_243, %c10, %c0_244, %c0_245] : memref<2x18x18x1xf32, #tpu.memory_space<vmem>>, vector<2x4x16x1xf32>
    %c0_246 = arith.constant 0 : index
    %c2_247 = arith.constant 2 : index
    %c0_248 = arith.constant 0 : index
    %c0_249 = arith.constant 0 : index
    %220 = vector.load %arg2[%c0_246, %c2_247, %c0_248, %c0_249] : memref<1x3x3x32xf32, #tpu.memory_space<vmem>>, vector<1x1x1x32xf32>
    %221 = vector.shape_cast %220 : vector<1x1x1x32xf32> to vector<32xf32>
    %222 = vector.shape_cast %221 : vector<32xf32> to vector<1x1x1x32xf32>
    %223 = vector.broadcast %219 : vector<2x4x16x1xf32> to vector<2x4x16x32xf32>
    %224 = vector.broadcast %222 : vector<1x1x1x32xf32> to vector<2x4x16x32xf32>
    %225 = arith.mulf %223, %224 : vector<2x4x16x32xf32>
    %226 = arith.addf %218, %225 : vector<2x4x16x32xf32>
    %c0_250 = arith.constant 0 : index
    %c10_251 = arith.constant 10 : index
    %c1_252 = arith.constant 1 : index
    %c0_253 = arith.constant 0 : index
    %227 = vector.load %arg11[%c0_250, %c10_251, %c1_252, %c0_253] : memref<2x18x18x1xf32, #tpu.memory_space<vmem>>, vector<2x4x16x1xf32>
    %c0_254 = arith.constant 0 : index
    %c2_255 = arith.constant 2 : index
    %c1_256 = arith.constant 1 : index
    %c0_257 = arith.constant 0 : index
    %228 = vector.load %arg2[%c0_254, %c2_255, %c1_256, %c0_257] : memref<1x3x3x32xf32, #tpu.memory_space<vmem>>, vector<1x1x1x32xf32>
    %229 = vector.shape_cast %228 : vector<1x1x1x32xf32> to vector<32xf32>
    %230 = vector.shape_cast %229 : vector<32xf32> to vector<1x1x1x32xf32>
    %231 = vector.broadcast %227 : vector<2x4x16x1xf32> to vector<2x4x16x32xf32>
    %232 = vector.broadcast %230 : vector<1x1x1x32xf32> to vector<2x4x16x32xf32>
    %233 = arith.mulf %231, %232 : vector<2x4x16x32xf32>
    %234 = arith.addf %226, %233 : vector<2x4x16x32xf32>
    %c0_258 = arith.constant 0 : index
    %c10_259 = arith.constant 10 : index
    %c2_260 = arith.constant 2 : index
    %c0_261 = arith.constant 0 : index
    %235 = vector.load %arg11[%c0_258, %c10_259, %c2_260, %c0_261] : memref<2x18x18x1xf32, #tpu.memory_space<vmem>>, vector<2x4x16x1xf32>
    %c0_262 = arith.constant 0 : index
    %c2_263 = arith.constant 2 : index
    %c2_264 = arith.constant 2 : index
    %c0_265 = arith.constant 0 : index
    %236 = vector.load %arg2[%c0_262, %c2_263, %c2_264, %c0_265] : memref<1x3x3x32xf32, #tpu.memory_space<vmem>>, vector<1x1x1x32xf32>
    %237 = vector.shape_cast %236 : vector<1x1x1x32xf32> to vector<32xf32>
    %238 = vector.shape_cast %237 : vector<32xf32> to vector<1x1x1x32xf32>
    %239 = vector.broadcast %235 : vector<2x4x16x1xf32> to vector<2x4x16x32xf32>
    %240 = vector.broadcast %238 : vector<1x1x1x32xf32> to vector<2x4x16x32xf32>
    %241 = arith.mulf %239, %240 : vector<2x4x16x32xf32>
    %242 = arith.addf %234, %241 : vector<2x4x16x32xf32>
    %c0_266 = arith.constant 0 : index
    %c8_267 = arith.constant 8 : index
    %c0_268 = arith.constant 0 : index
    %c0_269 = arith.constant 0 : index
    %243 = vector.load %arg12[%c0_266, %c8_267, %c0_268, %c0_269] : memref<2x16x16x32xf32, #tpu.memory_space<vmem>>, vector<2x4x16x32xf32>
    tpu.vector_store %arg12[%c0_266, %c8_267, %c0_268, %c0_269], %242 {strides = array<i32>} : memref<2x16x16x32xf32, #tpu.memory_space<vmem>>, vector<2x4x16x32xf32>,
    %cst_270 = arith.constant 0.000000e+00 : f32
    %244 = vector.broadcast %cst_270 : f32 to vector<2x4x16x32xf32>
    %c0_271 = arith.constant 0 : index
    %c12 = arith.constant 12 : index
    %c0_272 = arith.constant 0 : index
    %c0_273 = arith.constant 0 : index
    %245 = vector.load %arg11[%c0_271, %c12, %c0_272, %c0_273] : memref<2x18x18x1xf32, #tpu.memory_space<vmem>>, vector<2x4x16x1xf32>
    %c0_274 = arith.constant 0 : index
    %c0_275 = arith.constant 0 : index
    %c0_276 = arith.constant 0 : index
    %c0_277 = arith.constant 0 : index
    %246 = vector.load %arg2[%c0_274, %c0_275, %c0_276, %c0_277] : memref<1x3x3x32xf32, #tpu.memory_space<vmem>>, vector<1x1x1x32xf32>
    %247 = vector.shape_cast %246 : vector<1x1x1x32xf32> to vector<32xf32>
    %248 = vector.shape_cast %247 : vector<32xf32> to vector<1x1x1x32xf32>
    %249 = vector.broadcast %245 : vector<2x4x16x1xf32> to vector<2x4x16x32xf32>
    %250 = vector.broadcast %248 : vector<1x1x1x32xf32> to vector<2x4x16x32xf32>
    %251 = arith.mulf %249, %250 : vector<2x4x16x32xf32>
    %252 = arith.addf %244, %251 : vector<2x4x16x32xf32>
    %c0_278 = arith.constant 0 : index
    %c12_279 = arith.constant 12 : index
    %c1_280 = arith.constant 1 : index
    %c0_281 = arith.constant 0 : index
    %253 = vector.load %arg11[%c0_278, %c12_279, %c1_280, %c0_281] : memref<2x18x18x1xf32, #tpu.memory_space<vmem>>, vector<2x4x16x1xf32>
    %c0_282 = arith.constant 0 : index
    %c0_283 = arith.constant 0 : index
    %c1_284 = arith.constant 1 : index
    %c0_285 = arith.constant 0 : index
    %254 = vector.load %arg2[%c0_282, %c0_283, %c1_284, %c0_285] : memref<1x3x3x32xf32, #tpu.memory_space<vmem>>, vector<1x1x1x32xf32>
    %255 = vector.shape_cast %254 : vector<1x1x1x32xf32> to vector<32xf32>
    %256 = vector.shape_cast %255 : vector<32xf32> to vector<1x1x1x32xf32>
    %257 = vector.broadcast %253 : vector<2x4x16x1xf32> to vector<2x4x16x32xf32>
    %258 = vector.broadcast %256 : vector<1x1x1x32xf32> to vector<2x4x16x32xf32>
    %259 = arith.mulf %257, %258 : vector<2x4x16x32xf32>
    %260 = arith.addf %252, %259 : vector<2x4x16x32xf32>
    %c0_286 = arith.constant 0 : index
    %c12_287 = arith.constant 12 : index
    %c2_288 = arith.constant 2 : index
    %c0_289 = arith.constant 0 : index
    %261 = vector.load %arg11[%c0_286, %c12_287, %c2_288, %c0_289] : memref<2x18x18x1xf32, #tpu.memory_space<vmem>>, vector<2x4x16x1xf32>
    %c0_290 = arith.constant 0 : index
    %c0_291 = arith.constant 0 : index
    %c2_292 = arith.constant 2 : index
    %c0_293 = arith.constant 0 : index
    %262 = vector.load %arg2[%c0_290, %c0_291, %c2_292, %c0_293] : memref<1x3x3x32xf32, #tpu.memory_space<vmem>>, vector<1x1x1x32xf32>
    %263 = vector.shape_cast %262 : vector<1x1x1x32xf32> to vector<32xf32>
    %264 = vector.shape_cast %263 : vector<32xf32> to vector<1x1x1x32xf32>
    %265 = vector.broadcast %261 : vector<2x4x16x1xf32> to vector<2x4x16x32xf32>
    %266 = vector.broadcast %264 : vector<1x1x1x32xf32> to vector<2x4x16x32xf32>
    %267 = arith.mulf %265, %266 : vector<2x4x16x32xf32>
    %268 = arith.addf %260, %267 : vector<2x4x16x32xf32>
    %c0_294 = arith.constant 0 : index
    %c13 = arith.constant 13 : index
    %c0_295 = arith.constant 0 : index
    %c0_296 = arith.constant 0 : index
    %269 = vector.load %arg11[%c0_294, %c13, %c0_295, %c0_296] : memref<2x18x18x1xf32, #tpu.memory_space<vmem>>, vector<2x4x16x1xf32>
    %c0_297 = arith.constant 0 : index
    %c1_298 = arith.constant 1 : index
    %c0_299 = arith.constant 0 : index
    %c0_300 = arith.constant 0 : index
    %270 = vector.load %arg2[%c0_297, %c1_298, %c0_299, %c0_300] : memref<1x3x3x32xf32, #tpu.memory_space<vmem>>, vector<1x1x1x32xf32>
    %271 = vector.shape_cast %270 : vector<1x1x1x32xf32> to vector<32xf32>
    %272 = vector.shape_cast %271 : vector<32xf32> to vector<1x1x1x32xf32>
    %273 = vector.broadcast %269 : vector<2x4x16x1xf32> to vector<2x4x16x32xf32>
    %274 = vector.broadcast %272 : vector<1x1x1x32xf32> to vector<2x4x16x32xf32>
    %275 = arith.mulf %273, %274 : vector<2x4x16x32xf32>
    %276 = arith.addf %268, %275 : vector<2x4x16x32xf32>
    %c0_301 = arith.constant 0 : index
    %c13_302 = arith.constant 13 : index
    %c1_303 = arith.constant 1 : index
    %c0_304 = arith.constant 0 : index
    %277 = vector.load %arg11[%c0_301, %c13_302, %c1_303, %c0_304] : memref<2x18x18x1xf32, #tpu.memory_space<vmem>>, vector<2x4x16x1xf32>
    %c0_305 = arith.constant 0 : index
    %c1_306 = arith.constant 1 : index
    %c1_307 = arith.constant 1 : index
    %c0_308 = arith.constant 0 : index
    %278 = vector.load %arg2[%c0_305, %c1_306, %c1_307, %c0_308] : memref<1x3x3x32xf32, #tpu.memory_space<vmem>>, vector<1x1x1x32xf32>
    %279 = vector.shape_cast %278 : vector<1x1x1x32xf32> to vector<32xf32>
    %280 = vector.shape_cast %279 : vector<32xf32> to vector<1x1x1x32xf32>
    %281 = vector.broadcast %277 : vector<2x4x16x1xf32> to vector<2x4x16x32xf32>
    %282 = vector.broadcast %280 : vector<1x1x1x32xf32> to vector<2x4x16x32xf32>
    %283 = arith.mulf %281, %282 : vector<2x4x16x32xf32>
    %284 = arith.addf %276, %283 : vector<2x4x16x32xf32>
    %c0_309 = arith.constant 0 : index
    %c13_310 = arith.constant 13 : index
    %c2_311 = arith.constant 2 : index
    %c0_312 = arith.constant 0 : index
    %285 = vector.load %arg11[%c0_309, %c13_310, %c2_311, %c0_312] : memref<2x18x18x1xf32, #tpu.memory_space<vmem>>, vector<2x4x16x1xf32>
    %c0_313 = arith.constant 0 : index
    %c1_314 = arith.constant 1 : index
    %c2_315 = arith.constant 2 : index
    %c0_316 = arith.constant 0 : index
    %286 = vector.load %arg2[%c0_313, %c1_314, %c2_315, %c0_316] : memref<1x3x3x32xf32, #tpu.memory_space<vmem>>, vector<1x1x1x32xf32>
    %287 = vector.shape_cast %286 : vector<1x1x1x32xf32> to vector<32xf32>
    %288 = vector.shape_cast %287 : vector<32xf32> to vector<1x1x1x32xf32>
    %289 = vector.broadcast %285 : vector<2x4x16x1xf32> to vector<2x4x16x32xf32>
    %290 = vector.broadcast %288 : vector<1x1x1x32xf32> to vector<2x4x16x32xf32>
    %291 = arith.mulf %289, %290 : vector<2x4x16x32xf32>
    %292 = arith.addf %284, %291 : vector<2x4x16x32xf32>
    %c0_317 = arith.constant 0 : index
    %c14 = arith.constant 14 : index
    %c0_318 = arith.constant 0 : index
    %c0_319 = arith.constant 0 : index
    %293 = vector.load %arg11[%c0_317, %c14, %c0_318, %c0_319] : memref<2x18x18x1xf32, #tpu.memory_space<vmem>>, vector<2x4x16x1xf32>
    %c0_320 = arith.constant 0 : index
    %c2_321 = arith.constant 2 : index
    %c0_322 = arith.constant 0 : index
    %c0_323 = arith.constant 0 : index
    %294 = vector.load %arg2[%c0_320, %c2_321, %c0_322, %c0_323] : memref<1x3x3x32xf32, #tpu.memory_space<vmem>>, vector<1x1x1x32xf32>
    %295 = vector.shape_cast %294 : vector<1x1x1x32xf32> to vector<32xf32>
    %296 = vector.shape_cast %295 : vector<32xf32> to vector<1x1x1x32xf32>
    %297 = vector.broadcast %293 : vector<2x4x16x1xf32> to vector<2x4x16x32xf32>
    %298 = vector.broadcast %296 : vector<1x1x1x32xf32> to vector<2x4x16x32xf32>
    %299 = arith.mulf %297, %298 : vector<2x4x16x32xf32>
    %300 = arith.addf %292, %299 : vector<2x4x16x32xf32>
    %c0_324 = arith.constant 0 : index
    %c14_325 = arith.constant 14 : index
    %c1_326 = arith.constant 1 : index
    %c0_327 = arith.constant 0 : index
    %301 = vector.load %arg11[%c0_324, %c14_325, %c1_326, %c0_327] : memref<2x18x18x1xf32, #tpu.memory_space<vmem>>, vector<2x4x16x1xf32>
    %c0_328 = arith.constant 0 : index
    %c2_329 = arith.constant 2 : index
    %c1_330 = arith.constant 1 : index
    %c0_331 = arith.constant 0 : index
    %302 = vector.load %arg2[%c0_328, %c2_329, %c1_330, %c0_331] : memref<1x3x3x32xf32, #tpu.memory_space<vmem>>, vector<1x1x1x32xf32>
    %303 = vector.shape_cast %302 : vector<1x1x1x32xf32> to vector<32xf32>
    %304 = vector.shape_cast %303 : vector<32xf32> to vector<1x1x1x32xf32>
    %305 = vector.broadcast %301 : vector<2x4x16x1xf32> to vector<2x4x16x32xf32>
    %306 = vector.broadcast %304 : vector<1x1x1x32xf32> to vector<2x4x16x32xf32>
    %307 = arith.mulf %305, %306 : vector<2x4x16x32xf32>
    %308 = arith.addf %300, %307 : vector<2x4x16x32xf32>
    %c0_332 = arith.constant 0 : index
    %c14_333 = arith.constant 14 : index
    %c2_334 = arith.constant 2 : index
    %c0_335 = arith.constant 0 : index
    %309 = vector.load %arg11[%c0_332, %c14_333, %c2_334, %c0_335] : memref<2x18x18x1xf32, #tpu.memory_space<vmem>>, vector<2x4x16x1xf32>
    %c0_336 = arith.constant 0 : index
    %c2_337 = arith.constant 2 : index
    %c2_338 = arith.constant 2 : index
    %c0_339 = arith.constant 0 : index
    %310 = vector.load %arg2[%c0_336, %c2_337, %c2_338, %c0_339] : memref<1x3x3x32xf32, #tpu.memory_space<vmem>>, vector<1x1x1x32xf32>
    %311 = vector.shape_cast %310 : vector<1x1x1x32xf32> to vector<32xf32>
    %312 = vector.shape_cast %311 : vector<32xf32> to vector<1x1x1x32xf32>
    %313 = vector.broadcast %309 : vector<2x4x16x1xf32> to vector<2x4x16x32xf32>
    %314 = vector.broadcast %312 : vector<1x1x1x32xf32> to vector<2x4x16x32xf32>
    %315 = arith.mulf %313, %314 : vector<2x4x16x32xf32>
    %316 = arith.addf %308, %315 : vector<2x4x16x32xf32>
    %c0_340 = arith.constant 0 : index
    %c12_341 = arith.constant 12 : index
    %c0_342 = arith.constant 0 : index
    %c0_343 = arith.constant 0 : index
    %317 = vector.load %arg12[%c0_340, %c12_341, %c0_342, %c0_343] : memref<2x16x16x32xf32, #tpu.memory_space<vmem>>, vector<2x4x16x32xf32>
    tpu.vector_store %arg12[%c0_340, %c12_341, %c0_342, %c0_343], %316 {strides = array<i32>} : memref<2x16x16x32xf32, #tpu.memory_space<vmem>>, vector<2x4x16x32xf32>,
    %c0_344 = arith.constant 0 : index
    %c0_345 = arith.constant 0 : index
    %c0_346 = arith.constant 0 : index
    %c0_347 = arith.constant 0 : index
    %318 = tpu.strided_load %arg12[%c0_344, %c0_345, %c0_346, %c0_347] {strides = array<i32: 1, 1, 2, 1>} : memref<2x16x16x32xf32, #tpu.memory_space<vmem>>, vector<2x8x8x32xf32>
    %c0_348 = arith.constant 0 : index
    %c0_349 = arith.constant 0 : index
    %c1_350 = arith.constant 1 : index
    %c0_351 = arith.constant 0 : index
    %319 = tpu.strided_load %arg12[%c0_348, %c0_349, %c1_350, %c0_351] {strides = array<i32: 1, 1, 2, 1>} : memref<2x16x16x32xf32, #tpu.memory_space<vmem>>, vector<2x8x8x32xf32>
    %320 = arith.maximumf %318, %319 : vector<2x8x8x32xf32>
    %321 = vector.shape_cast %320 : vector<2x8x8x32xf32> to vector<2x4x2x8x32xf32>
    %322 = vector.extract_strided_slice %321 {offsets = [0, 0, 0, 0, 0], sizes = [2, 4, 1, 8, 32], strides = [1, 1, 1, 1, 1]} : vector<2x4x2x8x32xf32> to vector<2x4x1x8x32xf32>
    %323 = vector.shape_cast %322 : vector<2x4x1x8x32xf32> to vector<2x4x8x32xf32>
    %324 = vector.extract_strided_slice %321 {offsets = [0, 0, 1, 0, 0], sizes = [2, 4, 1, 8, 32], strides = [1, 1, 1, 1, 1]} : vector<2x4x2x8x32xf32> to vector<2x4x1x8x32xf32>
    %325 = vector.shape_cast %324 : vector<2x4x1x8x32xf32> to vector<2x4x8x32xf32>
    %326 = arith.maximumf %323, %325 : vector<2x4x8x32xf32>
    %c0_352 = arith.constant 0 : index
    %c0_353 = arith.constant 0 : index
    %c0_354 = arith.constant 0 : index
    %327 = vector.load %arg3[%c0_352, %c0_353, %c0_354] : memref<1x1x32xf32, #tpu.memory_space<vmem>>, vector<1x1x32xf32>
    %328 = vector.shape_cast %327 : vector<1x1x32xf32> to vector<1x32xf32>
    %329 = vector.shape_cast %328 : vector<1x32xf32> to vector<1x1x1x32xf32>
    %330 = vector.broadcast %329 : vector<1x1x1x32xf32> to vector<2x4x8x32xf32>
    %331 = arith.addf %326, %330 : vector<2x4x8x32xf32>
    %c0_355 = arith.constant 0 : index
    %c1_356 = arith.constant 1 : index
    %c1_357 = arith.constant 1 : index
    %c0_358 = arith.constant 0 : index
    %332 = vector.load %arg13[%c0_355, %c1_356, %c1_357, %c0_358] : memref<2x10x10x32xf32, #tpu.memory_space<vmem>>, vector<2x4x8x32xf32>
    tpu.vector_store %arg13[%c0_355, %c1_356, %c1_357, %c0_358], %331 {strides = array<i32>} : memref<2x10x10x32xf32, #tpu.memory_space<vmem>>, vector<2x4x8x32xf32>,
    %c0_359 = arith.constant 0 : index
    %c8_360 = arith.constant 8 : index
    %c0_361 = arith.constant 0 : index
    %c0_362 = arith.constant 0 : index
    %333 = tpu.strided_load %arg12[%c0_359, %c8_360, %c0_361, %c0_362] {strides = array<i32: 1, 1, 2, 1>} : memref<2x16x16x32xf32, #tpu.memory_space<vmem>>, vector<2x8x8x32xf32>
    %c0_363 = arith.constant 0 : index
    %c8_364 = arith.constant 8 : index
    %c1_365 = arith.constant 1 : index
    %c0_366 = arith.constant 0 : index
    %334 = tpu.strided_load %arg12[%c0_363, %c8_364, %c1_365, %c0_366] {strides = array<i32: 1, 1, 2, 1>} : memref<2x16x16x32xf32, #tpu.memory_space<vmem>>, vector<2x8x8x32xf32>
    %335 = arith.maximumf %333, %334 : vector<2x8x8x32xf32>
    %336 = vector.shape_cast %335 : vector<2x8x8x32xf32> to vector<2x4x2x8x32xf32>
    %337 = vector.extract_strided_slice %336 {offsets = [0, 0, 0, 0, 0], sizes = [2, 4, 1, 8, 32], strides = [1, 1, 1, 1, 1]} : vector<2x4x2x8x32xf32> to vector<2x4x1x8x32xf32>
    %338 = vector.shape_cast %337 : vector<2x4x1x8x32xf32> to vector<2x4x8x32xf32>
    %339 = vector.extract_strided_slice %336 {offsets = [0, 0, 1, 0, 0], sizes = [2, 4, 1, 8, 32], strides = [1, 1, 1, 1, 1]} : vector<2x4x2x8x32xf32> to vector<2x4x1x8x32xf32>
    %340 = vector.shape_cast %339 : vector<2x4x1x8x32xf32> to vector<2x4x8x32xf32>
    %341 = arith.maximumf %338, %340 : vector<2x4x8x32xf32>
    %c0_367 = arith.constant 0 : index
    %c0_368 = arith.constant 0 : index
    %c0_369 = arith.constant 0 : index
    %342 = vector.load %arg3[%c0_367, %c0_368, %c0_369] : memref<1x1x32xf32, #tpu.memory_space<vmem>>, vector<1x1x32xf32>
    %343 = vector.shape_cast %342 : vector<1x1x32xf32> to vector<1x32xf32>
    %344 = vector.shape_cast %343 : vector<1x32xf32> to vector<1x1x1x32xf32>
    %345 = vector.broadcast %344 : vector<1x1x1x32xf32> to vector<2x4x8x32xf32>
    %346 = arith.addf %341, %345 : vector<2x4x8x32xf32>
    %c0_370 = arith.constant 0 : index
    %c5_371 = arith.constant 5 : index
    %c1_372 = arith.constant 1 : index
    %c0_373 = arith.constant 0 : index
    %347 = vector.load %arg13[%c0_370, %c5_371, %c1_372, %c0_373] : memref<2x10x10x32xf32, #tpu.memory_space<vmem>>, vector<2x4x8x32xf32>
    tpu.vector_store %arg13[%c0_370, %c5_371, %c1_372, %c0_373], %346 {strides = array<i32>} : memref<2x10x10x32xf32, #tpu.memory_space<vmem>>, vector<2x4x8x32xf32>,
    %c0_374 = arith.constant 0 : index
    %c0_375 = arith.constant 0 : index
    %c0_376 = arith.constant 0 : index
    %c0_377 = arith.constant 0 : index
    %348 = vector.load %arg13[%c0_374, %c0_375, %c0_376, %c0_377] : memref<2x10x10x32xf32, #tpu.memory_space<vmem>>, vector<2x8x8x32xf32>
    %349 = vector.shape_cast %348 : vector<2x8x8x32xf32> to vector<128x32xf32>
    %350 = arith.truncf %349 : vector<128x32xf32> to vector<128x32xbf16>
    %c0_378 = arith.constant 0 : index
    %c0_379 = arith.constant 0 : index
    %351 = vector.load %arg14[%c0_378, %c0_379] : memref<128x288xbf16, #tpu.memory_space<vmem>>, vector<128x32xbf16>
    tpu.vector_store %arg14[%c0_378, %c0_379], %350 {strides = array<i32>} : memref<128x288xbf16, #tpu.memory_space<vmem>>, vector<128x32xbf16>,
    %c0_380 = arith.constant 0 : index
    %c0_381 = arith.constant 0 : index
    %c1_382 = arith.constant 1 : index
    %c0_383 = arith.constant 0 : index
    %352 = vector.load %arg13[%c0_380, %c0_381, %c1_382, %c0_383] : memref<2x10x10x32xf32, #tpu.memory_space<vmem>>, vector<2x8x8x32xf32>
    %353 = vector.shape_cast %352 : vector<2x8x8x32xf32> to vector<128x32xf32>
    %354 = arith.truncf %353 : vector<128x32xf32> to vector<128x32xbf16>
    %c0_384 = arith.constant 0 : index
    %c32 = arith.constant 32 : index
    %355 = vector.load %arg14[%c0_384, %c32] : memref<128x288xbf16, #tpu.memory_space<vmem>>, vector<128x32xbf16>
    tpu.vector_store %arg14[%c0_384, %c32], %354 {strides = array<i32>} : memref<128x288xbf16, #tpu.memory_space<vmem>>, vector<128x32xbf16>,
    %c0_385 = arith.constant 0 : index
    %c0_386 = arith.constant 0 : index
    %c2_387 = arith.constant 2 : index
    %c0_388 = arith.constant 0 : index
    %356 = vector.load %arg13[%c0_385, %c0_386, %c2_387, %c0_388] : memref<2x10x10x32xf32, #tpu.memory_space<vmem>>, vector<2x8x8x32xf32>
    %357 = vector.shape_cast %356 : vector<2x8x8x32xf32> to vector<128x32xf32>
    %358 = arith.truncf %357 : vector<128x32xf32> to vector<128x32xbf16>
    %c0_389 = arith.constant 0 : index
    %c64 = arith.constant 64 : index
    %359 = vector.load %arg14[%c0_389, %c64] : memref<128x288xbf16, #tpu.memory_space<vmem>>, vector<128x32xbf16>
    tpu.vector_store %arg14[%c0_389, %c64], %358 {strides = array<i32>} : memref<128x288xbf16, #tpu.memory_space<vmem>>, vector<128x32xbf16>,
    %c0_390 = arith.constant 0 : index
    %c1_391 = arith.constant 1 : index
    %c0_392 = arith.constant 0 : index
    %c0_393 = arith.constant 0 : index
    %360 = vector.load %arg13[%c0_390, %c1_391, %c0_392, %c0_393] : memref<2x10x10x32xf32, #tpu.memory_space<vmem>>, vector<2x8x8x32xf32>
    %361 = vector.shape_cast %360 : vector<2x8x8x32xf32> to vector<128x32xf32>
    %362 = arith.truncf %361 : vector<128x32xf32> to vector<128x32xbf16>
    %c0_394 = arith.constant 0 : index
    %c96 = arith.constant 96 : index
    %363 = vector.load %arg14[%c0_394, %c96] : memref<128x288xbf16, #tpu.memory_space<vmem>>, vector<128x32xbf16>
    tpu.vector_store %arg14[%c0_394, %c96], %362 {strides = array<i32>} : memref<128x288xbf16, #tpu.memory_space<vmem>>, vector<128x32xbf16>,
    %c0_395 = arith.constant 0 : index
    %c1_396 = arith.constant 1 : index
    %c1_397 = arith.constant 1 : index
    %c0_398 = arith.constant 0 : index
    %364 = vector.load %arg13[%c0_395, %c1_396, %c1_397, %c0_398] : memref<2x10x10x32xf32, #tpu.memory_space<vmem>>, vector<2x8x8x32xf32>
    %365 = vector.shape_cast %364 : vector<2x8x8x32xf32> to vector<128x32xf32>
    %366 = arith.truncf %365 : vector<128x32xf32> to vector<128x32xbf16>
    %c0_399 = arith.constant 0 : index
    %c128 = arith.constant 128 : index
    %367 = vector.load %arg14[%c0_399, %c128] : memref<128x288xbf16, #tpu.memory_space<vmem>>, vector<128x32xbf16>
    tpu.vector_store %arg14[%c0_399, %c128], %366 {strides = array<i32>} : memref<128x288xbf16, #tpu.memory_space<vmem>>, vector<128x32xbf16>,
    %c0_400 = arith.constant 0 : index
    %c1_401 = arith.constant 1 : index
    %c2_402 = arith.constant 2 : index
    %c0_403 = arith.constant 0 : index
    %368 = vector.load %arg13[%c0_400, %c1_401, %c2_402, %c0_403] : memref<2x10x10x32xf32, #tpu.memory_space<vmem>>, vector<2x8x8x32xf32>
    %369 = vector.shape_cast %368 : vector<2x8x8x32xf32> to vector<128x32xf32>
    %370 = arith.truncf %369 : vector<128x32xf32> to vector<128x32xbf16>
    %c0_404 = arith.constant 0 : index
    %c160 = arith.constant 160 : index
    %371 = vector.load %arg14[%c0_404, %c160] : memref<128x288xbf16, #tpu.memory_space<vmem>>, vector<128x32xbf16>
    tpu.vector_store %arg14[%c0_404, %c160], %370 {strides = array<i32>} : memref<128x288xbf16, #tpu.memory_space<vmem>>, vector<128x32xbf16>,
    %c0_405 = arith.constant 0 : index
    %c2_406 = arith.constant 2 : index
    %c0_407 = arith.constant 0 : index
    %c0_408 = arith.constant 0 : index
    %372 = vector.load %arg13[%c0_405, %c2_406, %c0_407, %c0_408] : memref<2x10x10x32xf32, #tpu.memory_space<vmem>>, vector<2x8x8x32xf32>
    %373 = vector.shape_cast %372 : vector<2x8x8x32xf32> to vector<128x32xf32>
    %374 = arith.truncf %373 : vector<128x32xf32> to vector<128x32xbf16>
    %c0_409 = arith.constant 0 : index
    %c192 = arith.constant 192 : index
    %375 = vector.load %arg14[%c0_409, %c192] : memref<128x288xbf16, #tpu.memory_space<vmem>>, vector<128x32xbf16>
    tpu.vector_store %arg14[%c0_409, %c192], %374 {strides = array<i32>} : memref<128x288xbf16, #tpu.memory_space<vmem>>, vector<128x32xbf16>,
    %c0_410 = arith.constant 0 : index
    %c2_411 = arith.constant 2 : index
    %c1_412 = arith.constant 1 : index
    %c0_413 = arith.constant 0 : index
    %376 = vector.load %arg13[%c0_410, %c2_411, %c1_412, %c0_413] : memref<2x10x10x32xf32, #tpu.memory_space<vmem>>, vector<2x8x8x32xf32>
    %377 = vector.shape_cast %376 : vector<2x8x8x32xf32> to vector<128x32xf32>
    %378 = arith.truncf %377 : vector<128x32xf32> to vector<128x32xbf16>
    %c0_414 = arith.constant 0 : index
    %c224 = arith.constant 224 : index
    %379 = vector.load %arg14[%c0_414, %c224] : memref<128x288xbf16, #tpu.memory_space<vmem>>, vector<128x32xbf16>
    tpu.vector_store %arg14[%c0_414, %c224], %378 {strides = array<i32>} : memref<128x288xbf16, #tpu.memory_space<vmem>>, vector<128x32xbf16>,
    %c0_415 = arith.constant 0 : index
    %c2_416 = arith.constant 2 : index
    %c2_417 = arith.constant 2 : index
    %c0_418 = arith.constant 0 : index
    %380 = vector.load %arg13[%c0_415, %c2_416, %c2_417, %c0_418] : memref<2x10x10x32xf32, #tpu.memory_space<vmem>>, vector<2x8x8x32xf32>
    %381 = vector.shape_cast %380 : vector<2x8x8x32xf32> to vector<128x32xf32>
    %382 = arith.truncf %381 : vector<128x32xf32> to vector<128x32xbf16>
    %c0_419 = arith.constant 0 : index
    %c256 = arith.constant 256 : index
    %383 = vector.load %arg14[%c0_419, %c256] : memref<128x288xbf16, #tpu.memory_space<vmem>>, vector<128x32xbf16>
    tpu.vector_store %arg14[%c0_419, %c256], %382 {strides = array<i32>} : memref<128x288xbf16, #tpu.memory_space<vmem>>, vector<128x32xbf16>,
    %c0_420 = arith.constant 0 : index
    %c0_421 = arith.constant 0 : index
    %384 = vector.load %arg14[%c0_420, %c0_421] : memref<128x288xbf16, #tpu.memory_space<vmem>>, vector<128x288xbf16>
    %c0_422 = arith.constant 0 : index
    %c0_423 = arith.constant 0 : index
    %c0_424 = arith.constant 0 : index
    %385 = vector.load %arg4[%c0_422, %c0_423, %c0_424] : memref<1x288x64xbf16, #tpu.memory_space<vmem>>, vector<1x288x64xbf16>
    %386 = vector.shape_cast %385 : vector<1x288x64xbf16> to vector<288x64xbf16>
    %cst_425 = arith.constant dense<0.000000e+00> : vector<128x64xf32>
    %387 = tpu.matmul %384, %386, %cst_425 {dimension_numbers = #tpu.dot_dimension_numbers<[1], [0], [0], [1], [0, 0, 1, 1], [], []>} : vector<128x288xbf16>, vector<288x64xbf16>, vector<128x64xf32> -> vector<128x64xf32>
    %388 = vector.shape_cast %387 : vector<128x64xf32> to vector<2x8x8x64xf32>
    %c0_426 = arith.constant 0 : index
    %c0_427 = arith.constant 0 : index
    %c0_428 = arith.constant 0 : index
    %389 = vector.load %arg5[%c0_426, %c0_427, %c0_428] : memref<1x1x64xf32, #tpu.memory_space<vmem>>, vector<1x1x64xf32>
    %390 = vector.shape_cast %389 : vector<1x1x64xf32> to vector<1x64xf32>
    %391 = vector.shape_cast %390 : vector<1x64xf32> to vector<1x1x1x64xf32>
    %392 = vector.broadcast %391 : vector<1x1x1x64xf32> to vector<2x8x8x64xf32>
    %393 = arith.addf %388, %392 : vector<2x8x8x64xf32>
    %c0_429 = arith.constant 0 : index
    %c0_430 = arith.constant 0 : index
    %c0_431 = arith.constant 0 : index
    %c0_432 = arith.constant 0 : index
    %394 = vector.load %arg15[%c0_429, %c0_430, %c0_431, %c0_432] : memref<2x8x8x64xf32, #tpu.memory_space<vmem>>, vector<2x8x8x64xf32>
    tpu.vector_store %arg15[%c0_429, %c0_430, %c0_431, %c0_432], %393 {strides = array<i32>} : memref<2x8x8x64xf32, #tpu.memory_space<vmem>>, vector<2x8x8x64xf32>,
    %c0_433 = arith.constant 0 : index
    %c0_434 = arith.constant 0 : index
    %c0_435 = arith.constant 0 : index
    %c0_436 = arith.constant 0 : index
    %395 = tpu.strided_load %arg15[%c0_433, %c0_434, %c0_435, %c0_436] {strides = array<i32: 1, 1, 2, 1>} : memref<2x8x8x64xf32, #tpu.memory_space<vmem>>, vector<2x8x4x64xf32>
    %c0_437 = arith.constant 0 : index
    %c0_438 = arith.constant 0 : index
    %c1_439 = arith.constant 1 : index
    %c0_440 = arith.constant 0 : index
    %396 = tpu.strided_load %arg15[%c0_437, %c0_438, %c1_439, %c0_440] {strides = array<i32: 1, 1, 2, 1>} : memref<2x8x8x64xf32, #tpu.memory_space<vmem>>, vector<2x8x4x64xf32>
    %397 = arith.maximumf %395, %396 : vector<2x8x4x64xf32>
    %398 = vector.shape_cast %397 : vector<2x8x4x64xf32> to vector<2x4x2x4x64xf32>
    %399 = vector.extract_strided_slice %398 {offsets = [0, 0, 0, 0, 0], sizes = [2, 4, 1, 4, 64], strides = [1, 1, 1, 1, 1]} : vector<2x4x2x4x64xf32> to vector<2x4x1x4x64xf32>
    %400 = vector.shape_cast %399 : vector<2x4x1x4x64xf32> to vector<2x4x4x64xf32>
    %401 = vector.extract_strided_slice %398 {offsets = [0, 0, 1, 0, 0], sizes = [2, 4, 1, 4, 64], strides = [1, 1, 1, 1, 1]} : vector<2x4x2x4x64xf32> to vector<2x4x1x4x64xf32>
    %402 = vector.shape_cast %401 : vector<2x4x1x4x64xf32> to vector<2x4x4x64xf32>
    %403 = arith.maximumf %400, %402 : vector<2x4x4x64xf32>
    %c0_441 = arith.constant 0 : index
    %c0_442 = arith.constant 0 : index
    %c0_443 = arith.constant 0 : index
    %c0_444 = arith.constant 0 : index
    %404 = vector.load %arg16[%c0_441, %c0_442, %c0_443, %c0_444] : memref<2x4x4x64xf32, #tpu.memory_space<vmem>>, vector<2x4x4x64xf32>
    tpu.vector_store %arg16[%c0_441, %c0_442, %c0_443, %c0_444], %403 {strides = array<i32>} : memref<2x4x4x64xf32, #tpu.memory_space<vmem>>, vector<2x4x4x64xf32>,
    %c0_445 = arith.constant 0 : index
    %c0_446 = arith.constant 0 : index
    %c0_447 = arith.constant 0 : index
    %c0_448 = arith.constant 0 : index
    %405 = vector.load %arg16[%c0_445, %c0_446, %c0_447, %c0_448] : memref<2x4x4x64xf32, #tpu.memory_space<vmem>>, vector<2x1x1x64xf32>
    %406 = vector.shape_cast %405 : vector<2x1x1x64xf32> to vector<2x64xf32>
    %c0_449 = arith.constant 0 : index
    %c0_450 = arith.constant 0 : index
    %407 = vector.load %arg17[%c0_449, %c0_450] : memref<2x1024xf32, #tpu.memory_space<vmem>>, vector<2x64xf32>
    tpu.vector_store %arg17[%c0_449, %c0_450], %406 {strides = array<i32>} : memref<2x1024xf32, #tpu.memory_space<vmem>>, vector<2x64xf32>,
    %c0_451 = arith.constant 0 : index
    %c0_452 = arith.constant 0 : index
    %c1_453 = arith.constant 1 : index
    %c0_454 = arith.constant 0 : index
    %408 = vector.load %arg16[%c0_451, %c0_452, %c1_453, %c0_454] : memref<2x4x4x64xf32, #tpu.memory_space<vmem>>, vector<2x1x1x64xf32>
    %409 = vector.shape_cast %408 : vector<2x1x1x64xf32> to vector<2x64xf32>
    %c0_455 = arith.constant 0 : index
    %c64_456 = arith.constant 64 : index
    %410 = vector.load %arg17[%c0_455, %c64_456] : memref<2x1024xf32, #tpu.memory_space<vmem>>, vector<2x64xf32>
    tpu.vector_store %arg17[%c0_455, %c64_456], %409 {strides = array<i32>} : memref<2x1024xf32, #tpu.memory_space<vmem>>, vector<2x64xf32>,
    %c0_457 = arith.constant 0 : index
    %c0_458 = arith.constant 0 : index
    %c2_459 = arith.constant 2 : index
    %c0_460 = arith.constant 0 : index
    %411 = vector.load %arg16[%c0_457, %c0_458, %c2_459, %c0_460] : memref<2x4x4x64xf32, #tpu.memory_space<vmem>>, vector<2x1x1x64xf32>
    %412 = vector.shape_cast %411 : vector<2x1x1x64xf32> to vector<2x64xf32>
    %c0_461 = arith.constant 0 : index
    %c128_462 = arith.constant 128 : index
    %413 = vector.load %arg17[%c0_461, %c128_462] : memref<2x1024xf32, #tpu.memory_space<vmem>>, vector<2x64xf32>
    tpu.vector_store %arg17[%c0_461, %c128_462], %412 {strides = array<i32>} : memref<2x1024xf32, #tpu.memory_space<vmem>>, vector<2x64xf32>,
    %c0_463 = arith.constant 0 : index
    %c0_464 = arith.constant 0 : index
    %c3 = arith.constant 3 : index
    %c0_465 = arith.constant 0 : index
    %414 = vector.load %arg16[%c0_463, %c0_464, %c3, %c0_465] : memref<2x4x4x64xf32, #tpu.memory_space<vmem>>, vector<2x1x1x64xf32>
    %415 = vector.shape_cast %414 : vector<2x1x1x64xf32> to vector<2x64xf32>
    %c0_466 = arith.constant 0 : index
    %c192_467 = arith.constant 192 : index
    %416 = vector.load %arg17[%c0_466, %c192_467] : memref<2x1024xf32, #tpu.memory_space<vmem>>, vector<2x64xf32>
    tpu.vector_store %arg17[%c0_466, %c192_467], %415 {strides = array<i32>} : memref<2x1024xf32, #tpu.memory_space<vmem>>, vector<2x64xf32>,
    %c0_468 = arith.constant 0 : index
    %c1_469 = arith.constant 1 : index
    %c0_470 = arith.constant 0 : index
    %c0_471 = arith.constant 0 : index
    %417 = vector.load %arg16[%c0_468, %c1_469, %c0_470, %c0_471] : memref<2x4x4x64xf32, #tpu.memory_space<vmem>>, vector<2x1x1x64xf32>
    %418 = vector.shape_cast %417 : vector<2x1x1x64xf32> to vector<2x64xf32>
    %c0_472 = arith.constant 0 : index
    %c256_473 = arith.constant 256 : index
    %419 = vector.load %arg17[%c0_472, %c256_473] : memref<2x1024xf32, #tpu.memory_space<vmem>>, vector<2x64xf32>
    tpu.vector_store %arg17[%c0_472, %c256_473], %418 {strides = array<i32>} : memref<2x1024xf32, #tpu.memory_space<vmem>>, vector<2x64xf32>,
    %c0_474 = arith.constant 0 : index
    %c1_475 = arith.constant 1 : index
    %c1_476 = arith.constant 1 : index
    %c0_477 = arith.constant 0 : index
    %420 = vector.load %arg16[%c0_474, %c1_475, %c1_476, %c0_477] : memref<2x4x4x64xf32, #tpu.memory_space<vmem>>, vector<2x1x1x64xf32>
    %421 = vector.shape_cast %420 : vector<2x1x1x64xf32> to vector<2x64xf32>
    %c0_478 = arith.constant 0 : index
    %c320 = arith.constant 320 : index
    %422 = vector.load %arg17[%c0_478, %c320] : memref<2x1024xf32, #tpu.memory_space<vmem>>, vector<2x64xf32>
    tpu.vector_store %arg17[%c0_478, %c320], %421 {strides = array<i32>} : memref<2x1024xf32, #tpu.memory_space<vmem>>, vector<2x64xf32>,
    %c0_479 = arith.constant 0 : index
    %c1_480 = arith.constant 1 : index
    %c2_481 = arith.constant 2 : index
    %c0_482 = arith.constant 0 : index
    %423 = vector.load %arg16[%c0_479, %c1_480, %c2_481, %c0_482] : memref<2x4x4x64xf32, #tpu.memory_space<vmem>>, vector<2x1x1x64xf32>
    %424 = vector.shape_cast %423 : vector<2x1x1x64xf32> to vector<2x64xf32>
    %c0_483 = arith.constant 0 : index
    %c384 = arith.constant 384 : index
    %425 = vector.load %arg17[%c0_483, %c384] : memref<2x1024xf32, #tpu.memory_space<vmem>>, vector<2x64xf32>
    tpu.vector_store %arg17[%c0_483, %c384], %424 {strides = array<i32>} : memref<2x1024xf32, #tpu.memory_space<vmem>>, vector<2x64xf32>,
    %c0_484 = arith.constant 0 : index
    %c1_485 = arith.constant 1 : index
    %c3_486 = arith.constant 3 : index
    %c0_487 = arith.constant 0 : index
    %426 = vector.load %arg16[%c0_484, %c1_485, %c3_486, %c0_487] : memref<2x4x4x64xf32, #tpu.memory_space<vmem>>, vector<2x1x1x64xf32>
    %427 = vector.shape_cast %426 : vector<2x1x1x64xf32> to vector<2x64xf32>
    %c0_488 = arith.constant 0 : index
    %c448 = arith.constant 448 : index
    %428 = vector.load %arg17[%c0_488, %c448] : memref<2x1024xf32, #tpu.memory_space<vmem>>, vector<2x64xf32>
    tpu.vector_store %arg17[%c0_488, %c448], %427 {strides = array<i32>} : memref<2x1024xf32, #tpu.memory_space<vmem>>, vector<2x64xf32>,
    %c0_489 = arith.constant 0 : index
    %c2_490 = arith.constant 2 : index
    %c0_491 = arith.constant 0 : index
    %c0_492 = arith.constant 0 : index
    %429 = vector.load %arg16[%c0_489, %c2_490, %c0_491, %c0_492] : memref<2x4x4x64xf32, #tpu.memory_space<vmem>>, vector<2x1x1x64xf32>
    %430 = vector.shape_cast %429 : vector<2x1x1x64xf32> to vector<2x64xf32>
    %c0_493 = arith.constant 0 : index
    %c512 = arith.constant 512 : index
    %431 = vector.load %arg17[%c0_493, %c512] : memref<2x1024xf32, #tpu.memory_space<vmem>>, vector<2x64xf32>
    tpu.vector_store %arg17[%c0_493, %c512], %430 {strides = array<i32>} : memref<2x1024xf32, #tpu.memory_space<vmem>>, vector<2x64xf32>,
    %c0_494 = arith.constant 0 : index
    %c2_495 = arith.constant 2 : index
    %c1_496 = arith.constant 1 : index
    %c0_497 = arith.constant 0 : index
    %432 = vector.load %arg16[%c0_494, %c2_495, %c1_496, %c0_497] : memref<2x4x4x64xf32, #tpu.memory_space<vmem>>, vector<2x1x1x64xf32>
    %433 = vector.shape_cast %432 : vector<2x1x1x64xf32> to vector<2x64xf32>
    %c0_498 = arith.constant 0 : index
    %c576 = arith.constant 576 : index
    %434 = vector.load %arg17[%c0_498, %c576] : memref<2x1024xf32, #tpu.memory_space<vmem>>, vector<2x64xf32>
    tpu.vector_store %arg17[%c0_498, %c576], %433 {strides = array<i32>} : memref<2x1024xf32, #tpu.memory_space<vmem>>, vector<2x64xf32>,
    %c0_499 = arith.constant 0 : index
    %c2_500 = arith.constant 2 : index
    %c2_501 = arith.constant 2 : index
    %c0_502 = arith.constant 0 : index
    %435 = vector.load %arg16[%c0_499, %c2_500, %c2_501, %c0_502] : memref<2x4x4x64xf32, #tpu.memory_space<vmem>>, vector<2x1x1x64xf32>
    %436 = vector.shape_cast %435 : vector<2x1x1x64xf32> to vector<2x64xf32>
    %c0_503 = arith.constant 0 : index
    %c640 = arith.constant 640 : index
    %437 = vector.load %arg17[%c0_503, %c640] : memref<2x1024xf32, #tpu.memory_space<vmem>>, vector<2x64xf32>
    tpu.vector_store %arg17[%c0_503, %c640], %436 {strides = array<i32>} : memref<2x1024xf32, #tpu.memory_space<vmem>>, vector<2x64xf32>,
    %c0_504 = arith.constant 0 : index
    %c2_505 = arith.constant 2 : index
    %c3_506 = arith.constant 3 : index
    %c0_507 = arith.constant 0 : index
    %438 = vector.load %arg16[%c0_504, %c2_505, %c3_506, %c0_507] : memref<2x4x4x64xf32, #tpu.memory_space<vmem>>, vector<2x1x1x64xf32>
    %439 = vector.shape_cast %438 : vector<2x1x1x64xf32> to vector<2x64xf32>
    %c0_508 = arith.constant 0 : index
    %c704 = arith.constant 704 : index
    %440 = vector.load %arg17[%c0_508, %c704] : memref<2x1024xf32, #tpu.memory_space<vmem>>, vector<2x64xf32>
    tpu.vector_store %arg17[%c0_508, %c704], %439 {strides = array<i32>} : memref<2x1024xf32, #tpu.memory_space<vmem>>, vector<2x64xf32>,
    %c0_509 = arith.constant 0 : index
    %c3_510 = arith.constant 3 : index
    %c0_511 = arith.constant 0 : index
    %c0_512 = arith.constant 0 : index
    %441 = vector.load %arg16[%c0_509, %c3_510, %c0_511, %c0_512] : memref<2x4x4x64xf32, #tpu.memory_space<vmem>>, vector<2x1x1x64xf32>
    %442 = vector.shape_cast %441 : vector<2x1x1x64xf32> to vector<2x64xf32>
    %c0_513 = arith.constant 0 : index
    %c768 = arith.constant 768 : index
    %443 = vector.load %arg17[%c0_513, %c768] : memref<2x1024xf32, #tpu.memory_space<vmem>>, vector<2x64xf32>
    tpu.vector_store %arg17[%c0_513, %c768], %442 {strides = array<i32>} : memref<2x1024xf32, #tpu.memory_space<vmem>>, vector<2x64xf32>,
    %c0_514 = arith.constant 0 : index
    %c3_515 = arith.constant 3 : index
    %c1_516 = arith.constant 1 : index
    %c0_517 = arith.constant 0 : index
    %444 = vector.load %arg16[%c0_514, %c3_515, %c1_516, %c0_517] : memref<2x4x4x64xf32, #tpu.memory_space<vmem>>, vector<2x1x1x64xf32>
    %445 = vector.shape_cast %444 : vector<2x1x1x64xf32> to vector<2x64xf32>
    %c0_518 = arith.constant 0 : index
    %c832 = arith.constant 832 : index
    %446 = vector.load %arg17[%c0_518, %c832] : memref<2x1024xf32, #tpu.memory_space<vmem>>, vector<2x64xf32>
    tpu.vector_store %arg17[%c0_518, %c832], %445 {strides = array<i32>} : memref<2x1024xf32, #tpu.memory_space<vmem>>, vector<2x64xf32>,
    %c0_519 = arith.constant 0 : index
    %c3_520 = arith.constant 3 : index
    %c2_521 = arith.constant 2 : index
    %c0_522 = arith.constant 0 : index
    %447 = vector.load %arg16[%c0_519, %c3_520, %c2_521, %c0_522] : memref<2x4x4x64xf32, #tpu.memory_space<vmem>>, vector<2x1x1x64xf32>
    %448 = vector.shape_cast %447 : vector<2x1x1x64xf32> to vector<2x64xf32>
    %c0_523 = arith.constant 0 : index
    %c896 = arith.constant 896 : index
    %449 = vector.load %arg17[%c0_523, %c896] : memref<2x1024xf32, #tpu.memory_space<vmem>>, vector<2x64xf32>
    tpu.vector_store %arg17[%c0_523, %c896], %448 {strides = array<i32>} : memref<2x1024xf32, #tpu.memory_space<vmem>>, vector<2x64xf32>,
    %c0_524 = arith.constant 0 : index
    %c3_525 = arith.constant 3 : index
    %c3_526 = arith.constant 3 : index
    %c0_527 = arith.constant 0 : index
    %450 = vector.load %arg16[%c0_524, %c3_525, %c3_526, %c0_527] : memref<2x4x4x64xf32, #tpu.memory_space<vmem>>, vector<2x1x1x64xf32>
    %451 = vector.shape_cast %450 : vector<2x1x1x64xf32> to vector<2x64xf32>
    %c0_528 = arith.constant 0 : index
    %c960 = arith.constant 960 : index
    %452 = vector.load %arg17[%c0_528, %c960] : memref<2x1024xf32, #tpu.memory_space<vmem>>, vector<2x64xf32>
    tpu.vector_store %arg17[%c0_528, %c960], %451 {strides = array<i32>} : memref<2x1024xf32, #tpu.memory_space<vmem>>, vector<2x64xf32>,
    %c0_529 = arith.constant 0 : index
    %c0_530 = arith.constant 0 : index
    %453 = vector.load %arg17[%c0_529, %c0_530] : memref<2x1024xf32, #tpu.memory_space<vmem>>, vector<2x1024xf32>
    %454 = arith.truncf %453 : vector<2x1024xf32> to vector<2x1024xbf16>
    %c0_531 = arith.constant 0 : index
    %c0_532 = arith.constant 0 : index
    %c0_533 = arith.constant 0 : index
    %455 = vector.load %arg6[%c0_531, %c0_532, %c0_533] : memref<1x1024x128xbf16, #tpu.memory_space<vmem>>, vector<1x1024x128xbf16>
    %456 = vector.shape_cast %455 : vector<1x1024x128xbf16> to vector<1024x128xbf16>
    %cst_534 = arith.constant dense<0.000000e+00> : vector<2x128xf32>
    %457 = tpu.matmul %454, %456, %cst_534 {dimension_numbers = #tpu.dot_dimension_numbers<[1], [0], [0], [1], [0, 0, 1, 1], [], []>} : vector<2x1024xbf16>, vector<1024x128xbf16>, vector<2x128xf32> -> vector<2x128xf32>
    %c0_535 = arith.constant 0 : index
    %c0_536 = arith.constant 0 : index
    %c0_537 = arith.constant 0 : index
    %458 = vector.load %arg7[%c0_535, %c0_536, %c0_537] : memref<1x1x128xf32, #tpu.memory_space<vmem>>, vector<1x1x128xf32>
    %459 = vector.shape_cast %458 : vector<1x1x128xf32> to vector<1x128xf32>
    %460 = vector.broadcast %459 : vector<1x128xf32> to vector<2x128xf32>
    %461 = arith.addf %457, %460 : vector<2x128xf32>
    %cst_538 = arith.constant 0.000000e+00 : f32
    %462 = vector.broadcast %cst_538 : f32 to vector<2x128xf32>
    %463 = arith.maximumf %461, %462 : vector<2x128xf32>
    %c0_539 = arith.constant 0 : index
    %c0_540 = arith.constant 0 : index
    %c0_541 = arith.constant 0 : index
    %464 = vector.load %arg8[%c0_539, %c0_540, %c0_541] : memref<1x1x128xf32, #tpu.memory_space<vmem>>, vector<1x1x128xf32>
    %465 = vector.shape_cast %464 : vector<1x1x128xf32> to vector<1x128xf32>
    %466 = vector.broadcast %465 : vector<1x128xf32> to vector<2x128xf32>
    %467 = arith.mulf %463, %466 : vector<2x128xf32>
    %cst_542 = arith.constant dense<0.000000e+00> : vector<2xf32>
    %468 = vector.multi_reduction <add>, %467, %cst_542 [1] : vector<2x128xf32> to vector<2xf32>
    %469 = vector.shape_cast %468 : vector<2xf32> to vector<2x1xf32>
    %c0_543 = arith.constant 0 : index
    %c0_544 = arith.constant 0 : index
    %c0_545 = arith.constant 0 : index
    %470 = vector.load %arg9[%c0_543, %c0_544, %c0_545] : memref<1x1x1xf32, #tpu.memory_space<vmem>>, vector<1x1x1xf32>
    %471 = vector.shape_cast %470 : vector<1x1x1xf32> to vector<1x1xf32>
    %472 = vector.broadcast %471 : vector<1x1xf32> to vector<2x1xf32>
    %473 = arith.addf %469, %472 : vector<2x1xf32>
    %c0_546 = arith.constant 0 : index
    %c0_547 = arith.constant 0 : index
    %c0_548 = arith.constant 0 : index
    %474 = vector.load %arg10[%c0_546, %c0_547, %c0_548] : memref<1x2x1xf32, #tpu.memory_space<vmem>>, vector<1x2x1xf32>
    %475 = vector.shape_cast %474 : vector<1x2x1xf32> to vector<2x1xf32>
    %476 = vector.shape_cast %473 : vector<2x1xf32> to vector<1x2x1xf32>
    tpu.vector_store %arg10[%c0_546, %c0_547, %c0_548], %476 {strides = array<i32>} : memref<1x2x1xf32, #tpu.memory_space<vmem>>, vector<1x2x1xf32>,
    return
  }
  func.func @transform_0(%arg0: i32) -> (i32, i32, i32, i32, i32) {
    %c0_i32 = arith.constant 0 : i32
    %c0_i32_0 = arith.constant 0 : i32
    %c0_i32_1 = arith.constant 0 : i32
    %c0_i32_2 = arith.constant 0 : i32
    %c0_i32_3 = arith.constant 0 : i32
    return %arg0, %c0_i32, %c0_i32_0, %c0_i32_1, %c0_i32_2 : i32, i32, i32, i32, i32
  }
  func.func @transform_1(%arg0: i32) -> (i32, i32, i32, i32) {
    %c0_i32 = arith.constant 0 : i32
    %c0_i32_0 = arith.constant 0 : i32
    %c0_i32_1 = arith.constant 0 : i32
    %c0_i32_2 = arith.constant 0 : i32
    return %arg0, %c0_i32, %c0_i32_0, %c0_i32_1 : i32, i32, i32, i32
  }
  func.func @transform_2(%arg0: i32) -> (i32, i32, i32) {
    %c0_i32 = arith.constant 0 : i32
    %c0_i32_0 = arith.constant 0 : i32
    %c0_i32_1 = arith.constant 0 : i32
    return %arg0, %c0_i32, %c0_i32_0 : i32, i32, i32
  }
  func.func @transform_3(%arg0: i32) -> (i32, i32, i32) {
    %c0_i32 = arith.constant 0 : i32
    %c0_i32_0 = arith.constant 0 : i32
    %c0_i32_1 = arith.constant 0 : i32
    return %arg0, %c0_i32, %c0_i32_0 : i32, i32, i32
  }
  func.func @transform_4(%arg0: i32) -> (i32, i32, i32) {
    %c0_i32 = arith.constant 0 : i32
    %c0_i32_0 = arith.constant 0 : i32
    %c0_i32_1 = arith.constant 0 : i32
    return %arg0, %c0_i32, %c0_i32_0 : i32, i32, i32
  }
  func.func @transform_5(%arg0: i32) -> (i32, i32, i32) {
    %c0_i32 = arith.constant 0 : i32
    %c0_i32_0 = arith.constant 0 : i32
    %c0_i32_1 = arith.constant 0 : i32
    return %arg0, %c0_i32, %c0_i32_0 : i32, i32, i32
  }
  func.func @transform_6(%arg0: i32) -> (i32, i32, i32) {
    %c0_i32 = arith.constant 0 : i32
    %c0_i32_0 = arith.constant 0 : i32
    %c0_i32_1 = arith.constant 0 : i32
    return %arg0, %c0_i32, %c0_i32_0 : i32, i32, i32
  }
  func.func @transform_7(%arg0: i32) -> (i32, i32, i32) {
    %c0_i32 = arith.constant 0 : i32
    %c0_i32_0 = arith.constant 0 : i32
    %c0_i32_1 = arith.constant 0 : i32
    return %arg0, %c0_i32, %c0_i32_0 : i32, i32, i32
  }
  func.func @transform_8(%arg0: i32) -> (i32, i32, i32) {
    %c0_i32 = arith.constant 0 : i32
    %c0_i32_0 = arith.constant 0 : i32
    %c0_i32_1 = arith.constant 0 : i32
    return %arg0, %c0_i32, %c0_i32_0 : i32, i32, i32
  }
  func.func @transform_9(%arg0: i32) -> (i32, i32, i32) {
    %c0_i32 = arith.constant 0 : i32
    %c0_i32_0 = arith.constant 0 : i32
    %c0_i32_1 = arith.constant 0 : i32
    return %arg0, %c0_i32, %c0_i32_0 : i32, i32, i32
  }
}

</mosaic_0001>

<bundles_post_ra>
// kernel: parallel_cnnet_forward.1
= control target key start
LH: loop header
LB: loop body
LE: loop exit
PB: predicated region body
PF: predicated region fallthrough
CT: control target
= control target key end

     0   :  { %s9946_s30 = smov 0   ;;  %s14179_s0 = inlined_call_operand.vmem [shape: f32[4,2,16,16,1], index: 0, kind: input, shape index: {}]   ;;  %s14180_s1 = inlined_call_operand.vmem [shape: f32[4,3,3,32], index: 1, kind: input, shape index: {}]   ;;  %s14181_s2 = inlined_call_operand.vmem [shape: f32[4,1,32], index: 2, kind: input, shape index: {}]   ;;  %s14182_s3 = inlined_call_operand.vmem [shape: bf16[4,288,64], index: 3, kind: input, shape index: {}]   ;;  %s14183_s4 = inlined_call_operand.vmem [shape: f32[4,1,64], index: 4, kind: input, shape index: {}]   ;;  %s14184_s5 = inlined_call_operand.vmem [shape: bf16[4,1024,128], index: 5, kind: input, shape index: {}]   ;;  %s14185_s6 = inlined_call_operand.vmem [shape: f32[4,1,128], index: 6, kind: input, shape index: {}]   ;;  %s14186_s7 = inlined_call_operand.vmem [shape: f32[4,1,128], index: 7, kind: input, shape index: {}]   ;;  %s14187_s8 = inlined_call_operand.vmem [shape: f32[4,1,1], index: 8, kind: input, shape index: {}]   ;;  %s14188_s9 = inlined_call_operand.vmem [shape: f32[4,2,1], index: 9, kind: output, shape index: {}]  }
   0x1 LB: > { %s9038_s10 = sadd.s32 4294967295, %s9888_s30   ;;  %p9042_p0 = scmp.ge.s32.totalorder %s9888_s30, 1  ;;  %s9888_s30 = sphi %s9946_s30, %s19_s30  }
   0x2   : > { %p357_p1 = scmp.lt.s32.totalorder %s9888_s30, 5 }
   0x4   : > { %p358_p2 = pnand %p9042_p0, %p357_p1 }
   0x6   : > { %361 = sbr.rel (%p358_p2) target bundleno = 2255 (0x8cf), region = 56 }
   0xb   : > { %vm655_vm0 = vcmask 7168   ;;  %vm734_vm1 = vcmask 0   ;;  %p9956_p3 = scmp.lt.s32.totalorder %s9038_s10, 3  ;;  %v9890_v0 = vmov 0   ;;  %v14189_v1 = vmov 0.0   ;;  %s9892_s11 = smov 32  }
   0xc   : > { %9752 = vset.pattern.permute.xlu0 %v9890_v0  ;;  %721 = vst.msk [vmem:[#allocation2 + $0x8] sm:$0xff] %vm655_vm0, %v14189_v1  ;;  %720 = vst.msk [vmem:[#allocation2] sm:$0xff] %vm655_vm0, %v14189_v1  ;;  %9753 = vset.pattern.permute.xlu1 %v9890_v0  ;;  %vm722_vm2 = vcmask 1024   ;;  %s9894_s13 = smov 96  }
   0xd   : > { %724 = vst.msk [vmem:[#allocation2 + $0x1b0] sm:$0xff] %vm655_vm0, %v14189_v1  ;;  %725 = vst.msk [vmem:[#allocation2 + $0x1b8] sm:$0xff] %vm655_vm0, %v14189_v1  ;;  %s14884_s10 = smov (!%p9956_p3, %s9038_s10), 3 }
   0xe   : > { %728 = vst.msk [vmem:[#allocation2 + $0x198] sm:$0xff] %vm655_vm0, %v14189_v1  ;;  %729 = vst.msk [vmem:[#allocation2 + $0x1a0] sm:$0xff] %vm655_vm0, %v14189_v1  ;;  %s9408_s12 = sshll.u32 %s14884_s10, 9  ;;  %s9736_s19 = smul.u32 12, %s14884_s10 }
   0xf   : > { %731 = vst.msk [vmem:[#allocation2 + $0x348] sm:$0xff] %vm655_vm0, %v14189_v1  ;;  %732 = vst.msk [vmem:[#allocation2 + $0x350] sm:$0xff] %vm655_vm0, %v14189_v1  ;;  %s10140_s15 = scalar_lea.vmem %s14179_s0, %s9408_s12  ;;  %s10170_s18 = scalar_lea.vmem %s14184_s5, %s9408_s12 }
  0x10   : > { %736 = vst.msk [vmem:[#allocation2 + $0x18] sm:$0x1] %vm734_vm1, %v14189_v1  ;;  %737 = vst.msk [vmem:[#allocation2 + $0x30] sm:$0x1] %vm734_vm1, %v14189_v1  ;;  %v462_v2 = vld [vmem:[%s10140_s15] sm:$0xff]  ;;  %v464_v3 = vld [vmem:[%s10140_s15 + $0x10] sm:$0xff]  ;;  %s10795_s22 = scalar_lea.vmem %s14180_s1, %s9736_s19  ;;  %s11182_s25 = scalar_lea.vmem %s14181_s2, %s14884_s10 }
  0x11   : > { %738 = vst.msk [vmem:[#allocation2 + $0x48] sm:$0x1] %vm734_vm1, %v14189_v1  ;;  %739 = vst.msk [vmem:[#allocation2 + $0x60] sm:$0x1] %vm734_vm1, %v14189_v1  ;;  %v463_v4 = vld [vmem:[%s10140_s15 + $0x8] sm:$0xff]  ;;  %vm526_vm3 = vcmp.ne.f32.partialorder %v462_v2, %v462_v2  ;;  %vm528_vm4 = vcmp.ne.f32.partialorder %v464_v3, %v464_v3  ;;  %v466_v5 = vld [vmem:[%s10140_s15 + $0x20] sm:$0xff]  ;;  %s442_s16 = scalar_lea.vmem %s14183_s4, %s14884_s10  ;;  %s450_s20 = scalar_lea.vmem %s14185_s6, %s14884_s10 }
  0x12   : > { %740 = vst.msk [vmem:[#allocation2 + $0x78] sm:$0x1] %vm734_vm1, %v14189_v1  ;;  %741 = vst.msk [vmem:[#allocation2 + $0x90] sm:$0x1] %vm734_vm1, %v14189_v1  ;;  %vm527_vm5 = vcmp.ne.f32.partialorder %v463_v4, %v463_v4  ;;  %v465_v6 = vld [vmem:[%s10140_s15 + $0x18] sm:$0xff]  ;;  %v494_v7 = vld [vmem:[%s10140_s15 + $0x100] sm:$0xff]  ;;  %vm530_vm6 = vcmp.ne.f32.partialorder %v466_v5, %v466_v5 }
  0x13   : > { %742 = vst.msk [vmem:[#allocation2 + $0xa8] sm:$0x1] %vm734_vm1, %v14189_v1  ;;  %743 = vst.msk [vmem:[#allocation2 + $0xc0] sm:$0x1] %vm734_vm1, %v14189_v1  ;;  %v860_v8 = vld [vmem:[#allocation2 + $0x8] sm:$0xff]  ;;  %v590_v10 = vsel %vm526_vm3, 0.0, %v462_v2  ;;  %vm529_vm7 = vcmp.ne.f32.partialorder %v465_v6, %v465_v6  ;;  %vm558_vm8 = vcmp.ne.f32.partialorder %v494_v7, %v494_v7 }
  0x14   : > { %744 = vst.msk [vmem:[#allocation2 + $0xd8] sm:$0x1] %vm734_vm1, %v14189_v1  ;;  %745 = vst.msk [vmem:[#allocation2 + $0xf0] sm:$0x1] %vm734_vm1, %v14189_v1  ;;  %v868_v9 = vld [vmem:[#allocation2 + $0x1b8] sm:$0xff]  ;;  %v592_v11 = vsel %vm528_vm4, 0.0, %v464_v3  ;;  %883 = vperm.xlu0 %9752, %v860_v8  }
  0x15   : > { %746 = vst.msk [vmem:[#allocation2 + $0x108] sm:$0x1] %vm734_vm1, %v14189_v1  ;;  %747 = vst.msk [vmem:[#allocation2 + $0x120] sm:$0x1] %vm734_vm1, %v14189_v1  ;;  %v591_v12 = vsel %vm527_vm5, 0.0, %v463_v4  ;;  %v467_v13 = vld [vmem:[%s10140_s15 + $0x28] sm:$0xff]  ;;  %923 = vperm.xlu1 %9753, %v868_v9  }
  0x16   : > { %748 = vst.msk [vmem:[#allocation2 + $0x138] sm:$0x1] %vm734_vm1, %v14189_v1  ;;  %749 = vst.msk [vmem:[#allocation2 + $0x150] sm:$0x1] %vm734_vm1, %v14189_v1  ;;  %v594_v15 = vsel %vm530_vm6, 0.0, %v466_v5  ;;  %vm531_vm9 = vcmp.ne.f32.partialorder %v467_v13, %v467_v13  ;;  %v496_v16 = vld [vmem:[%s10140_s15 + $0x110] sm:$0xff] }
  0x17   : > { %750 = vst.msk [vmem:[#allocation2 + $0x168] sm:$0x1] %vm734_vm1, %v14189_v1  ;;  %751 = vst.msk [vmem:[#allocation2 + $0x180] sm:$0x1] %vm734_vm1, %v14189_v1  ;;  %v593_v17 = vsel %vm529_vm7, 0.0, %v465_v6  ;;  %v622_v18 = vsel %vm558_vm8, 0.0, %v494_v7  ;;  %vm560_vm10 = vcmp.ne.f32.partialorder %v496_v16, %v496_v16 }
  0x18   : > { %754 = vst.msk [vmem:[#allocation2 + $0x1c8] sm:$0x1] %vm734_vm1, %v14189_v1  ;;  %755 = vst.msk [vmem:[#allocation2 + $0x1e0] sm:$0x1] %vm734_vm1, %v14189_v1  ;;  %v595_v19 = vsel %vm531_vm9, 0.0, %v467_v13  ;;  %v495_v20 = vld [vmem:[%s10140_s15 + $0x108] sm:$0xff] }
  0x19   : > { %756 = vst.msk [vmem:[#allocation2 + $0x1f8] sm:$0x1] %vm734_vm1, %v14189_v1  ;;  %757 = vst.msk [vmem:[#allocation2 + $0x210] sm:$0x1] %vm734_vm1, %v14189_v1  ;;  %v498_v21 = vld [vmem:[%s10140_s15 + $0x120] sm:$0xff]  ;;  %v497_v22 = vld [vmem:[%s10140_s15 + $0x118] sm:$0xff]  ;;  %vm559_vm11 = vcmp.ne.f32.partialorder %v495_v20, %v495_v20 }
  0x1a   : > { %758 = vst.msk [vmem:[#allocation2 + $0x228] sm:$0x1] %vm734_vm1, %v14189_v1  ;;  %759 = vst.msk [vmem:[#allocation2 + $0x240] sm:$0x1] %vm734_vm1, %v14189_v1  ;;  %v624_v23 = vsel %vm560_vm10, 0.0, %v496_v16  ;;  %vm562_vm12 = vcmp.ne.f32.partialorder %v498_v21, %v498_v21  ;;  %vm561_vm13 = vcmp.ne.f32.partialorder %v497_v22, %v497_v22  ;;  %v499_v24 = vld [vmem:[%s10140_s15 + $0x128] sm:$0xff] }
  0x1b   : > { %760 = vst.msk [vmem:[#allocation2 + $0x258] sm:$0x1] %vm734_vm1, %v14189_v1  ;;  %761 = vst.msk [vmem:[#allocation2 + $0x270] sm:$0x1] %vm734_vm1, %v14189_v1  ;;  %v623_v25 = vsel %vm559_vm11, 0.0, %v495_v20  ;;  %v626_v26 = vsel %vm562_vm12, 0.0, %v498_v21  ;;  %vm563_vm14 = vcmp.ne.f32.partialorder %v499_v24, %v499_v24 }
  0x1c   : > { %762 = vst.msk [vmem:[#allocation2 + $0x288] sm:$0x1] %vm734_vm1, %v14189_v1  ;;  %763 = vst.msk [vmem:[#allocation2 + $0x2a0] sm:$0x1] %vm734_vm1, %v14189_v1  ;;  %v625_v27 = vsel %vm561_vm13, 0.0, %v497_v22  ;;  %v627_v28 = vsel %vm563_vm14, 0.0, %v499_v24 }
  0x1d   : > { %764 = vst.msk [vmem:[#allocation2 + $0x2b8] sm:$0x1] %vm734_vm1, %v14189_v1  ;;  %765 = vst.msk [vmem:[#allocation2 + $0x2d0] sm:$0x1] %vm734_vm1, %v14189_v1  ;;  %v468_v30 = vld [vmem:[%s10140_s15 + $0x30] sm:$0xff]  ;;  %v469_v31 = vld [vmem:[%s10140_s15 + $0x38] sm:$0xff] }
  0x1e   : > { %766 = vst.msk [vmem:[#allocation2 + $0x2e8] sm:$0x1] %vm734_vm1, %v14189_v1  ;;  %767 = vst.msk [vmem:[#allocation2 + $0x300] sm:$0x1] %vm734_vm1, %v14189_v1  ;;  %vm532_vm15 = vcmp.ne.f32.partialorder %v468_v30, %v468_v30  ;;  %v500_v32 = vld [vmem:[%s10140_s15 + $0x130] sm:$0xff]  ;;  %v501_v33 = vld [vmem:[%s10140_s15 + $0x138] sm:$0xff] }
  0x1f   : > { %768 = vst.msk [vmem:[#allocation2 + $0x318] sm:$0x1] %vm734_vm1, %v14189_v1  ;;  %769 = vst.msk [vmem:[#allocation2 + $0x330] sm:$0x1] %vm734_vm1, %v14189_v1  ;;  %v596_v35 = vsel %vm532_vm15, 0.0, %v468_v30  ;;  %vm564_vm3 = vcmp.ne.f32.partialorder %v500_v32, %v500_v32  ;;  %vm565_vm4 = vcmp.ne.f32.partialorder %v501_v33, %v501_v33  ;;  %v992_v49 = vld [vmem:[#allocation2 + $0x1] sm:$0xff] }
  0x20   : > { %772 = vst.msk [vmem:[#allocation2 + $0x29] sm:$0x1] %vm734_vm1, %v14189_v1  ;;  %773 = vst.msk [vmem:[#allocation2 + $0x41] sm:$0x1] %vm734_vm1, %v14189_v1  ;;  %v628_v37 = vsel %vm564_vm3, 0.0, %v500_v32  ;;  %v629_v38 = vsel %vm565_vm4, 0.0, %v501_v33 }
  0x21   : > { %774 = vst.msk [vmem:[#allocation2 + $0x59] sm:$0x1] %vm734_vm1, %v14189_v1  ;;  %775 = vst.msk [vmem:[#allocation2 + $0x71] sm:$0x1] %vm734_vm1, %v14189_v1  ;;  %v1000_v57 = vld [vmem:[#allocation2 + $0x1b1] sm:$0xff]  ;;  %v1125_v2 = vld [vmem:[#allocation2 + $0x2] sm:$0xff] }
  0x22   : > { %776 = vst.msk [vmem:[#allocation2 + $0x89] sm:$0x1] %vm734_vm1, %v14189_v1  ;;  %777 = vst.msk [vmem:[#allocation2 + $0xa1] sm:$0x1] %vm734_vm1, %v14189_v1  ;;  %v470_v6 = vld [vmem:[%s10140_s15 + $0x40] sm:$0xff]  ;;  %v503_v22 = vld [vmem:[%s10140_s15 + $0x148] sm:$0xff] }
  0x23   : > { %778 = vst.msk [vmem:[#allocation2 + $0xb9] sm:$0x1] %vm734_vm1, %v14189_v1  ;;  %779 = vst.msk [vmem:[#allocation2 + $0xd1] sm:$0x1] %vm734_vm1, %v14189_v1  ;;  %vm534_vm5 = vcmp.ne.f32.partialorder %v470_v6, %v470_v6  ;;  %vm567_vm8 = vcmp.ne.f32.partialorder %v503_v22, %v503_v22  ;;  %vm807_vm3 = vcmask 261120   ;;  %s9737_s26 = smul.u32 144, %s14884_s10 }
  0x24   : > { %780 = vst.msk [vmem:[#allocation2 + $0xe9] sm:$0x1] %vm734_vm1, %v14189_v1  ;;  %781 = vst.msk [vmem:[#allocation2 + $0x101] sm:$0x1] %vm734_vm1, %v14189_v1  ;;  %v598_v7 = vsel %vm534_vm5, 0.0, %v470_v6  ;;  %v472_v6 = vld [vmem:[%s10140_s15 + $0x50] sm:$0xff] }
  0x25   : > { %782 = vst.msk [vmem:[#allocation2 + $0x119] sm:$0x1] %vm734_vm1, %v14189_v1  ;;  %783 = vst.msk [vmem:[#allocation2 + $0x131] sm:$0x1] %vm734_vm1, %v14189_v1  ;;  %vm536_vm9 = vcmp.ne.f32.partialorder %v472_v6, %v472_v6  ;;  %s12452_s29 = scalar_lea.vmem %s14182_s3, %s9737_s26  ;;  %s9893_s12 = smov 64  }
  0x26   : > { %784 = vst.msk [vmem:[#allocation2 + $0x149] sm:$0x1] %vm734_vm1, %v14189_v1  ;;  %785 = vst.msk [vmem:[#allocation2 + $0x161] sm:$0x1] %vm734_vm1, %v14189_v1  ;;  %s9049_s26 = sshll.u32 %s14884_s10, 1 }
  0x27   : > { %786 = vst.msk [vmem:[#allocation2 + $0x179] sm:$0x1] %vm734_vm1, %v14189_v1  ;;  %787 = vst.msk [vmem:[#allocation2 + $0x191] sm:$0x1] %vm734_vm1, %v14189_v1 }
  0x28   : > { %790 = vst.msk [vmem:[#allocation2 + $0x1d9] sm:$0x1] %vm734_vm1, %v14189_v1  ;;  %791 = vst.msk [vmem:[#allocation2 + $0x1f1] sm:$0x1] %vm734_vm1, %v14189_v1 }
  0x29   : > { %792 = vst.msk [vmem:[#allocation2 + $0x209] sm:$0x1] %vm734_vm1, %v14189_v1  ;;  %793 = vst.msk [vmem:[#allocation2 + $0x221] sm:$0x1] %vm734_vm1, %v14189_v1 }
  0x2a   : > { %794 = vst.msk [vmem:[#allocation2 + $0x239] sm:$0x1] %vm734_vm1, %v14189_v1  ;;  %795 = vst.msk [vmem:[#allocation2 + $0x251] sm:$0x1] %vm734_vm1, %v14189_v1 }
  0x2b   : > { %796 = vst.msk [vmem:[#allocation2 + $0x269] sm:$0x1] %vm734_vm1, %v14189_v1  ;;  %797 = vst.msk [vmem:[#allocation2 + $0x281] sm:$0x1] %vm734_vm1, %v14189_v1 }
  0x2c   : > { %798 = vst.msk [vmem:[#allocation2 + $0x299] sm:$0x1] %vm734_vm1, %v14189_v1  ;;  %799 = vst.msk [vmem:[#allocation2 + $0x2b1] sm:$0x1] %vm734_vm1, %v14189_v1 }
  0x2d   : > { %800 = vst.msk [vmem:[#allocation2 + $0x2c9] sm:$0x1] %vm734_vm1, %v14189_v1  ;;  %801 = vst.msk [vmem:[#allocation2 + $0x2e1] sm:$0x1] %vm734_vm1, %v14189_v1 }
  0x2e   : > { %802 = vst.msk [vmem:[#allocation2 + $0x2f9] sm:$0x1] %vm734_vm1, %v14189_v1  ;;  %803 = vst.msk [vmem:[#allocation2 + $0x311] sm:$0x1] %vm734_vm1, %v14189_v1 }
  0x2f   : > { %804 = vst.msk [vmem:[#allocation2 + $0x329] sm:$0x1] %vm734_vm1, %v14189_v1  ;;  %805 = vst.msk [vmem:[#allocation2 + $0x341] sm:$0x1] %vm734_vm1, %v14189_v1 }
  0x30   : > { %735 = vst.msk [vmem:[#allocation2] sm:$0x1] %vm734_vm1, %v14189_v1  ;;  %752 = vst.msk [vmem:[#allocation2 + $0x198] sm:$0x1] %vm734_vm1, %v14189_v1 }
  0x31   : > { %753 = vst.msk [vmem:[#allocation2 + $0x1b0] sm:$0x1] %vm734_vm1, %v14189_v1  ;;  %770 = vst.msk [vmem:[#allocation2 + $0x348] sm:$0x1] %vm734_vm1, %v14189_v1 }
  0x32   : > { %723 = vst.msk [vmem:[#allocation2 + $0x10] sm:$0x3] %vm722_vm2, %v14189_v1  ;;  %726 = vst.msk [vmem:[#allocation2 + $0x1c0] sm:$0x3] %vm722_vm2, %v14189_v1 }
  0x33   : > { %730 = vst.msk [vmem:[#allocation2 + $0x1a8] sm:$0x3] %vm722_vm2, %v14189_v1  ;;  %733 = vst.msk [vmem:[#allocation2 + $0x358] sm:$0x3] %vm722_vm2, %v14189_v1 }
  0x34   : > { %771 = vst.msk [vmem:[#allocation2 + $0x11] sm:$0x1] %vm734_vm1, %v14189_v1  ;;  %788 = vst.msk [vmem:[#allocation2 + $0x1a9] sm:$0x1] %vm734_vm1, %v14189_v1 }
  0x35   : > { %789 = vst.msk [vmem:[#allocation2 + $0x1c1] sm:$0x1] %vm734_vm1, %v14189_v1  ;;  %806 = vst.msk [vmem:[#allocation2 + $0x359] sm:$0x1] %vm734_vm1, %v14189_v1  ;;  %vm533_vm1 = vcmp.ne.f32.partialorder %v469_v31, %v469_v31 }
  0x36   : > { %656 = vst.msk [vmem:[#allocation2 + $0x19] sm:$0xff] %vm655_vm0, %v590_v10  ;;  %658 = vst.msk [vmem:[#allocation2 + $0x31] sm:$0xff] %vm655_vm0, %v592_v11  ;;  %v597_v36 = vsel %vm533_vm1, 0.0, %v469_v31  ;;  %v471_v10 = vld [vmem:[%s10140_s15 + $0x48] sm:$0xff] }
  0x37   : > { %v859_v14 = vld [vmem:[#allocation2] sm:$0xff]  ;;  %657 = vst.msk [vmem:[#allocation2 + $0x21] sm:$0xff] %vm655_vm0, %v591_v12  ;;  %660 = vst.msk [vmem:[#allocation2 + $0x49] sm:$0xff] %vm655_vm0, %v594_v15  ;;  %vm535_vm6 = vcmp.ne.f32.partialorder %v471_v10, %v471_v10 }
  0x38   : > { %659 = vst.msk [vmem:[#allocation2 + $0x39] sm:$0xff] %vm655_vm0, %v593_v17  ;;  %688 = vst.msk [vmem:[#allocation2 + $0x1c9] sm:$0xff] %vm655_vm0, %v622_v18  ;;  %878 = vperm.xlu0 %9752, %v859_v14   ;;  %v867_v29 = vld [vmem:[#allocation2 + $0x1b0] sm:$0xff]  ;;  %v599_v11 = vsel %vm535_vm6, 0.0, %v471_v10  ;;  %v502_v18 = vld [vmem:[%s10140_s15 + $0x140] sm:$0xff] }
  0x39   : > { %661 = vst.msk [vmem:[#allocation2 + $0x51] sm:$0xff] %vm655_vm0, %v595_v19  ;;  %690 = vst.msk [vmem:[#allocation2 + $0x1e1] sm:$0xff] %vm655_vm0, %v624_v23  ;;  %v993_v52 = vld [vmem:[#allocation2 + $0x9] sm:$0xff]  ;;  %v1001_v60 = vld [vmem:[#allocation2 + $0x1b9] sm:$0xff]  ;;  %vm566_vm7 = vcmp.ne.f32.partialorder %v502_v18, %v502_v18  ;;  %v631_v23 = vsel %vm567_vm8, 0.0, %v503_v22 }
  0x3a   : > { %689 = vst.msk [vmem:[#allocation2 + $0x1d1] sm:$0xff] %vm655_vm0, %v623_v25  ;;  %692 = vst.msk [vmem:[#allocation2 + $0x1f9] sm:$0xff] %vm655_vm0, %v626_v26  ;;  %v1133_v14 = vld [vmem:[#allocation2 + $0x1b2] sm:$0xff]  ;;  %v630_v19 = vsel %vm566_vm7, 0.0, %v502_v18  ;;  %vm818_vm7 = vcmask 253952  }
  0x3b   : > { %691 = vst.msk [vmem:[#allocation2 + $0x1e9] sm:$0xff] %vm655_vm0, %v625_v27  ;;  %693 = vst.msk [vmem:[#allocation2 + $0x201] sm:$0xff] %vm655_vm0, %v627_v28  ;;  %v1126_v5 = vld [vmem:[#allocation2 + $0xa] sm:$0xff] }
  0x3c   : > { %918 = vperm.xlu0 %9752, %v867_v29   ;;  %662 = vst.msk [vmem:[#allocation2 + $0x61] sm:$0xff] %vm655_vm0, %v596_v35  ;;  %663 = vst.msk [vmem:[#allocation2 + $0x69] sm:$0xff] %vm655_vm0, %v597_v36  ;;  %v1134_v17 = vld [vmem:[#allocation2 + $0x1ba] sm:$0xff] }
  0x3d   : > { %v10177_v34 = vld [vmem:[#allocation2 + $0x18] sm:$0xff]  ;;  %v10182_v39 = vld [vmem:[#allocation2 + $0x30] sm:$0xff]  ;;  %694 = vst.msk [vmem:[#allocation2 + $0x211] sm:$0xff] %vm655_vm0, %v628_v37  ;;  %695 = vst.msk [vmem:[#allocation2 + $0x219] sm:$0xff] %vm655_vm0, %v629_v38 }
  0x3e   : > { %888 = vperm.xlu1 %9753, %v10177_v34   ;;  %v10184_v40 = vld [vmem:[#allocation2 + $0x20] sm:$0xff]  ;;  %v10190_v41 = vld [vmem:[#allocation2 + $0x48] sm:$0xff]  ;;  %v10219_v53 = vld [vmem:[#allocation2 + $0x31] sm:$0xff]  ;;  %664 = vst.msk [vmem:[#allocation2 + $0x79] sm:$0xff] %vm655_vm0, %v598_v7 }
  0x3f   : > { %v10192_v42 = vld [vmem:[#allocation2 + $0x38] sm:$0xff]  ;;  %v10196_v43 = vld [vmem:[#allocation2 + $0x1c8] sm:$0xff]  ;;  %665 = vst.msk [vmem:[#allocation2 + $0x81] sm:$0xff] %vm655_vm0, %v599_v11  ;;  %696 = vst.msk [vmem:[#allocation2 + $0x229] sm:$0xff] %vm655_vm0, %v630_v19  ;;  %v600_v11 = vsel %vm536_vm9, 0.0, %v472_v6 }
  0x40   : > { %898 = vperm.xlu0 %9752, %v10182_v39   ;;  %v10198_v44 = vld [vmem:[#allocation2 + $0x50] sm:$0xff]  ;;  %v10202_v45 = vld [vmem:[#allocation2 + $0x1e0] sm:$0xff]  ;;  %697 = vst.msk [vmem:[#allocation2 + $0x231] sm:$0xff] %vm655_vm0, %v631_v23  ;;  %666 = vst.msk [vmem:[#allocation2 + $0x91] sm:$0xff] %vm655_vm0, %v600_v11 }
  0x41   : > { %v10204_v46 = vld [vmem:[#allocation2 + $0x1d0] sm:$0xff]  ;;  %v10206_v47 = vld [vmem:[#allocation2 + $0x1f8] sm:$0xff]  ;;  %v10221_v54 = vld [vmem:[#allocation2 + $0x21] sm:$0xff] }
  0x42   : > { %893 = vperm.xlu1 %9753, %v10184_v40   ;;  %v10210_v48 = vld [vmem:[#allocation2 + $0x1e8] sm:$0xff]  ;;  %v10212_v50 = vld [vmem:[#allocation2 + $0x200] sm:$0xff]  ;;  %v10230_v58 = vld [vmem:[#allocation2 + $0x51] sm:$0xff] }
  0x43   : > { %v10216_v51 = vld [vmem:[#allocation2 + $0x19] sm:$0xff]  ;;  %v10224_v55 = vld [vmem:[#allocation2 + $0x49] sm:$0xff]  ;;  %v10237_v61 = vld [vmem:[#allocation2 + $0x1e1] sm:$0xff] }
  0x44   : > { %908 = vperm.xlu0 %9752, %v10190_v41   ;;  %v10226_v56 = vld [vmem:[#allocation2 + $0x39] sm:$0xff]  ;;  %v10234_v59 = vld [vmem:[#allocation2 + $0x1c9] sm:$0xff]  ;;  %v10239_v62 = vld [vmem:[#allocation2 + $0x1d1] sm:$0xff] }
  0x45   : > { %v10242_v63 = vld [vmem:[#allocation2 + $0x1f9] sm:$0xff]  ;;  %v10244_v0 = vld [vmem:[#allocation2 + $0x1e9] sm:$0xff]  ;;  %v10248_v3 = vld [vmem:[#allocation2 + $0x201] sm:$0xff] }
  0x46   : > { %903 = vperm.xlu1 %9753, %v10192_v42   ;;  %v10252_v4 = vld [vmem:[#allocation2 + $0x1a] sm:$0xff]  ;;  %v10258_v8 = vld [vmem:[#allocation2 + $0x32] sm:$0xff]  ;;  %v10260_v9 = vld [vmem:[#allocation2 + $0x22] sm:$0xff] }
  0x47   : > { %v10266_v12 = vld [vmem:[#allocation2 + $0x4a] sm:$0xff]  ;;  %v10268_v13 = vld [vmem:[#allocation2 + $0x3a] sm:$0xff]  ;;  %v10272_v15 = vld [vmem:[#allocation2 + $0x52] sm:$0xff] }
  0x48   : > { %928 = vperm.xlu0 %9752, %v10196_v43   ;;  %v10275_v16 = vld [vmem:[#allocation2 + $0x1ca] sm:$0xff]  ;;  %v10280_v20 = vld [vmem:[#allocation2 + $0x1e2] sm:$0xff]  ;;  %v10282_v21 = vld [vmem:[#allocation2 + $0x1d2] sm:$0xff] }
  0x49   : > { %v10288_v24 = vld [vmem:[#allocation2 + $0x1fa] sm:$0xff]  ;;  %v10290_v25 = vld [vmem:[#allocation2 + $0x1ea] sm:$0xff]  ;;  %v10294_v26 = vld [vmem:[#allocation2 + $0x202] sm:$0xff] }
  0x4a   : > { %913 = vperm.xlu1 %9753, %v10198_v44   ;;  %v10302_v27 = vld [vmem:[#allocation2 + $0x60] sm:$0xff]  ;;  %v10306_v28 = vld [vmem:[#allocation2 + $0x68] sm:$0xff]  ;;  %v10314_v29 = vld [vmem:[#allocation2 + $0x210] sm:$0xff] }
  0x4b   : > { %v10322_v32 = vld [vmem:[#allocation2 + $0x218] sm:$0xff]  ;;  %v10340_v38 = vld [vmem:[#allocation2 + $0x61] sm:$0xff] }
  0x4c   : > { %938 = vperm.xlu0 %9752, %v10202_v45  }
  0x4e   : > { %933 = vperm.xlu1 %9753, %v10204_v46  }
  0x50   : > { %948 = vperm.xlu0 %9752, %v10206_v47  }
  0x52   : > { %943 = vperm.xlu1 %9753, %v10210_v48  }
  0x54   : > { %1011 = vperm.xlu0 %9752, %v992_v49  }
  0x56   : > { %953 = vperm.xlu1 %9753, %v10212_v50  }
  0x58   : > { %1021 = vperm.xlu0 %9752, %v10216_v51  }
  0x5a   : > { %1016 = vperm.xlu1 %9753, %v993_v52  }
  0x5c   : > { %1031 = vperm.xlu0 %9752, %v10219_v53  }
  0x5e   : > { %1026 = vperm.xlu1 %9753, %v10221_v54  }
  0x60   : > { %1041 = vperm.xlu0 %9752, %v10224_v55  }
  0x62   : > { %1036 = vperm.xlu1 %9753, %v10226_v56  }
  0x64   : > { %1051 = vperm.xlu0 %9752, %v1000_v57  }
  0x66   : > { %1046 = vperm.xlu1 %9753, %v10230_v58  }
  0x68   : > { %1061 = vperm.xlu0 %9752, %v10234_v59  }
  0x6a   : > { %1056 = vperm.xlu1 %9753, %v1001_v60  }
  0x6c   : > { %1071 = vperm.xlu0 %9752, %v10237_v61  }
  0x6e   : > { %1066 = vperm.xlu1 %9753, %v10239_v62  }
  0x70   : > { %1081 = vperm.xlu0 %9752, %v10242_v63  }
  0x72   : > { %1076 = vperm.xlu1 %9753, %v10244_v0  }
  0x74   : > { %1144 = vperm.xlu0 %9752, %v1125_v2  }
  0x76   : > { %1086 = vperm.xlu1 %9753, %v10248_v3  }
  0x78   : > { %1154 = vperm.xlu0 %9752, %v10252_v4  }
  0x7a   : > { %1149 = vperm.xlu1 %9753, %v1126_v5  }
  0x7c   : > { %1164 = vperm.xlu0 %9752, %v10258_v8  }
  0x7e   : > { %1159 = vperm.xlu1 %9753, %v10260_v9  }
  0x80   : > { %1174 = vperm.xlu0 %9752, %v10266_v12  }
  0x82   : > { %1169 = vperm.xlu1 %9753, %v10268_v13  }
  0x84   : > { %1184 = vperm.xlu0 %9752, %v1133_v14   ;;  %v474_v14 = vld [vmem:[%s10140_s15 + $0x60] sm:$0xff] }
  0x85   : > { %vm538_vm10 = vcmp.ne.f32.partialorder %v474_v14, %v474_v14 }
  0x86   : > { %1179 = vperm.xlu1 %9753, %v10272_v15   ;;  %v602_v22 = vsel %vm538_vm10, 0.0, %v474_v14 }
  0x87   : > { %668 = vst.msk [vmem:[#allocation2 + $0xa9] sm:$0xff] %vm655_vm0, %v602_v22  ;;  %v10412_v22 = vld [vmem:[#allocation2 + $0x6a] sm:$0xff] }
  0x88   : > { %1194 = vperm.xlu0 %9752, %v10275_v16  }
  0x8a   : > { %1189 = vperm.xlu1 %9753, %v1134_v17   ;;  %v473_v17 = vld [vmem:[%s10140_s15 + $0x58] sm:$0xff] }
  0x8b   : > { %vm537_vm11 = vcmp.ne.f32.partialorder %v473_v17, %v473_v17 }
  0x8c   : > { %1204 = vperm.xlu0 %9752, %v10280_v20   ;;  %v601_v23 = vsel %vm537_vm11, 0.0, %v473_v17 }
  0x8d   : > { %667 = vst.msk [vmem:[#allocation2 + $0x99] sm:$0xff] %vm655_vm0, %v601_v23  ;;  %v504_v23 = vld [vmem:[%s10140_s15 + $0x150] sm:$0xff] }
  0x8e   : > { %1199 = vperm.xlu1 %9753, %v10282_v21   ;;  %vm568_vm13 = vcmp.ne.f32.partialorder %v504_v23, %v504_v23 }
  0x8f   : > { %v10316_v30 = vpop.permute.xlu0 %883 }
  0x90   : > { %1214 = vperm.xlu0 %9752, %v10288_v24   ;;  %v10320_v31 = vpop.permute.xlu1 %923 }
  0x92   : > { %1209 = vperm.xlu1 %9753, %v10290_v25  }
  0x94   : > { %1278 = vperm.xlu0 %9752, %v10177_v34  }
  0x96   : > { %1219 = vperm.xlu1 %9753, %v10294_v26  }
  0x98   : > { %1288 = vperm.xlu0 %9752, %v10182_v39  }
  0x9a   : > { %1283 = vperm.xlu1 %9753, %v10184_v40  }
  0x9c   : > { %1298 = vperm.xlu0 %9752, %v10190_v41  }
  0x9e   : > { %1293 = vperm.xlu1 %9753, %v10192_v42  }
  0xa0   : > { %1308 = vperm.xlu0 %9752, %v10302_v27  }
  0xa2   : > { %1303 = vperm.xlu1 %9753, %v10198_v44  }
  0xa4   : > { %1318 = vperm.xlu0 %9752, %v10196_v43  }
  0xa6   : > { %1313 = vperm.xlu1 %9753, %v10306_v28  }
  0xa8   : > { %1328 = vperm.xlu0 %9752, %v10202_v45  }
  0xaa   : > { %1323 = vperm.xlu1 %9753, %v10204_v46   ;;  %v10348_v46 = vld [vmem:[#allocation2 + $0x69] sm:$0xff] }
  0xac   : > { %1338 = vperm.xlu0 %9752, %v10206_v47  }
  0xae   : > { %1333 = vperm.xlu1 %9753, %v10210_v48  }
  0xb0   : > { %1348 = vperm.xlu0 %9752, %v10314_v29  }
  0xb2   : > { %1343 = vperm.xlu1 %9753, %v10212_v50  }
  0xb3   : > { %v10324_v33 = vpop.permute.xlu0 %878 }
  0xb4   : > { %1411 = vperm.xlu0 %9752, %v10216_v51  }
  0xb6   : > { %1353 = vperm.xlu1 %9753, %v10322_v32  }
  0xb7   : > { %v10328_v34 = vpop.permute.xlu0 %918 }
  0xb8   : > { %1421 = vperm.xlu0 %9752, %v10219_v53  }
  0xb9   : > { %v10330_v35 = vpop.permute.xlu1 %888 }
  0xba   : > { %1416 = vperm.xlu1 %9753, %v10221_v54  }
  0xbb   : > { %v10334_v36 = vpop.permute.xlu0 %898 }
  0xbc   : > { %1431 = vperm.xlu0 %9752, %v10224_v55  }
  0xbd   : > { %v10336_v37 = vpop.permute.xlu1 %893 }
  0xbe   : > { %1426 = vperm.xlu1 %9753, %v10226_v56  }
  0xbf   : > { %v10342_v40 = vpop.permute.xlu0 %908 }
  0xc0   : > { %1441 = vperm.xlu0 %9752, %v10340_v38  }
  0xc1   : > { %v10344_v43 = vpop.permute.xlu1 %903 }
  0xc2   : > { %1436 = vperm.xlu1 %9753, %v10230_v58  }
  0xc3   : > { %v10350_v49 = vpop.permute.xlu0 %928 }
  0xc4   : > { %1451 = vperm.xlu0 %9752, %v10234_v59   ;;  %v10368_v59 = vld [vmem:[#allocation2 + $0x211] sm:$0xff] }
  0xc5   : > { %v10352_v51 = vpop.permute.xlu1 %913 }
  0xc6   : > { %1446 = vperm.xlu1 %9753, %v10348_v46  }
  0xc7   : > { %v10356_v52 = vpop.permute.xlu0 %938 }
  0xc8   : > { %1461 = vperm.xlu0 %9752, %v10237_v61  }
  0xc9   : > { %v10358_v54 = vpop.permute.xlu1 %933 }
  0xca   : > { %1456 = vperm.xlu1 %9753, %v10239_v62   ;;  %v10376_v62 = vld [vmem:[#allocation2 + $0x219] sm:$0xff] }
  0xcb   : > { %v10362_v57 = vpop.permute.xlu0 %948 }
  0xcc   : > { %1471 = vperm.xlu0 %9752, %v10242_v63  }
  0xcd   : > { %v10364_v60 = vpop.permute.xlu1 %943 }
  0xce   : > { %14279 = vst [vmem:[#allocation9_spill] sm:$0xff] %v10364_v60  ;;  %1466 = vperm.xlu1 %9753, %v10244_v0  }
  0xcf   : > { %v10370_v2 = vpop.permute.xlu0 %1011 }
  0xd0   : > { %1481 = vperm.xlu0 %9752, %v10368_v59  }
  0xd1   : > { %v10372_v5 = vpop.permute.xlu1 %953 }
  0xd2   : > { %14280 = vst [vmem:[#allocation10_spill] sm:$0xff] %v10372_v5  ;;  %1476 = vperm.xlu1 %9753, %v10248_v3  }
  0xd3   : > { %v10379_v7 = vpop.permute.xlu0 %1021 }
  0xd4   : > { %1544 = vperm.xlu0 %9752, %v10252_v4   ;;  %v475_v4 = vld [vmem:[%s10140_s15 + $0x68] sm:$0xff] }
  0xd5   : > { %v10381_v10 = vpop.permute.xlu1 %1016  ;;  %vm539_vm12 = vcmp.ne.f32.partialorder %v475_v4, %v475_v4 }
  0xd6   : > { %1486 = vperm.xlu1 %9753, %v10376_v62   ;;  %v603_v1 = vsel %vm539_vm12, 0.0, %v475_v4 }
  0xd7   : > { %v10388_v18 = vpop.permute.xlu0 %1031  ;;  %669 = vst.msk [vmem:[#allocation2 + $0xb1] sm:$0xff] %vm655_vm0, %v603_v1  ;;  %v632_v1 = vsel %vm568_vm13, 0.0, %v504_v23  ;;  %vm6028_vm13 = vcmask 257024  }
  0xd8   : > { %1554 = vperm.xlu0 %9752, %v10258_v8   ;;  %698 = vst.msk [vmem:[#allocation2 + $0x241] sm:$0xff] %vm655_vm0, %v632_v1 }
  0xd9   : > { %v10390_v19 = vpop.permute.xlu1 %1026 }
  0xda   : > { %1549 = vperm.xlu1 %9753, %v10260_v9   ;;  %v10404_v9 = vld [vmem:[#allocation2 + $0x62] sm:$0xff] }
  0xdb   : > { %v10397_v6 = vpop.permute.xlu0 %1041 }
  0xdc   : > { %14281 = vst [vmem:[#allocation11_spill] sm:$0xff] %v10397_v6  ;;  %1564 = vperm.xlu0 %9752, %v10266_v12  }
  0xdd   : > { %v10399_v11 = vpop.permute.xlu1 %1036 }
  0xde   : > { %14282 = vst [vmem:[#allocation12_spill] sm:$0xff] %v10399_v11  ;;  %1559 = vperm.xlu1 %9753, %v10268_v13  }
  0xdf   : > { %v10406_v14 = vpop.permute.xlu0 %1051 }
  0xe0   : > { %14283 = vst [vmem:[#allocation13_spill] sm:$0xff] %v10406_v14  ;;  %1574 = vperm.xlu0 %9752, %v10404_v9   ;;  %v505_v14 = vld [vmem:[%s10140_s15 + $0x158] sm:$0xff] }
  0xe1   : > { %v10408_v17 = vpop.permute.xlu1 %1046  ;;  %vm569_vm15 = vcmp.ne.f32.partialorder %v505_v14, %v505_v14 }
  0xe2   : > { %14284 = vst [vmem:[#allocation14_spill] sm:$0xff] %v10408_v17  ;;  %1569 = vperm.xlu1 %9753, %v10272_v15   ;;  %v506_v17 = vld [vmem:[%s10140_s15 + $0x160] sm:$0xff] }
  0xe3   : > { %v10415_v4 = vpop.permute.xlu0 %1061  ;;  %vm570_vm14 = vcmp.ne.f32.partialorder %v506_v17, %v506_v17 }
  0xe4   : > { %14285 = vst [vmem:[#allocation15_spill] sm:$0xff] %v10415_v4  ;;  %1584 = vperm.xlu0 %9752, %v10275_v16   ;;  %v634_v60 = vsel %vm570_vm14, 0.0, %v506_v17  ;;  %v633_v4 = vsel %vm569_vm15, 0.0, %v505_v14  ;;  %v507_v16 = vld [vmem:[%s10140_s15 + $0x168] sm:$0xff]  ;;  %v10440_v14 = vld [vmem:[#allocation2 + $0x212] sm:$0xff]  ;;  %v10448_v17 = vld [vmem:[#allocation2 + $0x21a] sm:$0xff] }
  0xe5   : > { %v10417_v11 = vpop.permute.xlu1 %1056  ;;  %700 = vst.msk [vmem:[#allocation2 + $0x259] sm:$0xff] %vm655_vm0, %v634_v60  ;;  %699 = vst.msk [vmem:[#allocation2 + $0x249] sm:$0xff] %vm655_vm0, %v633_v4  ;;  %vm571_vm1 = vcmp.ne.f32.partialorder %v507_v16, %v507_v16 }
  0xe6   : > { %14286 = vst [vmem:[#allocation16_spill] sm:$0xff] %v10417_v11  ;;  %1579 = vperm.xlu1 %9753, %v10412_v22   ;;  %v635_v11 = vsel %vm571_vm1, 0.0, %v507_v16  ;;  %14290 = vst [vmem:[#allocation20_spill] sm:$0xff] %v10448_v17 }
  0xe7   : > { %v10424_v6 = vpop.permute.xlu0 %1071  ;;  %701 = vst.msk [vmem:[#allocation2 + $0x261] sm:$0xff] %vm655_vm0, %v635_v11 }
  0xe8   : > { %1594 = vperm.xlu0 %9752, %v10280_v20  }
  0xe9   : > { %v10426_v5 = vpop.permute.xlu1 %1066 }
  0xea   : > { %1589 = vperm.xlu1 %9753, %v10282_v21  }
  0xeb   : > { %v10433_v23 = vpop.permute.xlu0 %1081 }
  0xec   : > { %1604 = vperm.xlu0 %9752, %v10288_v24  }
  0xed   : > { %v10435_v1 = vpop.permute.xlu1 %1076 }
  0xee   : > { %14287 = vst [vmem:[#allocation17_spill] sm:$0xff] %v10435_v1  ;;  %1599 = vperm.xlu1 %9753, %v10290_v25  }
  0xef   : > { %v10442_v21 = vpop.permute.xlu0 %1144 }
  0xf0   : > { %14288 = vst [vmem:[#allocation18_spill] sm:$0xff] %v10442_v21  ;;  %1614 = vperm.xlu0 %9752, %v10440_v14  }
  0xf1   : > { %v10444_v60 = vpop.permute.xlu1 %1086 }
  0xf2   : > { %14289 = vst [vmem:[#allocation19_spill] sm:$0xff] %v10444_v60  ;;  %1609 = vperm.xlu1 %9753, %v10294_v26  }
  0xf3   : > { %v10450_v4 = vpop.permute.xlu0 %1154 }
  0xf4   : > { %14291 = vst [vmem:[#allocation21_spill] sm:$0xff] %v10450_v4  ;;  %1679 = vperm.xlu0 %9752, %v10182_v39  }
  0xf5   : > { %v10452_v16 = vpop.permute.xlu1 %1149 }
  0xf6   : > { %14292 = vst [vmem:[#allocation22_spill] sm:$0xff] %v10452_v16  ;;  %1619 = vperm.xlu1 %9753, %v10448_v17   ;;  %v10468_v16 = vld [vmem:[#allocation2 + $0x78] sm:$0xff] }
  0xf7   : > { %v10456_v11 = vpop.permute.xlu0 %1164  ;;  %14295 = vst [vmem:[#allocation25_spill] sm:$0xff] %v10468_v16 }
  0xf8   : > { %1689 = vperm.xlu0 %9752, %v10190_v41   ;;  %v10476_v41 = vld [vmem:[#allocation2 + $0x80] sm:$0xff] }
  0xf9   : > { %v10458_v1 = vpop.permute.xlu1 %1159 }
  0xfa   : > { %1684 = vperm.xlu1 %9753, %v10192_v42  }
  0xfb   : > { %v10462_v60 = vpop.permute.xlu0 %1174 }
  0xfc   : > { %14293 = vst [vmem:[#allocation23_spill] sm:$0xff] %v10462_v60  ;;  %1699 = vperm.xlu0 %9752, %v10302_v27  }
  0xfd   : > { %v10464_v21 = vpop.permute.xlu1 %1169 }
  0xfe   : > { %14294 = vst [vmem:[#allocation24_spill] sm:$0xff] %v10464_v21  ;;  %1694 = vperm.xlu1 %9753, %v10198_v44  }
  0xff   : > { %v10470_v39 = vpop.permute.xlu0 %1184 }
 0x100   : > { %14296 = vst [vmem:[#allocation26_spill] sm:$0xff] %v10470_v39  ;;  %1709 = vperm.xlu0 %9752, %v10468_v16  }
 0x101   : > { %v10472_v4 = vpop.permute.xlu1 %1179 }
 0x102   : > { %14297 = vst [vmem:[#allocation27_spill] sm:$0xff] %v10472_v4  ;;  %1704 = vperm.xlu1 %9753, %v10306_v28  }
 0x103   : > { %v10478_v42 = vpop.permute.xlu0 %1194 }
 0x104   : > { %14298 = vst [vmem:[#allocation28_spill] sm:$0xff] %v10478_v42  ;;  %1719 = vperm.xlu0 %9752, %v10202_v45  }
 0x105   : > { %v10480_v60 = vpop.permute.xlu1 %1189 }
 0x106   : > { %14299 = vst [vmem:[#allocation29_spill] sm:$0xff] %v10480_v60  ;;  %1714 = vperm.xlu1 %9753, %v10476_v41   ;;  %v10496_v60 = vld [vmem:[#allocation2 + $0x228] sm:$0xff] }
 0x107   : > { %v10484_v44 = vpop.permute.xlu0 %1204 }
 0x108   : > { %1729 = vperm.xlu0 %9752, %v10206_v47   ;;  %v10504_v47 = vld [vmem:[#allocation2 + $0x230] sm:$0xff] }
 0x109   : > { %v10486_v21 = vpop.permute.xlu1 %1199 }
 0x10a   : > { %1724 = vperm.xlu1 %9753, %v10210_v48  }
 0x10b   : > { %v10490_v4 = vpop.permute.xlu0 %1214 }
 0x10c   : > { %14300 = vst [vmem:[#allocation30_spill] sm:$0xff] %v10490_v4  ;;  %1739 = vperm.xlu0 %9752, %v10314_v29  }
 0x10d   : > { %v10492_v39 = vpop.permute.xlu1 %1209 }
 0x10e   : > { %14301 = vst [vmem:[#allocation31_spill] sm:$0xff] %v10492_v39  ;;  %1734 = vperm.xlu1 %9753, %v10212_v50  }
 0x10f   : > { %v10498_v45 = vpop.permute.xlu0 %1278 }
 0x110   : > { %14302 = vst [vmem:[#allocation32_spill] sm:$0xff] %v10498_v45  ;;  %1749 = vperm.xlu0 %9752, %v10496_v60  }
 0x111   : > { %v10500_v42 = vpop.permute.xlu1 %1219 }
 0x112   : > { %14303 = vst [vmem:[#allocation33_spill] sm:$0xff] %v10500_v42  ;;  %1744 = vperm.xlu1 %9753, %v10322_v32  }
 0x113   : > { %v10506_v48 = vpop.permute.xlu0 %1288 }
 0x114   : > { %14304 = vst [vmem:[#allocation34_spill] sm:$0xff] %v10506_v48  ;;  %1812 = vperm.xlu0 %9752, %v10219_v53  }
 0x115   : > { %v10508_v4 = vpop.permute.xlu1 %1283 }
 0x116   : > { %14305 = vst [vmem:[#allocation35_spill] sm:$0xff] %v10508_v4  ;;  %1754 = vperm.xlu1 %9753, %v10504_v47   ;;  %v10524_v4 = vld [vmem:[#allocation2 + $0x79] sm:$0xff] }
 0x117   : > { %v10512_v50 = vpop.permute.xlu0 %1298 }
 0x118   : > { %1822 = vperm.xlu0 %9752, %v10224_v55   ;;  %v10532_v55 = vld [vmem:[#allocation2 + $0x81] sm:$0xff] }
 0x119   : > { %v10514_v39 = vpop.permute.xlu1 %1293 }
 0x11a   : > { %1817 = vperm.xlu1 %9753, %v10226_v56  }
 0x11b   : > { %v10518_v42 = vpop.permute.xlu0 %1308 }
 0x11c   : > { %14306 = vst [vmem:[#allocation36_spill] sm:$0xff] %v10518_v42  ;;  %1832 = vperm.xlu0 %9752, %v10340_v38  }
 0x11d   : > { %v10520_v45 = vpop.permute.xlu1 %1303 }
 0x11e   : > { %14307 = vst [vmem:[#allocation37_spill] sm:$0xff] %v10520_v45  ;;  %1827 = vperm.xlu1 %9753, %v10230_v58  }
 0x11f   : > { %v10526_v53 = vpop.permute.xlu0 %1318 }
 0x120   : > { %14308 = vst [vmem:[#allocation38_spill] sm:$0xff] %v10526_v53  ;;  %1842 = vperm.xlu0 %9752, %v10524_v4  }
 0x121   : > { %v10528_v48 = vpop.permute.xlu1 %1313 }
 0x122   : > { %14309 = vst [vmem:[#allocation39_spill] sm:$0xff] %v10528_v48  ;;  %1837 = vperm.xlu1 %9753, %v10348_v46  }
 0x123   : > { %v10534_v56 = vpop.permute.xlu0 %1328 }
 0x124   : > { %14310 = vst [vmem:[#allocation40_spill] sm:$0xff] %v10534_v56  ;;  %1852 = vperm.xlu0 %9752, %v10237_v61   ;;  %v10552_v61 = vld [vmem:[#allocation2 + $0x229] sm:$0xff] }
 0x125   : > { %v10536_v42 = vpop.permute.xlu1 %1323 }
 0x126   : > { %14311 = vst [vmem:[#allocation41_spill] sm:$0xff] %v10536_v42  ;;  %1847 = vperm.xlu1 %9753, %v10532_v55  }
 0x127   : > { %v10540_v58 = vpop.permute.xlu0 %1338 }
 0x128   : > { %14312 = vst [vmem:[#allocation42_spill] sm:$0xff] %v10540_v58  ;;  %1862 = vperm.xlu0 %9752, %v10242_v63   ;;  %v10568_v63 = vld [vmem:[#allocation2 + $0x231] sm:$0xff] }
 0x129   : > { %v10542_v45 = vpop.permute.xlu1 %1333 }
 0x12a   : > { %14313 = vst [vmem:[#allocation43_spill] sm:$0xff] %v10542_v45  ;;  %1857 = vperm.xlu1 %9753, %v10244_v0   ;;  %v14318_v45 = vmov 0.0  }
 0x12b   : > { %v10546_v48 = vpop.permute.xlu0 %1348  ;;  %808 = vst.msk [vmem:[#allocation4] sm:$0xff] %vm807_vm3, %v14318_v45  ;;  %811 = vst.msk [vmem:[#allocation4 + $0xa0] sm:$0xff] %vm807_vm3, %v14318_v45 }
 0x12c   : > { %14314 = vst [vmem:[#allocation44_spill] sm:$0xff] %v10546_v48  ;;  %1872 = vperm.xlu0 %9752, %v10368_v59   ;;  %814 = vst.msk [vmem:[#allocation4 + $0x90] sm:$0xff] %vm807_vm3, %v14318_v45 }
 0x12d   : > { %v10548_v53 = vpop.permute.xlu1 %1343  ;;  %816 = vst.msk [vmem:[#allocation4 + $0x130] sm:$0xff] %vm807_vm3, %v14318_v45 }
 0x12e   : > { %14315 = vst [vmem:[#allocation45_spill] sm:$0xff] %v10548_v53  ;;  %1867 = vperm.xlu1 %9753, %v10248_v3   ;;  %841 = vst.msk [vmem:[#allocation4 + $0x29] sm:$0x1] %vm818_vm7, %v14318_v45 }
 0x12f   : > { %v10554_v42 = vpop.permute.xlu0 %1411  ;;  %842 = vst.msk [vmem:[#allocation4 + $0x39] sm:$0x1] %vm818_vm7, %v14318_v45  ;;  %819 = vst.msk [vmem:[#allocation4] sm:$0x1] %vm818_vm7, %v14318_v45 }
 0x130   : > { %14316 = vst [vmem:[#allocation46_spill] sm:$0xff] %v10554_v42  ;;  %1882 = vperm.xlu0 %9752, %v10552_v61   ;;  %820 = vst.msk [vmem:[#allocation4 + $0x10] sm:$0x1] %vm818_vm7, %v14318_v45 }
 0x131   : > { %v10556_v58 = vpop.permute.xlu1 %1353  ;;  %821 = vst.msk [vmem:[#allocation4 + $0x20] sm:$0x1] %vm818_vm7, %v14318_v45  ;;  %822 = vst.msk [vmem:[#allocation4 + $0x30] sm:$0x1] %vm818_vm7, %v14318_v45 }
 0x132   : > { %14317 = vst [vmem:[#allocation47_spill] sm:$0xff] %v10556_v58  ;;  %1877 = vperm.xlu1 %9753, %v10376_v62   ;;  %v476_v58 = vld [vmem:[%s10140_s15 + $0x70] sm:$0xff]  ;;  %823 = vst.msk [vmem:[#allocation4 + $0x40] sm:$0x1] %vm818_vm7, %v14318_v45 }
 0x133   : > { %v10570_v0 = vpop.permute.xlu0 %1421  ;;  %vm540_vm4 = vcmp.ne.f32.partialorder %v476_v58, %v476_v58  ;;  %824 = vst.msk [vmem:[#allocation4 + $0x50] sm:$0x1] %vm818_vm7, %v14318_v45  ;;  %825 = vst.msk [vmem:[#allocation4 + $0x60] sm:$0x1] %vm818_vm7, %v14318_v45 }
 0x134   : > { %14319 = vst [vmem:[#allocation48_spill] sm:$0xff] %v10570_v0  ;;  %1945 = vperm.xlu0 %9752, %v10258_v8   ;;  %v604_v48 = vsel %vm540_vm4, 0.0, %v476_v58  ;;  %v477_v0 = vld [vmem:[%s10140_s15 + $0x78] sm:$0xff]  ;;  %826 = vst.msk [vmem:[#allocation4 + $0x70] sm:$0x1] %vm818_vm7, %v14318_v45 }
 0x135   : > { %v10572_v3 = vpop.permute.xlu1 %1416  ;;  %670 = vst.msk [vmem:[#allocation2 + $0xc1] sm:$0xff] %vm655_vm0, %v604_v48  ;;  %vm541_vm5 = vcmp.ne.f32.partialorder %v477_v0, %v477_v0  ;;  %v10592_v58 = vld [vmem:[#allocation2 + $0x7a] sm:$0xff]  ;;  %v10600_v48 = vld [vmem:[#allocation2 + $0x82] sm:$0xff] }
 0x136   : > { %14320 = vst [vmem:[#allocation49_spill] sm:$0xff] %v10572_v3  ;;  %1887 = vperm.xlu1 %9753, %v10568_v63   ;;  %v605_v56 = vsel %vm541_vm5, 0.0, %v477_v0  ;;  %827 = vst.msk [vmem:[#allocation4 + $0x80] sm:$0x1] %vm818_vm7, %v14318_v45 }
 0x137   : > { %v10577_v42 = vpop.permute.xlu0 %1431  ;;  %671 = vst.msk [vmem:[#allocation2 + $0xc9] sm:$0xff] %vm655_vm0, %v605_v56 }
 0x138   : > { %1955 = vperm.xlu0 %9752, %v10266_v12   ;;  %828 = vst.msk [vmem:[#allocation4 + $0x90] sm:$0x1] %vm818_vm7, %v14318_v45  ;;  %829 = vst.msk [vmem:[#allocation4 + $0xa0] sm:$0x1] %vm818_vm7, %v14318_v45 }
 0x139   : > { %v10579_v53 = vpop.permute.xlu1 %1426  ;;  %830 = vst.msk [vmem:[#allocation4 + $0xb0] sm:$0x1] %vm818_vm7, %v14318_v45  ;;  %831 = vst.msk [vmem:[#allocation4 + $0xc0] sm:$0x1] %vm818_vm7, %v14318_v45 }
 0x13a   : > { %1950 = vperm.xlu1 %9753, %v10268_v13   ;;  %832 = vst.msk [vmem:[#allocation4 + $0xd0] sm:$0x1] %vm818_vm7, %v14318_v45  ;;  %833 = vst.msk [vmem:[#allocation4 + $0xe0] sm:$0x1] %vm818_vm7, %v14318_v45 }
 0x13b   : > { %v10585_v3 = vpop.permute.xlu0 %1441  ;;  %834 = vst.msk [vmem:[#allocation4 + $0xf0] sm:$0x1] %vm818_vm7, %v14318_v45  ;;  %835 = vst.msk [vmem:[#allocation4 + $0x100] sm:$0x1] %vm818_vm7, %v14318_v45 }
 0x13c   : > { %1965 = vperm.xlu0 %9752, %v10404_v9   ;;  %836 = vst.msk [vmem:[#allocation4 + $0x110] sm:$0x1] %vm818_vm7, %v14318_v45  ;;  %837 = vst.msk [vmem:[#allocation4 + $0x120] sm:$0x1] %vm818_vm7, %v14318_v45 }
 0x13d   : > { %v10587_v8 = vpop.permute.xlu1 %1436  ;;  %838 = vst.msk [vmem:[#allocation4 + $0x130] sm:$0x1] %vm818_vm7, %v14318_v45  ;;  %840 = vst.msk [vmem:[#allocation4 + $0x19] sm:$0x1] %vm818_vm7, %v14318_v45 }
 0x13e   : > { %14321 = vst [vmem:[#allocation50_spill] sm:$0xff] %v10587_v8  ;;  %1960 = vperm.xlu1 %9753, %v10272_v15   ;;  %v508_v15 = vld [vmem:[%s10140_s15 + $0x170] sm:$0xff]  ;;  %843 = vst.msk [vmem:[#allocation4 + $0x49] sm:$0x1] %vm818_vm7, %v14318_v45 }
 0x13f   : > { %v10594_v12 = vpop.permute.xlu0 %1451  ;;  %vm572_vm6 = vcmp.ne.f32.partialorder %v508_v15, %v508_v15  ;;  %844 = vst.msk [vmem:[#allocation4 + $0x59] sm:$0x1] %vm818_vm7, %v14318_v45  ;;  %845 = vst.msk [vmem:[#allocation4 + $0x69] sm:$0x1] %vm818_vm7, %v14318_v45 }
 0x140   : > { %14322 = vst [vmem:[#allocation51_spill] sm:$0xff] %v10594_v12  ;;  %1975 = vperm.xlu0 %9752, %v10592_v58   ;;  %v636_v12 = vsel %vm572_vm6, 0.0, %v508_v15  ;;  %846 = vst.msk [vmem:[#allocation4 + $0x79] sm:$0x1] %vm818_vm7, %v14318_v45 }
 0x141   : > { %v10596_v13 = vpop.permute.xlu1 %1446  ;;  %702 = vst.msk [vmem:[#allocation2 + $0x271] sm:$0xff] %vm655_vm0, %v636_v12 }
 0x142   : > { %14323 = vst [vmem:[#allocation52_spill] sm:$0xff] %v10596_v13  ;;  %1970 = vperm.xlu1 %9753, %v10412_v22   ;;  %847 = vst.msk [vmem:[#allocation4 + $0x89] sm:$0x1] %vm818_vm7, %v14318_v45 }
 0x143   : > { %v10602_v0 = vpop.permute.xlu0 %1461  ;;  %850 = vst.msk [vmem:[#allocation4 + $0xb9] sm:$0x1] %vm818_vm7, %v14318_v45  ;;  %851 = vst.msk [vmem:[#allocation4 + $0xc9] sm:$0x1] %vm818_vm7, %v14318_v45 }
 0x144   : > { %14324 = vst [vmem:[#allocation53_spill] sm:$0xff] %v10602_v0  ;;  %1985 = vperm.xlu0 %9752, %v10280_v20   ;;  %v509_v0 = vld [vmem:[%s10140_s15 + $0x178] sm:$0xff]  ;;  %852 = vst.msk [vmem:[#allocation4 + $0xd9] sm:$0x1] %vm818_vm7, %v14318_v45 }
 0x145   : > { %v10604_v8 = vpop.permute.xlu1 %1456  ;;  %vm573_vm8 = vcmp.ne.f32.partialorder %v509_v0, %v509_v0  ;;  %853 = vst.msk [vmem:[#allocation4 + $0xe9] sm:$0x1] %vm818_vm7, %v14318_v45  ;;  %854 = vst.msk [vmem:[#allocation4 + $0xf9] sm:$0x1] %vm818_vm7, %v14318_v45 }
 0x146   : > { %14325 = vst [vmem:[#allocation54_spill] sm:$0xff] %v10604_v8  ;;  %1980 = vperm.xlu1 %9753, %v10600_v48   ;;  %855 = vst.msk [vmem:[#allocation4 + $0x109] sm:$0x1] %vm818_vm7, %v14318_v45 }
 0x147   : > { %v10609_v56 = vpop.permute.xlu0 %1471  ;;  %856 = vst.msk [vmem:[#allocation4 + $0x119] sm:$0x1] %vm818_vm7, %v14318_v45  ;;  %857 = vst.msk [vmem:[#allocation4 + $0x129] sm:$0x1] %vm818_vm7, %v14318_v45 }
 0x148   : > { %1995 = vperm.xlu0 %9752, %v10288_v24   ;;  %v637_v24 = vsel %vm573_vm8, 0.0, %v509_v0 }
 0x149   : > { %v10611_v13 = vpop.permute.xlu1 %1466  ;;  %703 = vst.msk [vmem:[#allocation2 + $0x279] sm:$0xff] %vm655_vm0, %v637_v24  ;;  %v10719_v24 = vld [vmem:[#allocation2 + $0x90] sm:$0xff] }
 0x14a   : > { %1990 = vperm.xlu1 %9753, %v10290_v25   ;;  %v10696_v25 = vld [vmem:[#allocation2 + $0x22a] sm:$0xff]  ;;  %14333 = vst [vmem:[#allocation62_spill] sm:$0xff] %v10719_v24 }
 0x14b   : > { %v10617_v8 = vpop.permute.xlu0 %1481 }
 0x14c   : > { %14326 = vst [vmem:[#allocation55_spill] sm:$0xff] %v10617_v8  ;;  %2005 = vperm.xlu0 %9752, %v10440_v14  }
 0x14d   : > { %v10619_v20 = vpop.permute.xlu1 %1476 }
 0x14e   : > { %14327 = vst [vmem:[#allocation56_spill] sm:$0xff] %v10619_v20  ;;  %2000 = vperm.xlu1 %9753, %v10294_v26   ;;  %v10705_v20 = vld [vmem:[#allocation2 + $0x232] sm:$0xff] }
 0x14f   : > { %v10699_v12 = vpop.permute.xlu0 %1544  ;;  %14329 = vst [vmem:[#allocation58_spill] sm:$0xff] %v10705_v20 }
 0x150   : > { %2015 = vperm.xlu0 %9752, %v10696_v25  }
 0x151   : > { %v10701_v15 = vpop.permute.xlu1 %1486 }
 0x152   : > { %14328 = vst [vmem:[#allocation57_spill] sm:$0xff] %v10701_v15  ;;  %2010 = vperm.xlu1 %9753, %v10448_v17  }
 0x153   : > { %v10707_v45 = vpop.permute.xlu0 %1554 }
 0x154   : > { %2095 = vperm.xlu0 %9752, %v10302_v27   ;;  %v10727_v27 = vld [vmem:[#allocation2 + $0xa8] sm:$0xff] }
 0x155   : > { %v10709_v8 = vpop.permute.xlu1 %1549  ;;  %14336 = vst [vmem:[#allocation65_spill] sm:$0xff] %v10727_v27 }
 0x156   : > { %14330 = vst [vmem:[#allocation59_spill] sm:$0xff] %v10709_v8  ;;  %2020 = vperm.xlu1 %9753, %v10705_v20   ;;  %v10729_v20 = vld [vmem:[#allocation2 + $0x98] sm:$0xff] }
 0x157   : > { %v10713_v26 = vpop.permute.xlu0 %1564  ;;  %14337 = vst [vmem:[#allocation66_spill] sm:$0xff] %v10729_v20 }
 0x158   : > { %14331 = vst [vmem:[#allocation60_spill] sm:$0xff] %v10713_v26  ;;  %2105 = vperm.xlu0 %9752, %v10468_v16  }
 0x159   : > { %v10715_v0 = vpop.permute.xlu1 %1559 }
 0x15a   : > { %14332 = vst [vmem:[#allocation61_spill] sm:$0xff] %v10715_v0  ;;  %2100 = vperm.xlu1 %9753, %v10306_v28   ;;  %v10737_v28 = vld [vmem:[#allocation2 + $0xb0] sm:$0xff] }
 0x15b   : > { %v10721_v15 = vpop.permute.xlu0 %1574  ;;  %14340 = vst [vmem:[#allocation69_spill] sm:$0xff] %v10737_v28 }
 0x15c   : > { %14334 = vst [vmem:[#allocation63_spill] sm:$0xff] %v10721_v15  ;;  %2115 = vperm.xlu0 %9752, %v10719_v24  }
 0x15d   : > { %v10723_v17 = vpop.permute.xlu1 %1569 }
 0x15e   : > { %14335 = vst [vmem:[#allocation64_spill] sm:$0xff] %v10723_v17  ;;  %2110 = vperm.xlu1 %9753, %v10476_v41  }
 0x15f   : > { %v10731_v26 = vpop.permute.xlu0 %1584 }
 0x160   : > { %14338 = vst [vmem:[#allocation67_spill] sm:$0xff] %v10731_v26  ;;  %2125 = vperm.xlu0 %9752, %v10727_v27   ;;  %v10751_v27 = vld [vmem:[#allocation2 + $0x240] sm:$0xff] }
 0x161   : > { %v10733_v0 = vpop.permute.xlu1 %1579  ;;  %14345 = vst [vmem:[#allocation74_spill] sm:$0xff] %v10751_v27 }
 0x162   : > { %14339 = vst [vmem:[#allocation68_spill] sm:$0xff] %v10733_v0  ;;  %2120 = vperm.xlu1 %9753, %v10729_v20  }
 0x163   : > { %v10739_v16 = vpop.permute.xlu0 %1594 }
 0x164   : > { %14341 = vst [vmem:[#allocation70_spill] sm:$0xff] %v10739_v16  ;;  %2135 = vperm.xlu0 %9752, %v10314_v29   ;;  %v10759_v29 = vld [vmem:[#allocation2 + $0x258] sm:$0xff] }
 0x165   : > { %v10741_v17 = vpop.permute.xlu1 %1589  ;;  %14348 = vst [vmem:[#allocation77_spill] sm:$0xff] %v10759_v29 }
 0x166   : > { %14342 = vst [vmem:[#allocation71_spill] sm:$0xff] %v10741_v17  ;;  %2130 = vperm.xlu1 %9753, %v10737_v28   ;;  %v10761_v28 = vld [vmem:[#allocation2 + $0x248] sm:$0xff] }
 0x167   : > { %v10745_v41 = vpop.permute.xlu0 %1604  ;;  %14349 = vst [vmem:[#allocation78_spill] sm:$0xff] %v10761_v28 }
 0x168   : > { %14343 = vst [vmem:[#allocation72_spill] sm:$0xff] %v10745_v41  ;;  %2145 = vperm.xlu0 %9752, %v10496_v60   ;;  %v9050_v41 = vld [vmem:[%s10795_s22] ss:$0 sm:$0xff] }
 0x169   : > { %v10747_v24 = vpop.permute.xlu1 %1599  ;;  %v960_v17 = vmul.f32 %v9050_v41, %v10324_v33 }
 0x16a   : > { %14344 = vst [vmem:[#allocation73_spill] sm:$0xff] %v10747_v24  ;;  %2140 = vperm.xlu1 %9753, %v10322_v32   ;;  %v10769_v32 = vld [vmem:[#allocation2 + $0x260] sm:$0xff] }
 0x16b   : > { %v10753_v20 = vpop.permute.xlu0 %1614  ;;  %14352 = vst [vmem:[#allocation81_spill] sm:$0xff] %v10769_v32 }
 0x16c   : > { %14346 = vst [vmem:[#allocation75_spill] sm:$0xff] %v10753_v20  ;;  %2155 = vperm.xlu0 %9752, %v10751_v27  }
 0x16d   : > { %v10755_v0 = vpop.permute.xlu1 %1609 }
 0x16e   : > { %14347 = vst [vmem:[#allocation76_spill] sm:$0xff] %v10755_v0  ;;  %2150 = vperm.xlu1 %9753, %v10504_v47  }
 0x16f   : > { %v10763_v24 = vpop.permute.xlu0 %1679 }
 0x170   : > { %14350 = vst [vmem:[#allocation79_spill] sm:$0xff] %v10763_v24  ;;  %2165 = vperm.xlu0 %9752, %v10759_v29  }
 0x171   : > { %v10765_v60 = vpop.permute.xlu1 %1619 }
 0x172   : > { %14351 = vst [vmem:[#allocation80_spill] sm:$0xff] %v10765_v60  ;;  %2160 = vperm.xlu1 %9753, %v10761_v28   ;;  %v10784_v28 = vld [vmem:[#allocation2 + $0x91] sm:$0xff] }
 0x173   : > { %v10771_v0 = vpop.permute.xlu0 %1689  ;;  %14357 = vst [vmem:[#allocation86_spill] sm:$0xff] %v10784_v28 }
 0x174   : > { %14353 = vst [vmem:[#allocation82_spill] sm:$0xff] %v10771_v0  ;;  %2228 = vperm.xlu0 %9752, %v10340_v38   ;;  %v10797_v38 = vld [vmem:[#allocation2 + $0xa9] sm:$0xff] }
 0x175   : > { %v10773_v27 = vpop.permute.xlu1 %1684  ;;  %14360 = vst [vmem:[#allocation89_spill] sm:$0xff] %v10797_v38 }
 0x176   : > { %14354 = vst [vmem:[#allocation83_spill] sm:$0xff] %v10773_v27  ;;  %2170 = vperm.xlu1 %9753, %v10769_v32  }
 0x177   : > { %v10777_v47 = vpop.permute.xlu0 %1699 }
 0x178   : > { %14355 = vst [vmem:[#allocation84_spill] sm:$0xff] %v10777_v47  ;;  %2238 = vperm.xlu0 %9752, %v10524_v4  }
 0x179   : > { %v10779_v20 = vpop.permute.xlu1 %1694 }
 0x17a   : > { %14356 = vst [vmem:[#allocation85_spill] sm:$0xff] %v10779_v20  ;;  %2233 = vperm.xlu1 %9753, %v10348_v46   ;;  %v10799_v46 = vld [vmem:[#allocation2 + $0x99] sm:$0xff]  ;;  %v968_v20 = vmul.f32 %v9050_v41, %v10328_v34 }
 0x17b   : > { %v10786_v29 = vpop.permute.xlu0 %1709  ;;  %14361 = vst [vmem:[#allocation90_spill] sm:$0xff] %v10799_v46 }
 0x17c   : > { %14358 = vst [vmem:[#allocation87_spill] sm:$0xff] %v10786_v29  ;;  %2248 = vperm.xlu0 %9752, %v10784_v28   ;;  %v9051_v28 = vld [vmem:[%s10795_s22 + $0x1] ss:$0 sm:$0xff]  ;;  %v969_v29 = vmul.f32 %v9050_v41, %v10320_v31  ;;  %v965_v31 = vmul.f32 %v9050_v41, %v10344_v43 }
 0x17d   : > { %v10788_v60 = vpop.permute.xlu1 %1704  ;;  %v1093_v33 = vmul.f32 %v9051_v28, %v10370_v2  ;;  %v1095_v34 = vmul.f32 %v9051_v28, %v10379_v7  ;;  %v1096_v43 = vmul.f32 %v9051_v28, %v10390_v19  ;;  %v14373_v19 = vld [vmem:[#allocation13_spill] sm:$0xff] }
 0x17e   : > { %14359 = vst [vmem:[#allocation88_spill] sm:$0xff] %v10788_v60  ;;  %2243 = vperm.xlu1 %9753, %v10532_v55   ;;  %v10808_v55 = vld [vmem:[#allocation2 + $0xb1] sm:$0xff]  ;;  %v961_v60 = vmul.f32 %v9050_v41, %v10316_v30  ;;  %v966_v30 = vmul.f32 %v9050_v41, %v10342_v40  ;;  %v1097_v40 = vmul.f32 %v9051_v28, %v10388_v18 }
 0x17f   : > { %v10801_v4 = vpop.permute.xlu0 %1719  ;;  %14364 = vst [vmem:[#allocation93_spill] sm:$0xff] %v10808_v55  ;;  %v1101_v27 = vmul.f32 %v9051_v28, %v14373_v19  ;;  %v10867_v19 = vld [vmem:[#allocation2 + $0x249] sm:$0xff] }
 0x180   : > { %14362 = vst [vmem:[#allocation91_spill] sm:$0xff] %v10801_v4  ;;  %2258 = vperm.xlu0 %9752, %v10797_v38   ;;  %v964_v38 = vmul.f32 %v9050_v41, %v10334_v36  ;;  %v972_v36 = vmul.f32 %v9050_v41, %v10356_v52  ;;  %v14371_v52 = vld [vmem:[#allocation11_spill] sm:$0xff] }
 0x181   : > { %v10803_v32 = vpop.permute.xlu1 %1714  ;;  %v1099_v26 = vmul.f32 %v9051_v28, %v14371_v52  ;;  %v9052_v52 = vld [vmem:[%s10795_s22 + $0x2] ss:$0 sm:$0xff] }
 0x182   : > { %14363 = vst [vmem:[#allocation92_spill] sm:$0xff] %v10803_v32  ;;  %2253 = vperm.xlu1 %9753, %v10799_v46   ;;  %v962_v32 = vmul.f32 %v9050_v41, %v10330_v35  ;;  %v963_v46 = vmul.f32 %v9050_v41, %v10336_v37  ;;  %v967_v35 = vmul.f32 %v9050_v41, %v10352_v51  ;;  %v14370_v51 = vld [vmem:[#allocation10_spill] sm:$0xff] }
 0x183   : > { %v10815_v16 = vpop.permute.xlu0 %1729  ;;  %v1094_v37 = vmul.f32 %v9051_v28, %v10381_v10  ;;  %v975_v47 = vmul.f32 %v9050_v41, %v14370_v51  ;;  %v14372_v10 = vld [vmem:[#allocation12_spill] sm:$0xff]  ;;  %v1113_v8 = vadd.f32 %v1097_v40, %v964_v38  ;;  %v1117_v38 = vadd.f32 %v1101_v27, %v968_v20 }
 0x184   : > { %14365 = vst [vmem:[#allocation94_spill] sm:$0xff] %v10815_v16  ;;  %2268 = vperm.xlu0 %9752, %v10368_v59   ;;  %v971_v59 = vmul.f32 %v9050_v41, %v10358_v54  ;;  %v1109_v54 = vadd.f32 %v1093_v33, %v960_v17  ;;  %v1098_v18 = vmul.f32 %v9051_v28, %v14372_v10  ;;  %14383 = vst [vmem:[#allocation12_spill] sm:$0xff] %v10867_v19 }
 0x185   : > { %v10817_v4 = vpop.permute.xlu1 %1724  ;;  %v1110_v0 = vadd.f32 %v1094_v37, %v961_v60  ;;  %v1104_v17 = vmul.f32 %v9051_v28, %v10426_v5  ;;  %v1107_v60 = vmul.f32 %v9051_v28, %v10433_v23  ;;  %v14380_v37 = vld [vmem:[#allocation17_spill] sm:$0xff]  ;;  %v10865_v5 = vld [vmem:[#allocation2 + $0x259] sm:$0xff] }
 0x186   : > { %14366 = vst [vmem:[#allocation95_spill] sm:$0xff] %v10817_v4  ;;  %2263 = vperm.xlu1 %9753, %v10808_v55   ;;  %v970_v4 = vmul.f32 %v9050_v41, %v10350_v49  ;;  %v974_v55 = vmul.f32 %v9050_v41, %v10362_v57  ;;  %v14369_v49 = vld [vmem:[#allocation9_spill] sm:$0xff]  ;;  %v1111_v57 = vadd.f32 %v1095_v34, %v962_v32 }
 0x187   : > { %v10836_v16 = vpop.permute.xlu0 %1739  ;;  %v973_v7 = vmul.f32 %v9050_v41, %v14369_v49  ;;  %v14376_v49 = vld [vmem:[#allocation15_spill] sm:$0xff]  ;;  %v14377_v41 = vld [vmem:[#allocation16_spill] sm:$0xff]  ;;  %v1115_v34 = vadd.f32 %v1099_v26, %v966_v30  ;;  %v1114_v10 = vadd.f32 %v1098_v18, %v965_v31  ;;  %v14384_v23 = vld [vmem:[#allocation21_spill] sm:$0xff]  ;;  %v1229_v18 = vmul.f32 %v9052_v52, %v10458_v1 }
 0x188   : > { %14367 = vst [vmem:[#allocation96_spill] sm:$0xff] %v10836_v16  ;;  %2278 = vperm.xlu0 %9752, %v10552_v61   ;;  %v10847_v16 = vld [vmem:[#allocation2 + $0x241] sm:$0xff]  ;;  %v1103_v24 = vmul.f32 %v9051_v28, %v14376_v49  ;;  %v1102_v51 = vmul.f32 %v9051_v28, %v14377_v41  ;;  %v1112_v61 = vadd.f32 %v1096_v43, %v963_v46  ;;  %v14381_v46 = vld [vmem:[#allocation18_spill] sm:$0xff] }
 0x189   : > { %v10838_v2 = vpop.permute.xlu1 %1734  ;;  %14374 = vst [vmem:[#allocation9_spill] sm:$0xff] %v10847_v16  ;;  %v1226_v40 = vmul.f32 %v9052_v52, %v14381_v46  ;;  %v1228_v41 = vmul.f32 %v9052_v52, %v14384_v23  ;;  %v10887_v1 = vld [vmem:[%s10795_s22 + $0x4] ss:$0 sm:$0xff]  ;;  %v14391_v46 = vld [vmem:[#allocation29_spill] sm:$0xff]  ;;  %v14392_v23 = vld [vmem:[#allocation30_spill] sm:$0xff] }
 0x18a   : > { %14368 = vst [vmem:[#allocation97_spill] sm:$0xff] %v10838_v2  ;;  %2273 = vperm.xlu1 %9753, %v10376_v62   ;;  %v14375_v2 = vld [vmem:[#allocation14_spill] sm:$0xff]  ;;  %v1105_v62 = vmul.f32 %v9051_v28, %v10424_v6  ;;  %v14382_v6 = vld [vmem:[#allocation19_spill] sm:$0xff]  ;;  %v1119_v26 = vadd.f32 %v1103_v24, %v970_v4  ;;  %v1118_v30 = vadd.f32 %v1102_v51, %v969_v29 }
 0x18b   : > { %v1100_v15 = vmul.f32 %v9051_v28, %v14375_v2  ;;  %v10855_v32 = vpop.permute.xlu0 %1749  ;;  %v1106_v2 = vmul.f32 %v9051_v28, %v14380_v37  ;;  %v1108_v43 = vmul.f32 %v9051_v28, %v14382_v6  ;;  %v1123_v28 = vadd.f32 %v1107_v60, %v974_v55  ;;  %v14386_v29 = vld [vmem:[#allocation23_spill] sm:$0xff] }
 0x18c   : > { %14378 = vst [vmem:[#allocation10_spill] sm:$0xff] %v10855_v32  ;;  %2288 = vperm.xlu0 %9752, %v10847_v16   ;;  %v1121_v37 = vadd.f32 %v1105_v62, %v972_v36  ;;  %v14385_v16 = vld [vmem:[#allocation22_spill] sm:$0xff]  ;;  %v1232_v4 = vmul.f32 %v9052_v52, %v14386_v29  ;;  %v1244_v36 = vadd.f32 %v1228_v41, %v1111_v57  ;;  %v14389_v62 = vld [vmem:[#allocation27_spill] sm:$0xff]  ;;  %v14394_v29 = vld [vmem:[#allocation32_spill] sm:$0xff] }
 0x18d   : > { %v10857_v33 = vpop.permute.xlu1 %1744  ;;  %v1116_v49 = vadd.f32 %v1100_v15, %v967_v35  ;;  %v1227_v32 = vmul.f32 %v9052_v52, %v14385_v16  ;;  %v1122_v31 = vadd.f32 %v1106_v2, %v973_v7  ;;  %v1242_v15 = vadd.f32 %v1226_v40, %v1109_v54  ;;  %v14387_v16 = vld [vmem:[#allocation24_spill] sm:$0xff] }
 0x18e   : > { %14379 = vst [vmem:[#allocation11_spill] sm:$0xff] %v10857_v33  ;;  %2283 = vperm.xlu1 %9753, %v10568_v63   ;;  %v1120_v33 = vadd.f32 %v1104_v17, %v971_v59  ;;  %v1230_v63 = vmul.f32 %v9052_v52, %v10456_v11  ;;  %v1124_v24 = vadd.f32 %v1108_v43, %v975_v47  ;;  %v10881_v11 = vld [vmem:[#allocation2 + $0x261] sm:$0xff]  ;;  %v14388_v59 = vld [vmem:[#allocation26_spill] sm:$0xff] }
 0x18f   : > { %v10872_v20 = vpop.permute.xlu0 %1812  ;;  %v1231_v35 = vmul.f32 %v9052_v52, %v14387_v16  ;;  %v1234_v51 = vmul.f32 %v9052_v52, %v14388_v59  ;;  %v1233_v55 = vmul.f32 %v9052_v52, %v14389_v62  ;;  %v14390_v7 = vld [vmem:[#allocation28_spill] sm:$0xff]  ;;  %v1243_v60 = vadd.f32 %v1227_v32, %v1110_v0  ;;  %v14393_v32 = vld [vmem:[#allocation31_spill] sm:$0xff] }
 0x190   : > { %2298 = vperm.xlu0 %9752, %v10865_v5   ;;  %v1236_v17 = vmul.f32 %v9052_v52, %v14390_v7  ;;  %v1246_v2 = vadd.f32 %v1230_v63, %v1113_v8  ;;  %v1235_v54 = vmul.f32 %v9052_v52, %v14391_v46  ;;  %v1238_v47 = vmul.f32 %v9052_v52, %v10484_v44  ;;  %v14395_v7 = vld [vmem:[#allocation33_spill] sm:$0xff] }
 0x191   : > { %v10874_v27 = vpop.permute.xlu1 %1754  ;;  %v1245_v57 = vadd.f32 %v1229_v18, %v1112_v61  ;;  %v1237_v43 = vmul.f32 %v9052_v52, %v10486_v21  ;;  %v1240_v41 = vmul.f32 %v9052_v52, %v14392_v23  ;;  %v1248_v0 = vadd.f32 %v1232_v4, %v1115_v34  ;;  %v478_v18 = vld [vmem:[%s10140_s15 + $0x80] sm:$0xff]  ;;  %v14396_v23 = vld [vmem:[#allocation34_spill] sm:$0xff] }
 0x192   : > { %2293 = vperm.xlu1 %9753, %v10867_v19   ;;  %v1247_v8 = vadd.f32 %v1231_v35, %v1114_v10  ;;  %v1239_v63 = vmul.f32 %v9052_v52, %v14393_v32  ;;  %v1360_v44 = vmul.f32 %v10887_v1, %v14394_v29  ;;  %v1250_v16 = vadd.f32 %v1234_v51, %v1117_v38  ;;  %v14397_v35 = vld [vmem:[#allocation35_spill] sm:$0xff]  ;;  %v10918_v51 = vld [vmem:[#allocation2 + $0x92] sm:$0xff] }
 0x193   : > { %v10891_v40 = vpop.permute.xlu0 %1822  ;;  %v1249_v59 = vadd.f32 %v1233_v55, %v1116_v49  ;;  %v1252_v62 = vadd.f32 %v1236_v17, %v1119_v26  ;;  %v1241_v61 = vmul.f32 %v9052_v52, %v14395_v7  ;;  %v1251_v21 = vadd.f32 %v1235_v54, %v1118_v30  ;;  %v14399_v55 = vld [vmem:[#allocation37_spill] sm:$0xff]  ;;  %v479_v17 = vld [vmem:[%s10140_s15 + $0x88] sm:$0xff]  ;;  %v14401_v54 = vld [vmem:[#allocation39_spill] sm:$0xff] }
 0x194   : > { %2361 = vperm.xlu0 %9752, %v10404_v9   ;;  %v1254_v46 = vadd.f32 %v1238_v47, %v1121_v37  ;;  %v1362_v9 = vmul.f32 %v10887_v1, %v14396_v23  ;;  %vm542_vm9 = vcmp.ne.f32.partialorder %v478_v18, %v478_v18  ;;  %v1253_v10 = vadd.f32 %v1237_v43, %v1120_v33  ;;  %v14402_v47 = vld [vmem:[#allocation40_spill] sm:$0xff] }
 0x195   : > { %v10893_v6 = vpop.permute.xlu1 %1817  ;;  %v1256_v4 = vadd.f32 %v1240_v41, %v1123_v28  ;;  %v1361_v38 = vmul.f32 %v10887_v1, %v14397_v35  ;;  %v606_v52 = vsel %vm542_vm9, 0.0, %v478_v18  ;;  %v1255_v49 = vadd.f32 %v1239_v63, %v1122_v31  ;;  %v14398_v28 = vld [vmem:[#allocation36_spill] sm:$0xff]  ;;  %v14400_v31 = vld [vmem:[#allocation38_spill] sm:$0xff]  ;;  %v14403_v63 = vld [vmem:[#allocation41_spill] sm:$0xff] }
 0x196   : > { %2303 = vperm.xlu1 %9753, %v10881_v11   ;;  %v1376_v26 = vadd.f32 %v1360_v44, %v1242_v15  ;;  %v1364_v30 = vmul.f32 %v10887_v1, %v10512_v50  ;;  %v1363_v37 = vmul.f32 %v10887_v1, %v10514_v39  ;;  %672 = vst.msk [vmem:[#allocation2 + $0xd9] sm:$0xff] %vm655_vm0, %v606_v52  ;;  %v14404_v44 = vld [vmem:[#allocation42_spill] sm:$0xff]  ;;  %v14406_v52 = vld [vmem:[#allocation44_spill] sm:$0xff] }
 0x197   : > { %v10906_v19 = vpop.permute.xlu0 %1832  ;;  %v1257_v33 = vadd.f32 %v1241_v61, %v1124_v24  ;;  %v1368_v15 = vmul.f32 %v10887_v1, %v14400_v31  ;;  %v1378_v50 = vadd.f32 %v1362_v9, %v1244_v36  ;;  %v1367_v39 = vmul.f32 %v10887_v1, %v14401_v54  ;;  %v10941_v61 = vld [vmem:[%s10795_s22 + $0x5] ss:$0 sm:$0xff] }
 0x198   : > { %2371 = vperm.xlu0 %9752, %v10592_v58   ;;  %v1366_v58 = vmul.f32 %v10887_v1, %v14398_v28  ;;  %v1370_v43 = vmul.f32 %v10887_v1, %v14402_v47  ;;  %vm543_vm10 = vcmp.ne.f32.partialorder %v479_v17, %v479_v17  ;;  %v1377_v32 = vadd.f32 %v1361_v38, %v1243_v60  ;;  %v14405_v9 = vld [vmem:[#allocation43_spill] sm:$0xff]  ;;  %v10949_v38 = vld [vmem:[#allocation2 + $0xaa] sm:$0xff] }
 0x199   : > { %v10908_v34 = vpop.permute.xlu1 %1827  ;;  %v1369_v29 = vmul.f32 %v10887_v1, %v14403_v63  ;;  %v1372_v7 = vmul.f32 %v10887_v1, %v14404_v44  ;;  %v607_v36 = vsel %vm543_vm10, 0.0, %v479_v17  ;;  %v1380_v18 = vadd.f32 %v1364_v30, %v1246_v2  ;;  %v10951_v28 = vld [vmem:[#allocation2 + $0x9a] sm:$0xff]  ;;  %v14408_v47 = vld [vmem:[#allocation45_spill] sm:$0xff] }
 0x19a   : > { %2366 = vperm.xlu1 %9753, %v10412_v22   ;;  %v1365_v22 = vmul.f32 %v10887_v1, %v14399_v55  ;;  %v1379_v23 = vadd.f32 %v1363_v37, %v1245_v57  ;;  %v1371_v35 = vmul.f32 %v10887_v1, %v14405_v9  ;;  %v1374_v60 = vmul.f32 %v10887_v1, %v14406_v52  ;;  %v14409_v30 = vld [vmem:[#allocation46_spill] sm:$0xff]  ;;  %v14410_v17 = vld [vmem:[#allocation47_spill] sm:$0xff] }
 0x19b   : > { %v10932_v41 = vpop.permute.xlu0 %1842  ;;  %14407 = vst [vmem:[#allocation13_spill] sm:$0xff] %v10951_v28  ;;  %673 = vst.msk [vmem:[#allocation2 + $0xe1] sm:$0xff] %vm655_vm0, %v607_v36  ;;  %v1382_v55 = vadd.f32 %v1366_v58, %v1248_v0  ;;  %v1384_v54 = vadd.f32 %v1368_v15, %v1250_v16  ;;  %v1383_v2 = vadd.f32 %v1367_v39, %v1249_v59  ;;  %v14411_v0 = vld [vmem:[#allocation48_spill] sm:$0xff]  ;;  %v14414_v39 = vld [vmem:[#allocation50_spill] sm:$0xff] }
 0x19c   : > { %2381 = vperm.xlu0 %9752, %v10918_v51   ;;  %v1381_v31 = vadd.f32 %v1365_v22, %v1247_v8  ;;  %v1386_v57 = vadd.f32 %v1370_v43, %v1252_v62  ;;  %v1493_v37 = vmul.f32 %v10941_v61, %v14409_v30  ;;  %v1375_v63 = vmul.f32 %v10887_v1, %v14410_v17  ;;  %v14412_v62 = vld [vmem:[#allocation49_spill] sm:$0xff] }
 0x19d   : > { %v10934_v24 = vpop.permute.xlu1 %1837  ;;  %v1385_v52 = vadd.f32 %v1369_v29, %v1251_v21  ;;  %v1388_v36 = vadd.f32 %v1372_v7, %v1254_v46  ;;  %v1495_v8 = vmul.f32 %v10941_v61, %v14411_v0  ;;  %v1387_v16 = vadd.f32 %v1371_v35, %v1253_v10  ;;  %v10972_v22 = vld [vmem:[#allocation2 + $0xb2] sm:$0xff]  ;;  %v14415_v29 = vld [vmem:[#allocation51_spill] sm:$0xff]  ;;  %v14416_v35 = vld [vmem:[#allocation52_spill] sm:$0xff] }
 0x19e   : > { %2376 = vperm.xlu1 %9753, %v10600_v48   ;;  %v1373_v48 = vmul.f32 %v10887_v1, %v14408_v47  ;;  %v1390_v59 = vadd.f32 %v1374_v60, %v1256_v4  ;;  %v1494_v58 = vmul.f32 %v10941_v61, %v14412_v62  ;;  %v1497_v1 = vmul.f32 %v10941_v61, %v10577_v42  ;;  %v14417_v47 = vld [vmem:[#allocation53_spill] sm:$0xff]  ;;  %v14419_v62 = vld [vmem:[#allocation55_spill] sm:$0xff] }
 0x19f   : > { %v10960_v44 = vpop.permute.xlu0 %1852  ;;  %14413 = vst [vmem:[#allocation14_spill] sm:$0xff] %v10972_v22  ;;  %v1496_v21 = vmul.f32 %v10941_v61, %v10579_v53  ;;  %v1499_v46 = vmul.f32 %v10941_v61, %v10585_v3  ;;  %v1498_v43 = vmul.f32 %v10941_v61, %v14414_v39  ;;  %v1509_v10 = vadd.f32 %v1493_v37, %v1376_v26 }
 0x1a0   : > { %2391 = vperm.xlu0 %9752, %v10949_v38   ;;  %v1389_v15 = vadd.f32 %v1373_v48, %v1255_v49  ;;  %v1391_v4 = vadd.f32 %v1375_v63, %v1257_v33  ;;  %v1501_v7 = vmul.f32 %v10941_v61, %v14415_v29  ;;  %v1500_v42 = vmul.f32 %v10941_v61, %v14416_v35  ;;  %v14418_v48 = vld [vmem:[#allocation54_spill] sm:$0xff]  ;;  %v510_v29 = vld [vmem:[%s10140_s15 + $0x180] sm:$0xff] }
 0x1a1   : > { %v10962_v9 = vpop.permute.xlu1 %1847  ;;  %v1511_v53 = vadd.f32 %v1495_v8, %v1378_v50  ;;  %v1503_v3 = vmul.f32 %v10941_v61, %v14417_v47  ;;  %v1502_v30 = vmul.f32 %v10941_v61, %v14418_v48  ;;  %v1510_v26 = vadd.f32 %v1494_v58, %v1377_v32  ;;  %v10999_v50 = vld [vmem:[%s10795_s22 + $0x6] ss:$0 sm:$0xff]  ;;  %v14420_v32 = vld [vmem:[#allocation56_spill] sm:$0xff] }
 0x1a2   : > { %2386 = vperm.xlu1 %9753, %v10951_v28   ;;  %v1513_v33 = vadd.f32 %v1497_v1, %v1380_v18  ;;  %v1505_v37 = vmul.f32 %v10941_v61, %v10609_v56  ;;  %v1504_v17 = vmul.f32 %v10941_v61, %v10611_v13  ;;  %v1512_v63 = vadd.f32 %v1496_v21, %v1379_v23  ;;  %v11011_v18 = vld [vmem:[%s10795_s22 + $0x8] ss:$0 sm:$0xff]  ;;  %v14426_v47 = vld [vmem:[#allocation79_spill] sm:$0xff] }
 0x1a3   : > { %v10984_v60 = vpop.permute.xlu0 %1862  ;;  %v1515_v0 = vadd.f32 %v1499_v46, %v1382_v55  ;;  %v1514_v8 = vadd.f32 %v1498_v43, %v1381_v31  ;;  %v1507_v39 = vmul.f32 %v10941_v61, %v14419_v62  ;;  %v11006_v35 = vadd.f32 %v1500_v42, %v1383_v2  ;;  %v14422_v46 = vld [vmem:[#allocation57_spill] sm:$0xff]  ;;  %v14425_v42 = vld [vmem:[#allocation60_spill] sm:$0xff] }
 0x1a4   : > { %2401 = vperm.xlu0 %9752, %v10440_v14   ;;  %v11004_v14 = vadd.f32 %v1501_v7, %v1384_v54  ;;  %v1506_v56 = vmul.f32 %v10941_v61, %v14420_v32  ;;  %vm574_vm11 = vcmp.ne.f32.partialorder %v510_v29, %v510_v29  ;;  %v11017_v23 = vadd.f32 %v1503_v3, %v1386_v57  ;;  %v14421_v54 = vld [vmem:[#allocation20_spill] sm:$0xff] }
 0x1a5   : > { %v10986_v49 = vpop.permute.xlu1 %1857  ;;  %v11019_v55 = vadd.f32 %v1502_v30, %v1385_v52  ;;  %v1626_v31 = vmul.f32 %v10999_v50, %v10699_v12  ;;  %v638_v2 = vsel %vm574_vm11, 0.0, %v510_v29  ;;  %v11025_v1 = vadd.f32 %v1505_v37, %v1388_v36  ;;  %v11034_v52 = vld [vmem:[%s10795_s22 + $0x9] ss:$0 sm:$0xff]  ;;  %v14424_v12 = vld [vmem:[#allocation59_spill] sm:$0xff] }
 0x1a6   : > { %2396 = vperm.xlu1 %9753, %v10972_v22   ;;  %v11027_v21 = vadd.f32 %v1504_v17, %v1387_v16  ;;  %v1508_v43 = vmul.f32 %v10941_v61, %v14422_v46  ;;  %v1628_v57 = vmul.f32 %v10999_v50, %v10707_v45  ;;  %v11036_v7 = vld [vmem:[#allocation2 + $0x242] sm:$0xff]  ;;  %704 = vst.msk [vmem:[#allocation2 + $0x289] sm:$0xff] %vm655_vm0, %v638_v2  ;;  %v14427_v45 = vld [vmem:[#allocation61_spill] sm:$0xff] }
 0x1a7   : > { %v11013_v13 = vpop.permute.xlu0 %1872  ;;  %14423 = vst [vmem:[#allocation15_spill] sm:$0xff] %v11036_v7  ;;  %v1627_v36 = vmul.f32 %v10999_v50, %v14424_v12  ;;  %v1630_v16 = vmul.f32 %v10999_v50, %v14425_v42  ;;  %v1761_v61 = vmul.f32 %v11011_v18, %v14426_v47  ;;  %v511_v3 = vld [vmem:[%s10140_s15 + $0x188] sm:$0xff]  ;;  %v11048_v48 = vadd.f32 %v1506_v56, %v1389_v15  ;;  %v14428_v37 = vld [vmem:[#allocation63_spill] sm:$0xff]  ;;  %v14430_v56 = vld [vmem:[#allocation58_spill] sm:$0xff] }
 0x1a8   : > { %2411 = vperm.xlu0 %9752, %v10696_v25   ;;  %v11039_v25 = vadd.f32 %v1507_v39, %v1390_v59  ;;  %v1629_v30 = vmul.f32 %v10999_v50, %v14427_v45  ;;  %v1632_v59 = vmul.f32 %v10999_v50, %v14428_v37  ;;  %vm575_vm12 = vcmp.ne.f32.partialorder %v511_v3, %v511_v3  ;;  %v14429_v29 = vld [vmem:[#allocation64_spill] sm:$0xff]  ;;  %v14431_v12 = vld [vmem:[#allocation82_spill] sm:$0xff]  ;;  %v14432_v47 = vld [vmem:[#allocation83_spill] sm:$0xff] }
 0x1a9   : > { %v11015_v58 = vpop.permute.xlu1 %1867  ;;  %v1642_v39 = vadd.f32 %v1626_v31, %v1509_v10  ;;  %v1631_v32 = vmul.f32 %v10999_v50, %v14429_v29  ;;  %v1894_v15 = vmul.f32 %v11034_v52, %v10872_v20  ;;  %v11064_v2 = vadd.f32 %v1508_v43, %v1391_v4  ;;  %v11071_v31 = vld [vmem:[%s10795_s22 + $0xa] ss:$0 sm:$0xff]  ;;  %v11073_v45 = vld [vmem:[#allocation2 + $0x25a] sm:$0xff] }
 0x1aa   : > { %2406 = vperm.xlu1 %9753, %v14421_v54   ;;  %v639_v54 = vsel %vm575_vm12, 0.0, %v511_v3  ;;  %v1644_v46 = vadd.f32 %v1628_v57, %v1511_v53  ;;  %v1763_v42 = vmul.f32 %v11011_v18, %v14431_v12  ;;  %v1762_v10 = vmul.f32 %v11011_v18, %v14432_v47  ;;  %v11075_v37 = vld [vmem:[#allocation2 + $0x24a] sm:$0xff]  ;;  %v14433_v3 = vld [vmem:[#allocation67_spill] sm:$0xff] }
 0x1ab   : > { %v11054_v17 = vpop.permute.xlu0 %1882  ;;  %705 = vst.msk [vmem:[#allocation2 + $0x291] sm:$0xff] %vm655_vm0, %v639_v54  ;;  %v1643_v20 = vadd.f32 %v1627_v36, %v1510_v26  ;;  %v1646_v29 = vadd.f32 %v1630_v16, %v1513_v33  ;;  %v1634_v4 = vmul.f32 %v10999_v50, %v14433_v3  ;;  %v1777_v53 = vadd.f32 %v1761_v61, %v1642_v39  ;;  %v14434_v33 = vld [vmem:[#allocation68_spill] sm:$0xff] }
 0x1ac   : > { %2421 = vperm.xlu0 %9752, %v11036_v7   ;;  %v1645_v43 = vadd.f32 %v1629_v30, %v1512_v63  ;;  %v1648_v57 = vadd.f32 %v1632_v59, %v1515_v0  ;;  %v1895_v12 = vmul.f32 %v11034_v52, %v10893_v6  ;;  %v1647_v22 = vadd.f32 %v1631_v32, %v1514_v8  ;;  %v11093_v6 = vld [vmem:[#allocation2 + $0x262] sm:$0xff]  ;;  %v14436_v8 = vld [vmem:[#allocation70_spill] sm:$0xff]  ;;  %v14437_v59 = vld [vmem:[#allocation85_spill] sm:$0xff] }
 0x1ad   : > { %v11056_v62 = vpop.permute.xlu1 %1877  ;;  %v1910_v28 = vadd.f32 %v1894_v15, %v1777_v53  ;;  %v1633_v63 = vmul.f32 %v10999_v50, %v14434_v33  ;;  %v1779_v0 = vadd.f32 %v1763_v42, %v1644_v46  ;;  %v1778_v36 = vadd.f32 %v1762_v10, %v1643_v20  ;;  %v14438_v15 = vld [vmem:[#allocation71_spill] sm:$0xff] }
 0x1ae   : > { %2416 = vperm.xlu1 %9753, %v14430_v56   ;;  %v1896_v56 = vmul.f32 %v11034_v52, %v10891_v40  ;;  %v14435_v40 = vld [vmem:[#allocation84_spill] sm:$0xff]  ;;  %v1650_v61 = vadd.f32 %v1634_v4, %v11004_v14  ;;  %v1636_v30 = vmul.f32 %v10999_v50, %v14436_v8  ;;  %v1764_v39 = vmul.f32 %v11011_v18, %v14437_v59 }
 0x1af   : > { %v1946_v47 = vpop.permute.xlu0 %1945  ;;  %v1765_v16 = vmul.f32 %v11011_v18, %v14435_v40  ;;  %v1635_v54 = vmul.f32 %v10999_v50, %v14438_v15  ;;  %v1911_v46 = vadd.f32 %v1895_v12, %v1778_v36  ;;  %v1898_v42 = vmul.f32 %v11034_v52, %v10906_v19 }
 0x1b0   : > { %v2027_v26 = vmul.f32 %v11071_v31, %v1946_v47  ;;  %2431 = vperm.xlu0 %9752, %v11073_v45   ;;  %v1912_v3 = vadd.f32 %v1896_v56, %v1779_v0  ;;  %v1897_v14 = vmul.f32 %v11034_v52, %v10908_v34  ;;  %v1649_v56 = vadd.f32 %v1633_v63, %v11006_v35  ;;  %v14440_v47 = vld [vmem:[#allocation87_spill] sm:$0xff] }
 0x1b1   : > { %v11084_v7 = vpop.permute.xlu1 %1887  ;;  %v1781_v12 = vadd.f32 %v1765_v16, %v1646_v29  ;;  %v1767_v19 = vmul.f32 %v11011_v18, %v14440_v47  ;;  %v2477_v34 = vld [vmem:[#allocation2 + $0x80] sm:$0xff]  ;;  %v1652_v0 = vadd.f32 %v1636_v30, %v11017_v23  ;;  %v1780_v36 = vadd.f32 %v1764_v39, %v1645_v43  ;;  %v14442_v30 = vld [vmem:[#allocation62_spill] sm:$0xff] }
 0x1b2   : > { %2426 = vperm.xlu1 %9753, %v11075_v37   ;;  %v2043_v32 = vadd.f32 %v2027_v26, %v1910_v28  ;;  %v14439_v28 = vld [vmem:[#allocation25_spill] sm:$0xff]  ;;  %v14441_v26 = vld [vmem:[#allocation88_spill] sm:$0xff]  ;;  %v1651_v59 = vadd.f32 %v1635_v54, %v11019_v55  ;;  %v1900_v15 = vmul.f32 %v11034_v52, %v10932_v41  ;;  %v1899_v35 = vmul.f32 %v11034_v52, %v10934_v24  ;;  %v14444_v24 = vld [vmem:[#allocation91_spill] sm:$0xff] }
 0x1b3   : > { %v1956_v10 = vpop.permute.xlu0 %1955  ;;  %v1766_v33 = vmul.f32 %v11011_v18, %v14441_v26  ;;  %v1913_v16 = vadd.f32 %v1897_v14, %v1780_v36  ;;  %v14443_v55 = vld [vmem:[#allocation72_spill] sm:$0xff]  ;;  %v1783_v39 = vadd.f32 %v1767_v19, %v1648_v57  ;;  %v1902_v57 = vmul.f32 %v11034_v52, %v10960_v44  ;;  %v14448_v36 = vld [vmem:[#allocation65_spill] sm:$0xff]  ;;  %v14450_v44 = vld [vmem:[#allocation75_spill] sm:$0xff] }
 0x1b4   : > { %2059 = vst.msk [vmem:[#allocation3] sm:$0xff] %vm807_vm3, %v2043_v32  ;;  %v2029_v4 = vmul.f32 %v11071_v31, %v1956_v10  ;;  %2495 = vperm.xlu0 %9752, %v14439_v28   ;;  %v1914_v32 = vadd.f32 %v1898_v42, %v1781_v12  ;;  %v1638_v41 = vmul.f32 %v10999_v50, %v14443_v55  ;;  %v14446_v10 = vld [vmem:[#allocation92_spill] sm:$0xff] }
 0x1b5   : > { %v1951_v20 = vpop.permute.xlu1 %1950  ;;  %v1782_v54 = vadd.f32 %v1766_v33, %v1647_v22  ;;  %v1916_v12 = vadd.f32 %v1900_v15, %v1783_v39  ;;  %v1901_v26 = vmul.f32 %v11034_v52, %v10962_v9 }
 0x1b6   : > { %v2028_v53 = vmul.f32 %v11071_v31, %v1951_v20  ;;  %2436 = vperm.xlu1 %9753, %v11093_v6   ;;  %v2045_v40 = vadd.f32 %v2029_v4, %v1912_v3  ;;  %v1769_v3 = vmul.f32 %v11011_v18, %v14444_v24  ;;  %v1768_v20 = vmul.f32 %v11011_v18, %v14446_v10  ;;  %v14454_v10 = vld [vmem:[#allocation96_spill] sm:$0xff] }
 0x1b7   : > { %v1966_v29 = vpop.permute.xlu0 %1965  ;;  %v1915_v47 = vadd.f32 %v1899_v35, %v1782_v54  ;;  %v14451_v35 = vld [vmem:[#allocation95_spill] sm:$0xff] }
 0x1b8   : > { %v2044_v8 = vadd.f32 %v2028_v53, %v1911_v46  ;;  %2061 = vst.msk [vmem:[#allocation3 + $0x10] sm:$0xff] %vm807_vm3, %v2045_v40  ;;  %v2031_v23 = vmul.f32 %v11071_v31, %v1966_v29  ;;  %2505 = vperm.xlu0 %9752, %v14442_v30   ;;  %v14445_v46 = vld [vmem:[#allocation73_spill] sm:$0xff]  ;;  %v14447_v53 = vld [vmem:[#allocation94_spill] sm:$0xff]  ;;  %v1785_v15 = vadd.f32 %v1769_v3, %v1650_v61  ;;  %v11152_v29 = vld [vmem:[#allocation2 + $0xc0] sm:$0xff] }
 0x1b9   : > { %v1961_v63 = vpop.permute.xlu1 %1960  ;;  %v1637_v42 = vmul.f32 %v10999_v50, %v14445_v46  ;;  %v1771_v28 = vmul.f32 %v11011_v18, %v14447_v53  ;;  %v14449_v40 = vld [vmem:[#allocation66_spill] sm:$0xff]  ;;  %v1770_v9 = vmul.f32 %v11011_v18, %v14451_v35  ;;  %v14455_v53 = vld [vmem:[#allocation97_spill] sm:$0xff] }
 0x1ba   : > { %2060 = vst.msk [vmem:[#allocation3 + $0x8] sm:$0xff] %vm807_vm3, %v2044_v8  ;;  %v2030_v43 = vmul.f32 %v11071_v31, %v1961_v63  ;;  %2500 = vperm.xlu1 %9753, %v2477_v34   ;;  %v2047_v14 = vadd.f32 %v2031_v23, %v1914_v32  ;;  %v1654_v8 = vadd.f32 %v1638_v41, %v11025_v1  ;;  %v14457_v35 = vld [vmem:[#allocation10_spill] sm:$0xff] }
 0x1bb   : > { %v1976_v22 = vpop.permute.xlu0 %1975  ;;  %v1640_v32 = vmul.f32 %v10999_v50, %v14450_v44  ;;  %v1784_v63 = vadd.f32 %v1768_v20, %v1649_v56  ;;  %v1653_v30 = vadd.f32 %v1637_v42, %v11027_v21  ;;  %v1787_v55 = vadd.f32 %v1771_v28, %v1652_v0  ;;  %v14452_v21 = vld [vmem:[#allocation69_spill] sm:$0xff]  ;;  %v14456_v44 = vld [vmem:[#allocation80_spill] sm:$0xff] }
 0x1bc   : > { %v2046_v4 = vadd.f32 %v2030_v43, %v1913_v16  ;;  %2063 = vst.msk [vmem:[#allocation3 + $0x20] sm:$0xff] %vm807_vm3, %v2047_v14  ;;  %v2033_v33 = vmul.f32 %v11071_v31, %v1976_v22  ;;  %2515 = vperm.xlu0 %9752, %v14448_v36   ;;  %v1904_v16 = vmul.f32 %v11034_v52, %v10984_v60  ;;  %v2484_v14 = vld [vmem:[#allocation2 + $0x228] sm:$0xff] }
 0x1bd   : > { %v1971_v19 = vpop.permute.xlu1 %1970  ;;  %v1918_v39 = vadd.f32 %v1902_v57, %v1785_v15  ;;  %v1903_v1 = vmul.f32 %v11034_v52, %v10986_v49  ;;  %v1917_v54 = vadd.f32 %v1901_v26, %v1784_v63  ;;  %v1656_v0 = vadd.f32 %v1640_v32, %v11039_v25  ;;  %v14453_v49 = vld [vmem:[#allocation76_spill] sm:$0xff]  ;;  %v14458_v63 = vld [vmem:[#allocation11_spill] sm:$0xff] }
 0x1be   : > { %2062 = vst.msk [vmem:[#allocation3 + $0x18] sm:$0xff] %vm807_vm3, %v2046_v4  ;;  %v2032_v34 = vmul.f32 %v11071_v31, %v1971_v19  ;;  %2510 = vperm.xlu1 %9753, %v14449_v40   ;;  %v2049_v23 = vadd.f32 %v2033_v33, %v1916_v12  ;;  %v1639_v46 = vmul.f32 %v10999_v50, %v14453_v49  ;;  %v11170_v4 = vld [vmem:[#allocation2 + $0xc8] sm:$0xff]  ;;  %v14459_v49 = vld [vmem:[#allocation74_spill] sm:$0xff] }
 0x1bf   : > { %v1986_v41 = vpop.permute.xlu0 %1985  ;;  %v1786_v42 = vadd.f32 %v1770_v9, %v1651_v59  ;;  %v1773_v20 = vmul.f32 %v11011_v18, %v14454_v10  ;;  %v1772_v28 = vmul.f32 %v11011_v18, %v14455_v53  ;;  %v1920_v12 = vadd.f32 %v1904_v16, %v1787_v55 }
 0x1c0   : > { %v2048_v43 = vadd.f32 %v2032_v34, %v1915_v47  ;;  %2065 = vst.msk [vmem:[#allocation3 + $0x30] sm:$0xff] %vm807_vm3, %v2049_v23  ;;  %v2035_v60 = vmul.f32 %v11071_v31, %v1986_v41  ;;  %2525 = vperm.xlu0 %9752, %v11152_v29   ;;  %v1906_v25 = vmul.f32 %v11034_v52, %v11013_v13  ;;  %v2485_v23 = vld [vmem:[#allocation2 + $0x230] sm:$0xff] }
 0x1c1   : > { %v1981_v61 = vpop.permute.xlu1 %1980  ;;  %v5726_v24 = vld [vmem:[#allocation3] ss:$2 sm:$0xff]  ;;  %v5758_v3 = vld [vmem:[#allocation3 + $0x1] ss:$2 sm:$0xff]  ;;  %v1919_v22 = vadd.f32 %v1903_v1, %v1786_v42  ;;  %v1905_v19 = vmul.f32 %v11034_v52, %v11015_v58  ;;  %v1641_v32 = vmul.f32 %v10999_v50, %v14456_v44  ;;  %v1789_v15 = vadd.f32 %v1773_v20, %v1654_v8 }
 0x1c2   : > { %2064 = vst.msk [vmem:[#allocation3 + $0x28] sm:$0xff] %vm807_vm3, %v2048_v43  ;;  %v2034_v56 = vmul.f32 %v11071_v31, %v1981_v61  ;;  %2520 = vperm.xlu1 %9753, %v14452_v21   ;;  %v2051_v47 = vadd.f32 %v2035_v60, %v1918_v39  ;;  %v5789_v59 = vmax.f32 %v5726_v24, %v5758_v3  ;;  %v11196_v39 = vld [vmem:[%s11182_s25] ss:$0 sm:$0xff] }
 0x1c3   : > { %v1996_v34 = vpop.permute.xlu0 %1995  ;;  %v1775_v9 = vmul.f32 %v11011_v18, %v14457_v35  ;;  %v1774_v16 = vmul.f32 %v11011_v18, %v14458_v63  ;;  %v1788_v43 = vadd.f32 %v1772_v28, %v1653_v30  ;;  %v1655_v61 = vadd.f32 %v1639_v46, %v11048_v48  ;;  %v14462_v35 = vld [vmem:[#allocation81_spill] sm:$0xff] }
 0x1c4   : > { %v2050_v57 = vadd.f32 %v2034_v56, %v1917_v54  ;;  %2067 = vst.msk [vmem:[#allocation3 + $0x100] sm:$0xff] %vm807_vm3, %v2051_v47  ;;  %v2037_v13 = vmul.f32 %v11071_v31, %v1996_v34  ;;  %2535 = vperm.xlu0 %9752, %v2484_v14   ;;  %v1922_v54 = vadd.f32 %v1906_v25, %v1789_v15 }
 0x1c5   : > { %v5728_v26 = vld [vmem:[#allocation3 + $0x10] ss:$2 sm:$0xff]  ;;  %v5760_v33 = vld [vmem:[#allocation3 + $0x11] ss:$2 sm:$0xff]  ;;  %v1991_v36 = vpop.permute.xlu1 %1990  ;;  %v1908_v50 = vmul.f32 %v11034_v52, %v11054_v17  ;;  %v1907_v8 = vmul.f32 %v11034_v52, %v11056_v62  ;;  %v1921_v60 = vadd.f32 %v1905_v19, %v1788_v43  ;;  %v1791_v17 = vadd.f32 %v1775_v9, %v1656_v0 }
 0x1c6   : > { %v5790_v40 = vmax.f32 %v5728_v26, %v5760_v33  ;;  %2066 = vst.msk [vmem:[#allocation3 + $0x38] sm:$0xff] %vm807_vm3, %v2050_v57  ;;  %v2036_v58 = vmul.f32 %v11071_v31, %v1991_v36  ;;  %2530 = vperm.xlu1 %9753, %v11170_v4   ;;  %v2053_v1 = vadd.f32 %v2037_v13, %v1920_v12  ;;  %v2609_v9 = vld [vmem:[#allocation2 + $0x79] sm:$0xff] }
 0x1c7   : > { %v2006_v24 = vpop.permute.xlu0 %2005  ;;  %v1790_v46 = vadd.f32 %v1774_v16, %v1655_v61  ;;  %v1657_v42 = vadd.f32 %v1641_v32, %v11064_v2  ;;  %v1776_v10 = vmul.f32 %v11011_v18, %v10874_v27  ;;  %v1924_v53 = vadd.f32 %v1908_v50, %v1791_v17  ;;  %v14460_v2 = vld [vmem:[#allocation77_spill] sm:$0xff]  ;;  %v11232_v16 = vld [vmem:[#allocation2 + $0x278] sm:$0xff] }
 0x1c8   : > { %v5805_v55 = vmax.f32 %v5789_v59, %v5790_v40  ;;  %v2052_v41 = vadd.f32 %v2036_v58, %v1919_v22  ;;  %2069 = vst.msk [vmem:[#allocation3 + $0x110] sm:$0xff] %vm807_vm3, %v2053_v1  ;;  %v2039_v30 = vmul.f32 %v11071_v31, %v2006_v24  ;;  %2545 = vperm.xlu0 %9752, %v14459_v49   ;;  %v14461_v59 = vld [vmem:[#allocation78_spill] sm:$0xff] }
 0x1c9   : > { %v2001_v3 = vpop.permute.xlu1 %2000  ;;  %v5730_v56 = vld [vmem:[#allocation3 + $0x20] ss:$2 sm:$0xff]  ;;  %v5762_v21 = vld [vmem:[#allocation3 + $0x21] ss:$2 sm:$0xff]  ;;  %v1923_v28 = vadd.f32 %v1907_v8, %v1790_v46  ;;  %v1909_v12 = vmul.f32 %v11034_v52, %v11084_v7  ;;  %v11221_v52 = vld [vmem:[#allocation2 + $0x270] sm:$0xff]  ;;  %v1792_v7 = vadd.f32 %v1776_v10, %v1657_v42 }
 0x1ca   : > { %2068 = vst.msk [vmem:[#allocation3 + $0x108] sm:$0xff] %vm807_vm3, %v2052_v41  ;;  %v2038_v48 = vmul.f32 %v11071_v31, %v2001_v3  ;;  %2540 = vperm.xlu1 %9753, %v2485_v23   ;;  %v5820_v62 = vadd.f32 %v11196_v39, %v5805_v55  ;;  %v2055_v20 = vadd.f32 %v2039_v30, %v1922_v54  ;;  %v2610_v3 = vld [vmem:[#allocation2 + $0x81] sm:$0xff] }
 0x1cb   : > { %v5791_v47 = vmax.f32 %v5730_v56, %v5762_v21  ;;  %v2016_v25 = vpop.permute.xlu0 %2015  ;;  %v1925_v13 = vadd.f32 %v1909_v12, %v1792_v7  ;;  %v14465_v21 = vld [vmem:[#allocation86_spill] sm:$0xff]  ;;  %v2617_v7 = vld [vmem:[#allocation2 + $0x229] sm:$0xff] }
 0x1cc   : > { %v2054_v14 = vadd.f32 %v2038_v48, %v1921_v60  ;;  %5829 = vst.msk [vmem:[#allocation4 + $0x11] sm:$0xff] %vm807_vm3, %v5820_v62  ;;  %2071 = vst.msk [vmem:[#allocation3 + $0x120] sm:$0xff] %vm807_vm3, %v2055_v20  ;;  %v2041_v27 = vmul.f32 %v11071_v31, %v2016_v25  ;;  %2555 = vperm.xlu0 %9752, %v14460_v2   ;;  %v14468_v25 = vld [vmem:[#allocation90_spill] sm:$0xff] }
 0x1cd   : > { %v5732_v57 = vld [vmem:[#allocation3 + $0x30] ss:$2 sm:$0xff]  ;;  %v5764_v22 = vld [vmem:[#allocation3 + $0x31] ss:$2 sm:$0xff]  ;;  %v2011_v0 = vpop.permute.xlu1 %2010 }
 0x1ce   : > { %v5792_v19 = vmax.f32 %v5732_v57, %v5764_v22  ;;  %2070 = vst.msk [vmem:[#allocation3 + $0x118] sm:$0xff] %vm807_vm3, %v2054_v14  ;;  %v2040_v18 = vmul.f32 %v11071_v31, %v2011_v0  ;;  %2550 = vperm.xlu1 %9753, %v14461_v59   ;;  %v2057_v33 = vadd.f32 %v2041_v27, %v1924_v53  ;;  %v14467_v22 = vld [vmem:[#allocation89_spill] sm:$0xff]  ;;  %v11264_v0 = vld [vmem:[#allocation2 + $0xc1] sm:$0xff] }
 0x1cf   : > { %v11223_v36 = vpop.permute.xlu0 %2095  ;;  %v14469_v59 = vld [vmem:[#allocation93_spill] sm:$0xff] }
 0x1d0   : > { %v5806_v26 = vmax.f32 %v5791_v47, %v5792_v19  ;;  %v2056_v34 = vadd.f32 %v2040_v18, %v1923_v28  ;;  %2073 = vst.msk [vmem:[#allocation3 + $0x130] sm:$0xff] %vm807_vm3, %v2057_v33  ;;  %2565 = vperm.xlu0 %9752, %v11221_v52  }
 0x1d1   : > { %v2021_v40 = vpop.permute.xlu1 %2020  ;;  %v5742_v32 = vld [vmem:[#allocation3 + $0x100] ss:$2 sm:$0xff]  ;;  %v5774_v15 = vld [vmem:[#allocation3 + $0x101] ss:$2 sm:$0xff] }
 0x1d2   : > { %v5821_v58 = vadd.f32 %v11196_v39, %v5806_v26  ;;  %2072 = vst.msk [vmem:[#allocation3 + $0x128] sm:$0xff] %vm807_vm3, %v2056_v34  ;;  %v2042_v44 = vmul.f32 %v11071_v31, %v2021_v40  ;;  %2560 = vperm.xlu1 %9753, %v14462_v35   ;;  %v5797_v50 = vmax.f32 %v5742_v32, %v5774_v15  ;;  %v11277_v34 = vld [vmem:[#allocation2 + $0xc9] sm:$0xff] }
 0x1d3   : > { %v6046_v23 = vld [vmem:[#allocation4 + $0x11] sm:$0xff]  ;;  %v11234_v41 = vpop.permute.xlu0 %2105 }
 0x1d4   : > { %5830 = vst.msk [vmem:[#allocation4 + $0x21] sm:$0xff] %vm807_vm3, %v5821_v58  ;;  %v2058_v63 = vadd.f32 %v2042_v44, %v1925_v13  ;;  %v6303_v43 = vld [vmem:[#allocation4 + $0x10] sm:$0xff]  ;;  %v11238_v61 = vpack.c.bf16 %v6046_v23, %v6046_v23  ;;  %2628 = vperm.xlu0 %9752, %v2609_v9  }
 0x1d5   : > { %v5744_v55 = vld [vmem:[#allocation3 + $0x110] ss:$2 sm:$0xff]  ;;  %v5776_v1 = vld [vmem:[#allocation3 + $0x111] ss:$2 sm:$0xff]  ;;  %v11236_v31 = vpop.permute.xlu1 %2100  ;;  %v11240_v54 = vpack.c.bf16 %v6303_v43, %v6303_v43 }
 0x1d6   : > { %14463 = vst [vmem:[#allocation16_spill] sm:$0xff] %v11238_v61  ;;  %v5798_v8 = vmax.f32 %v5744_v55, %v5776_v1  ;;  %2074 = vst.msk [vmem:[#allocation3 + $0x138] sm:$0xff] %vm807_vm3, %v2058_v63  ;;  %2570 = vperm.xlu1 %9753, %v11232_v16   ;;  %v14472_v35 = vld [vmem:[#allocation9_spill] sm:$0xff] }
 0x1d7   : > { %14464 = vst [vmem:[#allocation17_spill] sm:$0xff] %v11240_v54  ;;  %6512 = vst.msk [vmem:[#allocation5 + $0x4] sm:$0xf] %vm6028_vm13, %v11238_v61  ;;  %v11248_v60 = vpop.permute.xlu0 %2115 }
 0x1d8   : > { %6030 = vst.msk [vmem:[#allocation5 + $0xc] sm:$0xf] %vm6028_vm13, %v11240_v54  ;;  %v5809_v24 = vmax.f32 %v5797_v50, %v5798_v8  ;;  %2638 = vperm.xlu0 %9752, %v14465_v21   ;;  %v2887_v54 = vld [vmem:[#allocation2 + $0x260] sm:$0xff] }
 0x1d9   : > { %v11250_v56 = vpop.permute.xlu1 %2110  ;;  %v5746_v48 = vld [vmem:[#allocation3 + $0x120] ss:$2 sm:$0xff]  ;;  %v5778_v49 = vld [vmem:[#allocation3 + $0x121] ss:$2 sm:$0xff] }
 0x1da   : > { %v5824_v30 = vadd.f32 %v11196_v39, %v5809_v24  ;;  %2633 = vperm.xlu1 %9753, %v2610_v3   ;;  %v5799_v47 = vmax.f32 %v5746_v48, %v5778_v49  ;;  %v14476_v24 = vld [vmem:[#allocation12_spill] sm:$0xff]  ;;  %v11315_v3 = vld [vmem:[#allocation2 + $0x271] sm:$0xff]  ;;  %v11323_v48 = vld [vmem:[#allocation2 + $0x279] sm:$0xff] }
 0x1db   : > { %v6913_v17 = vld [vmem:[#allocation4 + $0x22] sm:$0xff]  ;;  %v11255_v14 = vpop.permute.xlu0 %2125  ;;  %v480_v49 = vld [vmem:[%s10140_s15 + $0x90] sm:$0xff] }
 0x1dc   : > { %v9538_v46 = vpack.c.bf16 %v6913_v17, %v6913_v17  ;;  %v6785_v62 = vld [vmem:[#allocation4 + $0x21] sm:$0xff]  ;;  %5833 = vst.msk [vmem:[#allocation4 + $0xb1] sm:$0xff] %vm807_vm3, %v5824_v30  ;;  %2648 = vperm.xlu0 %9752, %v14467_v22   ;;  %vm544_vm14 = vcmp.ne.f32.partialorder %v480_v49, %v480_v49 }
 0x1dd   : > { %v5950_v42 = vld [vmem:[#allocation4 + $0x20] sm:$0xff]  ;;  %v5748_v10 = vld [vmem:[#allocation3 + $0x130] ss:$2 sm:$0xff]  ;;  %v5780_v20 = vld [vmem:[#allocation3 + $0x131] ss:$2 sm:$0xff]  ;;  %v11257_v53 = vpop.permute.xlu1 %2120  ;;  %v11259_v28 = vpack.c.bf16 %v6785_v62, %v6785_v62  ;;  %v608_v62 = vsel %vm544_vm14, 0.0, %v480_v49 }
 0x1de   : > { %v9412_v12 = vpack.c.bf16 %v5950_v42, %v5950_v42  ;;  %v5800_v57 = vmax.f32 %v5748_v10, %v5780_v20  ;;  %6993 = vst.msk [vmem:[#allocation5 + $0x8] sm:$0xf] %vm6028_vm13, %v9538_v46  ;;  %2643 = vperm.xlu1 %9753, %v14468_v25   ;;  %v2743_v42 = vld [vmem:[#allocation2 + $0x82] sm:$0xff]  ;;  %v481_v20 = vld [vmem:[%s10140_s15 + $0x98] sm:$0xff] }
 0x1df   : > { %14466 = vst [vmem:[#allocation18_spill] sm:$0xff] %v11259_v28  ;;  %6513 = vst.msk [vmem:[#allocation5 + $0x10] sm:$0xf] %vm6028_vm13, %v11259_v28  ;;  %v11269_v27 = vpop.permute.xlu0 %2135  ;;  %v482_v10 = vld [vmem:[%s10140_s15 + $0xa0] sm:$0xff]  ;;  %vm545_vm1 = vcmp.ne.f32.partialorder %v481_v20, %v481_v20  ;;  %v483_v22 = vld [vmem:[%s10140_s15 + $0xa8] sm:$0xff] }
 0x1e0   : > { %6031 = vst.msk [vmem:[#allocation5 + $0x18] sm:$0xf] %vm6028_vm13, %v9412_v12  ;;  %v5810_v19 = vmax.f32 %v5799_v47, %v5800_v57  ;;  %2658 = vperm.xlu0 %9752, %v11264_v0   ;;  %vm546_vm15 = vcmp.ne.f32.partialorder %v482_v10, %v482_v10  ;;  %v609_v57 = vsel %vm545_vm1, 0.0, %v481_v20  ;;  %vm547_vm4 = vcmp.ne.f32.partialorder %v483_v22, %v483_v22  ;;  %v513_v49 = vld [vmem:[%s10140_s15 + $0x198] sm:$0xff] }
 0x1e1   : > { %v11271_v18 = vpop.permute.xlu1 %2130  ;;  %674 = vst.msk [vmem:[#allocation2 + $0xf1] sm:$0xff] %vm655_vm0, %v608_v62  ;;  %v610_v47 = vsel %vm546_vm15, 0.0, %v482_v10  ;;  %675 = vst.msk [vmem:[#allocation2 + $0xf9] sm:$0xff] %vm655_vm0, %v609_v57  ;;  %vm577_vm8 = vcmp.ne.f32.partialorder %v513_v49, %v513_v49  ;;  %v14480_v10 = vld [vmem:[#allocation15_spill] sm:$0xff]  ;;  %v515_v57 = vld [vmem:[%s10140_s15 + $0x1a8] sm:$0xff] }
 0x1e2   : > { %v5825_v2 = vadd.f32 %v11196_v39, %v5810_v19  ;;  %2653 = vperm.xlu1 %9753, %v14469_v59   ;;  %v2618_v39 = vld [vmem:[#allocation2 + $0x231] sm:$0xff]  ;;  %676 = vst.msk [vmem:[#allocation2 + $0x109] sm:$0xff] %vm655_vm0, %v610_v47  ;;  %v641_v47 = vsel %vm577_vm8, 0.0, %v513_v49  ;;  %vm579_vm9 = vcmp.ne.f32.partialorder %v515_v57, %v515_v57 }
 0x1e3   : > { %v6054_v26 = vld [vmem:[#allocation4 + $0xb1] sm:$0xff]  ;;  %v11283_v58 = vpop.permute.xlu0 %2145  ;;  %707 = vst.msk [vmem:[#allocation2 + $0x2a9] sm:$0xff] %vm655_vm0, %v641_v47 }
 0x1e4   : > { %v6311_v33 = vld [vmem:[#allocation4 + $0xb0] sm:$0xff]  ;;  %5834 = vst.msk [vmem:[#allocation4 + $0xc1] sm:$0xff] %vm807_vm3, %v5825_v2  ;;  %v11279_v40 = vpack.c.bf16 %v6054_v26, %v6054_v26  ;;  %2668 = vperm.xlu0 %9752, %v2617_v7   ;;  %v611_v2 = vsel %vm547_vm4, 0.0, %v483_v22  ;;  %v2877_v49 = vld [vmem:[#allocation2 + $0x98] sm:$0xff] }
 0x1e5   : > { %v11281_v13 = vpack.c.bf16 %v6311_v33, %v6311_v33  ;;  %v11285_v44 = vpop.permute.xlu1 %2140  ;;  %v14477_v59 = vld [vmem:[#allocation13_spill] sm:$0xff]  ;;  %677 = vst.msk [vmem:[#allocation2 + $0x111] sm:$0xff] %vm655_vm0, %v611_v2  ;;  %v14478_v33 = vld [vmem:[#allocation14_spill] sm:$0xff] }
 0x1e6   : > { %14470 = vst [vmem:[#allocation19_spill] sm:$0xff] %v11279_v40  ;;  %6520 = vst.msk [vmem:[#allocation5 + $0x64] sm:$0xf] %vm6028_vm13, %v11279_v40  ;;  %2663 = vperm.xlu1 %9753, %v11277_v34   ;;  %v2879_v47 = vld [vmem:[#allocation2 + $0xb0] sm:$0xff] }
 0x1e7   : > { %14471 = vst [vmem:[#allocation21_spill] sm:$0xff] %v11281_v13  ;;  %6038 = vst.msk [vmem:[#allocation5 + $0x6c] sm:$0xf] %vm6028_vm13, %v11281_v13  ;;  %v11292_v32 = vpop.permute.xlu0 %2155 }
 0x1e8   : > { %2678 = vperm.xlu0 %9752, %v14472_v35   ;;  %v11357_v35 = vld [vmem:[#allocation2 + $0xca] sm:$0xff] }
 0x1e9   : > { %v11294_v15 = vpop.permute.xlu1 %2150  ;;  %14479 = vst [vmem:[#allocation26_spill] sm:$0xff] %v11357_v35 }
 0x1ea   : > { %2673 = vperm.xlu1 %9753, %v2618_v39   ;;  %v2750_v39 = vld [vmem:[#allocation2 + $0x22a] sm:$0xff] }
 0x1eb   : > { %v6921_v9 = vld [vmem:[#allocation4 + $0xc2] sm:$0xff]  ;;  %v11303_v50 = vpop.permute.xlu0 %2165 }
 0x1ec   : > { %v6665_v63 = vld [vmem:[#allocation4 + $0xc0] sm:$0xff]  ;;  %v11297_v43 = vpack.c.bf16 %v6921_v9, %v6921_v9  ;;  %2688 = vperm.xlu0 %9752, %v10865_v5  }
 0x1ed   : > { %v6793_v23 = vld [vmem:[#allocation4 + $0xc1] sm:$0xff]  ;;  %v11299_v55 = vpack.c.bf16 %v6665_v63, %v6665_v63  ;;  %v11305_v8 = vpop.permute.xlu1 %2160 }
 0x1ee   : > { %14473 = vst [vmem:[#allocation22_spill] sm:$0xff] %v11297_v43  ;;  %v11301_v1 = vpack.c.bf16 %v6793_v23, %v6793_v23  ;;  %7001 = vst.msk [vmem:[#allocation5 + $0x68] sm:$0xf] %vm6028_vm13, %v11297_v43  ;;  %2683 = vperm.xlu1 %9753, %v14476_v24   ;;  %v2742_v5 = vld [vmem:[#allocation2 + $0x7a] sm:$0xff]  ;;  %v2751_v24 = vld [vmem:[#allocation2 + $0x232] sm:$0xff] }
 0x1ef   : > { %14474 = vst [vmem:[#allocation23_spill] sm:$0xff] %v11299_v55  ;;  %6039 = vst.msk [vmem:[#allocation5 + $0x78] sm:$0xf] %vm6028_vm13, %v11299_v55  ;;  %v11317_v21 = vpop.permute.xlu0 %2228  ;;  %v2885_v43 = vld [vmem:[#allocation2 + $0x248] sm:$0xff] }
 0x1f0   : > { %14475 = vst [vmem:[#allocation24_spill] sm:$0xff] %v11301_v1  ;;  %6521 = vst.msk [vmem:[#allocation5 + $0x70] sm:$0xf] %vm6028_vm13, %v11301_v1  ;;  %2698 = vperm.xlu0 %9752, %v11315_v3  }
 0x1f1   : > { %v11319_v30 = vpop.permute.xlu1 %2170 }
 0x1f2   : > { %2693 = vperm.xlu1 %9753, %v10881_v11  }
 0x1f3   : > { %v11326_v17 = vpop.permute.xlu0 %2238 }
 0x1f4   : > { %2761 = vperm.xlu0 %9752, %v2742_v5   ;;  %v514_v5 = vld [vmem:[%s10140_s15 + $0x1a0] sm:$0xff] }
 0x1f5   : > { %v11328_v46 = vpop.permute.xlu1 %2233  ;;  %vm578_vm6 = vcmp.ne.f32.partialorder %v514_v5, %v514_v5 }
 0x1f6   : > { %2703 = vperm.xlu1 %9753, %v11323_v48   ;;  %v642_v20 = vsel %vm578_vm6, 0.0, %v514_v5 }
 0x1f7   : > { %v11334_v11 = vpop.permute.xlu0 %2248  ;;  %708 = vst.msk [vmem:[#allocation2 + $0x2b9] sm:$0xff] %vm655_vm0, %v642_v20 }
 0x1f8   : > { %2771 = vperm.xlu0 %9752, %v10918_v51   ;;  %v11348_v51 = vld [vmem:[#allocation2 + $0xc2] sm:$0xff] }
 0x1f9   : > { %v11336_v12 = vpop.permute.xlu1 %2243 }
 0x1fa   : > { %2766 = vperm.xlu1 %9753, %v2743_v42  }
 0x1fb   : > { %v11342_v25 = vpop.permute.xlu0 %2258 }
 0x1fc   : > { %2781 = vperm.xlu0 %9752, %v10949_v38   ;;  %v512_v38 = vld [vmem:[%s10140_s15 + $0x190] sm:$0xff] }
 0x1fd   : > { %v11344_v19 = vpop.permute.xlu1 %2253  ;;  %vm576_vm5 = vcmp.ne.f32.partialorder %v512_v38, %v512_v38 }
 0x1fe   : > { %2776 = vperm.xlu1 %9753, %v14477_v59   ;;  %v640_v23 = vsel %vm576_vm5, 0.0, %v512_v38  ;;  %v643_v59 = vsel %vm579_vm9, 0.0, %v515_v57 }
 0x1ff   : > { %v11351_v7 = vpop.permute.xlu0 %2268  ;;  %706 = vst.msk [vmem:[#allocation2 + $0x2a1] sm:$0xff] %vm655_vm0, %v640_v23  ;;  %709 = vst.msk [vmem:[#allocation2 + $0x2c1] sm:$0xff] %vm655_vm0, %v643_v59  ;;  %v2876_v23 = vld [vmem:[#allocation2 + $0x90] sm:$0xff]  ;;  %v11407_v59 = vld [vmem:[#allocation2 + $0xd8] sm:$0xff] }
 0x200   : > { %2791 = vperm.xlu0 %9752, %v11348_v51   ;;  %14487 = vst [vmem:[#allocation33_spill] sm:$0xff] %v11407_v59 }
 0x201   : > { %v11353_v26 = vpop.permute.xlu1 %2263 }
 0x202   : > { %2786 = vperm.xlu1 %9753, %v14478_v33   ;;  %v11382_v33 = vld [vmem:[#allocation2 + $0x272] sm:$0xff] }
 0x203   : > { %v11360_v9 = vpop.permute.xlu0 %2278 }
 0x204   : > { %2801 = vperm.xlu0 %9752, %v2750_v39  }
 0x205   : > { %v11362_v63 = vpop.permute.xlu1 %2273 }
 0x206   : > { %2796 = vperm.xlu1 %9753, %v11357_v35  }
 0x207   : > { %v11368_v62 = vpop.permute.xlu0 %2288 }
 0x208   : > { %2811 = vperm.xlu0 %9752, %v14480_v10  }
 0x209   : > { %v11370_v42 = vpop.permute.xlu1 %2283 }
 0x20a   : > { %2806 = vperm.xlu1 %9753, %v2751_v24   ;;  %v11391_v24 = vld [vmem:[#allocation2 + $0x27a] sm:$0xff] }
 0x20b   : > { %v11376_v22 = vpop.permute.xlu0 %2298 }
 0x20c   : > { %2821 = vperm.xlu0 %9752, %v11073_v45  }
 0x20d   : > { %v11378_v2 = vpop.permute.xlu1 %2293 }
 0x20e   : > { %2816 = vperm.xlu1 %9753, %v11075_v37   ;;  %v2878_v37 = vld [vmem:[#allocation2 + $0xa8] sm:$0xff] }
 0x20f   : > { %v11385_v39 = vpop.permute.xlu0 %2361 }
 0x210   : > { %2831 = vperm.xlu0 %9752, %v11382_v33  }
 0x211   : > { %v11387_v38 = vpop.permute.xlu1 %2303 }
 0x212   : > { %2826 = vperm.xlu1 %9753, %v11093_v6  }
 0x213   : > { %v11393_v5 = vpop.permute.xlu0 %2371 }
 0x214   : > { %14481 = vst [vmem:[#allocation27_spill] sm:$0xff] %v11393_v5  ;;  %2895 = vperm.xlu0 %9752, %v2876_v23  }
 0x215   : > { %v11395_v45 = vpop.permute.xlu1 %2366 }
 0x216   : > { %14482 = vst [vmem:[#allocation28_spill] sm:$0xff] %v11395_v45  ;;  %2836 = vperm.xlu1 %9753, %v11391_v24   ;;  %v3145_v45 = vld [vmem:[#allocation2 + $0xb2] sm:$0xff] }
 0x217   : > { %v11398_v10 = vpop.permute.xlu0 %2381 }
 0x218   : > { %14483 = vst [vmem:[#allocation29_spill] sm:$0xff] %v11398_v10  ;;  %2905 = vperm.xlu0 %9752, %v2878_v37   ;;  %v2884_v37 = vld [vmem:[#allocation2 + $0x240] sm:$0xff] }
 0x219   : > { %v11400_v20 = vpop.permute.xlu1 %2376 }
 0x21a   : > { %14484 = vst [vmem:[#allocation30_spill] sm:$0xff] %v11400_v20  ;;  %2900 = vperm.xlu1 %9753, %v2877_v49   ;;  %v11415_v49 = vld [vmem:[#allocation2 + $0xe0] sm:$0xff] }
 0x21b   : > { %v11402_v6 = vpop.permute.xlu0 %2391  ;;  %14490 = vst [vmem:[#allocation36_spill] sm:$0xff] %v11415_v49 }
 0x21c   : > { %14485 = vst [vmem:[#allocation31_spill] sm:$0xff] %v11402_v6  ;;  %2915 = vperm.xlu0 %9752, %v11152_v29  }
 0x21d   : > { %v11404_v57 = vpop.permute.xlu1 %2386 }
 0x21e   : > { %14486 = vst [vmem:[#allocation32_spill] sm:$0xff] %v11404_v57  ;;  %2910 = vperm.xlu1 %9753, %v2879_v47   ;;  %v2886_v47 = vld [vmem:[#allocation2 + $0x258] sm:$0xff] }
 0x21f   : > { %v11409_v23 = vpop.permute.xlu0 %2401 }
 0x220   : > { %14488 = vst [vmem:[#allocation34_spill] sm:$0xff] %v11409_v23  ;;  %2925 = vperm.xlu0 %9752, %v11407_v59  }
 0x221   : > { %v11411_v1 = vpop.permute.xlu1 %2396 }
 0x222   : > { %14489 = vst [vmem:[#allocation35_spill] sm:$0xff] %v11411_v1  ;;  %2920 = vperm.xlu1 %9753, %v11170_v4  }
 0x223   : > { %v11417_v13 = vpop.permute.xlu0 %2411 }
 0x224   : > { %14491 = vst [vmem:[#allocation37_spill] sm:$0xff] %v11417_v13  ;;  %2935 = vperm.xlu0 %9752, %v2884_v37  }
 0x225   : > { %v11419_v55 = vpop.permute.xlu1 %2406 }
 0x226   : > { %14492 = vst [vmem:[#allocation38_spill] sm:$0xff] %v11419_v55  ;;  %2930 = vperm.xlu1 %9753, %v11415_v49   ;;  %v11431_v55 = vld [vmem:[#allocation2 + $0x288] sm:$0xff] }
 0x227   : > { %v11422_v40 = vpop.permute.xlu0 %2421 }
 0x228   : > { %14493 = vst [vmem:[#allocation39_spill] sm:$0xff] %v11422_v40  ;;  %2945 = vperm.xlu0 %9752, %v2886_v47   ;;  %v3009_v47 = vld [vmem:[#allocation2 + $0x91] sm:$0xff] }
 0x229   : > { %v11424_v28 = vpop.permute.xlu1 %2416 }
 0x22a   : > { %14494 = vst [vmem:[#allocation40_spill] sm:$0xff] %v11424_v28  ;;  %2940 = vperm.xlu1 %9753, %v2885_v43   ;;  %v11439_v43 = vld [vmem:[#allocation2 + $0x290] sm:$0xff] }
 0x22b   : > { %v11426_v61 = vpop.permute.xlu0 %2431 }
 0x22c   : > { %14495 = vst [vmem:[#allocation41_spill] sm:$0xff] %v11426_v61  ;;  %2955 = vperm.xlu0 %9752, %v11221_v52  }
 0x22d   : > { %v11428_v1 = vpop.permute.xlu1 %2426 }
 0x22e   : > { %14496 = vst [vmem:[#allocation42_spill] sm:$0xff] %v11428_v1  ;;  %2950 = vperm.xlu1 %9753, %v2887_v54   ;;  %v3011_v54 = vld [vmem:[#allocation2 + $0xa9] sm:$0xff]  ;;  %v3010_v1 = vld [vmem:[#allocation2 + $0x99] sm:$0xff] }
 0x22f   : > { %v11433_v37 = vpop.permute.xlu0 %2495 }
 0x230   : > { %14497 = vst [vmem:[#allocation43_spill] sm:$0xff] %v11433_v37  ;;  %2965 = vperm.xlu0 %9752, %v11431_v55  }
 0x231   : > { %v11435_v13 = vpop.permute.xlu1 %2436 }
 0x232   : > { %14498 = vst [vmem:[#allocation44_spill] sm:$0xff] %v11435_v13  ;;  %2960 = vperm.xlu1 %9753, %v11232_v16   ;;  %v3012_v13 = vld [vmem:[#allocation2 + $0xb1] sm:$0xff] }
 0x233   : > { %v11441_v28 = vpop.permute.xlu0 %2505 }
 0x234   : > { %14499 = vst [vmem:[#allocation45_spill] sm:$0xff] %v11441_v28  ;;  %3028 = vperm.xlu0 %9752, %v3009_v47  }
 0x235   : > { %v11443_v61 = vpop.permute.xlu1 %2500 }
 0x236   : > { %14500 = vst [vmem:[#allocation46_spill] sm:$0xff] %v11443_v61  ;;  %2970 = vperm.xlu1 %9753, %v11439_v43   ;;  %v11455_v61 = vld [vmem:[#allocation2 + $0xd9] sm:$0xff] }
 0x237   : > { %v11446_v40 = vpop.permute.xlu0 %2515 }
 0x238   : > { %14501 = vst [vmem:[#allocation47_spill] sm:$0xff] %v11446_v40  ;;  %3038 = vperm.xlu0 %9752, %v3011_v54   ;;  %v3017_v54 = vld [vmem:[#allocation2 + $0x241] sm:$0xff] }
 0x239   : > { %v11448_v37 = vpop.permute.xlu1 %2510 }
 0x23a   : > { %14502 = vst [vmem:[#allocation48_spill] sm:$0xff] %v11448_v37  ;;  %3033 = vperm.xlu1 %9753, %v3010_v1   ;;  %v11463_v1 = vld [vmem:[#allocation2 + $0xe1] sm:$0xff] }
 0x23b   : > { %v11450_v23 = vpop.permute.xlu0 %2525 }
 0x23c   : > { %14503 = vst [vmem:[#allocation49_spill] sm:$0xff] %v11450_v23  ;;  %3048 = vperm.xlu0 %9752, %v11264_v0  }
 0x23d   : > { %v11452_v57 = vpop.permute.xlu1 %2520 }
 0x23e   : > { %14504 = vst [vmem:[#allocation50_spill] sm:$0xff] %v11452_v57  ;;  %3043 = vperm.xlu1 %9753, %v3012_v13   ;;  %v3019_v13 = vld [vmem:[#allocation2 + $0x259] sm:$0xff]  ;;  %v3018_v57 = vld [vmem:[#allocation2 + $0x249] sm:$0xff] }
 0x23f   : > { %v11457_v47 = vpop.permute.xlu0 %2535 }
 0x240   : > { %14505 = vst [vmem:[#allocation51_spill] sm:$0xff] %v11457_v47  ;;  %3058 = vperm.xlu0 %9752, %v11455_v61  }
 0x241   : > { %v11459_v28 = vpop.permute.xlu1 %2530 }
 0x242   : > { %14506 = vst [vmem:[#allocation52_spill] sm:$0xff] %v11459_v28  ;;  %3053 = vperm.xlu1 %9753, %v11277_v34   ;;  %v3020_v28 = vld [vmem:[#allocation2 + $0x261] sm:$0xff] }
 0x243   : > { %v11465_v37 = vpop.permute.xlu0 %2545 }
 0x244   : > { %14507 = vst [vmem:[#allocation53_spill] sm:$0xff] %v11465_v37  ;;  %3068 = vperm.xlu0 %9752, %v3017_v54   ;;  %v11479_v54 = vld [vmem:[#allocation2 + $0x289] sm:$0xff] }
 0x245   : > { %v11467_v23 = vpop.permute.xlu1 %2540 }
 0x246   : > { %14508 = vst [vmem:[#allocation54_spill] sm:$0xff] %v11467_v23  ;;  %3063 = vperm.xlu1 %9753, %v11463_v1  }
 0x247   : > { %v11470_v40 = vpop.permute.xlu0 %2555 }
 0x248   : > { %14509 = vst [vmem:[#allocation55_spill] sm:$0xff] %v11470_v40  ;;  %3078 = vperm.xlu0 %9752, %v3019_v13   ;;  %v11487_v13 = vld [vmem:[#allocation2 + $0x291] sm:$0xff] }
 0x249   : > { %v11472_v47 = vpop.permute.xlu1 %2550 }
 0x24a   : > { %14510 = vst [vmem:[#allocation56_spill] sm:$0xff] %v11472_v47  ;;  %3073 = vperm.xlu1 %9753, %v3018_v57   ;;  %v3142_v57 = vld [vmem:[#allocation2 + $0x92] sm:$0xff]  ;;  %v3143_v47 = vld [vmem:[#allocation2 + $0x9a] sm:$0xff] }
 0x24b   : > { %v11474_v6 = vpop.permute.xlu0 %2565 }
 0x24c   : > { %14511 = vst [vmem:[#allocation20_spill] sm:$0xff] %v11474_v6  ;;  %3088 = vperm.xlu0 %9752, %v11315_v3  }
 0x24d   : > { %v11476_v20 = vpop.permute.xlu1 %2560 }
 0x24e   : > { %14512 = vst [vmem:[#allocation57_spill] sm:$0xff] %v11476_v20  ;;  %3083 = vperm.xlu1 %9753, %v3020_v28   ;;  %v3144_v28 = vld [vmem:[#allocation2 + $0xaa] sm:$0xff] }
 0x24f   : > { %v11481_v23 = vpop.permute.xlu0 %2628 }
 0x250   : > { %14513 = vst [vmem:[#allocation59_spill] sm:$0xff] %v11481_v23  ;;  %3098 = vperm.xlu0 %9752, %v11479_v54   ;;  %v484_v23 = vld [vmem:[%s10140_s15 + $0xb0] sm:$0xff] }
 0x251   : > { %v11483_v37 = vpop.permute.xlu1 %2570  ;;  %vm548_vm10 = vcmp.ne.f32.partialorder %v484_v23, %v484_v23 }
 0x252   : > { %14514 = vst [vmem:[#allocation60_spill] sm:$0xff] %v11483_v37  ;;  %3093 = vperm.xlu1 %9753, %v11323_v48   ;;  %v612_v10 = vsel %vm548_vm10, 0.0, %v484_v23 }
 0x253   : > { %v11489_v6 = vpop.permute.xlu0 %2638  ;;  %678 = vst.msk [vmem:[#allocation2 + $0x121] sm:$0xff] %vm655_vm0, %v612_v10  ;;  %v3150_v10 = vld [vmem:[#allocation2 + $0x242] sm:$0xff] }
 0x254   : > { %14515 = vst [vmem:[#allocation79_spill] sm:$0xff] %v11489_v6  ;;  %3161 = vperm.xlu0 %9752, %v3142_v57   ;;  %v485_v6 = vld [vmem:[%s10140_s15 + $0xb8] sm:$0xff] }
 0x255   : > { %v11491_v20 = vpop.permute.xlu1 %2633  ;;  %vm549_vm11 = vcmp.ne.f32.partialorder %v485_v6, %v485_v6 }
 0x256   : > { %14516 = vst [vmem:[#allocation61_spill] sm:$0xff] %v11491_v20  ;;  %3103 = vperm.xlu1 %9753, %v11487_v13   ;;  %v613_v20 = vsel %vm549_vm11, 0.0, %v485_v6 }
 0x257   : > { %v11495_v40 = vpop.permute.xlu0 %2648  ;;  %679 = vst.msk [vmem:[#allocation2 + $0x129] sm:$0xff] %vm655_vm0, %v613_v20  ;;  %v3151_v20 = vld [vmem:[#allocation2 + $0x24a] sm:$0xff] }
 0x258   : > { %14517 = vst [vmem:[#allocation63_spill] sm:$0xff] %v11495_v40  ;;  %3171 = vperm.xlu0 %9752, %v3144_v28   ;;  %v11506_v40 = vld [vmem:[#allocation2 + $0xda] sm:$0xff]  ;;  %v11515_v28 = vld [vmem:[#allocation2 + $0xe2] sm:$0xff] }
 0x259   : > { %v11497_v37 = vpop.permute.xlu1 %2643  ;;  %14521 = vst [vmem:[#allocation83_spill] sm:$0xff] %v11506_v40 }
 0x25a   : > { %14518 = vst [vmem:[#allocation64_spill] sm:$0xff] %v11497_v37  ;;  %3166 = vperm.xlu1 %9753, %v3143_v47  }
 0x25b   : > { %v11501_v5 = vpop.permute.xlu0 %2658 }
 0x25c   : > { %14519 = vst [vmem:[#allocation58_spill] sm:$0xff] %v11501_v5  ;;  %3181 = vperm.xlu0 %9752, %v11348_v51  }
 0x25d   : > { %v11503_v57 = vpop.permute.xlu1 %2653 }
 0x25e   : > { %14520 = vst [vmem:[#allocation82_spill] sm:$0xff] %v11503_v57  ;;  %3176 = vperm.xlu1 %9753, %v3145_v45   ;;  %v3152_v45 = vld [vmem:[#allocation2 + $0x25a] sm:$0xff] }
 0x25f   : > { %v11509_v23 = vpop.permute.xlu0 %2668 }
 0x260   : > { %14522 = vst [vmem:[#allocation67_spill] sm:$0xff] %v11509_v23  ;;  %3191 = vperm.xlu0 %9752, %v11506_v40   ;;  %v516_v23 = vld [vmem:[%s10140_s15 + $0x1b0] sm:$0xff] }
 0x261   : > { %v11511_v47 = vpop.permute.xlu1 %2663  ;;  %vm580_vm12 = vcmp.ne.f32.partialorder %v516_v23, %v516_v23 }
 0x262   : > { %14523 = vst [vmem:[#allocation68_spill] sm:$0xff] %v11511_v47  ;;  %3186 = vperm.xlu1 %9753, %v11357_v35   ;;  %v644_v37 = vsel %vm580_vm12, 0.0, %v516_v23  ;;  %v3153_v35 = vld [vmem:[#allocation2 + $0x262] sm:$0xff] }
 0x263   : > { %v11517_v57 = vpop.permute.xlu0 %2678  ;;  %710 = vst.msk [vmem:[#allocation2 + $0x2d1] sm:$0xff] %vm655_vm0, %v644_v37  ;;  %v11543_v37 = vld [vmem:[#allocation2 + $0x292] sm:$0xff] }
 0x264   : > { %14524 = vst [vmem:[#allocation84_spill] sm:$0xff] %v11517_v57  ;;  %3201 = vperm.xlu0 %9752, %v3150_v10   ;;  %v517_v57 = vld [vmem:[%s10140_s15 + $0x1b8] sm:$0xff]  ;;  %14530 = vst [vmem:[#allocation88_spill] sm:$0xff] %v11543_v37 }
 0x265   : > { %v11519_v6 = vpop.permute.xlu1 %2673  ;;  %vm581_vm14 = vcmp.ne.f32.partialorder %v517_v57, %v517_v57 }
 0x266   : > { %14525 = vst [vmem:[#allocation70_spill] sm:$0xff] %v11519_v6  ;;  %3196 = vperm.xlu1 %9753, %v11515_v28   ;;  %v645_v6 = vsel %vm581_vm14, 0.0, %v517_v57 }
 0x267   : > { %v11523_v5 = vpop.permute.xlu0 %2688  ;;  %711 = vst.msk [vmem:[#allocation2 + $0x2d9] sm:$0xff] %vm655_vm0, %v645_v6  ;;  %v11557_v6 = vld [vmem:[#allocation2 + $0xf0] sm:$0xff] }
 0x268   : > { %14526 = vst [vmem:[#allocation85_spill] sm:$0xff] %v11523_v5  ;;  %3211 = vperm.xlu0 %9752, %v3152_v45   ;;  %v11534_v5 = vld [vmem:[#allocation2 + $0x28a] sm:$0xff]  ;;  %14533 = vst [vmem:[#allocation91_spill] sm:$0xff] %v11557_v6 }
 0x269   : > { %v11525_v47 = vpop.permute.xlu1 %2683 }
 0x26a   : > { %3206 = vperm.xlu1 %9753, %v3151_v20  }
 0x26b   : > { %v11529_v40 = vpop.permute.xlu0 %2698 }
 0x26c   : > { %14527 = vst [vmem:[#allocation71_spill] sm:$0xff] %v11529_v40  ;;  %3221 = vperm.xlu0 %9752, %v11382_v33  }
 0x26d   : > { %v11531_v10 = vpop.permute.xlu1 %2693 }
 0x26e   : > { %14528 = vst [vmem:[#allocation25_spill] sm:$0xff] %v11531_v10  ;;  %3216 = vperm.xlu1 %9753, %v3153_v35  }
 0x26f   : > { %v11537_v45 = vpop.permute.xlu0 %2761 }
 0x270   : > { %3231 = vperm.xlu0 %9752, %v11534_v5  }
 0x271   : > { %v11539_v23 = vpop.permute.xlu1 %2703 }
 0x272   : > { %14529 = vst [vmem:[#allocation87_spill] sm:$0xff] %v11539_v23  ;;  %3226 = vperm.xlu1 %9753, %v11391_v24  }
 0x273   : > { %v11545_v20 = vpop.permute.xlu0 %2771 }
 0x274   : > { %3312 = vperm.xlu0 %9752, %v11152_v29   ;;  %v11565_v29 = vld [vmem:[#allocation2 + $0x108] sm:$0xff] }
 0x275   : > { %v11547_v10 = vpop.permute.xlu1 %2766  ;;  %14535 = vst [vmem:[#allocation92_spill] sm:$0xff] %v11565_v29 }
 0x276   : > { %3236 = vperm.xlu1 %9753, %v11543_v37   ;;  %v11567_v37 = vld [vmem:[#allocation2 + $0xf8] sm:$0xff] }
 0x277   : > { %v11551_v35 = vpop.permute.xlu0 %2781  ;;  %14536 = vst [vmem:[#allocation94_spill] sm:$0xff] %v11567_v37 }
 0x278   : > { %14531 = vst [vmem:[#allocation62_spill] sm:$0xff] %v11551_v35  ;;  %3322 = vperm.xlu0 %9752, %v11407_v59  }
 0x279   : > { %v11553_v57 = vpop.permute.xlu1 %2776 }
 0x27a   : > { %14532 = vst [vmem:[#allocation72_spill] sm:$0xff] %v11553_v57  ;;  %3317 = vperm.xlu1 %9753, %v11170_v4   ;;  %v11575_v4 = vld [vmem:[#allocation2 + $0x110] sm:$0xff] }
 0x27b   : > { %v11559_v23 = vpop.permute.xlu0 %2791  ;;  %14538 = vst [vmem:[#allocation66_spill] sm:$0xff] %v11575_v4 }
 0x27c   : > { %3332 = vperm.xlu0 %9752, %v11557_v6  }
 0x27d   : > { %v11561_v40 = vpop.permute.xlu1 %2786 }
 0x27e   : > { %14534 = vst [vmem:[#allocation73_spill] sm:$0xff] %v11561_v40  ;;  %3327 = vperm.xlu1 %9753, %v11415_v49  }
 0x27f   : > { %v11569_v35 = vpop.permute.xlu0 %2801 }
 0x280   : > { %3342 = vperm.xlu0 %9752, %v11565_v29   ;;  %v11589_v29 = vld [vmem:[#allocation2 + $0x2a0] sm:$0xff] }
 0x281   : > { %v11571_v57 = vpop.permute.xlu1 %2796  ;;  %14543 = vst [vmem:[#allocation96_spill] sm:$0xff] %v11589_v29 }
 0x282   : > { %14537 = vst [vmem:[#allocation65_spill] sm:$0xff] %v11571_v57  ;;  %3337 = vperm.xlu1 %9753, %v11567_v37  }
 0x283   : > { %v11577_v59 = vpop.permute.xlu0 %2811 }
 0x284   : > { %14539 = vst [vmem:[#allocation75_spill] sm:$0xff] %v11577_v59  ;;  %3352 = vperm.xlu0 %9752, %v11221_v52   ;;  %v11597_v52 = vld [vmem:[#allocation2 + $0x2b8] sm:$0xff] }
 0x285   : > { %v11579_v40 = vpop.permute.xlu1 %2806  ;;  %14546 = vst [vmem:[#allocation10_spill] sm:$0xff] %v11597_v52 }
 0x286   : > { %14540 = vst [vmem:[#allocation95_spill] sm:$0xff] %v11579_v40  ;;  %3347 = vperm.xlu1 %9753, %v11575_v4   ;;  %v11599_v4 = vld [vmem:[#allocation2 + $0x2a8] sm:$0xff] }
 0x287   : > { %v11583_v49 = vpop.permute.xlu0 %2821  ;;  %14547 = vst [vmem:[#allocation11_spill] sm:$0xff] %v11599_v4 }
 0x288   : > { %14541 = vst [vmem:[#allocation69_spill] sm:$0xff] %v11583_v49  ;;  %3362 = vperm.xlu0 %9752, %v11431_v55  }
 0x289   : > { %v11585_v6 = vpop.permute.xlu1 %2816 }
 0x28a   : > { %14542 = vst [vmem:[#allocation76_spill] sm:$0xff] %v11585_v6  ;;  %3357 = vperm.xlu1 %9753, %v11232_v16   ;;  %v11607_v16 = vld [vmem:[#allocation2 + $0x2c0] sm:$0xff] }
 0x28b   : > { %v11591_v37 = vpop.permute.xlu0 %2831  ;;  %14549 = vst [vmem:[#allocation77_spill] sm:$0xff] %v11607_v16 }
 0x28c   : > { %14544 = vst [vmem:[#allocation97_spill] sm:$0xff] %v11591_v37  ;;  %3372 = vperm.xlu0 %9752, %v11589_v29  }
 0x28d   : > { %v11593_v57 = vpop.permute.xlu1 %2826 }
 0x28e   : > { %14545 = vst [vmem:[#allocation80_spill] sm:$0xff] %v11593_v57  ;;  %3367 = vperm.xlu1 %9753, %v11439_v43  }
 0x28f   : > { %v11601_v49 = vpop.permute.xlu0 %2895 }
 0x290   : > { %3382 = vperm.xlu0 %9752, %v11597_v52  }
 0x291   : > { %v11603_v6 = vpop.permute.xlu1 %2836 }
 0x292   : > { %14548 = vst [vmem:[#allocation74_spill] sm:$0xff] %v11603_v6  ;;  %3377 = vperm.xlu1 %9753, %v11599_v4   ;;  %v11621_v4 = vld [vmem:[#allocation2 + $0xf1] sm:$0xff] }
 0x293   : > { %v11609_v55 = vpop.permute.xlu0 %2905  ;;  %14550 = vst [vmem:[#allocation78_spill] sm:$0xff] %v11621_v4 }
 0x294   : > { %3445 = vperm.xlu0 %9752, %v11264_v0   ;;  %v11629_v0 = vld [vmem:[#allocation2 + $0x109] sm:$0xff] }
 0x295   : > { %v11611_v57 = vpop.permute.xlu1 %2900  ;;  %14553 = vst [vmem:[#allocation89_spill] sm:$0xff] %v11629_v0 }
 0x296   : > { %3387 = vperm.xlu1 %9753, %v11607_v16   ;;  %v11631_v16 = vld [vmem:[#allocation2 + $0xf9] sm:$0xff] }
 0x297   : > { %v11615_v43 = vpop.permute.xlu0 %2915  ;;  %14554 = vst [vmem:[#allocation90_spill] sm:$0xff] %v11631_v16 }
 0x298   : > { %3455 = vperm.xlu0 %9752, %v11455_v61  }
 0x299   : > { %v11617_v29 = vpop.permute.xlu1 %2910 }
 0x29a   : > { %3450 = vperm.xlu1 %9753, %v11277_v34   ;;  %v11639_v34 = vld [vmem:[#allocation2 + $0x111] sm:$0xff] }
 0x29b   : > { %v11623_v52 = vpop.permute.xlu0 %2925  ;;  %14557 = vst [vmem:[#allocation12_spill] sm:$0xff] %v11639_v34 }
 0x29c   : > { %14551 = vst [vmem:[#allocation81_spill] sm:$0xff] %v11623_v52  ;;  %3465 = vperm.xlu0 %9752, %v11621_v4  }
 0x29d   : > { %v11625_v6 = vpop.permute.xlu1 %2920 }
 0x29e   : > { %14552 = vst [vmem:[#allocation86_spill] sm:$0xff] %v11625_v6  ;;  %3460 = vperm.xlu1 %9753, %v11463_v1   ;;  %v9065_v6 = vld [vmem:[%s10795_s22] ss:$0 sm:$0xff]  ;;  %v9066_v1 = vld [vmem:[%s10795_s22 + $0x1] ss:$0 sm:$0xff] }
 0x29f   : > { %v11633_v37 = vpop.permute.xlu0 %2935  ;;  %v2183_v59 = vmul.f32 %v9065_v6, %v11255_v14  ;;  %v2186_v14 = vmul.f32 %v9065_v6, %v11285_v44  ;;  %v2316_v44 = vmul.f32 %v9066_v1, %v11342_v25 }
 0x2a0   : > { %14555 = vst [vmem:[#allocation93_spill] sm:$0xff] %v11633_v37  ;;  %3475 = vperm.xlu0 %9752, %v11629_v0   ;;  %v2177_v37 = vmul.f32 %v9065_v6, %v11223_v36  ;;  %v2178_v0 = vmul.f32 %v9065_v6, %v11236_v31  ;;  %v2185_v36 = vmul.f32 %v9065_v6, %v11269_v27 }
 0x2a1   : > { %v11635_v61 = vpop.permute.xlu1 %2930  ;;  %v2310_v31 = vmul.f32 %v9066_v1, %v11317_v21  ;;  %v2189_v27 = vmul.f32 %v9065_v6, %v11292_v32  ;;  %v2191_v21 = vmul.f32 %v9065_v6, %v11303_v50  ;;  %v2318_v50 = vmul.f32 %v9066_v1, %v11351_v7 }
 0x2a2   : > { %14556 = vst [vmem:[#allocation9_spill] sm:$0xff] %v11635_v61  ;;  %3470 = vperm.xlu1 %9753, %v11631_v16   ;;  %v2179_v61 = vmul.f32 %v9065_v6, %v11234_v41  ;;  %v2181_v16 = vmul.f32 %v9065_v6, %v11248_v60  ;;  %v2184_v41 = vmul.f32 %v9065_v6, %v11271_v18  ;;  %v11666_v60 = vld [vmem:[#allocation2 + $0x2a1] sm:$0xff] }
 0x2a3   : > { %v11641_v40 = vpop.permute.xlu0 %2945  ;;  %14562 = vst [vmem:[#allocation99_spill] sm:$0xff] %v11666_v60  ;;  %v2188_v18 = vmul.f32 %v9065_v6, %v11294_v15  ;;  %v2326_v32 = vadd.f32 %v2310_v31, %v2177_v37  ;;  %v2321_v7 = vmul.f32 %v9066_v1, %v11370_v42  ;;  %v14568_v42 = vld [vmem:[#allocation27_spill] sm:$0xff] }
 0x2a4   : > { %14558 = vst [vmem:[#allocation13_spill] sm:$0xff] %v11641_v40  ;;  %3485 = vperm.xlu0 %9752, %v11315_v3   ;;  %v2180_v40 = vmul.f32 %v9065_v6, %v11250_v56  ;;  %v2187_v56 = vmul.f32 %v9065_v6, %v11283_v58  ;;  %v2192_v58 = vmul.f32 %v9065_v6, %v11319_v30 }
 0x2a5   : > { %v11644_v4 = vpop.permute.xlu1 %2940 }
 0x2a6   : > { %14559 = vst [vmem:[#allocation14_spill] sm:$0xff] %v11644_v4  ;;  %3480 = vperm.xlu1 %9753, %v11639_v34   ;;  %v2182_v4 = vmul.f32 %v9065_v6, %v11257_v53  ;;  %v2312_v34 = vmul.f32 %v9066_v1, %v11326_v17  ;;  %v2311_v53 = vmul.f32 %v9066_v1, %v11328_v46 }
 0x2a7   : > { %v11652_v52 = vpop.permute.xlu0 %2955  ;;  %v2313_v17 = vmul.f32 %v9066_v1, %v11336_v12  ;;  %v2315_v46 = vmul.f32 %v9066_v1, %v11344_v19  ;;  %v2317_v12 = vmul.f32 %v9066_v1, %v11353_v26  ;;  %v2320_v19 = vmul.f32 %v9066_v1, %v11360_v9 }
 0x2a8   : > { %14560 = vst [vmem:[#allocation15_spill] sm:$0xff] %v11652_v52  ;;  %3495 = vperm.xlu0 %9752, %v11479_v54   ;;  %v2314_v54 = vmul.f32 %v9066_v1, %v11334_v11  ;;  %v2328_v15 = vadd.f32 %v2312_v34, %v2179_v61  ;;  %v11688_v52 = vld [vmem:[%s10795_s22 + $0x2] ss:$0 sm:$0xff]  ;;  %v2327_v30 = vadd.f32 %v2311_v53, %v2178_v0  ;;  %v14569_v53 = vld [vmem:[#allocation28_spill] sm:$0xff] }
 0x2a9   : > { %v11658_v3 = vpop.permute.xlu1 %2950  ;;  %v2329_v37 = vadd.f32 %v2313_v17, %v2180_v40  ;;  %v2322_v61 = vmul.f32 %v9066_v1, %v11368_v62  ;;  %v2324_v26 = vmul.f32 %v9066_v1, %v11376_v22  ;;  %v2331_v31 = vadd.f32 %v2315_v46, %v2182_v4  ;;  %v11716_v17 = vld [vmem:[#allocation2 + $0x2c1] sm:$0xff]  ;;  %v14572_v46 = vld [vmem:[#allocation30_spill] sm:$0xff] }
 0x2aa   : > { %14561 = vst [vmem:[#allocation98_spill] sm:$0xff] %v11658_v3  ;;  %3490 = vperm.xlu1 %9753, %v11323_v48   ;;  %v2190_v3 = vmul.f32 %v9065_v6, %v11305_v8  ;;  %v11691_v8 = vld [vmem:[#allocation2 + $0x2b9] sm:$0xff]  ;;  %v2330_v25 = vadd.f32 %v2314_v54, %v2181_v16  ;;  %v2319_v6 = vmul.f32 %v9066_v1, %v11362_v63  ;;  %v14570_v54 = vld [vmem:[#allocation29_spill] sm:$0xff]  ;;  %14571 = vst [vmem:[#allocation27_spill] sm:$0xff] %v11716_v17 }
 0x2ab   : > { %v11676_v48 = vpop.permute.xlu0 %2965  ;;  %14565 = vst [vmem:[#allocation102_spill] sm:$0xff] %v11691_v8  ;;  %v2323_v0 = vmul.f32 %v9066_v1, %v11378_v2  ;;  %v2443_v9 = vmul.f32 %v11688_v52, %v11385_v39  ;;  %v2334_v40 = vadd.f32 %v2318_v50, %v2185_v36  ;;  %v2333_v63 = vadd.f32 %v2317_v12, %v2184_v41 }
 0x2ac   : > { %14563 = vst [vmem:[#allocation100_spill] sm:$0xff] %v11676_v48  ;;  %3505 = vperm.xlu0 %9752, %v11666_v60   ;;  %v2325_v62 = vmul.f32 %v9066_v1, %v11387_v38  ;;  %v2445_v22 = vmul.f32 %v11688_v52, %v14568_v42  ;;  %v2335_v4 = vadd.f32 %v2319_v6, %v2186_v14  ;;  %v14573_v14 = vld [vmem:[#allocation31_spill] sm:$0xff]  ;;  %v14601_v60 = vld [vmem:[#allocation20_spill] sm:$0xff] }
 0x2ad   : > { %v11682_v11 = vpop.permute.xlu1 %2960  ;;  %v2444_v2 = vmul.f32 %v11688_v52, %v14569_v53  ;;  %v2447_v39 = vmul.f32 %v11688_v52, %v14570_v54  ;;  %v2337_v36 = vadd.f32 %v2321_v7, %v2188_v18  ;;  %v2340_v41 = vadd.f32 %v2324_v26, %v2191_v21  ;;  %v14575_v21 = vld [vmem:[#allocation34_spill] sm:$0xff]  ;;  %v14576_v7 = vld [vmem:[#allocation35_spill] sm:$0xff] }
 0x2ae   : > { %14564 = vst [vmem:[#allocation101_spill] sm:$0xff] %v11682_v11  ;;  %3500 = vperm.xlu1 %9753, %v11487_v13   ;;  %v11695_v11 = vld [vmem:[#allocation2 + $0x2a9] sm:$0xff]  ;;  %v2332_v13 = vadd.f32 %v2316_v44, %v2183_v59  ;;  %v2336_v59 = vadd.f32 %v2320_v19, %v2187_v56  ;;  %v2338_v44 = vadd.f32 %v2322_v61, %v2189_v27  ;;  %v14578_v53 = vld [vmem:[#allocation38_spill] sm:$0xff] }
 0x2af   : > { %14566 = vst [vmem:[#allocation103_spill] sm:$0xff] %v11695_v11  ;;  %v11700_v34 = vpop.permute.xlu0 %3028  ;;  %v2446_v38 = vmul.f32 %v11688_v52, %v14572_v46  ;;  %v2339_v50 = vadd.f32 %v2323_v0, %v2190_v3  ;;  %v2459_v56 = vadd.f32 %v2443_v9, %v2326_v32  ;;  %v2449_v12 = vmul.f32 %v11688_v52, %v14573_v14  ;;  %v14574_v19 = vld [vmem:[#allocation32_spill] sm:$0xff]  ;;  %v14577_v0 = vld [vmem:[#allocation37_spill] sm:$0xff] }
 0x2b0   : > { %3515 = vperm.xlu0 %9752, %v11691_v8   ;;  %v2448_v6 = vmul.f32 %v11688_v52, %v14574_v19  ;;  %v2341_v27 = vadd.f32 %v2325_v62, %v2192_v58  ;;  %v2461_v18 = vadd.f32 %v2445_v22, %v2328_v15  ;;  %v2451_v61 = vmul.f32 %v11688_v52, %v14575_v21  ;;  %v14579_v15 = vld [vmem:[#allocation39_spill] sm:$0xff]  ;;  %v14580_v22 = vld [vmem:[#allocation40_spill] sm:$0xff]  ;;  %v14581_v14 = vld [vmem:[#allocation41_spill] sm:$0xff] }
 0x2b1   : > { %v11705_v16 = vpop.permute.xlu1 %2970  ;;  %v2450_v3 = vmul.f32 %v11688_v52, %v14576_v7  ;;  %v2460_v32 = vadd.f32 %v2444_v2, %v2327_v30  ;;  %v2463_v26 = vadd.f32 %v2447_v39, %v2330_v25  ;;  %v2453_v9 = vmul.f32 %v11688_v52, %v14577_v0  ;;  %v486_v25 = vld [vmem:[%s10140_s15 + $0xc0] sm:$0xff]  ;;  %v14582_v21 = vld [vmem:[#allocation42_spill] sm:$0xff]  ;;  %v487_v8 = vld [vmem:[%s10140_s15 + $0xc8] sm:$0xff] }
 0x2b2   : > { %14567 = vst [vmem:[#allocation104_spill] sm:$0xff] %v11705_v16  ;;  %3510 = vperm.xlu1 %9753, %v11695_v11   ;;  %v2452_v54 = vmul.f32 %v11688_v52, %v14578_v53  ;;  %v2462_v58 = vadd.f32 %v2446_v38, %v2329_v37  ;;  %v2455_v62 = vmul.f32 %v11688_v52, %v14579_v15  ;;  %v14583_v37 = vld [vmem:[#allocation83_spill] sm:$0xff]  ;;  %v14588_v11 = vld [vmem:[#allocation45_spill] sm:$0xff] }
 0x2b3   : > { %v11720_v1 = vpop.permute.xlu0 %3038  ;;  %v2454_v46 = vmul.f32 %v11688_v52, %v14580_v22  ;;  %v2457_v19 = vmul.f32 %v11688_v52, %v14581_v14  ;;  %v2465_v2 = vadd.f32 %v2449_v12, %v2332_v13  ;;  %v2464_v39 = vadd.f32 %v2448_v6, %v2331_v31  ;;  %v14584_v15 = vld [vmem:[#allocation43_spill] sm:$0xff]  ;;  %v14585_v14 = vld [vmem:[#allocation26_spill] sm:$0xff]  ;;  %v14587_v6 = vld [vmem:[#allocation44_spill] sm:$0xff] }
 0x2b4   : > { %3578 = vperm.xlu0 %9752, %v11348_v51   ;;  %v11739_v51 = vld [vmem:[%s10795_s22 + $0x4] ss:$0 sm:$0xff]  ;;  %v2456_v7 = vmul.f32 %v11688_v52, %v14582_v21  ;;  %vm550_vm15 = vcmp.ne.f32.partialorder %v486_v25, %v486_v25  ;;  %v2467_v38 = vadd.f32 %v2451_v61, %v2334_v40  ;;  %v2466_v53 = vadd.f32 %v2450_v3, %v2333_v63  ;;  %v14589_v3 = vld [vmem:[#allocation46_spill] sm:$0xff] }
 0x2b5   : > { %v11726_v42 = vpop.permute.xlu1 %3033  ;;  %v2577_v22 = vmul.f32 %v11739_v51, %v14584_v15  ;;  %v614_v13 = vsel %vm550_vm15, 0.0, %v486_v25  ;;  %v2469_v31 = vadd.f32 %v2453_v9, %v2336_v59  ;;  %v2468_v12 = vadd.f32 %v2452_v54, %v2335_v4  ;;  %v14590_v59 = vld [vmem:[#allocation47_spill] sm:$0xff]  ;;  %v14593_v54 = vld [vmem:[#allocation50_spill] sm:$0xff] }
 0x2b6   : > { %3520 = vperm.xlu1 %9753, %v11716_v17   ;;  %v11758_v17 = vld [vmem:[#allocation2 + $0xf2] sm:$0xff]  ;;  %v2458_v21 = vmul.f32 %v11688_v52, %v14587_v6  ;;  %680 = vst.msk [vmem:[#allocation2 + $0x139] sm:$0xff] %vm655_vm0, %v614_v13  ;;  %v2471_v40 = vadd.f32 %v2455_v62, %v2338_v44  ;;  %v2470_v63 = vadd.f32 %v2454_v46, %v2337_v36  ;;  %v14591_v52 = vld [vmem:[#allocation48_spill] sm:$0xff]  ;;  %v14594_v13 = vld [vmem:[#allocation51_spill] sm:$0xff] }
 0x2b7   : > { %v11747_v30 = vpop.permute.xlu0 %3048  ;;  %14586 = vst [vmem:[#allocation28_spill] sm:$0xff] %v11758_v17  ;;  %v2473_v61 = vadd.f32 %v2457_v19, %v2340_v41  ;;  %v2578_v15 = vmul.f32 %v11739_v51, %v14589_v3  ;;  %v2472_v25 = vadd.f32 %v2456_v7, %v2339_v50  ;;  %v2581_v4 = vmul.f32 %v11739_v51, %v14590_v59  ;;  %v14592_v36 = vld [vmem:[#allocation49_spill] sm:$0xff]  ;;  %v14595_v3 = vld [vmem:[#allocation52_spill] sm:$0xff] }
 0x2b8   : > { %3588 = vperm.xlu0 %9752, %v14583_v37   ;;  %v2579_v37 = vmul.f32 %v11739_v51, %v14588_v11  ;;  %v2580_v9 = vmul.f32 %v11739_v51, %v14591_v52  ;;  %vm551_vm1 = vcmp.ne.f32.partialorder %v487_v8, %v487_v8  ;;  %v2593_v44 = vadd.f32 %v2577_v22, %v2459_v56  ;;  %v11782_v50 = vld [vmem:[#allocation2 + $0x10a] sm:$0xff]  ;;  %v11789_v56 = vld [vmem:[%s10795_s22 + $0x5] ss:$0 sm:$0xff]  ;;  %v11791_v22 = vld [vmem:[#allocation2 + $0xfa] sm:$0xff] }
 0x2b9   : > { %v11752_v0 = vpop.permute.xlu1 %3043  ;;  %v2583_v41 = vmul.f32 %v11739_v51, %v14592_v36  ;;  %v2582_v62 = vmul.f32 %v11739_v51, %v14593_v54  ;;  %v615_v46 = vsel %vm551_vm1, 0.0, %v487_v8  ;;  %v2474_v19 = vadd.f32 %v2458_v21, %v2341_v27  ;;  %14596 = vst [vmem:[#allocation29_spill] sm:$0xff] %v11791_v22  ;;  %v14597_v36 = vld [vmem:[#allocation53_spill] sm:$0xff]  ;;  %v14598_v54 = vld [vmem:[#allocation54_spill] sm:$0xff]  ;;  %v14599_v27 = vld [vmem:[#allocation55_spill] sm:$0xff] }
 0x2ba   : > { %3583 = vperm.xlu1 %9753, %v14585_v14   ;;  %v2595_v7 = vadd.f32 %v2579_v37, %v2461_v18  ;;  %v2585_v6 = vmul.f32 %v11739_v51, %v14594_v13  ;;  %v2584_v59 = vmul.f32 %v11739_v51, %v14595_v3  ;;  %681 = vst.msk [vmem:[#allocation2 + $0x141] sm:$0xff] %vm655_vm0, %v615_v46  ;;  %v14600_v3 = vld [vmem:[#allocation56_spill] sm:$0xff] }
 0x2bb   : > { %v11767_v14 = vpop.permute.xlu0 %3058  ;;  %v2594_v52 = vadd.f32 %v2578_v15, %v2460_v32  ;;  %v2586_v8 = vmul.f32 %v11739_v51, %v14598_v54  ;;  %v2589_v18 = vmul.f32 %v11739_v51, %v14599_v27  ;;  %v2597_v37 = vadd.f32 %v2581_v4, %v2463_v26  ;;  %v14603_v54 = vld [vmem:[#allocation57_spill] sm:$0xff]  ;;  %v14604_v27 = vld [vmem:[#allocation59_spill] sm:$0xff]  ;;  %v14605_v4 = vld [vmem:[#allocation60_spill] sm:$0xff] }
 0x2bc   : > { %3598 = vperm.xlu0 %9752, %v11758_v17   ;;  %v2596_v13 = vadd.f32 %v2580_v9, %v2462_v58  ;;  %v2588_v17 = vmul.f32 %v11739_v51, %v14600_v3  ;;  %v2591_v46 = vmul.f32 %v11739_v51, %v14601_v60  ;;  %v2599_v15 = vadd.f32 %v2583_v41, %v2465_v2  ;;  %v14606_v60 = vld [vmem:[#allocation79_spill] sm:$0xff] }
 0x2bd   : > { %v11774_v11 = vpop.permute.xlu1 %3053  ;;  %v2590_v16 = vmul.f32 %v11739_v51, %v14603_v54  ;;  %v2710_v48 = vmul.f32 %v11789_v56, %v14604_v27  ;;  %v2601_v26 = vadd.f32 %v2585_v6, %v2467_v38  ;;  %v2600_v58 = vadd.f32 %v2584_v59, %v2466_v53  ;;  %v14608_v53 = vld [vmem:[#allocation63_spill] sm:$0xff] }
 0x2be   : > { %3593 = vperm.xlu1 %9753, %v11515_v28   ;;  %v2587_v28 = vmul.f32 %v11739_v51, %v14597_v36  ;;  %v2598_v36 = vadd.f32 %v2582_v62, %v2464_v39  ;;  %v2592_v9 = vmul.f32 %v11739_v51, %v14605_v4  ;;  %v2712_v3 = vmul.f32 %v11789_v56, %v14606_v60  ;;  %v14607_v62 = vld [vmem:[#allocation61_spill] sm:$0xff]  ;;  %v14609_v51 = vld [vmem:[#allocation64_spill] sm:$0xff] }
 0x2bf   : > { %v11800_v21 = vpop.permute.xlu0 %3068  ;;  %v2602_v39 = vadd.f32 %v2586_v8, %v2468_v12  ;;  %v2605_v41 = vadd.f32 %v2589_v18, %v2471_v40  ;;  %v2711_v54 = vmul.f32 %v11789_v56, %v14607_v62  ;;  %v2607_v38 = vadd.f32 %v2591_v46, %v2473_v61  ;;  %v14610_v40 = vld [vmem:[#allocation58_spill] sm:$0xff]  ;;  %v14612_v46 = vld [vmem:[#allocation67_spill] sm:$0xff] }
 0x2c0   : > { %3608 = vperm.xlu0 %9752, %v11782_v50   ;;  %v2603_v2 = vadd.f32 %v2587_v28, %v2469_v31  ;;  %v2714_v6 = vmul.f32 %v11789_v56, %v14608_v53  ;;  %v2713_v59 = vmul.f32 %v11789_v56, %v14609_v51  ;;  %v2606_v31 = vadd.f32 %v2590_v16, %v2472_v25  ;;  %v14611_v8 = vld [vmem:[#allocation82_spill] sm:$0xff]  ;;  %v14614_v25 = vld [vmem:[#allocation84_spill] sm:$0xff]  ;;  %v14616_v51 = vld [vmem:[#allocation85_spill] sm:$0xff] }
 0x2c1   : > { %v11806_v32 = vpop.permute.xlu1 %3063  ;;  %v2726_v12 = vadd.f32 %v2710_v48, %v2593_v44  ;;  %v2716_v28 = vmul.f32 %v11789_v56, %v14610_v40  ;;  %v11839_v61 = vadd.f32 %v2592_v9, %v2474_v19  ;;  %v2728_v18 = vadd.f32 %v2712_v3, %v2595_v7  ;;  %v14615_v62 = vld [vmem:[#allocation70_spill] sm:$0xff]  ;;  %v11852_v19 = vld [vmem:[%s10795_s22 + $0x8] ss:$0 sm:$0xff]  ;;  %v518_v9 = vld [vmem:[%s10140_s15 + $0x1c0] sm:$0xff] }
 0x2c2   : > { %14602 = vst [vmem:[#allocation30_spill] sm:$0xff] %v11806_v32  ;;  %3603 = vperm.xlu1 %9753, %v11791_v22   ;;  %v11818_v32 = vld [vmem:[#allocation2 + $0x112] sm:$0xff]  ;;  %v2604_v22 = vadd.f32 %v2588_v17, %v2470_v63  ;;  %v2715_v17 = vmul.f32 %v11789_v56, %v14611_v8  ;;  %v11836_v63 = vld [vmem:[%s10795_s22 + $0x6] ss:$0 sm:$0xff]  ;;  %v2718_v60 = vmul.f32 %v11789_v56, %v14612_v46 }
 0x2c3   : > { %v11822_v27 = vpop.permute.xlu0 %3078  ;;  %v2727_v48 = vadd.f32 %v2711_v54, %v2594_v52  ;;  %v2720_v44 = vmul.f32 %v11789_v56, %v14614_v25  ;;  %v2719_v53 = vmul.f32 %v11789_v56, %v14615_v62  ;;  %v2722_v40 = vmul.f32 %v11789_v56, %v14616_v51  ;;  %v11865_v62 = vld [vmem:[%s10795_s22 + $0x9] ss:$0 sm:$0xff]  ;;  %v11905_v51 = vld [vmem:[%s10795_s22 + $0xa] ss:$0 sm:$0xff] }
 0x2c4   : > { %3618 = vperm.xlu0 %9752, %v11382_v33   ;;  %v14613_v33 = vld [vmem:[#allocation68_spill] sm:$0xff]  ;;  %v2730_v3 = vadd.f32 %v2714_v6, %v2597_v37  ;;  %v2729_v8 = vadd.f32 %v2713_v59, %v2596_v13  ;;  %v2843_v52 = vmul.f32 %v11836_v63, %v11537_v45  ;;  %vm582_vm4 = vcmp.ne.f32.partialorder %v518_v9, %v518_v9  ;;  %v14617_v59 = vld [vmem:[#allocation71_spill] sm:$0xff] }
 0x2c5   : > { %v11828_v4 = vpop.permute.xlu1 %3073  ;;  %v2717_v16 = vmul.f32 %v11789_v56, %v14613_v33  ;;  %v2732_v46 = vadd.f32 %v2716_v28, %v2599_v15  ;;  %v2731_v33 = vadd.f32 %v2715_v17, %v2598_v36  ;;  %v2721_v25 = vmul.f32 %v11789_v56, %v11525_v47  ;;  %v11868_v37 = vld [vmem:[#allocation2 + $0x2a2] sm:$0xff]  ;;  %v14618_v28 = vld [vmem:[#allocation25_spill] sm:$0xff] }
 0x2c6   : > { %3613 = vperm.xlu1 %9753, %v11818_v32   ;;  %v646_v13 = vsel %vm582_vm4, 0.0, %v518_v9  ;;  %v11870_v6 = vadd.f32 %v2718_v60, %v2601_v26  ;;  %v2977_v15 = vmul.f32 %v11852_v19, %v11601_v49  ;;  %v11879_v47 = vadd.f32 %v2720_v44, %v2603_v2  ;;  %v519_v17 = vld [vmem:[%s10140_s15 + $0x1c8] sm:$0xff]  ;;  %v14619_v44 = vld [vmem:[#allocation62_spill] sm:$0xff] }
 0x2c7   : > { %v11854_v7 = vpop.permute.xlu0 %3088  ;;  %v11872_v45 = vadd.f32 %v2717_v16, %v2600_v58  ;;  %712 = vst.msk [vmem:[#allocation2 + $0x2e9] sm:$0xff] %vm655_vm0, %v646_v13  ;;  %v11881_v36 = vadd.f32 %v2719_v53, %v2602_v39  ;;  %v2723_v26 = vmul.f32 %v11789_v56, %v14618_v28  ;;  %v2859_v60 = vadd.f32 %v2843_v52, %v2726_v12  ;;  %v14620_v12 = vld [vmem:[#allocation88_spill] sm:$0xff]  ;;  %v14622_v28 = vld [vmem:[#allocation73_spill] sm:$0xff] }
 0x2c8   : > { %3628 = vperm.xlu0 %9752, %v11534_v5   ;;  %v2724_v5 = vmul.f32 %v11789_v56, %v14617_v59  ;;  %v2845_v16 = vmul.f32 %v11836_v63, %v11545_v20  ;;  %v3110_v49 = vmul.f32 %v11865_v62, %v11700_v34  ;;  %vm583_vm5 = vcmp.ne.f32.partialorder %v519_v17, %v519_v17  ;;  %v11907_v20 = vld [vmem:[#allocation2 + $0x2ba] sm:$0xff]  ;;  %v14621_v9 = vld [vmem:[#allocation72_spill] sm:$0xff] }
 0x2c9   : > { %v11859_v54 = vpop.permute.xlu1 %3083  ;;  %v11897_v39 = vadd.f32 %v2721_v25, %v2604_v22  ;;  %v2847_v53 = vmul.f32 %v11836_v63, %v14619_v44  ;;  %v647_v34 = vsel %vm583_vm5, 0.0, %v519_v17  ;;  %v2846_v52 = vmul.f32 %v11836_v63, %v14621_v9  ;;  %v11941_v9 = vld [vmem:[#allocation2 + $0x2c2] sm:$0xff] }
 0x2ca   : > { %3623 = vperm.xlu1 %9753, %v11391_v24   ;;  %v11883_v24 = vadd.f32 %v2722_v40, %v2605_v41  ;;  %v2844_v41 = vmul.f32 %v11836_v63, %v11547_v10  ;;  %v11909_v40 = vadd.f32 %v2724_v5, %v2607_v38  ;;  %v2993_v22 = vadd.f32 %v2977_v15, %v2859_v60  ;;  %v11915_v10 = vld [vmem:[#allocation2 + $0x2aa] sm:$0xff] }
 0x2cb   : > { %v11887_v58 = vpop.permute.xlu0 %3098  ;;  %v2979_v25 = vmul.f32 %v11852_v19, %v11609_v55  ;;  %713 = vst.msk [vmem:[#allocation2 + $0x2f1] sm:$0xff] %vm655_vm0, %v647_v34  ;;  %v11918_v13 = vadd.f32 %v2723_v26, %v2606_v31  ;;  %v2849_v59 = vmul.f32 %v11836_v63, %v11559_v23  ;;  %v2848_v38 = vmul.f32 %v11836_v63, %v14622_v28  ;;  %v14623_v31 = vld [vmem:[#allocation87_spill] sm:$0xff] }
 0x2cc   : > { %3638 = vperm.xlu0 %9752, %v11868_v37   ;;  %v2978_v5 = vmul.f32 %v11852_v19, %v11611_v57  ;;  %v2861_v15 = vadd.f32 %v2845_v16, %v2728_v18  ;;  %v3126_v60 = vadd.f32 %v3110_v49, %v2993_v22  ;;  %v3112_v55 = vmul.f32 %v11865_v62, %v11720_v1 }
 0x2cd   : > { %v11894_v2 = vpop.permute.xlu1 %3093  ;;  %v11934_v23 = vmul.f32 %v11789_v56, %v14623_v31  ;;  %v2860_v26 = vadd.f32 %v2844_v41, %v2727_v48  ;;  %v2863_v34 = vadd.f32 %v2847_v53, %v2730_v3  ;;  %v3111_v57 = vmul.f32 %v11865_v62, %v11726_v42  ;;  %v14624_v53 = vld [vmem:[#allocation33_spill] sm:$0xff]  ;;  %v14629_v31 = vld [vmem:[#allocation86_spill] sm:$0xff] }
 0x2ce   : > { %3633 = vperm.xlu1 %9753, %v14620_v12   ;;  %v2862_v18 = vadd.f32 %v2846_v52, %v2729_v8  ;;  %v2995_v16 = vadd.f32 %v2979_v25, %v2861_v15  ;;  %v2981_v1 = vmul.f32 %v11852_v19, %v11615_v43  ;;  %v2865_v22 = vadd.f32 %v2849_v59, %v2732_v46  ;;  %v14625_v46 = vld [vmem:[#allocation65_spill] sm:$0xff]  ;;  %v14626_v25 = vld [vmem:[#allocation75_spill] sm:$0xff] }
 0x2cf   : > { %v3162_v17 = vpop.permute.xlu0 %3161  ;;  %v2864_v28 = vadd.f32 %v2848_v38, %v2731_v33  ;;  %v2980_v56 = vmul.f32 %v11852_v19, %v11617_v29  ;;  %v2851_v42 = vmul.f32 %v11836_v63, %v11569_v35  ;;  %v3114_v8 = vmul.f32 %v11865_v62, %v11747_v30  ;;  %v14627_v38 = vld [vmem:[#allocation81_spill] sm:$0xff] }
 0x2d0   : > { %v3243_v44 = vmul.f32 %v11905_v51, %v3162_v17  ;;  %3648 = vperm.xlu0 %9752, %v11907_v20   ;;  %v2994_v17 = vadd.f32 %v2978_v5, %v2860_v26  ;;  %v3128_v3 = vadd.f32 %v3112_v55, %v2995_v16  ;;  %v2850_v33 = vmul.f32 %v11836_v63, %v14625_v46 }
 0x2d1   : > { %v11929_v12 = vpop.permute.xlu1 %3103  ;;  %v3113_v29 = vmul.f32 %v11865_v62, %v11752_v0  ;;  %v2853_v30 = vmul.f32 %v11836_v63, %v14626_v25  ;;  %v2997_v59 = vadd.f32 %v2981_v1, %v2863_v34  ;;  %v2983_v5 = vmul.f32 %v11852_v19, %v14627_v38  ;;  %v14635_v38 = vld [vmem:[#allocation92_spill] sm:$0xff] }
 0x2d2   : > { %3643 = vperm.xlu1 %9753, %v11915_v10   ;;  %v3259_v49 = vadd.f32 %v3243_v44, %v3126_v60  ;;  %v3127_v52 = vadd.f32 %v3111_v57, %v2994_v17  ;;  %v14628_v60 = vld [vmem:[#allocation95_spill] sm:$0xff]  ;;  %v2996_v44 = vadd.f32 %v2980_v56, %v2862_v18  ;;  %v2982_v26 = vmul.f32 %v11852_v19, %v14629_v31 }
 0x2d3   : > { %v3172_v48 = vpop.permute.xlu0 %3171  ;;  %v2852_v55 = vmul.f32 %v11836_v63, %v14628_v60  ;;  %v2867_v16 = vadd.f32 %v2851_v42, %v11870_v6  ;;  %v3116_v17 = vmul.f32 %v11865_v62, %v11767_v14  ;;  %v2866_v18 = vadd.f32 %v2850_v33, %v11872_v45  ;;  %v14631_v42 = vld [vmem:[#allocation36_spill] sm:$0xff]  ;;  %v14633_v33 = vld [vmem:[#allocation9_spill] sm:$0xff] }
 0x2d4   : > { %3276 = vst.msk [vmem:[#allocation3 + $0x40] sm:$0xff] %vm807_vm3, %v3259_v49  ;;  %v3245_v43 = vmul.f32 %v11905_v51, %v3172_v48  ;;  %3712 = vperm.xlu0 %9752, %v14624_v53   ;;  %v3130_v49 = vadd.f32 %v3114_v8, %v2997_v59  ;;  %v14630_v48 = vld [vmem:[#allocation91_spill] sm:$0xff]  ;;  %v3129_v56 = vadd.f32 %v3113_v29, %v2996_v44  ;;  %v14638_v44 = vld [vmem:[#allocation94_spill] sm:$0xff] }
 0x2d5   : > { %v3167_v41 = vpop.permute.xlu1 %3166  ;;  %v2869_v14 = vadd.f32 %v2853_v30, %v11879_v47  ;;  %v2999_v8 = vadd.f32 %v2983_v5, %v2865_v22  ;;  %v2868_v46 = vadd.f32 %v2852_v55, %v11881_v36  ;;  %v2998_v45 = vadd.f32 %v2982_v26, %v2864_v28  ;;  %v14636_v36 = vld [vmem:[#allocation76_spill] sm:$0xff]  ;;  %v14639_v26 = vld [vmem:[#allocation13_spill] sm:$0xff] }
 0x2d6   : > { %v3244_v35 = vmul.f32 %v11905_v51, %v3167_v41  ;;  %3653 = vperm.xlu1 %9753, %v11941_v9   ;;  %v3261_v15 = vadd.f32 %v3245_v43, %v3128_v3  ;;  %v3115_v3 = vmul.f32 %v11865_v62, %v11774_v11  ;;  %v14632_v43 = vld [vmem:[#allocation93_spill] sm:$0xff]  ;;  %v3118_v47 = vmul.f32 %v11865_v62, %v11800_v21  ;;  %v11998_v21 = vld [vmem:[#allocation2 + $0x120] sm:$0xff] }
 0x2d7   : > { %v3182_v57 = vpop.permute.xlu0 %3181  ;;  %v2985_v41 = vmul.f32 %v11852_v19, %v14632_v43  ;;  %v3132_v59 = vadd.f32 %v3116_v17, %v2999_v8  ;;  %v2854_v28 = vmul.f32 %v11836_v63, %v14636_v36  ;;  %v3119_v43 = vmul.f32 %v11865_v62, %v11828_v4 }
 0x2d8   : > { %v3260_v0 = vadd.f32 %v3244_v35, %v3127_v52  ;;  %3278 = vst.msk [vmem:[#allocation3 + $0x50] sm:$0xff] %vm807_vm3, %v3261_v15  ;;  %v3247_v34 = vmul.f32 %v11905_v51, %v3182_v57  ;;  %3722 = vperm.xlu0 %9752, %v14630_v48   ;;  %v2984_v52 = vmul.f32 %v11852_v19, %v14633_v33  ;;  %v14634_v35 = vld [vmem:[#allocation69_spill] sm:$0xff]  ;;  %v14637_v15 = vld [vmem:[#allocation30_spill] sm:$0xff]  ;;  %v14642_v48 = vld [vmem:[#allocation80_spill] sm:$0xff] }
 0x2d9   : > { %v3177_v1 = vpop.permute.xlu1 %3176  ;;  %v2855_v25 = vmul.f32 %v11836_v63, %v14634_v35  ;;  %v3131_v5 = vadd.f32 %v3115_v3, %v2998_v45  ;;  %v3117_v60 = vmul.f32 %v11865_v62, %v14637_v15  ;;  %v3001_v31 = vadd.f32 %v2985_v41, %v2867_v16  ;;  %v14640_v57 = vld [vmem:[#allocation14_spill] sm:$0xff]  ;;  %v14644_v35 = vld [vmem:[#allocation15_spill] sm:$0xff] }
 0x2da   : > { %3277 = vst.msk [vmem:[#allocation3 + $0x48] sm:$0xff] %vm807_vm3, %v3260_v0  ;;  %v3246_v6 = vmul.f32 %v11905_v51, %v3177_v1  ;;  %3717 = vperm.xlu1 %9753, %v14631_v42   ;;  %v3263_v53 = vadd.f32 %v3247_v34, %v3130_v49  ;;  %v2987_v0 = vmul.f32 %v11852_v19, %v14639_v26  ;;  %v14641_v34 = vld [vmem:[#allocation97_spill] sm:$0xff] }
 0x2db   : > { %v3192_v29 = vpop.permute.xlu0 %3191  ;;  %v2986_v49 = vmul.f32 %v11852_v19, %v14640_v57  ;;  %v2857_v1 = vmul.f32 %v11836_v63, %v14641_v34  ;;  %v3000_v3 = vadd.f32 %v2984_v52, %v2866_v18  ;;  %v3134_v8 = vadd.f32 %v3118_v47, %v3001_v31  ;;  %v14646_v57 = vld [vmem:[#allocation100_spill] sm:$0xff] }
 0x2dc   : > { %v3262_v11 = vadd.f32 %v3246_v6, %v3129_v56  ;;  %3280 = vst.msk [vmem:[#allocation3 + $0x60] sm:$0xff] %vm807_vm3, %v3263_v53  ;;  %v3249_v22 = vmul.f32 %v11905_v51, %v3192_v29  ;;  %3732 = vperm.xlu0 %9752, %v14635_v38   ;;  %v2856_v56 = vmul.f32 %v11836_v63, %v14642_v48  ;;  %v12022_v38 = vld [vmem:[#allocation2 + $0x128] sm:$0xff]  ;;  %v3702_v48 = vld [vmem:[#allocation2 + $0x290] sm:$0xff] }
 0x2dd   : > { %v3187_v30 = vpop.permute.xlu1 %3186  ;;  %v3120_v16 = vmul.f32 %v11865_v62, %v11822_v27  ;;  %v2871_v45 = vadd.f32 %v2855_v25, %v11883_v24  ;;  %v2870_v18 = vadd.f32 %v2854_v28, %v11897_v39  ;;  %v3133_v33 = vadd.f32 %v3117_v60, %v3000_v3  ;;  %v14643_v27 = vld [vmem:[#allocation66_spill] sm:$0xff] }
 0x2de   : > { %3279 = vst.msk [vmem:[#allocation3 + $0x58] sm:$0xff] %vm807_vm3, %v3262_v11  ;;  %v3248_v55 = vmul.f32 %v11905_v51, %v3187_v30  ;;  %3727 = vperm.xlu1 %9753, %v14638_v44   ;;  %v3265_v17 = vadd.f32 %v3249_v22, %v3132_v59  ;;  %v3701_v11 = vld [vmem:[#allocation2 + $0x288] sm:$0xff]  ;;  %v3003_v4 = vadd.f32 %v2987_v0, %v2869_v14  ;;  %v14645_v25 = vld [vmem:[#allocation98_spill] sm:$0xff] }
 0x2df   : > { %v3202_v42 = vpop.permute.xlu0 %3201  ;;  %v3002_v29 = vadd.f32 %v2986_v49, %v2868_v46  ;;  %v2989_v59 = vmul.f32 %v11852_v19, %v14644_v35  ;;  %v2873_v24 = vadd.f32 %v2857_v1, %v11909_v40  ;;  %v2872_v39 = vadd.f32 %v2856_v56, %v11918_v13  ;;  %v14648_v56 = vld [vmem:[#allocation74_spill] sm:$0xff] }
 0x2e0   : > { %v3264_v6 = vadd.f32 %v3248_v55, %v3131_v5  ;;  %3282 = vst.msk [vmem:[#allocation3 + $0x70] sm:$0xff] %vm807_vm3, %v3265_v17  ;;  %v3251_v41 = vmul.f32 %v11905_v51, %v3202_v42  ;;  %3742 = vperm.xlu0 %9752, %v11998_v21   ;;  %v2988_v36 = vmul.f32 %v11852_v19, %v14645_v25  ;;  %v14647_v17 = vld [vmem:[#allocation101_spill] sm:$0xff] }
 0x2e1   : > { %v3197_v53 = vpop.permute.xlu1 %3196  ;;  %v5734_v47 = vld [vmem:[#allocation3 + $0x40] ss:$2 sm:$0xff]  ;;  %v5766_v22 = vld [vmem:[#allocation3 + $0x41] ss:$2 sm:$0xff]  ;;  %v3136_v15 = vadd.f32 %v3120_v16, %v3003_v4  ;;  %v3135_v14 = vadd.f32 %v3119_v43, %v3002_v29  ;;  %v3122_v46 = vmul.f32 %v11865_v62, %v11854_v7  ;;  %v3121_v40 = vmul.f32 %v11865_v62, %v11859_v54 }
 0x2e2   : > { %3281 = vst.msk [vmem:[#allocation3 + $0x68] sm:$0xff] %vm807_vm3, %v3264_v6  ;;  %v3250_v52 = vmul.f32 %v11905_v51, %v3197_v53  ;;  %3737 = vperm.xlu1 %9753, %v14643_v27   ;;  %v3267_v30 = vadd.f32 %v3251_v41, %v3134_v8  ;;  %v5793_v13 = vmax.f32 %v5734_v47, %v5766_v22 }
 0x2e3   : > { %v3212_v5 = vpop.permute.xlu0 %3211  ;;  %v3005_v7 = vadd.f32 %v2989_v59, %v2871_v45  ;;  %v2991_v49 = vmul.f32 %v11852_v19, %v14646_v57  ;;  %v2990_v34 = vmul.f32 %v11852_v19, %v14647_v17  ;;  %v2858_v54 = vmul.f32 %v11836_v63, %v14648_v56  ;;  %v12051_v63 = vld [vmem:[%s11182_s25] ss:$0 sm:$0xff]  ;;  %v14650_v59 = vld [vmem:[#allocation104_spill] sm:$0xff]  ;;  %v14653_v57 = vld [vmem:[#allocation77_spill] sm:$0xff] }
 0x2e4   : > { %v3266_v28 = vadd.f32 %v3250_v52, %v3133_v33  ;;  %3284 = vst.msk [vmem:[#allocation3 + $0x140] sm:$0xff] %vm807_vm3, %v3267_v30  ;;  %v3253_v44 = vmul.f32 %v11905_v51, %v3212_v5  ;;  %3752 = vperm.xlu0 %9752, %v3701_v11   ;;  %v3004_v3 = vadd.f32 %v2988_v36, %v2870_v18  ;;  %v14649_v33 = vld [vmem:[#allocation96_spill] sm:$0xff]  ;;  %v12079_v17 = vld [vmem:[#allocation2 + $0x2d8] sm:$0xff] }
 0x2e5   : > { %v5736_v60 = vld [vmem:[#allocation3 + $0x50] ss:$2 sm:$0xff]  ;;  %v5768_v55 = vld [vmem:[#allocation3 + $0x51] ss:$2 sm:$0xff]  ;;  %v3207_v31 = vpop.permute.xlu1 %3206  ;;  %v3138_v16 = vadd.f32 %v3122_v46, %v3005_v7  ;;  %v3124_v43 = vmul.f32 %v11865_v62, %v11887_v58  ;;  %v3123_v41 = vmul.f32 %v11865_v62, %v11894_v2  ;;  %v2741_v58 = vadd.f32 %v11934_v23, %v11839_v61 }
 0x2e6   : > { %v5794_v26 = vmax.f32 %v5736_v60, %v5768_v55  ;;  %3283 = vst.msk [vmem:[#allocation3 + $0x78] sm:$0xff] %vm807_vm3, %v3266_v28  ;;  %v3252_v0 = vmul.f32 %v11905_v51, %v3207_v31  ;;  %3747 = vperm.xlu1 %9753, %v12022_v38   ;;  %v3269_v1 = vadd.f32 %v3253_v44, %v3136_v15  ;;  %v14652_v60 = vld [vmem:[#allocation11_spill] sm:$0xff]  ;;  %v12069_v55 = vld [vmem:[#allocation2 + $0x2d0] sm:$0xff] }
 0x2e7   : > { %v3222_v8 = vpop.permute.xlu0 %3221  ;;  %v3137_v52 = vadd.f32 %v3121_v40, %v3004_v3  ;;  %v3007_v2 = vadd.f32 %v2991_v49, %v2873_v24  ;;  %v3006_v11 = vadd.f32 %v2990_v34, %v2872_v39  ;;  %v2992_v47 = vmul.f32 %v11852_v19, %v14650_v59  ;;  %v14651_v24 = vld [vmem:[#allocation10_spill] sm:$0xff] }
 0x2e8   : > { %v5807_v6 = vmax.f32 %v5793_v13, %v5794_v26  ;;  %v3268_v42 = vadd.f32 %v3252_v0, %v3135_v14  ;;  %3286 = vst.msk [vmem:[#allocation3 + $0x150] sm:$0xff] %vm807_vm3, %v3269_v1  ;;  %v3255_v53 = vmul.f32 %v11905_v51, %v3222_v8  ;;  %3762 = vperm.xlu0 %9752, %v14649_v33   ;;  %v3826_v49 = vld [vmem:[#allocation2 + $0xd9] sm:$0xff]  ;;  %v3827_v33 = vld [vmem:[#allocation2 + $0xe1] sm:$0xff] }
 0x2e9   : > { %v3217_v45 = vpop.permute.xlu1 %3216  ;;  %v5738_v4 = vld [vmem:[#allocation3 + $0x60] ss:$2 sm:$0xff]  ;;  %v5770_v29 = vld [vmem:[#allocation3 + $0x61] ss:$2 sm:$0xff]  ;;  %v2874_v25 = vadd.f32 %v2858_v54, %v2741_v58  ;;  %v3140_v36 = vadd.f32 %v3124_v43, %v3007_v2  ;;  %v3139_v28 = vadd.f32 %v3123_v41, %v3006_v11  ;;  %v3125_v39 = vmul.f32 %v11865_v62, %v11929_v12  ;;  %v14654_v58 = vld [vmem:[#allocation78_spill] sm:$0xff] }
 0x2ea   : > { %v5822_v18 = vadd.f32 %v12051_v63, %v5807_v6  ;;  %3285 = vst.msk [vmem:[#allocation3 + $0x148] sm:$0xff] %vm807_vm3, %v3268_v42  ;;  %v3254_v27 = vmul.f32 %v11905_v51, %v3217_v45  ;;  %3757 = vperm.xlu1 %9753, %v3702_v48   ;;  %v3271_v35 = vadd.f32 %v3255_v53, %v3138_v16 }
 0x2eb   : > { %v3232_v30 = vpop.permute.xlu0 %3231  ;;  %v5795_v19 = vmax.f32 %v5738_v4, %v5770_v29  ;;  %v3008_v31 = vadd.f32 %v2992_v47, %v2874_v25 }
 0x2ec   : > { %5831 = vst.msk [vmem:[#allocation4 + $0x31] sm:$0xff] %vm807_vm3, %v5822_v18  ;;  %v3270_v22 = vadd.f32 %v3254_v27, %v3137_v52  ;;  %3288 = vst.msk [vmem:[#allocation3 + $0x160] sm:$0xff] %vm807_vm3, %v3271_v35  ;;  %v3257_v61 = vmul.f32 %v11905_v51, %v3232_v30  ;;  %3772 = vperm.xlu0 %9752, %v14651_v24   ;;  %v14657_v24 = vld [vmem:[#allocation90_spill] sm:$0xff] }
 0x2ed   : > { %v5740_v5 = vld [vmem:[#allocation3 + $0x70] ss:$2 sm:$0xff]  ;;  %v5772_v15 = vld [vmem:[#allocation3 + $0x71] ss:$2 sm:$0xff]  ;;  %v3227_v23 = vpop.permute.xlu1 %3226  ;;  %v3141_v62 = vadd.f32 %v3125_v39, %v3008_v31  ;;  %v14658_v31 = vld [vmem:[#allocation12_spill] sm:$0xff] }
 0x2ee   : > { %v5796_v14 = vmax.f32 %v5740_v5, %v5772_v15  ;;  %3287 = vst.msk [vmem:[#allocation3 + $0x158] sm:$0xff] %vm807_vm3, %v3270_v22  ;;  %v3256_v46 = vmul.f32 %v11905_v51, %v3227_v23  ;;  %3767 = vperm.xlu1 %9753, %v14652_v60   ;;  %v3273_v44 = vadd.f32 %v3257_v61, %v3140_v36 }
 0x2ef   : > { %v12071_v26 = vpop.permute.xlu0 %3312 }
 0x2f0   : > { %v5808_v40 = vmax.f32 %v5795_v19, %v5796_v14  ;;  %v3272_v13 = vadd.f32 %v3256_v46, %v3139_v28  ;;  %3290 = vst.msk [vmem:[#allocation3 + $0x170] sm:$0xff] %vm807_vm3, %v3273_v44  ;;  %3782 = vperm.xlu0 %9752, %v12069_v55   ;;  %v14655_v28 = vld [vmem:[#allocation89_spill] sm:$0xff]  ;;  %v12106_v19 = vld [vmem:[#allocation2 + $0x121] sm:$0xff] }
 0x2f1   : > { %v3237_v0 = vpop.permute.xlu1 %3236  ;;  %v5750_v34 = vld [vmem:[#allocation3 + $0x140] ss:$2 sm:$0xff]  ;;  %v5782_v1 = vld [vmem:[#allocation3 + $0x141] ss:$2 sm:$0xff] }
 0x2f2   : > { %v5823_v12 = vadd.f32 %v12051_v63, %v5808_v40  ;;  %3289 = vst.msk [vmem:[#allocation3 + $0x168] sm:$0xff] %vm807_vm3, %v3272_v13  ;;  %v3258_v7 = vmul.f32 %v11905_v51, %v3237_v0  ;;  %3777 = vperm.xlu1 %9753, %v14653_v57   ;;  %v5801_v53 = vmax.f32 %v5750_v34, %v5782_v1  ;;  %v3834_v40 = vld [vmem:[#allocation2 + $0x289] sm:$0xff] }
 0x2f3   : > { %v6914_v48 = vld [vmem:[#allocation4 + $0x32] sm:$0xff]  ;;  %v12082_v54 = vpop.permute.xlu0 %3322  ;;  %v12120_v13 = vld [vmem:[#allocation2 + $0x129] sm:$0xff] }
 0x2f4   : > { %5832 = vst.msk [vmem:[#allocation4 + $0x41] sm:$0xff] %vm807_vm3, %v5823_v12  ;;  %v3274_v56 = vadd.f32 %v3258_v7, %v3141_v62  ;;  %v9539_v3 = vpack.c.bf16 %v6914_v48, %v6914_v48  ;;  %v6434_v6 = vld [vmem:[#allocation4 + $0x31] sm:$0xff]  ;;  %3845 = vperm.xlu0 %9752, %v3826_v49  }
 0x2f5   : > { %v5951_v42 = vld [vmem:[#allocation4 + $0x30] sm:$0xff]  ;;  %v12084_v43 = vpop.permute.xlu1 %3317  ;;  %v9476_v51 = vpack.c.bf16 %v6434_v6, %v6434_v6 }
 0x2f6   : > { %v5752_v8 = vld [vmem:[#allocation3 + $0x150] ss:$2 sm:$0xff]  ;;  %v5784_v16 = vld [vmem:[#allocation3 + $0x151] ss:$2 sm:$0xff]  ;;  %v9413_v41 = vpack.c.bf16 %v5951_v42, %v5951_v42  ;;  %3291 = vst.msk [vmem:[#allocation3 + $0x178] sm:$0xff] %vm807_vm3, %v3274_v56  ;;  %3787 = vperm.xlu1 %9753, %v12079_v17  }
 0x2f7   : > { %v5802_v45 = vmax.f32 %v5752_v8, %v5784_v16  ;;  %6994 = vst.msk [vmem:[#allocation5 + $0x14] sm:$0xf] %vm6028_vm13, %v9539_v3  ;;  %6514 = vst.msk [vmem:[#allocation5 + $0x1c] sm:$0xf] %vm6028_vm13, %v9476_v51  ;;  %v12091_v18 = vpop.permute.xlu0 %3332  ;;  %v14662_v3 = vld [vmem:[#allocation99_spill] sm:$0xff] }
 0x2f8   : > { %6032 = vst.msk [vmem:[#allocation5 + $0x24] sm:$0xf] %vm6028_vm13, %v9413_v41  ;;  %3855 = vperm.xlu0 %9752, %v14654_v58   ;;  %v12157_v58 = vld [vmem:[#allocation2 + $0x2d1] sm:$0xff] }
 0x2f9   : > { %v5811_v52 = vmax.f32 %v5801_v53, %v5802_v45  ;;  %v12093_v27 = vpop.permute.xlu1 %3327  ;;  %v5754_v11 = vld [vmem:[#allocation3 + $0x160] ss:$2 sm:$0xff]  ;;  %v5786_v4 = vld [vmem:[#allocation3 + $0x161] ss:$2 sm:$0xff] }
 0x2fa   : > { %3850 = vperm.xlu1 %9753, %v3827_v33   ;;  %v5803_v61 = vmax.f32 %v5754_v11, %v5786_v4  ;;  %v14666_v33 = vld [vmem:[#allocation102_spill] sm:$0xff]  ;;  %v14668_v4 = vld [vmem:[#allocation27_spill] sm:$0xff] }
 0x2fb   : > { %v5826_v2 = vadd.f32 %v12051_v63, %v5811_v52  ;;  %v6915_v29 = vld [vmem:[#allocation4 + $0x42] sm:$0xff]  ;;  %v12098_v35 = vpop.permute.xlu0 %3342 }
 0x2fc   : > { %v9540_v59 = vpack.c.bf16 %v6915_v29, %v6915_v29  ;;  %v6787_v47 = vld [vmem:[#allocation4 + $0x41] sm:$0xff]  ;;  %3865 = vperm.xlu0 %9752, %v14655_v28  }
 0x2fd   : > { %5835 = vst.msk [vmem:[#allocation4 + $0xd1] sm:$0xff] %vm807_vm3, %v5826_v2  ;;  %v5952_v22 = vld [vmem:[#allocation4 + $0x40] sm:$0xff]  ;;  %v5756_v30 = vld [vmem:[#allocation3 + $0x170] ss:$2 sm:$0xff]  ;;  %v5788_v25 = vld [vmem:[#allocation3 + $0x171] ss:$2 sm:$0xff]  ;;  %v12100_v36 = vpop.permute.xlu1 %3337  ;;  %v12103_v5 = vpack.c.bf16 %v6787_v47, %v6787_v47 }
 0x2fe   : > { %v9414_v15 = vpack.c.bf16 %v5952_v22, %v5952_v22  ;;  %v5804_v23 = vmax.f32 %v5756_v30, %v5788_v25  ;;  %3860 = vperm.xlu1 %9753, %v14657_v24   ;;  %v9754_v39 = vld [vmem:[#allocation5 + $0x8] ss:$12 sps:$4 sm:$0xff]   ;;  %6995 = vst.msk [vmem:[#allocation5 + $0x20] sm:$0xf] %vm6028_vm13, %v9540_v59  ;;  %v14667_v52 = vld [vmem:[#allocation103_spill] sm:$0xff] }
 0x2ff   : > { %14656 = vst [vmem:[#allocation31_spill] sm:$0xff] %v12103_v5  ;;  %6515 = vst.msk [vmem:[#allocation5 + $0x28] sm:$0xf] %vm6028_vm13, %v12103_v5  ;;  %9720 = vmatprep.mubr.msk.bf16.mxu1 %vm807_vm3, %v9754_v39  ;;  %v12113_v46 = vpop.permute.xlu0 %3352  ;;  %v3959_v29 = vld [vmem:[#allocation2 + $0xda] sm:$0xff]  ;;  %v488_v22 = vld [vmem:[%s10140_s15 + $0xd0] sm:$0xff] }
 0x300   : > { %6033 = vst.msk [vmem:[#allocation5 + $0x30] sm:$0xf] %vm6028_vm13, %v9414_v15  ;;  %v5812_v14 = vmax.f32 %v5803_v61, %v5804_v23  ;;  %3875 = vperm.xlu0 %9752, %v12106_v19   ;;  %v12171_v59 = vld [vmem:[#allocation2 + $0x2d9] sm:$0xff]  ;;  %vm552_vm6 = vcmp.ne.f32.partialorder %v488_v22, %v488_v22  ;;  %v3960_v28 = vld [vmem:[#allocation2 + $0xe2] sm:$0xff] }
 0x301   : > { %v12115_v60 = vpop.permute.xlu1 %3347  ;;  %v616_v25 = vsel %vm552_vm6, 0.0, %v488_v22  ;;  %v489_v61 = vld [vmem:[%s10140_s15 + $0xd8] sm:$0xff]  ;;  %v14669_v24 = vld [vmem:[#allocation28_spill] sm:$0xff]  ;;  %vm809_vm6 = vcmask 254976  }
 0x302   : > { %v5827_v44 = vadd.f32 %v12051_v63, %v5812_v14  ;;  %3870 = vperm.xlu1 %9753, %v14658_v31   ;;  %v3835_v63 = vld [vmem:[#allocation2 + $0x291] sm:$0xff]  ;;  %682 = vst.msk [vmem:[#allocation2 + $0x151] sm:$0xff] %vm655_vm0, %v616_v25  ;;  %vm553_vm8 = vcmp.ne.f32.partialorder %v489_v61, %v489_v61  ;;  %v12188_v14 = vld [vmem:[%s10795_s22] ss:$0 sm:$0xff] }
 0x303   : > { %v12123_v7 = vpop.permute.xlu0 %3362  ;;  %v617_v39 = vsel %vm553_vm8, 0.0, %v489_v61  ;;  %v490_v25 = vld [vmem:[%s10140_s15 + $0xe0] sm:$0xff] }
 0x304   : > { %v6922_v0 = vld [vmem:[#allocation4 + $0xd2] sm:$0xff]  ;;  %5836 = vst.msk [vmem:[#allocation4 + $0xe1] sm:$0xff] %vm807_vm3, %v5827_v44  ;;  %3885 = vperm.xlu0 %9752, %v3834_v40   ;;  %v12191_v44 = vld [vmem:[%s10795_s22 + $0x1] ss:$0 sm:$0xff]  ;;  %v3400_v40 = vmul.f32 %v12188_v14, %v12098_v35  ;;  %vm554_vm9 = vcmp.ne.f32.partialorder %v490_v25, %v490_v25 }
 0x305   : > { %v6666_v62 = vld [vmem:[#allocation4 + $0xd0] sm:$0xff]  ;;  %v12125_v57 = vpack.c.bf16 %v6922_v0, %v6922_v0  ;;  %v12131_v1 = vpop.permute.xlu1 %3357  ;;  %683 = vst.msk [vmem:[#allocation2 + $0x159] sm:$0xff] %vm655_vm0, %v617_v39  ;;  %v618_v39 = vsel %vm554_vm9, 0.0, %v490_v25  ;;  %vm6415_vm9 = vcmask 1044224  }
 0x306   : > { %v6794_v12 = vld [vmem:[#allocation4 + $0xd1] sm:$0xff]  ;;  %v12127_v49 = vpack.c.bf16 %v6666_v62, %v6666_v62  ;;  %3880 = vperm.xlu1 %9753, %v12120_v13   ;;  %684 = vst.msk [vmem:[#allocation2 + $0x169] sm:$0xff] %vm655_vm0, %v618_v39 }
 0x307   : > { %14659 = vst [vmem:[#allocation32_spill] sm:$0xff] %v12125_v57  ;;  %v12129_v34 = vpack.c.bf16 %v6794_v12, %v6794_v12  ;;  %7002 = vst.msk [vmem:[#allocation5 + $0x74] sm:$0xf] %vm6028_vm13, %v12125_v57  ;;  %v12140_v48 = vpop.permute.xlu0 %3372  ;;  %v14670_v12 = vld [vmem:[#allocation29_spill] sm:$0xff] }
 0x308   : > { %14660 = vst [vmem:[#allocation34_spill] sm:$0xff] %v12127_v49  ;;  %6040 = vst.msk [vmem:[#allocation5 + $0x84] sm:$0xf] %vm6028_vm13, %v12127_v49  ;;  %3895 = vperm.xlu0 %9752, %v14662_v3  }
 0x309   : > { %14661 = vst [vmem:[#allocation35_spill] sm:$0xff] %v12129_v34  ;;  %6522 = vst.msk [vmem:[#allocation5 + $0x7c] sm:$0xf] %vm6028_vm13, %v12129_v34  ;;  %v12142_v56 = vpop.permute.xlu1 %3367 }
 0x30a   : > { %3890 = vperm.xlu1 %9753, %v3835_v63   ;;  %v12200_v63 = vld [vmem:[#allocation2 + $0x122] sm:$0xff] }
 0x30b   : > { %v6923_v6 = vld [vmem:[#allocation4 + $0xe2] sm:$0xff]  ;;  %v12145_v16 = vpop.permute.xlu0 %3382 }
 0x30c   : > { %v6667_v42 = vld [vmem:[#allocation4 + $0xe0] sm:$0xff]  ;;  %v12147_v51 = vpack.c.bf16 %v6923_v6, %v6923_v6  ;;  %3905 = vperm.xlu0 %9752, %v14666_v33   ;;  %v3401_v33 = vmul.f32 %v12188_v14, %v12115_v60 }
 0x30d   : > { %v6795_v8 = vld [vmem:[#allocation4 + $0xe1] sm:$0xff]  ;;  %v12149_v41 = vpack.c.bf16 %v6667_v42, %v6667_v42  ;;  %v12153_v45 = vpop.permute.xlu1 %3377  ;;  %v3402_v42 = vmul.f32 %v12188_v14, %v12113_v46 }
 0x30e   : > { %14663 = vst [vmem:[#allocation37_spill] sm:$0xff] %v12147_v51  ;;  %v12151_v53 = vpack.c.bf16 %v6795_v8, %v6795_v8  ;;  %3900 = vperm.xlu1 %9753, %v14667_v52   ;;  %7003 = vst.msk [vmem:[#allocation5 + $0x80] sm:$0xf] %vm6028_vm13, %v12147_v51  ;;  %v3967_v52 = vld [vmem:[#allocation2 + $0x28a] sm:$0xff] }
 0x30f   : > { %14664 = vst [vmem:[#allocation38_spill] sm:$0xff] %v12149_v41  ;;  %6041 = vst.msk [vmem:[#allocation5 + $0x90] sm:$0xf] %vm6028_vm13, %v12149_v41  ;;  %v12165_v2 = vpop.permute.xlu0 %3445 }
 0x310   : > { %14665 = vst [vmem:[#allocation39_spill] sm:$0xff] %v12151_v53  ;;  %6523 = vst.msk [vmem:[#allocation5 + $0x88] sm:$0xf] %vm6028_vm13, %v12151_v53  ;;  %3915 = vperm.xlu0 %9752, %v12157_v58  }
 0x311   : > { %v12167_v11 = vpop.permute.xlu1 %3387 }
 0x312   : > { %3910 = vperm.xlu1 %9753, %v14668_v4   ;;  %v3409_v39 = vmul.f32 %v12188_v14, %v12167_v11 }
 0x313   : > { %v12173_v47 = vpop.permute.xlu0 %3455 }
 0x314   : > { %3978 = vperm.xlu0 %9752, %v3959_v29   ;;  %v12214_v29 = vld [vmem:[#allocation2 + $0x12a] sm:$0xff] }
 0x315   : > { %v12176_v30 = vpop.permute.xlu1 %3450 }
 0x316   : > { %3920 = vperm.xlu1 %9753, %v12171_v59  }
 0x317   : > { %v12180_v15 = vpop.permute.xlu0 %3465 }
 0x318   : > { %3988 = vperm.xlu0 %9752, %v14669_v24  }
 0x319   : > { %v12183_v23 = vpop.permute.xlu1 %3460 }
 0x31a   : > { %3983 = vperm.xlu1 %9753, %v3960_v28   ;;  %v3404_v28 = vmul.f32 %v12188_v14, %v12123_v7 }
 0x31b   : > { %v3476_v31 = vpop.permute.xlu0 %3475 }
 0x31c   : > { %v3533_v0 = vmul.f32 %v12191_v44, %v3476_v31  ;;  %3998 = vperm.xlu0 %9752, %v11782_v50  }
 0x31d   : > { %v12196_v62 = vpop.permute.xlu1 %3470 }
 0x31e   : > { %3993 = vperm.xlu1 %9753, %v14670_v12   ;;  %v12202_v3 = vadd.f32 %v3533_v0, %v3400_v40  ;;  %v3968_v40 = vld [vmem:[#allocation2 + $0x292] sm:$0xff]  ;;  %v491_v12 = vld [vmem:[%s10140_s15 + $0xe8] sm:$0xff] }
 0x31f   : > { %v3486_v6 = vpop.permute.xlu0 %3485  ;;  %vm555_vm10 = vcmp.ne.f32.partialorder %v491_v12, %v491_v12 }
 0x320   : > { %v3535_v8 = vmul.f32 %v12191_v44, %v3486_v6  ;;  %4008 = vperm.xlu0 %9752, %v12200_v63   ;;  %v3406_v6 = vmul.f32 %v12188_v14, %v12140_v48 }
 0x321   : > { %v3481_v35 = vpop.permute.xlu1 %3480 }
 0x322   : > { %v3534_v50 = vmul.f32 %v12191_v44, %v3481_v35  ;;  %4003 = vperm.xlu1 %9753, %v11818_v32   ;;  %v12212_v4 = vadd.f32 %v3535_v8, %v3402_v42  ;;  %v3403_v32 = vmul.f32 %v12188_v14, %v12131_v1  ;;  %v3405_v8 = vmul.f32 %v12188_v14, %v12142_v56 }
 0x323   : > { %v3496_v46 = vpop.permute.xlu0 %3495  ;;  %v3407_v56 = vmul.f32 %v12188_v14, %v12153_v45  ;;  %v4093_v45 = vld [vmem:[#allocation2 + $0xf0] sm:$0xff] }
 0x324   : > { %v12216_v22 = vadd.f32 %v3534_v50, %v3401_v33  ;;  %v3537_v61 = vmul.f32 %v12191_v44, %v3496_v46  ;;  %4018 = vperm.xlu0 %9752, %v3967_v52   ;;  %v619_v33 = vsel %vm555_vm10, 0.0, %v491_v12  ;;  %v3408_v46 = vmul.f32 %v12188_v14, %v12145_v16 }
 0x325   : > { %v3491_v60 = vpop.permute.xlu1 %3490  ;;  %685 = vst.msk [vmem:[#allocation2 + $0x171] sm:$0xff] %vm655_vm0, %v619_v33  ;;  %vm7682_vm10 = vcmask 1041409  }
 0x326   : > { %v3536_v24 = vmul.f32 %v12191_v44, %v3491_v60  ;;  %4013 = vperm.xlu1 %9753, %v12214_v29   ;;  %v12226_v31 = vadd.f32 %v3537_v61, %v3404_v28  ;;  %v3973_v61 = vld [vmem:[#allocation2 + $0x2d2] sm:$0xff] }
 0x327   : > { %v3506_v7 = vpop.permute.xlu0 %3505 }
 0x328   : > { %v12229_v0 = vadd.f32 %v3536_v24, %v3403_v32  ;;  %v3539_v42 = vmul.f32 %v12191_v44, %v3506_v7  ;;  %4028 = vperm.xlu0 %9752, %v11868_v37  }
 0x329   : > { %v3501_v1 = vpop.permute.xlu1 %3500 }
 0x32a   : > { %v3538_v35 = vmul.f32 %v12191_v44, %v3501_v1  ;;  %4023 = vperm.xlu1 %9753, %v3968_v40   ;;  %v12239_v50 = vadd.f32 %v3539_v42, %v3406_v6  ;;  %v3974_v40 = vld [vmem:[#allocation2 + $0x2da] sm:$0xff]  ;;  %v4095_v6 = vld [vmem:[#allocation2 + $0x108] sm:$0xff] }
 0x32b   : > { %v3516_v48 = vpop.permute.xlu0 %3515  ;;  %v4094_v42 = vld [vmem:[#allocation2 + $0xf8] sm:$0xff] }
 0x32c   : > { %v12242_v52 = vadd.f32 %v3538_v35, %v3405_v8  ;;  %v3541_v37 = vmul.f32 %v12191_v44, %v3516_v48  ;;  %4038 = vperm.xlu0 %9752, %v11907_v20   ;;  %v4096_v8 = vld [vmem:[#allocation2 + $0x110] sm:$0xff] }
 0x32d   : > { %v3511_v25 = vpop.permute.xlu1 %3510 }
 0x32e   : > { %v3540_v28 = vmul.f32 %v12191_v44, %v3511_v25  ;;  %4033 = vperm.xlu1 %9753, %v11915_v10   ;;  %v12252_v60 = vadd.f32 %v3541_v37, %v3408_v46  ;;  %v12279_v46 = vld [vmem:[#allocation2 + $0x138] sm:$0xff] }
 0x32f   : > { %v12256_v24 = vpop.permute.xlu0 %3578 }
 0x330   : > { %v12254_v32 = vadd.f32 %v3540_v28, %v3407_v56  ;;  %4048 = vperm.xlu0 %9752, %v3973_v61  }
 0x331   : > { %v3521_v16 = vpop.permute.xlu1 %3520 }
 0x332   : > { %v3542_v20 = vmul.f32 %v12191_v44, %v3521_v16  ;;  %4043 = vperm.xlu1 %9753, %v11941_v9   ;;  %v12273_v9 = vld [vmem:[%s10795_s22 + $0x2] ss:$0 sm:$0xff] }
 0x333   : > { %v12264_v7 = vpop.permute.xlu0 %3588  ;;  %v4101_v16 = vld [vmem:[#allocation2 + $0x2a0] sm:$0xff] }
 0x334   : > { %v12262_v10 = vadd.f32 %v3542_v20, %v3409_v39  ;;  %4112 = vperm.xlu0 %9752, %v4093_v45   ;;  %v12291_v20 = vld [vmem:[#allocation2 + $0x140] sm:$0xff] }
 0x335   : > { %v12266_v12 = vpop.permute.xlu1 %3583 }
 0x336   : > { %4053 = vperm.xlu1 %9753, %v3974_v40  }
 0x337   : > { %v12268_v1 = vpop.permute.xlu0 %3598 }
 0x338   : > { %4122 = vperm.xlu0 %9752, %v4095_v6  }
 0x339   : > { %v12270_v11 = vpop.permute.xlu1 %3593 }
 0x33a   : > { %4117 = vperm.xlu1 %9753, %v4094_v42  }
 0x33b   : > { %v3609_v35 = vpop.permute.xlu0 %3608 }
 0x33c   : > { %v3666_v33 = vmul.f32 %v12273_v9, %v3609_v35  ;;  %4132 = vperm.xlu0 %9752, %v11998_v21  }
 0x33d   : > { %v12276_v48 = vpop.permute.xlu1 %3603 }
 0x33e   : > { %4127 = vperm.xlu1 %9753, %v4096_v8   ;;  %v12282_v37 = vadd.f32 %v3666_v33, %v12202_v3  ;;  %v4103_v8 = vld [vmem:[#allocation2 + $0x2b8] sm:$0xff] }
 0x33f   : > { %v3619_v25 = vpop.permute.xlu0 %3618 }
 0x340   : > { %v3668_v56 = vmul.f32 %v12273_v9, %v3619_v25  ;;  %4142 = vperm.xlu0 %9752, %v12279_v46  }
 0x341   : > { %v3614_v28 = vpop.permute.xlu1 %3613 }
 0x342   : > { %v3667_v61 = vmul.f32 %v12273_v9, %v3614_v28  ;;  %4137 = vperm.xlu1 %9753, %v12022_v38   ;;  %v12289_v39 = vadd.f32 %v3668_v56, %v12212_v4  ;;  %v4102_v4 = vld [vmem:[#allocation2 + $0x2a8] sm:$0xff] }
 0x343   : > { %v3629_v3 = vpop.permute.xlu0 %3628 }
 0x344   : > { %v12294_v45 = vadd.f32 %v3667_v61, %v12216_v22  ;;  %v3670_v40 = vmul.f32 %v12273_v9, %v3629_v3  ;;  %4152 = vperm.xlu0 %9752, %v4101_v16   ;;  %v4104_v16 = vld [vmem:[#allocation2 + $0x2c0] sm:$0xff] }
 0x345   : > { %v3624_v6 = vpop.permute.xlu1 %3623 }
 0x346   : > { %v3669_v42 = vmul.f32 %v12273_v9, %v3624_v6  ;;  %4147 = vperm.xlu1 %9753, %v12291_v20   ;;  %v12300_v35 = vadd.f32 %v3670_v40, %v12226_v31  ;;  %v492_v40 = vld [vmem:[%s10140_s15 + $0xf0] sm:$0xff] }
 0x347   : > { %v3639_v22 = vpop.permute.xlu0 %3638  ;;  %vm556_vm11 = vcmp.ne.f32.partialorder %v492_v40, %v492_v40 }
 0x348   : > { %v12303_v33 = vadd.f32 %v3669_v42, %v12229_v0  ;;  %v3672_v25 = vmul.f32 %v12273_v9, %v3639_v22  ;;  %4162 = vperm.xlu0 %9752, %v4103_v8   ;;  %v4107_v8 = vld [vmem:[#allocation2 + $0x2e8] sm:$0xff] }
 0x349   : > { %v3634_v56 = vpop.permute.xlu1 %3633 }
 0x34a   : > { %v3671_v28 = vmul.f32 %v12273_v9, %v3634_v56  ;;  %4157 = vperm.xlu1 %9753, %v4102_v4   ;;  %v12308_v61 = vadd.f32 %v3672_v25, %v12239_v50  ;;  %v620_v4 = vsel %vm556_vm11, 0.0, %v492_v40  ;;  %v493_v25 = vld [vmem:[%s10140_s15 + $0xf8] sm:$0xff]  ;;  %vm7684_vm11 = vcmask 1043459  }
 0x34b   : > { %v3649_v3 = vpop.permute.xlu0 %3648  ;;  %686 = vst.msk [vmem:[#allocation2 + $0x181] sm:$0xff] %vm655_vm0, %v620_v4  ;;  %vm557_vm12 = vcmp.ne.f32.partialorder %v493_v25, %v493_v25  ;;  %v12342_v4 = vld [vmem:[%s10795_s22 + $0x4] ss:$0 sm:$0xff] }
 0x34c   : > { %v12311_v31 = vadd.f32 %v3671_v28, %v12242_v52  ;;  %v3674_v0 = vmul.f32 %v12273_v9, %v3649_v3  ;;  %4172 = vperm.xlu0 %9752, %v12069_v55   ;;  %v4226_v28 = vld [vmem:[#allocation2 + $0xf1] sm:$0xff] }
 0x34d   : > { %v3644_v6 = vpop.permute.xlu1 %3643 }
 0x34e   : > { %v3673_v42 = vmul.f32 %v12273_v9, %v3644_v6  ;;  %4167 = vperm.xlu1 %9753, %v4104_v16   ;;  %v12318_v50 = vadd.f32 %v3674_v0, %v12252_v60  ;;  %v621_v16 = vsel %vm557_vm12, 0.0, %v493_v25  ;;  %v4108_v60 = vld [vmem:[#allocation2 + $0x2f0] sm:$0xff]  ;;  %v4227_v6 = vld [vmem:[#allocation2 + $0xf9] sm:$0xff]  ;;  %vm7686_vm12 = vcmask 1045509  }
 0x34f   : > { %v12324_v22 = vpop.permute.xlu0 %3712  ;;  %687 = vst.msk [vmem:[#allocation2 + $0x189] sm:$0xff] %vm655_vm0, %v621_v16  ;;  %v4228_v0 = vld [vmem:[#allocation2 + $0x109] sm:$0xff] }
 0x350   : > { %v12322_v52 = vadd.f32 %v3673_v42, %v12254_v32  ;;  %4182 = vperm.xlu0 %9752, %v4107_v8   ;;  %v4229_v8 = vld [vmem:[#allocation2 + $0x111] sm:$0xff] }
 0x351   : > { %v3654_v56 = vpop.permute.xlu1 %3653 }
 0x352   : > { %v3675_v55 = vmul.f32 %v12273_v9, %v3654_v56  ;;  %4177 = vperm.xlu1 %9753, %v12079_v17  }
 0x353   : > { %v12333_v32 = vpop.permute.xlu0 %3722 }
 0x354   : > { %v12331_v3 = vadd.f32 %v3675_v55, %v12262_v10  ;;  %4245 = vperm.xlu0 %9752, %v4226_v28   ;;  %v12348_v55 = vld [vmem:[#allocation2 + $0x139] sm:$0xff] }
 0x355   : > { %v12335_v40 = vpop.permute.xlu1 %3717 }
 0x356   : > { %4187 = vperm.xlu1 %9753, %v4108_v60  }
 0x357   : > { %v12337_v42 = vpop.permute.xlu0 %3732 }
 0x358   : > { %4255 = vperm.xlu0 %9752, %v4228_v0  }
 0x359   : > { %v12339_v17 = vpop.permute.xlu1 %3727 }
 0x35a   : > { %4250 = vperm.xlu1 %9753, %v4227_v6  }
 0x35b   : > { %v3743_v25 = vpop.permute.xlu0 %3742 }
 0x35c   : > { %v3800_v10 = vmul.f32 %v12342_v4, %v3743_v25  ;;  %4265 = vperm.xlu0 %9752, %v12106_v19   ;;  %v4234_v25 = vld [vmem:[#allocation2 + $0x2a1] sm:$0xff] }
 0x35d   : > { %v12345_v56 = vpop.permute.xlu1 %3737 }
 0x35e   : > { %4260 = vperm.xlu1 %9753, %v4229_v8   ;;  %v12351_v28 = vadd.f32 %v3800_v10, %v12282_v37  ;;  %v12360_v8 = vld [vmem:[#allocation2 + $0x141] sm:$0xff] }
 0x35f   : > { %v3753_v16 = vpop.permute.xlu0 %3752 }
 0x360   : > { %14671 = vst [vmem:[#allocation40_spill] sm:$0xff] %v12351_v28  ;;  %v3802_v60 = vmul.f32 %v12342_v4, %v3753_v16  ;;  %4275 = vperm.xlu0 %9752, %v12348_v55   ;;  %v522_v28 = vld [vmem:[%s10140_s15 + $0x1e0] sm:$0xff] }
 0x361   : > { %v3748_v0 = vpop.permute.xlu1 %3747  ;;  %vm586_vm1 = vcmp.ne.f32.partialorder %v522_v28, %v522_v28 }
 0x362   : > { %v3801_v6 = vmul.f32 %v12342_v4, %v3748_v0  ;;  %4270 = vperm.xlu1 %9753, %v12120_v13   ;;  %v12358_v53 = vadd.f32 %v3802_v60, %v12289_v39  ;;  %v4236_v0 = vld [vmem:[#allocation2 + $0x2b9] sm:$0xff]  ;;  %v4235_v39 = vld [vmem:[#allocation2 + $0x2a9] sm:$0xff] }
 0x363   : > { %v3763_v37 = vpop.permute.xlu0 %3762 }
 0x364   : > { %14672 = vst [vmem:[#allocation41_spill] sm:$0xff] %v12358_v53  ;;  %v12363_v41 = vadd.f32 %v3801_v6, %v12294_v45  ;;  %v3804_v10 = vmul.f32 %v12342_v4, %v3763_v37  ;;  %4285 = vperm.xlu0 %9752, %v4234_v25   ;;  %v12518_v53 = vld [vmem:[#allocation2 + $0x171] sm:$0xff] }
 0x365   : > { %v3758_v16 = vpop.permute.xlu1 %3757 }
 0x366   : > { %14673 = vst [vmem:[#allocation42_spill] sm:$0xff] %v12363_v41  ;;  %v3803_v51 = vmul.f32 %v12342_v4, %v3758_v16  ;;  %4280 = vperm.xlu1 %9753, %v12360_v8   ;;  %v12369_v57 = vadd.f32 %v3804_v10, %v12300_v35  ;;  %v4237_v16 = vld [vmem:[#allocation2 + $0x2c1] sm:$0xff] }
 0x367   : > { %v3773_v34 = vpop.permute.xlu0 %3772 }
 0x368   : > { %14674 = vst [vmem:[#allocation83_spill] sm:$0xff] %v12369_v57  ;;  %v12372_v60 = vadd.f32 %v3803_v51, %v12303_v33  ;;  %v3806_v45 = vmul.f32 %v12342_v4, %v3773_v34  ;;  %4295 = vperm.xlu0 %9752, %v4236_v0   ;;  %v4240_v33 = vld [vmem:[#allocation2 + $0x2e9] sm:$0xff] }
 0x369   : > { %v3768_v6 = vpop.permute.xlu1 %3767 }
 0x36a   : > { %14675 = vst [vmem:[#allocation43_spill] sm:$0xff] %v12372_v60  ;;  %v3805_v37 = vmul.f32 %v12342_v4, %v3768_v6  ;;  %4290 = vperm.xlu1 %9753, %v4235_v39   ;;  %v12377_v25 = vadd.f32 %v3806_v45, %v12308_v61  ;;  %v4359_v6 = vld [vmem:[#allocation2 + $0xf2] sm:$0xff] }
 0x36b   : > { %v3783_v35 = vpop.permute.xlu0 %3782 }
 0x36c   : > { %14676 = vst [vmem:[#allocation26_spill] sm:$0xff] %v12377_v25  ;;  %v12380_v49 = vadd.f32 %v3805_v37, %v12311_v31  ;;  %v3808_v10 = vmul.f32 %v12342_v4, %v3783_v35  ;;  %4305 = vperm.xlu0 %9752, %v12157_v58   ;;  %v4241_v58 = vld [vmem:[#allocation2 + $0x2f1] sm:$0xff]  ;;  %v4360_v35 = vld [vmem:[#allocation2 + $0xfa] sm:$0xff] }
 0x36d   : > { %v3778_v51 = vpop.permute.xlu1 %3777 }
 0x36e   : > { %14677 = vst [vmem:[#allocation44_spill] sm:$0xff] %v12380_v49  ;;  %v3807_v34 = vmul.f32 %v12342_v4, %v3778_v51  ;;  %4300 = vperm.xlu1 %9753, %v4237_v16   ;;  %v12386_v0 = vadd.f32 %v3808_v10, %v12318_v50 }
 0x36f   : > { %v12391_v39 = vpop.permute.xlu0 %3845 }
 0x370   : > { %14678 = vst [vmem:[#allocation45_spill] sm:$0xff] %v12386_v0  ;;  %v12389_v61 = vadd.f32 %v3807_v34, %v12322_v52  ;;  %4315 = vperm.xlu0 %9752, %v4240_v33   ;;  %v4361_v52 = vld [vmem:[#allocation2 + $0x10a] sm:$0xff] }
 0x371   : > { %v3788_v31 = vpop.permute.xlu1 %3787 }
 0x372   : > { %14679 = vst [vmem:[#allocation46_spill] sm:$0xff] %v12389_v61  ;;  %v3809_v45 = vmul.f32 %v12342_v4, %v3788_v31  ;;  %4310 = vperm.xlu1 %9753, %v12171_v59   ;;  %v4362_v59 = vld [vmem:[#allocation2 + $0x112] sm:$0xff] }
 0x373   : > { %v12398_v16 = vpop.permute.xlu0 %3855 }
 0x374   : > { %v12396_v37 = vadd.f32 %v3809_v45, %v12331_v3  ;;  %4378 = vperm.xlu0 %9752, %v4359_v6  }
 0x375   : > { %v12400_v50 = vpop.permute.xlu1 %3850 }
 0x376   : > { %14680 = vst [vmem:[#allocation47_spill] sm:$0xff] %v12396_v37  ;;  %4320 = vperm.xlu1 %9753, %v4241_v58  }
 0x377   : > { %v12402_v10 = vpop.permute.xlu0 %3865 }
 0x378   : > { %4388 = vperm.xlu0 %9752, %v4361_v52  }
 0x379   : > { %v12404_v51 = vpop.permute.xlu1 %3860 }
 0x37a   : > { %4383 = vperm.xlu1 %9753, %v4360_v35  }
 0x37b   : > { %v12406_v34 = vpop.permute.xlu0 %3875 }
 0x37c   : > { %14681 = vst [vmem:[#allocation48_spill] sm:$0xff] %v12406_v34  ;;  %4398 = vperm.xlu0 %9752, %v12200_v63  }
 0x37d   : > { %v12408_v33 = vpop.permute.xlu1 %3870 }
 0x37e   : > { %4393 = vperm.xlu1 %9753, %v4362_v59  }
 0x37f   : > { %v12411_v3 = vpop.permute.xlu0 %3885 }
 0x380   : > { %14682 = vst [vmem:[#allocation49_spill] sm:$0xff] %v12411_v3  ;;  %4529 = vperm.xlu0 %9752, %v11998_v21  }
 0x381   : > { %v12413_v31 = vpop.permute.xlu1 %3880 }
 0x382   : > { %14683 = vst [vmem:[#allocation50_spill] sm:$0xff] %v12413_v31  ;;  %4403 = vperm.xlu1 %9753, %v12214_v29   ;;  %v12544_v31 = vld [vmem:[#allocation2 + $0x16a] sm:$0xff] }
 0x383   : > { %v12417_v45 = vpop.permute.xlu0 %3895 }
 0x384   : > { %14684 = vst [vmem:[#allocation51_spill] sm:$0xff] %v12417_v45  ;;  %4539 = vperm.xlu0 %9752, %v12279_v46  }
 0x385   : > { %v12419_v6 = vpop.permute.xlu1 %3890 }
 0x386   : > { %14685 = vst [vmem:[#allocation52_spill] sm:$0xff] %v12419_v6  ;;  %4534 = vperm.xlu1 %9753, %v12022_v38   ;;  %v12441_v38 = vld [vmem:[#allocation2 + $0x13a] sm:$0xff] }
 0x387   : > { %v12423_v58 = vpop.permute.xlu0 %3905 }
 0x388   : > { %14686 = vst [vmem:[#allocation53_spill] sm:$0xff] %v12423_v58  ;;  %4662 = vperm.xlu0 %9752, %v12106_v19   ;;  %v12473_v58 = vld [vmem:[#allocation2 + $0x158] sm:$0xff] }
 0x389   : > { %v12425_v52 = vpop.permute.xlu1 %3900 }
 0x38a   : > { %14687 = vst [vmem:[#allocation54_spill] sm:$0xff] %v12425_v52  ;;  %4544 = vperm.xlu1 %9753, %v12291_v20  }
 0x38b   : > { %v12429_v21 = vpop.permute.xlu0 %3915 }
 0x38c   : > { %14688 = vst [vmem:[#allocation55_spill] sm:$0xff] %v12429_v21  ;;  %4672 = vperm.xlu0 %9752, %v12348_v55   ;;  %v9756_v21 = vld [vmem:[%s12452_s29 + $0x80] sm:$0xff]  }
 0x38d   : > { %v12431_v35 = vpop.permute.xlu1 %3910 }
 0x38e   : > { %14689 = vst [vmem:[#allocation56_spill] sm:$0xff] %v12431_v35  ;;  %4667 = vperm.xlu1 %9753, %v12120_v13   ;;  %v12455_v13 = vld [vmem:[#allocation2 + $0x142] sm:$0xff]  ;;  %v12464_v35 = vld [vmem:[#allocation2 + $0x150] sm:$0xff] }
 0x38f   : > { %v12435_v59 = vpop.permute.xlu0 %3978 }
 0x390   : > { %4795 = vperm.xlu0 %9752, %v12200_v63   ;;  %v9755_v63 = vld [vmem:[%s12452_s29 + $0x88] sm:$0xff]  }
 0x391   : > { %v12437_v37 = vpop.permute.xlu1 %3920  ;;  %9716 = vmatprep.subr.bf16.mxu1 %v9755_v63 }
 0x392   : > { %14690 = vst [vmem:[#allocation20_spill] sm:$0xff] %v12437_v37  ;;  %4677 = vperm.xlu1 %9753, %v12360_v8   ;;  %9717 = vmatpush3.bf16.msra.mxu1 %v9755_v63  ;;  %v12481_v63 = vld [vmem:[#allocation2 + $0x151] sm:$0xff] }
 0x393   : > { %v12444_v19 = vpop.permute.xlu0 %3988  ;;  %9718 = vmatprep.subr.bf16.mxu1 %v9756_v21 }
 0x394   : > { %4805 = vperm.xlu0 %9752, %v12441_v38  }
 0x395   : > { %v12446_v61 = vpop.permute.xlu1 %3983 }
 0x396   : > { %4800 = vperm.xlu1 %9753, %v12214_v29   ;;  %9719 = vmatpush3.bf16.msra.mxu1 %v9756_v21 }
 0x397   : > { %v12458_v37 = vpop.permute.xlu0 %3998 }
 0x398   : > { %4929 = vperm.xlu0 %9752, %v12279_v46  }
 0x399   : > { %v12460_v0 = vpop.permute.xlu1 %3993 }
 0x39a   : > { %4810 = vperm.xlu1 %9753, %v12455_v13  }
 0x39b   : > { %v12467_v25 = vpop.permute.xlu0 %4008 }
 0x39c   : > { %14691 = vst [vmem:[#allocation57_spill] sm:$0xff] %v12467_v25  ;;  %4939 = vperm.xlu0 %9752, %v12464_v35  }
 0x39d   : > { %v12469_v29 = vpop.permute.xlu1 %4003 }
 0x39e   : > { %14692 = vst [vmem:[#allocation59_spill] sm:$0xff] %v12469_v29  ;;  %4934 = vperm.xlu1 %9753, %v12291_v20   ;;  %v12489_v20 = vld [vmem:[#allocation2 + $0x159] sm:$0xff] }
 0x39f   : > { %v12475_v46 = vpop.permute.xlu0 %4018 }
 0x3a0   : > { %14693 = vst [vmem:[#allocation60_spill] sm:$0xff] %v12475_v46  ;;  %5062 = vperm.xlu0 %9752, %v12348_v55   ;;  %v4516_v55 = vld [vmem:[#allocation2 + $0x168] sm:$0xff]  ;;  %v520_v46 = vld [vmem:[%s10140_s15 + $0x1d0] sm:$0xff] }
 0x3a1   : > { %v12477_v5 = vpop.permute.xlu1 %4013  ;;  %vm584_vm14 = vcmp.ne.f32.partialorder %v520_v46, %v520_v46 }
 0x3a2   : > { %14694 = vst [vmem:[#allocation79_spill] sm:$0xff] %v12477_v5  ;;  %4944 = vperm.xlu1 %9753, %v12473_v58   ;;  %v648_v6 = vsel %vm584_vm14, 0.0, %v520_v46  ;;  %vm7688_vm14 = vcmask 1047559  }
 0x3a3   : > { %v12483_v49 = vpop.permute.xlu0 %4028  ;;  %714 = vst.msk [vmem:[#allocation2 + $0x301] sm:$0xff] %vm655_vm0, %v648_v6  ;;  %v12527_v6 = vld [vmem:[#allocation2 + $0x152] sm:$0xff] }
 0x3a4   : > { %14695 = vst [vmem:[#allocation61_spill] sm:$0xff] %v12483_v49  ;;  %5072 = vperm.xlu0 %9752, %v12481_v63  }
 0x3a5   : > { %v12485_v52 = vpop.permute.xlu1 %4023 }
 0x3a6   : > { %14696 = vst [vmem:[#allocation63_spill] sm:$0xff] %v12485_v52  ;;  %5067 = vperm.xlu1 %9753, %v12360_v8   ;;  %v4517_v8 = vld [vmem:[#allocation2 + $0x170] sm:$0xff] }
 0x3a7   : > { %v12491_v21 = vpop.permute.xlu0 %4038 }
 0x3a8   : > { %14697 = vst [vmem:[#allocation64_spill] sm:$0xff] %v12491_v21  ;;  %4549 = vperm.xlu0 %9752, %v12464_v35  }
 0x3a9   : > { %v12493_v60 = vpop.permute.xlu1 %4033 }
 0x3aa   : > { %14698 = vst [vmem:[#allocation58_spill] sm:$0xff] %v12493_v60  ;;  %5077 = vperm.xlu1 %9753, %v12489_v20   ;;  %v12508_v60 = vld [vmem:[#allocation2 + $0x169] sm:$0xff] }
 0x3ab   : > { %v12497_v49 = vpop.permute.xlu0 %4048 }
 0x3ac   : > { %14699 = vst [vmem:[#allocation82_spill] sm:$0xff] %v12497_v49  ;;  %4559 = vperm.xlu0 %9752, %v4516_v55  }
 0x3ad   : > { %v12499_v57 = vpop.permute.xlu1 %4043 }
 0x3ae   : > { %14700 = vst [vmem:[#allocation67_spill] sm:$0xff] %v12499_v57  ;;  %4554 = vperm.xlu1 %9753, %v12473_v58   ;;  %v521_v57 = vld [vmem:[%s10140_s15 + $0x1d8] sm:$0xff] }
 0x3af   : > { %v12502_v52 = vpop.permute.xlu0 %4112  ;;  %vm585_vm15 = vcmp.ne.f32.partialorder %v521_v57, %v521_v57 }
 0x3b0   : > { %4682 = vperm.xlu0 %9752, %v12481_v63  }
 0x3b1   : > { %v12505_v21 = vpop.permute.xlu1 %4053 }
 0x3b2   : > { %14701 = vst [vmem:[#allocation68_spill] sm:$0xff] %v12505_v21  ;;  %4564 = vperm.xlu1 %9753, %v4517_v8   ;;  %v649_v21 = vsel %vm585_vm15, 0.0, %v521_v57  ;;  %v12535_v57 = vld [vmem:[#allocation2 + $0x15a] sm:$0xff]  ;;  %vm7691_vm15 = vcmask 517120  }
 0x3b3   : > { %v12511_v49 = vpop.permute.xlu0 %4122  ;;  %715 = vst.msk [vmem:[#allocation2 + $0x309] sm:$0xff] %vm655_vm0, %v649_v21 }
 0x3b4   : > { %4692 = vperm.xlu0 %9752, %v12508_v60  }
 0x3b5   : > { %v12514_v45 = vpop.permute.xlu1 %4117 }
 0x3b6   : > { %4687 = vperm.xlu1 %9753, %v12489_v20  }
 0x3b7   : > { %v12521_v3 = vpop.permute.xlu0 %4132 }
 0x3b8   : > { %5195 = vperm.xlu0 %9752, %v12441_v38  }
 0x3b9   : > { %v12523_v46 = vpop.permute.xlu1 %4127 }
 0x3ba   : > { %14702 = vst [vmem:[#allocation84_spill] sm:$0xff] %v12523_v46  ;;  %4697 = vperm.xlu1 %9753, %v12518_v53  }
 0x3bb   : > { %v12529_v41 = vpop.permute.xlu0 %4142 }
 0x3bc   : > { %14703 = vst [vmem:[#allocation70_spill] sm:$0xff] %v12529_v41  ;;  %5205 = vperm.xlu0 %9752, %v12527_v6   ;;  %v650_v41 = vsel %vm586_vm1, 0.0, %v522_v28  ;;  %vm7721_vm1 = vcmask 1041920  }
 0x3bd   : > { %v12531_v5 = vpop.permute.xlu1 %4137  ;;  %716 = vst.msk [vmem:[#allocation2 + $0x319] sm:$0xff] %vm655_vm0, %v650_v41 }
 0x3be   : > { %14704 = vst [vmem:[#allocation85_spill] sm:$0xff] %v12531_v5  ;;  %5200 = vperm.xlu1 %9753, %v12455_v13   ;;  %v523_v5 = vld [vmem:[%s10140_s15 + $0x1e8] sm:$0xff] }
 0x3bf   : > { %v12537_v21 = vpop.permute.xlu0 %4152  ;;  %vm587_vm4 = vcmp.ne.f32.partialorder %v523_v5, %v523_v5 }
 0x3c0   : > { %14705 = vst [vmem:[#allocation71_spill] sm:$0xff] %v12537_v21  ;;  %4815 = vperm.xlu0 %9752, %v12527_v6   ;;  %v651_v21 = vsel %vm587_vm4, 0.0, %v523_v5  ;;  %vm8860_vm4 = vcmask 1041408  }
 0x3c1   : > { %v12540_v25 = vpop.permute.xlu1 %4147  ;;  %717 = vst.msk [vmem:[#allocation2 + $0x321] sm:$0xff] %vm655_vm0, %v651_v21  ;;  %v12572_v21 = vld [vmem:[#allocation2 + $0x180] sm:$0xff] }
 0x3c2   : > { %14706 = vst [vmem:[#allocation25_spill] sm:$0xff] %v12540_v25  ;;  %5210 = vperm.xlu1 %9753, %v12535_v57   ;;  %v12554_v25 = vld [vmem:[#allocation2 + $0x172] sm:$0xff]  ;;  %14714 = vst [vmem:[#allocation75_spill] sm:$0xff] %v12572_v21 }
 0x3c3   : > { %v12547_v34 = vpop.permute.xlu0 %4162 }
 0x3c4   : > { %14707 = vst [vmem:[#allocation62_spill] sm:$0xff] %v12547_v34  ;;  %4825 = vperm.xlu0 %9752, %v12544_v31  }
 0x3c5   : > { %v12550_v29 = vpop.permute.xlu1 %4157 }
 0x3c6   : > { %14708 = vst [vmem:[#allocation88_spill] sm:$0xff] %v12550_v29  ;;  %4820 = vperm.xlu1 %9753, %v12535_v57  }
 0x3c7   : > { %v12557_v46 = vpop.permute.xlu0 %4172 }
 0x3c8   : > { %14709 = vst [vmem:[#allocation72_spill] sm:$0xff] %v12557_v46  ;;  %5329 = vperm.xlu0 %9752, %v12464_v35  }
 0x3c9   : > { %v12559_v28 = vpop.permute.xlu1 %4167 }
 0x3ca   : > { %14710 = vst [vmem:[#allocation73_spill] sm:$0xff] %v12559_v28  ;;  %4830 = vperm.xlu1 %9753, %v12554_v25  }
 0x3cb   : > { %v12563_v41 = vpop.permute.xlu0 %4182 }
 0x3cc   : > { %14711 = vst [vmem:[#allocation87_spill] sm:$0xff] %v12563_v41  ;;  %5339 = vperm.xlu0 %9752, %v4516_v55   ;;  %v12579_v41 = vld [vmem:[#allocation2 + $0x188] sm:$0xff] }
 0x3cd   : > { %v12565_v29 = vpop.permute.xlu1 %4177  ;;  %14715 = vst [vmem:[#allocation81_spill] sm:$0xff] %v12579_v41 }
 0x3ce   : > { %14712 = vst [vmem:[#allocation33_spill] sm:$0xff] %v12565_v29  ;;  %5334 = vperm.xlu1 %9753, %v12473_v58  }
 0x3cf   : > { %v12568_v5 = vpop.permute.xlu0 %4245 }
 0x3d0   : > { %4949 = vperm.xlu0 %9752, %v4516_v55  }
 0x3d1   : > { %v12570_v34 = vpop.permute.xlu1 %4187 }
 0x3d2   : > { %14713 = vst [vmem:[#allocation65_spill] sm:$0xff] %v12570_v34  ;;  %5344 = vperm.xlu1 %9753, %v4517_v8  }
 0x3d3   : > { %v12574_v46 = vpop.permute.xlu0 %4255 }
 0x3d4   : > { %4959 = vperm.xlu0 %9752, %v12572_v21   ;;  %v3394_v21 = vmul.f32 %v12188_v14, %v12071_v26  ;;  %v3398_v26 = vmul.f32 %v12188_v14, %v12091_v18  ;;  %v3660_v18 = vmul.f32 %v12273_v9, %v12256_v24  ;;  %v3794_v24 = vmul.f32 %v12342_v4, %v12324_v22 }
 0x3d5   : > { %v12576_v35 = vpop.permute.xlu1 %4250 }
 0x3d6   : > { %4954 = vperm.xlu1 %9753, %v4517_v8   ;;  %v3527_v8 = vmul.f32 %v12191_v44, %v12165_v2  ;;  %v3395_v2 = vmul.f32 %v12188_v14, %v12084_v43  ;;  %v3532_v43 = vmul.f32 %v12191_v44, %v12196_v62  ;;  %v3663_v62 = vmul.f32 %v12273_v9, %v12270_v11  ;;  %v12651_v11 = vld [vmem:[#allocation2 + $0x181] sm:$0xff] }
 0x3d7   : > { %v12581_v29 = vpop.permute.xlu0 %4265 }
 0x3d8   : > { %5462 = vperm.xlu0 %9752, %v12481_v63   ;;  %v3396_v63 = vmul.f32 %v12188_v14, %v12082_v54  ;;  %v3531_v54 = vmul.f32 %v12191_v44, %v12180_v15  ;;  %v3662_v15 = vmul.f32 %v12273_v9, %v12264_v7 }
 0x3d9   : > { %v12583_v58 = vpop.permute.xlu1 %4260 }
 0x3da   : > { %4964 = vperm.xlu1 %9753, %v12579_v41   ;;  %v3528_v41 = vmul.f32 %v12191_v44, %v12176_v30  ;;  %v3397_v30 = vmul.f32 %v12188_v14, %v12093_v27  ;;  %v3664_v27 = vmul.f32 %v12273_v9, %v12268_v1  ;;  %v3547_v7 = vadd.f32 %v3531_v54, %v3398_v26  ;;  %v12660_v26 = vld [vmem:[%s10795_s22 + $0x8] ss:$0 sm:$0xff]  ;;  %v524_v54 = vld [vmem:[%s10140_s15 + $0x1f0] sm:$0xff] }
 0x3db   : > { %v12587_v55 = vpop.permute.xlu0 %4275  ;;  %v3665_v1 = vmul.f32 %v12273_v9, %v12276_v48  ;;  %vm588_vm5 = vcmp.ne.f32.partialorder %v524_v54, %v524_v54 }
 0x3dc   : > { %14716 = vst [vmem:[#allocation95_spill] sm:$0xff] %v12587_v55  ;;  %5472 = vperm.xlu0 %9752, %v12508_v60   ;;  %v3529_v55 = vmul.f32 %v12191_v44, %v12173_v47  ;;  %v3530_v47 = vmul.f32 %v12191_v44, %v12183_v23  ;;  %v3661_v23 = vmul.f32 %v12273_v9, %v12266_v12 }
 0x3dd   : > { %v12589_v34 = vpop.permute.xlu1 %4270  ;;  %v3544_v44 = vadd.f32 %v3528_v41, %v3395_v2  ;;  %v3796_v41 = vmul.f32 %v12342_v4, %v12333_v32  ;;  %v3680_v48 = vadd.f32 %v3664_v27, %v3547_v7  ;;  %v3798_v32 = vmul.f32 %v12342_v4, %v12337_v42 }
 0x3de   : > { %14717 = vst [vmem:[#allocation86_spill] sm:$0xff] %v12589_v34  ;;  %5467 = vperm.xlu1 %9753, %v12489_v20   ;;  %v3543_v20 = vadd.f32 %v3527_v8, %v3394_v21  ;;  %v3546_v12 = vadd.f32 %v3530_v47, %v3397_v30  ;;  %v4194_v27 = vmul.f32 %v12660_v26, %v12502_v52 }
 0x3df   : > { %v12595_v28 = vpop.permute.xlu0 %4285  ;;  %v3677_v9 = vadd.f32 %v3661_v23, %v3544_v44  ;;  %v3814_v44 = vadd.f32 %v3798_v32, %v3680_v48 }
 0x3e0   : > { %14718 = vst [vmem:[#allocation91_spill] sm:$0xff] %v12595_v28  ;;  %4408 = vperm.xlu0 %9752, %v12441_v38   ;;  %v3399_v38 = vmul.f32 %v12188_v14, %v12100_v36  ;;  %v12632_v28 = vld [vmem:[%s10795_s22 + $0x5] ss:$0 sm:$0xff]  ;;  %v3545_v14 = vadd.f32 %v3529_v55, %v3396_v63  ;;  %v12648_v55 = vld [vmem:[%s10795_s22 + $0x6] ss:$0 sm:$0xff]  ;;  %v3676_v8 = vadd.f32 %v3660_v18, %v3543_v20  ;;  %v652_v20 = vsel %vm588_vm5, 0.0, %v524_v54 }
 0x3e1   : > { %v12605_v34 = vpop.permute.xlu1 %4280  ;;  %v3927_v63 = vmul.f32 %v12632_v28, %v12391_v39  ;;  %v3679_v47 = vadd.f32 %v3663_v62, %v3546_v12  ;;  %v3929_v42 = vmul.f32 %v12632_v28, %v12398_v16  ;;  %v12673_v18 = vld [vmem:[%s10795_s22 + $0x9] ss:$0 sm:$0xff]  ;;  %718 = vst.msk [vmem:[#allocation2 + $0x331] sm:$0xff] %vm655_vm0, %v652_v20  ;;  %v3928_v16 = vmul.f32 %v12632_v28, %v12400_v50 }
 0x3e2   : > { %5477 = vperm.xlu1 %9753, %v12518_v53   ;;  %v3548_v22 = vadd.f32 %v3532_v43, %v3399_v38  ;;  %v3678_v2 = vadd.f32 %v3662_v15, %v3545_v14  ;;  %v3810_v30 = vadd.f32 %v3794_v24, %v3676_v8  ;;  %v12680_v14 = vld [vmem:[#allocation2 + $0x189] sm:$0xff]  ;;  %v3799_v24 = vmul.f32 %v12342_v4, %v12345_v56 }
 0x3e3   : > { %v12634_v36 = vpop.permute.xlu0 %4295  ;;  %v4327_v7 = vmul.f32 %v12673_v18, %v12568_v5  ;;  %v14725_v50 = vmov 0.0   ;;  %v4061_v56 = vmul.f32 %v12648_v55, %v12446_v61  ;;  %v12707_v5 = vld [vmem:[%s10795_s22 + $0xa] ss:$0 sm:$0xff]  ;;  %v3930_v61 = vmul.f32 %v12632_v28, %v12404_v51 }
 0x3e4   : > { %14719 = vst [vmem:[#allocation36_spill] sm:$0xff] %v12634_v36  ;;  %5082 = vperm.xlu0 %9752, %v12508_v60   ;;  %v3795_v60 = vmul.f32 %v12342_v4, %v12335_v40  ;;  %v4060_v40 = vmul.f32 %v12648_v55, %v12435_v59  ;;  %v3681_v39 = vadd.f32 %v3665_v1, %v3548_v22  ;;  %810 = vst.msk [vmem:[#allocation4 + $0x8] sm:$0x3] %vm809_vm6, %v14725_v50 }
 0x3e5   : > { %v12640_v21 = vpop.permute.xlu1 %4290  ;;  %v3812_v43 = vadd.f32 %v3796_v41, %v3678_v2  ;;  %v3797_v59 = vmul.f32 %v12342_v4, %v12339_v17  ;;  %v3943_v23 = vadd.f32 %v3927_v63, %v3810_v30  ;;  %v525_v17 = vld [vmem:[%s10140_s15 + $0x1f8] sm:$0xff]  ;;  %815 = vst.msk [vmem:[#allocation4 + $0x98] sm:$0x3] %vm809_vm6, %v14725_v50  ;;  %817 = vst.msk [vmem:[#allocation4 + $0x138] sm:$0x3] %vm809_vm6, %v14725_v50 }
 0x3e6   : > { %14720 = vst [vmem:[#allocation93_spill] sm:$0xff] %v12640_v21  ;;  %4413 = vperm.xlu1 %9753, %v12455_v13   ;;  %v3811_v15 = vadd.f32 %v3795_v60, %v3677_v9  ;;  %812 = vst.msk [vmem:[#allocation4 + $0xa8] sm:$0x3] %vm809_vm6, %v14725_v50  ;;  %vm589_vm8 = vcmp.ne.f32.partialorder %v525_v17, %v525_v17  ;;  %v3931_v4 = vmul.f32 %v12632_v28, %v12402_v10  ;;  %v14754_v21 = vld [vmem:[#allocation50_spill] sm:$0xff] }
 0x3e7   : > { %v12662_v13 = vpop.permute.xlu0 %4305  ;;  %v4076_v52 = vadd.f32 %v4060_v40, %v3943_v23  ;;  %848 = vst.msk [vmem:[#allocation4 + $0x99] sm:$0x1] %vm818_vm7, %v14725_v50  ;;  %858 = vst.msk [vmem:[#allocation4 + $0x139] sm:$0x1] %vm818_vm7, %v14725_v50  ;;  %v3813_v10 = vadd.f32 %v3797_v59, %v3679_v47  ;;  %v4196_v41 = vmul.f32 %v12660_v26, %v12511_v49 }
 0x3e8   : > { %14721 = vst [vmem:[#allocation9_spill] sm:$0xff] %v12662_v13  ;;  %5092 = vperm.xlu0 %9752, %v12651_v11   ;;  %839 = vst.msk [vmem:[#allocation4 + $0x9] sm:$0x1] %vm818_vm7, %v14725_v50  ;;  %v3944_v22 = vadd.f32 %v3928_v16, %v3811_v15  ;;  %v4064_v60 = vmul.f32 %v12648_v55, %v12458_v37  ;;  %v4195_v63 = vmul.f32 %v12660_v26, %v12514_v45  ;;  %v14727_v15 = vld [vmem:[#allocation84_spill] sm:$0xff] }
 0x3e9   : > { %v12667_v38 = vpop.permute.xlu1 %4300  ;;  %849 = vst.msk [vmem:[#allocation4 + $0xa9] sm:$0x1] %vm818_vm7, %v14725_v50  ;;  %v4210_v1 = vadd.f32 %v4194_v27, %v4076_v52  ;;  %v4063_v9 = vmul.f32 %v12648_v55, %v12460_v0  ;;  %v4329_v51 = vmul.f32 %v12673_v18, %v12574_v46  ;;  %v3815_v54 = vadd.f32 %v3799_v24, %v3681_v39  ;;  %v5182_v24 = vld [vmem:[#allocation2 + $0x182] sm:$0xff] }
 0x3ea   : > { %14722 = vst [vmem:[#allocation69_spill] sm:$0xff] %v12667_v38  ;;  %5087 = vperm.xlu1 %9753, %v12518_v53   ;;  %v4062_v53 = vmul.f32 %v12648_v55, %v12444_v19  ;;  %v3945_v19 = vadd.f32 %v3929_v42, %v3812_v43  ;;  %v3947_v47 = vadd.f32 %v3931_v4, %v3814_v44  ;;  %v14728_v44 = vld [vmem:[#allocation59_spill] sm:$0xff]  ;;  %vm6286_vm7 = vcmask 781824  }
 0x3eb   : > { %v12687_v62 = vpop.permute.xlu0 %4315  ;;  %v4343_v48 = vadd.f32 %v4327_v7, %v4210_v1  ;;  %v4077_v37 = vadd.f32 %v4061_v56, %v3944_v22  ;;  %v4328_v45 = vmul.f32 %v12673_v18, %v12576_v35  ;;  %v3946_v30 = vadd.f32 %v3930_v61, %v3813_v10 }
 0x3ec   : > { %14723 = vst [vmem:[#allocation92_spill] sm:$0xff] %v12687_v62  ;;  %5595 = vperm.xlu0 %9752, %v12527_v6   ;;  %v653_v6 = vsel %vm589_vm8, 0.0, %v525_v17  ;;  %v4078_v8 = vadd.f32 %v4062_v53, %v3945_v19  ;;  %v4198_v40 = vmul.f32 %v12660_v26, %v12521_v3  ;;  %v3932_v43 = vmul.f32 %v12632_v28, %v12408_v33  ;;  %v14729_v19 = vld [vmem:[#allocation85_spill] sm:$0xff]  ;;  %v12899_v62 = vld [vmem:[#allocation2 + $0x319] sm:$0xff] }
 0x3ed   : > { %v12694_v12 = vpop.permute.xlu1 %4310  ;;  %719 = vst.msk [vmem:[#allocation2 + $0x339] sm:$0xff] %vm655_vm0, %v653_v6  ;;  %v4080_v42 = vadd.f32 %v4064_v60, %v3947_v47  ;;  %v4211_v20 = vadd.f32 %v4195_v63, %v4077_v37  ;;  %v4197_v39 = vmul.f32 %v12660_v26, %v14727_v15  ;;  %v4079_v23 = vadd.f32 %v4063_v9, %v3946_v30  ;;  %v5183_v63 = vld [vmem:[#allocation2 + $0x18a] sm:$0xff]  ;;  %v5316_v37 = vld [vmem:[#allocation2 + $0x198] sm:$0xff] }
 0x3ee   : > { %14724 = vst [vmem:[#allocation76_spill] sm:$0xff] %v12694_v12  ;;  %5097 = vperm.xlu1 %9753, %v12680_v14   ;;  %v4212_v0 = vadd.f32 %v4196_v41, %v4078_v8  ;;  %v4065_v33 = vmul.f32 %v12648_v55, %v14728_v44  ;;  %v4330_v53 = vmul.f32 %v12673_v18, %v12583_v58  ;;  %v14730_v41 = vld [vmem:[#allocation86_spill] sm:$0xff]  ;;  %14750 = vst [vmem:[#allocation89_spill] sm:$0xff] %v12899_v62  ;;  %vm6157_vm0 = vcmask 519424  }
 0x3ef   : > { %v4379_v2 = vpop.permute.xlu0 %4378  ;;  %v4344_v16 = vadd.f32 %v4328_v45, %v4211_v20  ;;  %v3948_v7 = vadd.f32 %v3932_v43, %v3815_v54  ;;  %v4213_v50 = vadd.f32 %v4197_v39, %v4079_v23  ;;  %v4199_v4 = vmul.f32 %v12660_v26, %v14729_v19  ;;  %v5317_v43 = vld [vmem:[#allocation2 + $0x1a0] sm:$0xff] }
 0x3f0   : > { %v4460_v49 = vmul.f32 %v12707_v5, %v4379_v2  ;;  %5605 = vperm.xlu0 %9752, %v12544_v31   ;;  %v4345_v27 = vadd.f32 %v4329_v51, %v4212_v0  ;;  %v4332_v22 = vmul.f32 %v12673_v18, %v14730_v41  ;;  %v14732_v0 = vld [vmem:[#allocation81_spill] sm:$0xff]  ;;  %v3934_v36 = vmul.f32 %v12632_v28, %v14754_v21 }
 0x3f1   : > { %v12731_v32 = vpop.permute.xlu1 %4320  ;;  %v4081_v61 = vadd.f32 %v4065_v33, %v3948_v7  ;;  %v4346_v1 = vadd.f32 %v4330_v53, %v4213_v50  ;;  %v4367_v7 = vld [vmem:[#allocation2 + $0x2a2] sm:$0xff] }
 0x3f2   : > { %14726 = vst [vmem:[#allocation30_spill] sm:$0xff] %v12731_v32  ;;  %5600 = vperm.xlu1 %9753, %v12535_v57   ;;  %v4476_v46 = vadd.f32 %v4460_v49, %v4343_v48  ;;  %v4331_v57 = vmul.f32 %v12673_v18, %v12581_v29  ;;  %v4214_v29 = vadd.f32 %v4198_v40, %v4080_v42  ;;  %v14731_v49 = vld [vmem:[#allocation75_spill] sm:$0xff] }
 0x3f3   : > { %v4389_v59 = vpop.permute.xlu0 %4388  ;;  %v4215_v2 = vadd.f32 %v4199_v4, %v4081_v61  ;;  %v5583_v50 = vld [vmem:[#allocation2 + $0x1a2] sm:$0xff]  ;;  %v4368_v61 = vld [vmem:[#allocation2 + $0x2aa] sm:$0xff] }
 0x3f4   : > { %4493 = vst.msk [vmem:[#allocation3 + $0x80] sm:$0xff] %vm807_vm3, %v4476_v46  ;;  %v4462_v35 = vmul.f32 %v12707_v5, %v4389_v59  ;;  %5215 = vperm.xlu0 %9752, %v12544_v31   ;;  %v4347_v6 = vadd.f32 %v4331_v57, %v4214_v29  ;;  %v12781_v57 = vld [vmem:[%s11182_s25] ss:$0 sm:$0xff] }
 0x3f5   : > { %v4384_v3 = vpop.permute.xlu1 %4383  ;;  %v4348_v54 = vadd.f32 %v4332_v22, %v4215_v2  ;;  %v4518_v22 = vld [vmem:[#allocation2 + $0x2d0] sm:$0xff] }
 0x3f6   : > { %v4461_v17 = vmul.f32 %v12707_v5, %v4384_v3  ;;  %5610 = vperm.xlu1 %9753, %v12554_v25   ;;  %v4478_v52 = vadd.f32 %v4462_v35, %v4345_v27  ;;  %v5449_v27 = vld [vmem:[#allocation2 + $0x199] sm:$0xff] }
 0x3f7   : > { %v4399_v56 = vpop.permute.xlu0 %4398 }
 0x3f8   : > { %v4477_v31 = vadd.f32 %v4461_v17, %v4344_v16  ;;  %4495 = vst.msk [vmem:[#allocation3 + $0x90] sm:$0xff] %vm807_vm3, %v4478_v52  ;;  %v4464_v10 = vmul.f32 %v12707_v5, %v4399_v56  ;;  %5225 = vperm.xlu0 %9752, %v5182_v24   ;;  %v5450_v16 = vld [vmem:[#allocation2 + $0x1a1] sm:$0xff] }
 0x3f9   : > { %v4394_v58 = vpop.permute.xlu1 %4393  ;;  %v5582_v17 = vld [vmem:[#allocation2 + $0x19a] sm:$0xff] }
 0x3fa   : > { %4494 = vst.msk [vmem:[#allocation3 + $0x88] sm:$0xff] %vm807_vm3, %v4477_v31  ;;  %v4463_v8 = vmul.f32 %v12707_v5, %v4394_v58  ;;  %5220 = vperm.xlu1 %9753, %v12554_v25   ;;  %v4480_v60 = vadd.f32 %v4464_v10, %v4347_v6  ;;  %v4369_v58 = vld [vmem:[#allocation2 + $0x2ba] sm:$0xff] }
 0x3fb   : > { %v12763_v48 = vpop.permute.xlu0 %4529 }
 0x3fc   : > { %v4479_v9 = vadd.f32 %v4463_v8, %v4346_v1  ;;  %4497 = vst.msk [vmem:[#allocation3 + $0xa0] sm:$0xff] %vm807_vm3, %v4480_v60  ;;  %5349 = vperm.xlu0 %9752, %v14731_v49   ;;  %v4370_v8 = vld [vmem:[#allocation2 + $0x2c2] sm:$0xff] }
 0x3fd   : > { %v4404_v51 = vpop.permute.xlu1 %4403 }
 0x3fe   : > { %4496 = vst.msk [vmem:[#allocation3 + $0x98] sm:$0xff] %vm807_vm3, %v4479_v9  ;;  %v4465_v47 = vmul.f32 %v12707_v5, %v4404_v51  ;;  %5230 = vperm.xlu1 %9753, %v5183_v63   ;;  %v4520_v9 = vld [vmem:[#allocation2 + $0x2e8] sm:$0xff]  ;;  %v4519_v51 = vld [vmem:[#allocation2 + $0x2d8] sm:$0xff] }
 0x3ff   : > { %v12769_v25 = vpop.permute.xlu0 %4539 }
 0x400   : > { %v4481_v45 = vadd.f32 %v4465_v47, %v4348_v54  ;;  %5359 = vperm.xlu0 %9752, %v5316_v37   ;;  %v4651_v47 = vld [vmem:[#allocation2 + $0x2d1] sm:$0xff] }
 0x401   : > { %v12771_v30 = vpop.permute.xlu1 %4534  ;;  %v5837_v40 = vld [vmem:[#allocation3 + $0x80] ss:$2 sm:$0xff]  ;;  %v5869_v46 = vld [vmem:[#allocation3 + $0x81] ss:$2 sm:$0xff]  ;;  %v4521_v37 = vld [vmem:[#allocation2 + $0x2f0] sm:$0xff] }
 0x402   : > { %4498 = vst.msk [vmem:[#allocation3 + $0xa8] sm:$0xff] %vm807_vm3, %v4481_v45  ;;  %5354 = vperm.xlu1 %9753, %v14732_v0   ;;  %v5900_v59 = vmax.f32 %v5837_v40, %v5869_v46  ;;  %v4653_v40 = vld [vmem:[#allocation2 + $0x2e9] sm:$0xff]  ;;  %v4652_v46 = vld [vmem:[#allocation2 + $0x2d9] sm:$0xff] }
 0x403   : > { %v12775_v42 = vpop.permute.xlu0 %4662 }
 0x404   : > { %5482 = vperm.xlu0 %9752, %v12651_v11  }
 0x405   : > { %v5839_v20 = vld [vmem:[#allocation3 + $0x90] ss:$2 sm:$0xff]  ;;  %v5871_v15 = vld [vmem:[#allocation3 + $0x91] ss:$2 sm:$0xff]  ;;  %v12777_v39 = vpop.permute.xlu1 %4544 }
 0x406   : > { %v5901_v23 = vmax.f32 %v5839_v20, %v5871_v15  ;;  %5364 = vperm.xlu1 %9753, %v5317_v43   ;;  %v12829_v15 = vld [vmem:[#allocation2 + $0x2d2] sm:$0xff] }
 0x407   : > { %v12783_v3 = vpop.permute.xlu0 %4672  ;;  %14737 = vst [vmem:[#allocation80_spill] sm:$0xff] %v12829_v15 }
 0x408   : > { %v5916_v35 = vmax.f32 %v5900_v59, %v5901_v23  ;;  %5492 = vperm.xlu0 %9752, %v5449_v27   ;;  %v4654_v59 = vld [vmem:[#allocation2 + $0x2f1] sm:$0xff] }
 0x409   : > { %v12785_v44 = vpop.permute.xlu1 %4667  ;;  %v6920_v27 = vld [vmem:[#allocation4 + $0x92] sm:$0xff] }
 0x40a   : > { %v5931_v33 = vadd.f32 %v12781_v57, %v5916_v35  ;;  %5487 = vperm.xlu1 %9753, %v12680_v14  }
 0x40b   : > { %v12790_v11 = vpop.permute.xlu0 %4795 }
 0x40c   : > { %5940 = vst.msk [vmem:[#allocation4 + $0x51] sm:$0xff] %vm807_vm3, %v5931_v33  ;;  %5615 = vperm.xlu0 %9752, %v5182_v24   ;;  %v9545_v33 = vpack.c.bf16 %v6920_v27, %v6920_v27 }
 0x40d   : > { %v12792_v53 = vpop.permute.xlu1 %4677 }
 0x40e   : > { %5497 = vperm.xlu1 %9753, %v5450_v16   ;;  %v12836_v16 = vld [vmem:[#allocation2 + $0x2ea] sm:$0xff]  ;;  %7000 = vst.msk [vmem:[#allocation5 + $0x5c] sm:$0xf] %vm6028_vm13, %v9545_v33 }
 0x40f   : > { %v12794_v29 = vpop.permute.xlu0 %4805  ;;  %14739 = vst [vmem:[#allocation15_spill] sm:$0xff] %v12836_v16 }
 0x410   : > { %5625 = vperm.xlu0 %9752, %v5582_v17   ;;  %v12838_v17 = vld [vmem:[#allocation2 + $0x2da] sm:$0xff] }
 0x411   : > { %v12796_v52 = vpop.permute.xlu1 %4800  ;;  %14740 = vst [vmem:[#allocation98_spill] sm:$0xff] %v12838_v17 }
 0x412   : > { %5620 = vperm.xlu1 %9753, %v5183_v63  }
 0x413   : > { %v6916_v19 = vld [vmem:[#allocation4 + $0x52] sm:$0xff]  ;;  %v12798_v4 = vpop.permute.xlu0 %4929 }
 0x414   : > { %v6788_v14 = vld [vmem:[#allocation4 + $0x51] sm:$0xff]  ;;  %v9541_v31 = vpack.c.bf16 %v6916_v19, %v6916_v19  ;;  %4418 = vperm.xlu0 %9752, %v4367_v7  }
 0x415   : > { %v12800_v56 = vpack.c.bf16 %v6788_v14, %v6788_v14  ;;  %v5953_v6 = vld [vmem:[#allocation4 + $0x50] sm:$0xff]  ;;  %v12802_v10 = vpop.permute.xlu1 %4810 }
 0x416   : > { %v9415_v24 = vpack.c.bf16 %v5953_v6, %v5953_v6  ;;  %5630 = vperm.xlu1 %9753, %v5583_v50   ;;  %6996 = vst.msk [vmem:[#allocation5 + $0x2c] sm:$0xf] %vm6028_vm13, %v9541_v31  ;;  %v12847_v19 = vld [vmem:[#allocation2 + $0x2f2] sm:$0xff]  ;;  %v12854_v6 = vld [vmem:[#allocation2 + $0x300] sm:$0xff] }
 0x417   : > { %14733 = vst [vmem:[#allocation94_spill] sm:$0xff] %v12800_v56  ;;  %6516 = vst.msk [vmem:[#allocation5 + $0x34] sm:$0xf] %vm6028_vm13, %v12800_v56  ;;  %v12808_v1 = vpop.permute.xlu0 %4939  ;;  %v14752_v56 = vld [vmem:[#allocation48_spill] sm:$0xff] }
 0x418   : > { %6034 = vst.msk [vmem:[#allocation5 + $0x3c] sm:$0xf] %vm6028_vm13, %v9415_v24  ;;  %4428 = vperm.xlu0 %9752, %v4369_v58   ;;  %v3933_v38 = vmul.f32 %v12632_v28, %v14752_v56 }
 0x419   : > { %v12810_v41 = vpop.permute.xlu1 %4934 }
 0x41a   : > { %4423 = vperm.xlu1 %9753, %v4368_v61   ;;  %v12861_v61 = vld [vmem:[#allocation2 + $0x308] sm:$0xff] }
 0x41b   : > { %v12812_v60 = vpop.permute.xlu0 %5062 }
 0x41c   : > { %4569 = vperm.xlu0 %9752, %v4518_v22  }
 0x41d   : > { %v12814_v63 = vpop.permute.xlu1 %4944  ;;  %v9757_v2 = vld [vmem:[#allocation5 + $0x20] ss:$12 sps:$4 sm:$0xff]  }
 0x41e   : > { %4433 = vperm.xlu1 %9753, %v4370_v8   ;;  %9721 = vmatmul.mubr.msk.bf16.vlgmr.msra.gmra.mxu1 %vm807_vm3, %v9757_v2  ;;  %v12868_v2 = vld [vmem:[#allocation2 + $0x301] sm:$0xff] }
 0x41f   : > { %v12817_v49 = vpop.permute.xlu0 %5072  ;;  %14744 = vst [vmem:[#allocation96_spill] sm:$0xff] %v12868_v2 }
 0x420   : > { %4579 = vperm.xlu0 %9752, %v4520_v9  }
 0x421   : > { %v12819_v54 = vpop.permute.xlu1 %5067 }
 0x422   : > { %4574 = vperm.xlu1 %9753, %v4519_v51  }
 0x423   : > { %v12821_v45 = vpop.permute.xlu0 %4549 }
 0x424   : > { %14734 = vst [vmem:[#allocation13_spill] sm:$0xff] %v12821_v45  ;;  %4702 = vperm.xlu0 %9752, %v4651_v47   ;;  %v12875_v47 = vld [vmem:[#allocation2 + $0x309] sm:$0xff] }
 0x425   : > { %v12823_v0 = vpop.permute.xlu1 %5077  ;;  %14747 = vst [vmem:[#allocation11_spill] sm:$0xff] %v12875_v47 }
 0x426   : > { %4584 = vperm.xlu1 %9753, %v4521_v37  }
 0x427   : > { %v12825_v43 = vpop.permute.xlu0 %4559 }
 0x428   : > { %14735 = vst [vmem:[#allocation14_spill] sm:$0xff] %v12825_v43  ;;  %4712 = vperm.xlu0 %9752, %v4653_v40   ;;  %v12940_v43 = vld [vmem:[%s10795_s22 + $0x2] ss:$0 sm:$0xff] }
 0x429   : > { %v12827_v20 = vpop.permute.xlu1 %4554 }
 0x42a   : > { %14736 = vst [vmem:[#allocation97_spill] sm:$0xff] %v12827_v20  ;;  %4707 = vperm.xlu1 %9753, %v4652_v46   ;;  %v14764_v20 = vld [vmem:[#allocation95_spill] sm:$0xff] }
 0x42b   : > { %v12831_v23 = vpop.permute.xlu0 %4682 }
 0x42c   : > { %4835 = vperm.xlu0 %9752, %v12829_v15   ;;  %v14755_v15 = vld [vmem:[#allocation57_spill] sm:$0xff] }
 0x42d   : > { %v12833_v35 = vpop.permute.xlu1 %4564 }
 0x42e   : > { %14738 = vst [vmem:[#allocation66_spill] sm:$0xff] %v12833_v35  ;;  %4717 = vperm.xlu1 %9753, %v4654_v59   ;;  %v12913_v35 = vld [vmem:[#allocation2 + $0x321] sm:$0xff] }
 0x42f   : > { %v12841_v7 = vpop.permute.xlu0 %4692  ;;  %14756 = vst [vmem:[#allocation99_spill] sm:$0xff] %v12913_v35 }
 0x430   : > { %4845 = vperm.xlu0 %9752, %v12836_v16  }
 0x431   : > { %v12843_v50 = vpop.permute.xlu1 %4687 }
 0x432   : > { %14741 = vst [vmem:[#allocation100_spill] sm:$0xff] %v12843_v50  ;;  %4840 = vperm.xlu1 %9753, %v12838_v17  }
 0x433   : > { %v12849_v14 = vpop.permute.xlu0 %5195 }
 0x434   : > { %4969 = vperm.xlu0 %9752, %v4520_v9  }
 0x435   : > { %v12851_v31 = vpop.permute.xlu1 %4697 }
 0x436   : > { %14742 = vst [vmem:[#allocation101_spill] sm:$0xff] %v12851_v31  ;;  %4850 = vperm.xlu1 %9753, %v12847_v19   ;;  %v14757_v31 = vld [vmem:[#allocation40_spill] sm:$0xff] }
 0x437   : > { %v12856_v24 = vpop.permute.xlu0 %5205  ;;  %v3949_v56 = vadd.f32 %v3933_v38, %v14757_v31  ;;  %v14763_v31 = vld [vmem:[#allocation25_spill] sm:$0xff] }
 0x438   : > { %4979 = vperm.xlu0 %9752, %v12854_v6  }
 0x439   : > { %v12858_v58 = vpop.permute.xlu1 %5200 }
 0x43a   : > { %4974 = vperm.xlu1 %9753, %v4521_v37  }
 0x43b   : > { %v12863_v22 = vpop.permute.xlu0 %4815 }
 0x43c   : > { %14743 = vst [vmem:[#allocation74_spill] sm:$0xff] %v12863_v22  ;;  %5102 = vperm.xlu0 %9752, %v4653_v40   ;;  %v12883_v40 = vld [vmem:[#allocation2 + $0x318] sm:$0xff]  ;;  %v12937_v22 = vld [vmem:[%s10795_s22] ss:$0 sm:$0xff] }
 0x43d   : > { %v12865_v8 = vpop.permute.xlu1 %5210 }
 0x43e   : > { %4984 = vperm.xlu1 %9753, %v12861_v61  }
 0x43f   : > { %v12870_v9 = vpop.permute.xlu0 %4825 }
 0x440   : > { %14745 = vst [vmem:[#allocation104_spill] sm:$0xff] %v12870_v9  ;;  %5112 = vperm.xlu0 %9752, %v12868_v2  }
 0x441   : > { %v12872_v51 = vpop.permute.xlu1 %4820 }
 0x442   : > { %14746 = vst [vmem:[#allocation10_spill] sm:$0xff] %v12872_v51  ;;  %5107 = vperm.xlu1 %9753, %v4654_v59   ;;  %v12891_v59 = vld [vmem:[#allocation2 + $0x320] sm:$0xff]  ;;  %v14762_v51 = vld [vmem:[#allocation42_spill] sm:$0xff] }
 0x443   : > { %v12877_v37 = vpop.permute.xlu0 %5329  ;;  %v3950_v9 = vadd.f32 %v3934_v36, %v14762_v51  ;;  %v4611_v36 = vmul.f32 %v12937_v22, %v12763_v48  ;;  %v4877_v51 = vmul.f32 %v12940_v43, %v12790_v11  ;;  %v4613_v48 = vmul.f32 %v12937_v22, %v12769_v25 }
 0x444   : > { %4589 = vperm.xlu0 %9752, %v12854_v6   ;;  %v4612_v25 = vmul.f32 %v12937_v22, %v12771_v30 }
 0x445   : > { %v12879_v46 = vpop.permute.xlu1 %4830 }
 0x446   : > { %14748 = vst [vmem:[#allocation77_spill] sm:$0xff] %v12879_v46  ;;  %5117 = vperm.xlu1 %9753, %v12875_v47   ;;  %v4066_v46 = vmul.f32 %v12648_v55, %v14755_v15  ;;  %v12929_v15 = vld [vmem:[#allocation2 + $0x302] sm:$0xff] }
 0x447   : > { %v12885_v27 = vpop.permute.xlu0 %5339  ;;  %14761 = vst [vmem:[#allocation103_spill] sm:$0xff] %v12929_v15 }
 0x448   : > { %4599 = vperm.xlu0 %9752, %v12883_v40   ;;  %v4082_v38 = vadd.f32 %v4066_v46, %v3949_v56  ;;  %v12956_v46 = vld [vmem:[%s10795_s22 + $0x4] ss:$0 sm:$0xff] }
 0x449   : > { %v12887_v33 = vpop.permute.xlu1 %5334 }
 0x44a   : > { %4594 = vperm.xlu1 %9753, %v12861_v61  }
 0x44b   : > { %v12893_v32 = vpop.permute.xlu0 %4949 }
 0x44c   : > { %14749 = vst [vmem:[#allocation78_spill] sm:$0xff] %v12893_v32  ;;  %4722 = vperm.xlu0 %9752, %v12868_v2   ;;  %v14758_v2 = vld [vmem:[#allocation79_spill] sm:$0xff] }
 0x44d   : > { %v12895_v12 = vpop.permute.xlu1 %5344  ;;  %v12923_v32 = vld [vmem:[%s10795_s22 + $0x1] ss:$0 sm:$0xff] }
 0x44e   : > { %4604 = vperm.xlu1 %9753, %v12891_v59   ;;  %v4747_v11 = vmul.f32 %v12923_v32, %v12792_v53 }
 0x44f   : > { %v12901_v13 = vpop.permute.xlu0 %4959 }
 0x450   : > { %14751 = vst [vmem:[#allocation90_spill] sm:$0xff] %v12901_v13  ;;  %4732 = vperm.xlu0 %9752, %v12899_v62   ;;  %v14759_v62 = vld [vmem:[#allocation70_spill] sm:$0xff] }
 0x451   : > { %v12905_v17 = vpop.permute.xlu1 %4954 }
 0x452   : > { %14753 = vst [vmem:[#allocation12_spill] sm:$0xff] %v12905_v17  ;;  %4727 = vperm.xlu1 %9753, %v12875_v47   ;;  %v4067_v17 = vmul.f32 %v12648_v55, %v14758_v2  ;;  %v4200_v47 = vmul.f32 %v12660_v26, %v14759_v62  ;;  %v4201_v2 = vmul.f32 %v12660_v26, %v14763_v31 }
 0x453   : > { %v12915_v13 = vpop.permute.xlu0 %5462  ;;  %v4333_v62 = vmul.f32 %v12673_v18, %v14764_v20  ;;  %v4746_v20 = vmul.f32 %v12923_v32, %v12783_v3  ;;  %v4745_v3 = vmul.f32 %v12923_v32, %v12785_v44  ;;  %v4614_v44 = vmul.f32 %v12937_v22, %v12777_v39 }
 0x454   : > { %5235 = vperm.xlu0 %9752, %v12836_v16   ;;  %v4744_v16 = vmul.f32 %v12923_v32, %v12775_v42  ;;  %v4216_v45 = vadd.f32 %v4200_v47, %v4082_v38  ;;  %v4334_v47 = vmul.f32 %v12673_v18, %v12605_v34 }
 0x455   : > { %v12925_v21 = vpop.permute.xlu1 %4964  ;;  %v4763_v39 = vadd.f32 %v4747_v11, %v4614_v44  ;;  %v13006_v11 = vld [vmem:[#allocation2 + $0x322] sm:$0xff] }
 0x456   : > { %14760 = vst [vmem:[#allocation102_spill] sm:$0xff] %v12925_v21  ;;  %4737 = vperm.xlu1 %9753, %v12913_v35   ;;  %v4083_v21 = vadd.f32 %v4067_v17, %v3950_v9  ;;  %v4349_v17 = vadd.f32 %v4333_v62, %v4216_v45  ;;  %v12959_v9 = vld [vmem:[#allocation2 + $0x30a] sm:$0xff]  ;;  %v4760_v56 = vadd.f32 %v4744_v16, %v4611_v36 }
 0x457   : > { %v12944_v35 = vpop.permute.xlu0 %5472  ;;  %v5011_v45 = vmul.f32 %v12956_v46, %v12798_v4  ;;  %v4762_v16 = vadd.f32 %v4746_v20, %v4613_v48  ;;  %v4878_v4 = vmul.f32 %v12940_v43, %v12796_v52  ;;  %v5144_v62 = vmul.f32 %v12632_v28, %v12812_v60 }
 0x458   : > { %5245 = vperm.xlu0 %9752, %v12929_v15   ;;  %v4217_v42 = vadd.f32 %v4201_v2, %v4083_v21  ;;  %v4879_v21 = vmul.f32 %v12940_v43, %v12794_v29  ;;  %v4893_v53 = vadd.f32 %v4877_v51, %v4760_v56  ;;  %v12982_v29 = vld [vmem:[#allocation2 + $0x31a] sm:$0xff]  ;;  %v5013_v2 = vmul.f32 %v12956_v46, %v12808_v1 }
 0x459   : > { %v12946_v50 = vpop.permute.xlu1 %5467  ;;  %v5277_v48 = vmul.f32 %v12648_v55, %v12849_v14  ;;  %v4880_v1 = vmul.f32 %v12940_v43, %v12802_v10  ;;  %v5012_v60 = vmul.f32 %v12956_v46, %v12810_v41  ;;  %v5014_v10 = vmul.f32 %v12956_v46, %v12814_v63 }
 0x45a   : > { %5240 = vperm.xlu1 %9753, %v12847_v19   ;;  %v4350_v30 = vadd.f32 %v4334_v47, %v4217_v42  ;;  %v4895_v20 = vadd.f32 %v4879_v21, %v4762_v16  ;;  %v5027_v51 = vadd.f32 %v5011_v45, %v4893_v53  ;;  %v5146_v42 = vmul.f32 %v12632_v28, %v12817_v49 }
 0x45b   : > { %v4409_v38 = vpop.permute.xlu0 %4408  ;;  %v5145_v41 = vmul.f32 %v12632_v28, %v12819_v54  ;;  %v5279_v49 = vmul.f32 %v12648_v55, %v12856_v24  ;;  %v5278_v54 = vmul.f32 %v12648_v55, %v12858_v58  ;;  %v5147_v24 = vmul.f32 %v12632_v28, %v12823_v0 }
 0x45c   : > { %v4466_v31 = vmul.f32 %v12707_v5, %v4409_v38  ;;  %4855 = vperm.xlu0 %9752, %v12929_v15   ;;  %v4761_v38 = vadd.f32 %v4745_v3, %v4612_v25  ;;  %v5029_v14 = vadd.f32 %v5013_v2, %v4895_v20  ;;  %v5160_v56 = vadd.f32 %v5144_v62, %v5027_v51  ;;  %v5873_v20 = vld [vmem:[#allocation3 + $0xa1] ss:$2 sm:$0xff] }
 0x45d   : > { %v12974_v34 = vpop.permute.xlu1 %5477  ;;  %v5411_v3 = vmul.f32 %v12660_v26, %v12877_v37  ;;  %v5544_v25 = vmul.f32 %v12673_v18, %v12915_v13  ;;  %v4896_v37 = vadd.f32 %v4880_v1, %v4763_v39  ;;  %v5413_v13 = vmul.f32 %v12660_v26, %v12885_v27  ;;  %v5841_v27 = vld [vmem:[#allocation3 + $0xa0] ss:$2 sm:$0xff] }
 0x45e   : > { %5250 = vperm.xlu1 %9753, %v12959_v9   ;;  %v4482_v36 = vadd.f32 %v4466_v31, %v4349_v17  ;;  %v4894_v47 = vadd.f32 %v4878_v4, %v4761_v38  ;;  %v5293_v31 = vadd.f32 %v5277_v48, %v5160_v56  ;;  %v5162_v63 = vadd.f32 %v5146_v42, %v5029_v14 }
 0x45f   : > { %v12990_v15 = vpop.permute.xlu0 %5082  ;;  %v5030_v4 = vadd.f32 %v5014_v10, %v4896_v37  ;;  %v5412_v62 = vmul.f32 %v12660_v26, %v12887_v33  ;;  %v5280_v58 = vmul.f32 %v12648_v55, %v12865_v8  ;;  %v5546_v38 = vmul.f32 %v12673_v18, %v12944_v35 }
 0x460   : > { %4499 = vst.msk [vmem:[#allocation3 + $0xb0] sm:$0xff] %vm807_vm3, %v4482_v36  ;;  %4865 = vperm.xlu0 %9752, %v12982_v29   ;;  %v5028_v16 = vadd.f32 %v5012_v60, %v4894_v47  ;;  %v5427_v53 = vadd.f32 %v5411_v3, %v5293_v31  ;;  %v5545_v33 = vmul.f32 %v12673_v18, %v12946_v50 }
 0x461   : > { %v4414_v52 = vpop.permute.xlu1 %4413  ;;  %v5163_v48 = vadd.f32 %v5147_v24, %v5030_v4  ;;  %v5414_v35 = vmul.f32 %v12660_v26, %v12895_v12  ;;  %v5902_v42 = vmax.f32 %v5841_v27, %v5873_v20  ;;  %v5547_v10 = vmul.f32 %v12673_v18, %v12974_v34  ;;  %v6658_v27 = vld [vmem:[#allocation4 + $0x30] sm:$0xff] }
 0x462   : > { %v4467_v17 = vmul.f32 %v12707_v5, %v4414_v52  ;;  %4860 = vperm.xlu1 %9753, %v12959_v9   ;;  %v5161_v2 = vadd.f32 %v5145_v41, %v5028_v16 }
 0x463   : > { %v13014_v45 = vpop.permute.xlu0 %5092 }
 0x464   : > { %v4483_v21 = vadd.f32 %v4467_v17, %v4350_v30  ;;  %5369 = vperm.xlu0 %9752, %v12854_v6   ;;  %v5295_v6 = vadd.f32 %v5279_v49, %v5162_v63  ;;  %v5560_v30 = vadd.f32 %v5544_v25, %v5427_v53  ;;  %v5294_v51 = vadd.f32 %v5278_v54, %v5161_v2  ;;  %v13051_v49 = vld [vmem:[#allocation2 + $0x330] sm:$0xff]  ;;  %v5948_v25 = vld [vmem:[#allocation4] sm:$0xff]  ;;  %v13062_v2 = vld [vmem:[#allocation2 + $0x338] sm:$0xff] }
 0x465   : > { %v13018_v44 = vpop.permute.xlu1 %5087  ;;  %v5296_v17 = vadd.f32 %v5280_v58, %v5163_v48  ;;  %v14765_v58 = vld [vmem:[#allocation49_spill] sm:$0xff] }
 0x466   : > { %4500 = vst.msk [vmem:[#allocation3 + $0xb8] sm:$0xff] %vm807_vm3, %v4483_v21  ;;  %4870 = vperm.xlu1 %9753, %v13006_v11   ;;  %v5429_v8 = vadd.f32 %v5413_v13, %v5295_v6  ;;  %v5428_v1 = vadd.f32 %v5412_v62, %v5294_v51  ;;  %v6045_v21 = vld [vmem:[#allocation4 + $0x1] sm:$0xff]  ;;  %v14766_v48 = vld [vmem:[#allocation41_spill] sm:$0xff] }
 0x467   : > { %v5596_v36 = vpop.permute.xlu0 %5595  ;;  %v5430_v37 = vadd.f32 %v5414_v35, %v5296_v17  ;;  %v9426_v34 = vpack.c.bf16 %v6045_v21, %v6045_v21  ;;  %v14772_v21 = vld [vmem:[#allocation13_spill] sm:$0xff] }
 0x468   : > { %v5677_v0 = vmul.f32 %v12707_v5, %v5596_v36  ;;  %5379 = vperm.xlu0 %9752, %v12883_v40   ;;  %v5562_v47 = vadd.f32 %v5546_v38, %v5429_v8  ;;  %v6528_v36 = vld [vmem:[#allocation4 + $0x12] sm:$0xff] }
 0x469   : > { %v13036_v39 = vpop.permute.xlu1 %5097  ;;  %v5563_v53 = vadd.f32 %v5547_v10, %v5430_v37  ;;  %v13074_v20 = vpack.c.bf16 %v6528_v36, %v6528_v36  ;;  %v14770_v10 = vld [vmem:[#allocation16_spill] sm:$0xff] }
 0x46a   : > { %5374 = vperm.xlu1 %9753, %v12861_v61   ;;  %v5693_v52 = vadd.f32 %v5677_v0, %v5560_v30  ;;  %v5561_v61 = vadd.f32 %v5545_v33, %v5428_v1  ;;  %v3935_v30 = vmul.f32 %v12632_v28, %v14765_v58  ;;  %v6529_v0 = vld [vmem:[#allocation4 + $0x22] sm:$0xff] }
 0x46b   : > { %v5606_v60 = vpop.permute.xlu0 %5605  ;;  %v13078_v33 = vpack.c.bf16 %v6529_v0, %v6529_v0 }
 0x46c   : > { %5710 = vst.msk [vmem:[#allocation3 + $0xc0] sm:$0xff] %vm807_vm3, %v5693_v52  ;;  %v5679_v3 = vmul.f32 %v12707_v5, %v5606_v60  ;;  %4989 = vperm.xlu0 %9752, %v12883_v40   ;;  %v9410_v40 = vpack.c.bf16 %v5948_v25, %v5948_v25  ;;  %v13081_v8 = vadd.f32 %v3935_v30, %v14766_v48  ;;  %v14773_v25 = vld [vmem:[#allocation14_spill] sm:$0xff]  ;;  %v14776_v30 = vld [vmem:[#allocation104_spill] sm:$0xff] }
 0x46d   : > { %v5843_v14 = vld [vmem:[#allocation3 + $0xb0] ss:$2 sm:$0xff]  ;;  %v5875_v56 = vld [vmem:[#allocation3 + $0xb1] ss:$2 sm:$0xff]  ;;  %v5601_v50 = vpop.permute.xlu1 %5600  ;;  %v4748_v52 = vmul.f32 %v12923_v32, %v12831_v23  ;;  %v13091_v60 = vpack.c.bf16 %v6658_v27, %v6658_v27  ;;  %v4750_v23 = vmul.f32 %v12923_v32, %v12841_v7  ;;  %v4617_v37 = vmul.f32 %v12937_v22, %v14773_v25 }
 0x46e   : > { %v5903_v41 = vmax.f32 %v5843_v14, %v5875_v56  ;;  %v5678_v12 = vmul.f32 %v12707_v5, %v5601_v50  ;;  %5384 = vperm.xlu1 %9753, %v12891_v59   ;;  %v5695_v31 = vadd.f32 %v5679_v3, %v5562_v47  ;;  %6029 = vst.msk [vmem:[#allocation5] sm:$0xf] %vm6028_vm13, %v9410_v40  ;;  %v14768_v47 = vld [vmem:[#allocation52_spill] sm:$0xff]  ;;  %v14778_v48 = vld [vmem:[#allocation78_spill] sm:$0xff] }
 0x46f   : > { %v13053_v54 = vpop.permute.xlu0 %5215  ;;  %v13099_v14 = vmul.f32 %v12632_v28, %v14768_v47  ;;  %v14769_v56 = vld [vmem:[#allocation100_spill] sm:$0xff]  ;;  %v4883_v0 = vmul.f32 %v12940_v43, %v14776_v30  ;;  %v4766_v25 = vadd.f32 %v4750_v23, %v4617_v37  ;;  %v14781_v23 = vld [vmem:[#allocation90_spill] sm:$0xff] }
 0x470   : > { %v5917_v16 = vmax.f32 %v5902_v42, %v5903_v41  ;;  %v5694_v63 = vadd.f32 %v5678_v12, %v5561_v61  ;;  %5712 = vst.msk [vmem:[#allocation3 + $0xd0] sm:$0xff] %vm807_vm3, %v5695_v31  ;;  %4999 = vperm.xlu0 %9752, %v13051_v49   ;;  %v14767_v42 = vld [vmem:[#allocation51_spill] sm:$0xff]  ;;  %v4749_v3 = vmul.f32 %v12923_v32, %v14769_v56  ;;  %v14771_v41 = vld [vmem:[#allocation60_spill] sm:$0xff] }
 0x471   : > { %v5611_v24 = vpop.permute.xlu1 %5610  ;;  %v13095_v17 = vmul.f32 %v12632_v28, %v14767_v42  ;;  %v13109_v12 = vmul.f32 %v12648_v55, %v14771_v41  ;;  %v4615_v31 = vmul.f32 %v12937_v22, %v14772_v21  ;;  %v5015_v42 = vmul.f32 %v12956_v46, %v14778_v48  ;;  %v14779_v41 = vld [vmem:[#allocation96_spill] sm:$0xff] }
 0x472   : > { %v5932_v13 = vadd.f32 %v12781_v57, %v5917_v16  ;;  %5711 = vst.msk [vmem:[#allocation3 + $0xc8] sm:$0xff] %vm807_vm3, %v5694_v63  ;;  %v5680_v4 = vmul.f32 %v12707_v5, %v5611_v24  ;;  %4994 = vperm.xlu1 %9753, %v12891_v59   ;;  %v6657_v59 = vld [vmem:[#allocation4 + $0x20] sm:$0xff]  ;;  %v14774_v16 = vld [vmem:[#allocation74_spill] sm:$0xff] }
 0x473   : > { %v13065_v62 = vpop.permute.xlu0 %5225  ;;  %v13089_v35 = vpack.c.bf16 %v6657_v59, %v6657_v59  ;;  %v4881_v7 = vmul.f32 %v12940_v43, %v14774_v16  ;;  %v4764_v58 = vadd.f32 %v4748_v52, %v4615_v31  ;;  %v14777_v59 = vld [vmem:[#allocation10_spill] sm:$0xff]  ;;  %v6174_v21 = vld [vmem:[#allocation4 + $0x2] sm:$0xff]  ;;  %v14780_v52 = vld [vmem:[#allocation101_spill] sm:$0xff] }
 0x474   : > { %5941 = vst.msk [vmem:[#allocation4 + $0x61] sm:$0xff] %vm807_vm3, %v5932_v13  ;;  %v5696_v6 = vadd.f32 %v5680_v4, %v5563_v53  ;;  %6109 = vrot.lane.b32.xlu0 %v9426_v34, %s9892_s11  ;;  %v14775_v34 = vld [vmem:[#allocation97_spill] sm:$0xff]  ;;  %v4882_v27 = vmul.f32 %v12940_v43, %v14777_v59  ;;  %v4751_v31 = vmul.f32 %v12923_v32, %v14780_v52 }
 0x475   : > { %v13069_v38 = vpop.permute.xlu1 %5220  ;;  %v4616_v53 = vmul.f32 %v12937_v22, %v14775_v34  ;;  %v14783_v34 = vld [vmem:[#allocation12_spill] sm:$0xff]  ;;  %v9442_v48 = vpack.c.bf16 %v6174_v21, %v6174_v21  ;;  %v5281_v32 = vmul.f32 %v12648_v55, %v13053_v54  ;;  %v14785_v52 = vld [vmem:[#allocation77_spill] sm:$0xff] }
 0x476   : > { %5713 = vst.msk [vmem:[#allocation3 + $0xd8] sm:$0xff] %vm807_vm3, %v5696_v6  ;;  %5004 = vperm.xlu1 %9753, %v13062_v2  }
 0x477   : > { %v13076_v51 = vpop.permute.xlu0 %5349  ;;  %v4765_v16 = vadd.f32 %v4749_v3, %v4616_v53  ;;  %v5017_v3 = vmul.f32 %v12956_v46, %v14781_v23  ;;  %v5016_v53 = vmul.f32 %v12956_v46, %v14783_v34  ;;  %v13193_v34 = vld [vmem:[%s10795_s22 + $0x8] ss:$0 sm:$0xff] }
 0x478   : > { %6592 = vrot.lane.b32.xlu0 %v13074_v20, %s9892_s11 }
 0x479   : > { %v13085_v1 = vpop.permute.xlu1 %5230  ;;  %v5845_v50 = vld [vmem:[#allocation3 + $0xc0] ss:$2 sm:$0xff]  ;;  %v5877_v61 = vld [vmem:[#allocation3 + $0xc1] ss:$2 sm:$0xff] }
 0x47a   : > { %6111 = vrot.lane.b32.xlu1 %v14770_v10, %s9892_s11 }
 0x47b   : > { %v6917_v63 = vld [vmem:[#allocation4 + $0x62] sm:$0xff]  ;;  %v13119_v13 = vpop.permute.xlu0 %5359 }
 0x47c   : > { %v6661_v40 = vld [vmem:[#allocation4 + $0x60] sm:$0xff]  ;;  %v13121_v4 = vpack.c.bf16 %v6917_v63, %v6917_v63  ;;  %5502 = vperm.xlu0 %9752, %v14779_v41   ;;  %v5904_v63 = vmax.f32 %v5845_v50, %v5877_v61  ;;  %v5148_v50 = vmul.f32 %v12632_v28, %v12990_v15  ;;  %v14782_v61 = vld [vmem:[#allocation66_spill] sm:$0xff]  ;;  %v4884_v15 = vmul.f32 %v12940_v43, %v14785_v52 }
 0x47d   : > { %v6789_v24 = vld [vmem:[#allocation4 + $0x61] sm:$0xff]  ;;  %v13123_v6 = vpack.c.bf16 %v6661_v40, %v6661_v40  ;;  %v5847_v47 = vld [vmem:[#allocation3 + $0xd0] ss:$2 sm:$0xff]  ;;  %v5879_v56 = vld [vmem:[#allocation3 + $0xd1] ss:$2 sm:$0xff]  ;;  %v5355_v10 = vpop.permute.xlu1 %5354  ;;  %v4618_v37 = vmul.f32 %v12937_v22, %v14782_v61  ;;  %v5150_v22 = vmul.f32 %v12632_v28, %v13014_v45 }
 0x47e   : > { %v13125_v36 = vpack.c.bf16 %v6789_v24, %v6789_v24  ;;  %v5905_v40 = vmax.f32 %v5847_v47, %v5879_v56  ;;  %6594 = vrot.lane.b32.xlu1 %v13078_v33, %s9892_s11  ;;  %6997 = vst.msk [vmem:[#allocation5 + $0x38] sm:$0xf] %vm6028_vm13, %v13121_v4  ;;  %v4897_v24 = vadd.f32 %v4881_v7, %v4764_v58  ;;  %v14784_v58 = vld [vmem:[#allocation89_spill] sm:$0xff]  ;;  %v14791_v61 = vld [vmem:[#allocation99_spill] sm:$0xff] }
 0x47f   : > { %6035 = vst.msk [vmem:[#allocation5 + $0x48] sm:$0xf] %vm6028_vm13, %v13123_v6  ;;  %v5483_v59 = vpop.permute.xlu0 %5482  ;;  %v4899_v47 = vadd.f32 %v4883_v0, %v4766_v25  ;;  %v4898_v56 = vadd.f32 %v4882_v27, %v4765_v16  ;;  %v14786_v0 = vld [vmem:[#allocation11_spill] sm:$0xff]  ;;  %v4767_v27 = vadd.f32 %v4751_v31, %v4618_v37  ;;  %v5415_v25 = vmul.f32 %v12660_v26, %v13076_v51 }
 0x480   : > { %6517 = vst.msk [vmem:[#allocation5 + $0x40] sm:$0xf] %vm6028_vm13, %v13125_v36  ;;  %v5918_v30 = vmax.f32 %v5904_v63, %v5905_v40  ;;  %v5031_v41 = vadd.f32 %v5015_v42, %v4897_v24  ;;  %5512 = vperm.xlu0 %9752, %v14784_v58   ;;  %v5149_v63 = vmul.f32 %v12632_v28, %v13018_v44  ;;  %v14787_v40 = vld [vmem:[#allocation102_spill] sm:$0xff]  ;;  %v14788_v44 = vld [vmem:[#allocation83_spill] sm:$0xff] }
 0x481   : > { %v5365_v7 = vpop.permute.xlu1 %5364  ;;  %v5033_v42 = vadd.f32 %v5017_v3, %v4899_v47  ;;  %v5032_v16 = vadd.f32 %v5016_v53, %v4898_v56  ;;  %v5018_v43 = vmul.f32 %v12956_v46, %v14787_v40  ;;  %v5283_v28 = vmul.f32 %v12648_v55, %v13065_v62  ;;  %v14789_v24 = vld [vmem:[#allocation43_spill] sm:$0xff] }
 0x482   : > { %v5933_v21 = vadd.f32 %v12781_v57, %v5918_v30  ;;  %5507 = vperm.xlu1 %9753, %v14786_v0   ;;  %v5164_v54 = vadd.f32 %v5148_v50, %v5031_v41  ;;  %v5282_v57 = vmul.f32 %v12648_v55, %v13069_v38  ;;  %v13174_v31 = vadd.f32 %v13095_v17, %v14788_v44  ;;  %v13183_v62 = vld [vmem:[%s10795_s22 + $0x5] ss:$0 sm:$0xff]  ;;  %v14790_v55 = vld [vmem:[#allocation54_spill] sm:$0xff] }
 0x483   : > { %v5493_v45 = vpop.permute.xlu0 %5492  ;;  %v13178_v26 = vadd.f32 %v13099_v14, %v14789_v24  ;;  %v5548_v46 = vmul.f32 %v12673_v18, %v5483_v59  ;;  %v13187_v38 = vmul.f32 %v13183_v62, %v14790_v55  ;;  %v4900_v17 = vadd.f32 %v4884_v15, %v4767_v27 }
 0x484   : > { %5942 = vst.msk [vmem:[#allocation4 + $0x71] sm:$0xff] %vm807_vm3, %v5933_v21  ;;  %v5297_v51 = vadd.f32 %v5281_v32, %v5164_v54  ;;  %6238 = vrot.lane.b32.xlu0 %v9442_v48, %s9893_s12  ;;  %v5166_v3 = vadd.f32 %v5150_v22, %v5033_v42  ;;  %v5165_v50 = vadd.f32 %v5149_v63, %v5032_v16  ;;  %v13201_v32 = vld [vmem:[%s10795_s22 + $0x6] ss:$0 sm:$0xff] }
 0x485   : > { %v5488_v23 = vpop.permute.xlu1 %5487  ;;  %v5151_v14 = vmul.f32 %v13183_v62, %v13036_v39  ;;  %v5417_v53 = vmul.f32 %v13193_v34, %v13119_v13  ;;  %v5416_v30 = vmul.f32 %v13193_v34, %v5355_v10  ;;  %v4084_v59 = vadd.f32 %v13109_v12, %v13081_v8  ;;  %v14792_v10 = vld [vmem:[#allocation61_spill] sm:$0xff]  ;;  %v14793_v12 = vld [vmem:[#allocation63_spill] sm:$0xff] }
 0x486   : > { %5517 = vperm.xlu1 %9753, %v14791_v61   ;;  %v5431_v37 = vadd.f32 %v5415_v25, %v5297_v51  ;;  %v5034_v48 = vadd.f32 %v5018_v43, %v4900_v17  ;;  %v5299_v47 = vadd.f32 %v5283_v28, %v5166_v3  ;;  %v5298_v56 = vadd.f32 %v5282_v57, %v5165_v50  ;;  %v14794_v21 = vld [vmem:[#allocation71_spill] sm:$0xff]  ;;  %v9762_v51 = vld [vmem:[%s12452_s29 + $0x78] sm:$0xff]   ;;  %v14796_v50 = vld [vmem:[#allocation80_spill] sm:$0xff] }
 0x487   : > { %v5616_v41 = vpop.permute.xlu0 %5615  ;;  %v5284_v39 = vmul.f32 %v13201_v32, %v13085_v1  ;;  %v5550_v15 = vmul.f32 %v12673_v18, %v5493_v45  ;;  %v4070_v8 = vmul.f32 %v13201_v32, %v14792_v10  ;;  %v4069_v63 = vmul.f32 %v13201_v32, %v14793_v12  ;;  %v13216_v1 = vld [vmem:[%s10795_s22 + $0x9] ss:$0 sm:$0xff]  ;;  %9554 = vmatprep.subr.bf16.mxu0 %v9762_v51 }
 0x488   : > { %v5564_v52 = vadd.f32 %v5548_v46, %v5431_v37  ;;  %v5681_v13 = vmul.f32 %v12707_v5, %v5616_v41  ;;  %6721 = vrot.lane.b32.xlu0 %v13089_v35, %s9893_s12  ;;  %v4202_v0 = vmul.f32 %v13193_v34, %v14794_v21  ;;  %v5549_v18 = vmul.f32 %v13216_v1, %v5488_v23  ;;  %v9763_v46 = vld [vmem:[%s12452_s29 + $0x38] sm:$0xff]   ;;  %v9765_v21 = vld [vmem:[%s12452_s29 + $0x30] sm:$0xff]   ;;  %v14804_v51 = vld [vmem:[#allocation44_spill] sm:$0xff] }
 0x489   : > { %v5498_v22 = vpop.permute.xlu1 %5497  ;;  %v5167_v27 = vadd.f32 %v5151_v14, %v5034_v48  ;;  %v5433_v42 = vadd.f32 %v5417_v53, %v5299_v47  ;;  %v5432_v54 = vadd.f32 %v5416_v30, %v5298_v56  ;;  %v5418_v28 = vmul.f32 %v13193_v34, %v5365_v7  ;;  %v13237_v53 = vld [vmem:[%s10795_s22 + $0xa] ss:$0 sm:$0xff]  ;;  %v14797_v47 = vld [vmem:[#allocation62_spill] sm:$0xff]  ;;  %9555 = vmatpush3.bf16.msra.mxu0 %v9763_v46 }
 0x48a   : > { %6240 = vrot.lane.b32.xlu1 %v13074_v20, %s9893_s12  ;;  %v5697_v25 = vadd.f32 %v5681_v13, %v5564_v52  ;;  %v14795_v20 = vld [vmem:[#allocation91_spill] sm:$0xff]  ;;  %v5551_v37 = vmul.f32 %v13216_v1, %v5498_v22  ;;  %v4218_v48 = vadd.f32 %v4202_v0, %v4084_v59  ;;  %v4204_v56 = vmul.f32 %v13193_v34, %v14797_v47 }
 0x48b   : > { %v6918_v16 = vld [vmem:[#allocation4 + $0x72] sm:$0xff]  ;;  %v5626_v57 = vpop.permute.xlu0 %5625  ;;  %v4335_v23 = vmul.f32 %v13216_v1, %v14795_v20  ;;  %v5300_v55 = vadd.f32 %v5284_v39, %v5167_v27  ;;  %v5566_v17 = vadd.f32 %v5550_v15, %v5433_v42  ;;  %v5565_v14 = vadd.f32 %v5549_v18, %v5432_v54  ;;  %v14798_v15 = vld [vmem:[#allocation88_spill] sm:$0xff]  ;;  %v14800_v0 = vld [vmem:[#allocation15_spill] sm:$0xff] }
 0x48c   : > { %v6662_v40 = vld [vmem:[#allocation4 + $0x70] sm:$0xff]  ;;  %v13222_v45 = vpack.c.bf16 %v6918_v16, %v6918_v16  ;;  %5714 = vst.msk [vmem:[#allocation3 + $0xe0] sm:$0xff] %vm807_vm3, %v5697_v25  ;;  %v5683_v3 = vmul.f32 %v12707_v5, %v5626_v57  ;;  %4438 = vperm.xlu0 %9752, %v14796_v50   ;;  %v4086_v5 = vadd.f32 %v4070_v8, %v13174_v31  ;;  %v14799_v27 = vld [vmem:[#allocation36_spill] sm:$0xff] }
 0x48d   : > { %v6790_v43 = vld [vmem:[#allocation4 + $0x71] sm:$0xff]  ;;  %v13224_v44 = vpack.c.bf16 %v6662_v40, %v6662_v40  ;;  %v5621_v7 = vpop.permute.xlu1 %5620  ;;  %v4085_v52 = vadd.f32 %v4069_v63, %v13178_v26  ;;  %v4203_v13 = vmul.f32 %v13193_v34, %v14798_v15  ;;  %v5434_v22 = vadd.f32 %v5418_v28, %v5300_v55  ;;  %v9766_v57 = vld [vmem:[%s12452_s29 + $0x68] sm:$0xff]  }
 0x48e   : > { %v13226_v24 = vpack.c.bf16 %v6790_v43, %v6790_v43  ;;  %v5682_v30 = vmul.f32 %v13237_v53, %v5621_v7  ;;  %6723 = vrot.lane.b32.xlu1 %v13091_v60, %s9893_s12  ;;  %6998 = vst.msk [vmem:[#allocation5 + $0x44] sm:$0xf] %vm6028_vm13, %v13222_v45  ;;  %v5699_v41 = vadd.f32 %v5683_v3, %v5566_v17  ;;  %v9764_v39 = vld [vmem:[%s12452_s29 + $0x70] sm:$0xff]   ;;  %v14801_v26 = vld [vmem:[#allocation58_spill] sm:$0xff]  ;;  %v9767_v7 = vld [vmem:[%s12452_s29 + $0x28] sm:$0xff]  }
 0x48f   : > { %6036 = vst.msk [vmem:[#allocation5 + $0x54] sm:$0xf] %vm6028_vm13, %v13224_v44  ;;  %v4419_v12 = vpop.permute.xlu0 %4418  ;;  %v4351_v18 = vadd.f32 %v4335_v23, %v4218_v48  ;;  %v4337_v31 = vmul.f32 %v13216_v1, %v14799_v27  ;;  %9556 = vmatprep.subr.bf16.mxu0 %v9764_v39  ;;  %v4071_v63 = vmul.f32 %v13201_v32, %v14801_v26  ;;  %v14802_v42 = vld [vmem:[#allocation93_spill] sm:$0xff]  ;;  %v14803_v40 = vld [vmem:[#allocation98_spill] sm:$0xff] }
 0x490   : > { %6518 = vst.msk [vmem:[#allocation5 + $0x4c] sm:$0xf] %vm6028_vm13, %v13226_v24  ;;  %v5698_v10 = vadd.f32 %v5682_v30, %v5565_v14  ;;  %v4468_v59 = vmul.f32 %v13237_v53, %v4419_v12  ;;  %4448 = vperm.xlu0 %9752, %v14800_v0   ;;  %v4336_v54 = vmul.f32 %v13216_v1, %v14802_v42  ;;  %v14805_v23 = vld [vmem:[#allocation73_spill] sm:$0xff]  ;;  %v9771_v0 = vld [vmem:[%s12452_s29 + $0x18] sm:$0xff]  }
 0x491   : > { %5716 = vst.msk [vmem:[#allocation3 + $0xf0] sm:$0xff] %vm807_vm3, %v5699_v41  ;;  %v5631_v8 = vpop.permute.xlu1 %5630  ;;  %v5567_v25 = vadd.f32 %v5551_v37, %v5434_v22  ;;  %v4220_v43 = vadd.f32 %v4204_v56, %v4086_v5  ;;  %9557 = vmatpush3.bf16.msra.mxu0 %v9765_v21  ;;  %v3954_v46 = vadd.f32 %v13187_v38, %v14804_v51  ;;  %v14806_v48 = vld [vmem:[#allocation69_spill] sm:$0xff]  ;;  %v9769_v22 = vld [vmem:[%s12452_s29 + $0x20] sm:$0xff]   ;;  %v14808_v51 = vld [vmem:[#allocation18_spill] sm:$0xff] }
 0x492   : > { %5715 = vst.msk [vmem:[#allocation3 + $0xe8] sm:$0xff] %vm807_vm3, %v5698_v10  ;;  %v5684_v16 = vmul.f32 %v13237_v53, %v5631_v8  ;;  %4443 = vperm.xlu1 %9753, %v14803_v40   ;;  %v4484_v28 = vadd.f32 %v4468_v59, %v4351_v18  ;;  %v4219_v20 = vadd.f32 %v4203_v13, %v4085_v52  ;;  %v13282_v41 = vld [vmem:[#allocation2 + $0x331] sm:$0xff]  ;;  %v13294_v21 = vld [vmem:[#allocation2 + $0x339] sm:$0xff] }
 0x493   : > { %v4205_v55 = vmul.f32 %v13193_v34, %v14805_v23  ;;  %v4429_v3 = vpop.permute.xlu0 %4428  ;;  %v4353_v50 = vadd.f32 %v4337_v31, %v4220_v43  ;;  %9558 = vmatprep.subr.bf16.mxu0 %v9766_v57  ;;  %v4087_v38 = vadd.f32 %v4071_v63, %v3954_v46  ;;  %v4338_v47 = vmul.f32 %v13216_v1, %v14806_v48  ;;  %v9770_v31 = vld [vmem:[%s12452_s29 + $0x58] sm:$0xff]  }
 0x494   : > { %v5700_v17 = vadd.f32 %v5684_v16, %v5567_v25  ;;  %4501 = vst.msk [vmem:[#allocation3 + $0x180] sm:$0xff] %vm807_vm3, %v4484_v28  ;;  %v4470_v14 = vmul.f32 %v13237_v53, %v4429_v3  ;;  %5122 = vperm.xlu0 %9752, %v14784_v58   ;;  %v4352_v5 = vadd.f32 %v4336_v54, %v4219_v20  ;;  %v9768_v58 = vld [vmem:[%s12452_s29 + $0x60] sm:$0xff]   ;;  %v14807_v54 = vld [vmem:[#allocation17_spill] sm:$0xff]  ;;  %v9774_v3 = vld [vmem:[%s12452_s29 + $0x48] sm:$0xff]  }
 0x495   : > { %v4424_v37 = vpop.permute.xlu1 %4423  ;;  %v9758_v30 = vld [vmem:[#allocation5 + $0x38] ss:$12 sps:$4 sm:$0xff]   ;;  %9559 = vmatpush3.bf16.msra.mxu0 %v9767_v7  ;;  %v4221_v52 = vadd.f32 %v4205_v55, %v4087_v38  ;;  %v9772_v16 = vld [vmem:[%s12452_s29 + $0x50] sm:$0xff]   ;;  %v13315_v20 = vld [vmem:[%s11182_s25] ss:$0 sm:$0xff] }
 0x496   : > { %5717 = vst.msk [vmem:[#allocation3 + $0xf8] sm:$0xff] %vm807_vm3, %v5700_v17  ;;  %v4469_v56 = vmul.f32 %v13237_v53, %v4424_v37  ;;  %4453 = vperm.xlu1 %9753, %v12847_v19   ;;  %v4486_v39 = vadd.f32 %v4470_v14, %v4353_v50  ;;  %9724 = vmatprep.mubr.msk.bf16.mxu1 %vm807_vm3, %v9758_v30  ;;  %v9773_v28 = vld [vmem:[%s12452_s29 + $0x10] sm:$0xff]   ;;  %v9775_v14 = vld [vmem:[%s12452_s29 + $0x8] sm:$0xff]  }
 0x497   : > { %v13286_v13 = vpop.permute.xlu0 %4569  ;;  %9560 = vmatprep.subr.bf16.mxu0 %v9768_v58  ;;  %v4354_v19 = vadd.f32 %v4338_v47, %v4221_v52  ;;  %v6786_v46 = vld [vmem:[#allocation4 + $0x31] sm:$0xff]  ;;  %v9776_v47 = vld [vmem:[%s12452_s29 + $0x40] sm:$0xff]  }
 0x498   : > { %v4485_v15 = vadd.f32 %v4469_v56, %v4352_v5  ;;  %4503 = vst.msk [vmem:[#allocation3 + $0x190] sm:$0xff] %vm807_vm3, %v4486_v39  ;;  %5132 = vperm.xlu0 %9752, %v13282_v41   ;;  %v13324_v50 = vpack.c.bf16 %v6786_v46, %v6786_v46  ;;  %v14809_v5 = vld [vmem:[#allocation103_spill] sm:$0xff]  ;;  %v5324_v46 = vld [vmem:[#allocation2 + $0x348] sm:$0xff] }
 0x499   : > { %v4434_v10 = vpop.permute.xlu1 %4433  ;;  %v5849_v18 = vld [vmem:[#allocation3 + $0xe0] ss:$2 sm:$0xff]  ;;  %v5881_v27 = vld [vmem:[#allocation3 + $0xe1] ss:$2 sm:$0xff]  ;;  %9561 = vmatpush3.bf16.msra.mxu0 %v9769_v22 }
 0x49a   : > { %4502 = vst.msk [vmem:[#allocation3 + $0x188] sm:$0xff] %vm807_vm3, %v4485_v15  ;;  %v4471_v12 = vmul.f32 %v13237_v53, %v4434_v10  ;;  %5127 = vperm.xlu1 %9753, %v14791_v61   ;;  %9562 = vmatprep.subr.bf16.mxu0 %v9770_v31  ;;  %v5906_v61 = vmax.f32 %v5849_v18, %v5881_v27  ;;  %v9777_v58 = vld [vmem:[%s12452_s29] sm:$0xff]   ;;  %v13352_v31 = vld [vmem:[#allocation2 + $0x332] sm:$0xff]  ;;  %s460_s29 = scalar_lea.vmem %s14188_s9, %s9049_s26 }
 0x49b   : > { %v13297_v8 = vpop.permute.xlu0 %4579 }
 0x49c   : > { %v4487_v59 = vadd.f32 %v4471_v12, %v4354_v19  ;;  %6367 = vrot.lane.b32.xlu0 %v14807_v54, %s9894_s13 }
 0x49d   : > { %v5851_v26 = vld [vmem:[#allocation3 + $0xf0] ss:$2 sm:$0xff]  ;;  %v5883_v63 = vld [vmem:[#allocation3 + $0xf1] ss:$2 sm:$0xff]  ;;  %v13300_v42 = vpop.permute.xlu1 %4574  ;;  %9563 = vmatpush3.bf16.msra.mxu0 %v9771_v0 }
 0x49e   : > { %v5907_v25 = vmax.f32 %v5851_v26, %v5883_v63  ;;  %4504 = vst.msk [vmem:[#allocation3 + $0x198] sm:$0xff] %vm807_vm3, %v4487_v59  ;;  %5137 = vperm.xlu1 %9753, %v13294_v21   ;;  %9564 = vmatprep.subr.bf16.mxu0 %v9772_v16  ;;  %v13364_v0 = vld [vmem:[#allocation2 + $0x33a] sm:$0xff] }
 0x49f   : > { %v13307_v43 = vpop.permute.xlu0 %4702 }
 0x4a0   : > { %v5919_v40 = vmax.f32 %v5906_v61, %v5907_v25  ;;  %6849 = vrot.lane.b32.xlu0 %v14808_v51, %s9894_s13 }
 0x4a1   : > { %v13310_v57 = vpop.permute.xlu1 %4584  ;;  %v5853_v55 = vld [vmem:[#allocation3 + $0x180] ss:$2 sm:$0xff]  ;;  %v5885_v17 = vld [vmem:[#allocation3 + $0x181] ss:$2 sm:$0xff]  ;;  %9565 = vmatpush3.bf16.msra.mxu0 %v9773_v28 }
 0x4a2   : > { %v5934_v23 = vadd.f32 %v13315_v20, %v5919_v40  ;;  %6369 = vrot.lane.b32.xlu1 %v13089_v35, %s9894_s13  ;;  %9566 = vmatprep.subr.bf16.mxu0 %v9774_v3  ;;  %v5908_v35 = vmax.f32 %v5853_v55, %v5885_v17  ;;  %v5325_v55 = vld [vmem:[#allocation2 + $0x350] sm:$0xff] }
 0x4a3   : > { %v13322_v7 = vpop.permute.xlu0 %4712 }
 0x4a4   : > { %5943 = vst.msk [vmem:[#allocation4 + $0x81] sm:$0xff] %vm807_vm3, %v5934_v23  ;;  %5635 = vperm.xlu0 %9752, %v14809_v5  }
 0x4a5   : > { %v5855_v37 = vld [vmem:[#allocation3 + $0x190] ss:$2 sm:$0xff]  ;;  %v5887_v30 = vld [vmem:[#allocation3 + $0x191] ss:$2 sm:$0xff]  ;;  %v13327_v38 = vpop.permute.xlu1 %4707  ;;  %9567 = vmatpush3.bf16.msra.mxu0 %v9775_v14 }
 0x4a6   : > { %v5909_v48 = vmax.f32 %v5855_v37, %v5887_v30  ;;  %6851 = vrot.lane.b32.xlu1 %v13324_v50, %s9894_s13  ;;  %9568 = vmatprep.subr.bf16.mxu0 %v9776_v47  ;;  %v5457_v37 = vld [vmem:[#allocation2 + $0x349] sm:$0xff] }
 0x4a7   : > { %v13333_v39 = vpop.permute.xlu0 %4835 }
 0x4a8   : > { %v5920_v56 = vmax.f32 %v5908_v35, %v5909_v48  ;;  %5645 = vperm.xlu0 %9752, %v12982_v29   ;;  %v6530_v48 = vld [vmem:[#allocation4 + $0x32] sm:$0xff] }
 0x4a9   : > { %v13336_v52 = vpop.permute.xlu1 %4717  ;;  %9569 = vmatpush3.bf16.msra.mxu0 %v9777_v58 }
 0x4aa   : > { %v5935_v15 = vadd.f32 %v13315_v20, %v5920_v56  ;;  %5640 = vperm.xlu1 %9753, %v12959_v9  }
 0x4ab   : > { %v6919_v22 = vld [vmem:[#allocation4 + $0x82] sm:$0xff]  ;;  %v13342_v19 = vpop.permute.xlu0 %4845 }
 0x4ac   : > { %v6791_v10 = vld [vmem:[#allocation4 + $0x81] sm:$0xff]  ;;  %5944 = vst.msk [vmem:[#allocation4 + $0xf1] sm:$0xff] %vm807_vm3, %v5935_v15  ;;  %v13344_v12 = vpack.c.bf16 %v6919_v22, %v6919_v22  ;;  %5255 = vperm.xlu0 %9752, %v12982_v29  }
 0x4ad   : > { %v13346_v18 = vpack.c.bf16 %v6791_v10, %v6791_v10  ;;  %v13348_v27 = vpop.permute.xlu1 %4840  ;;  %v6531_v15 = vld [vmem:[#allocation4 + $0x42] sm:$0xff] }
 0x4ae   : > { %5650 = vperm.xlu1 %9753, %v13006_v11   ;;  %6999 = vst.msk [vmem:[#allocation5 + $0x50] sm:$0xf] %vm6028_vm13, %v13344_v12  ;;  %v9493_v22 = vpack.c.bf16 %v6531_v15, %v6531_v15  ;;  %v6659_v10 = vld [vmem:[#allocation4 + $0x40] sm:$0xff] }
 0x4af   : > { %6519 = vst.msk [vmem:[#allocation5 + $0x58] sm:$0xf] %vm6028_vm13, %v13346_v18  ;;  %v13358_v9 = vpop.permute.xlu0 %4969 }
 0x4b0   : > { %5265 = vperm.xlu0 %9752, %v13352_v31  }
 0x4b1   : > { %v13360_v59 = vpop.permute.xlu1 %4850 }
 0x4b2   : > { %5260 = vperm.xlu1 %9753, %v13006_v11   ;;  %v9760_v11 = vld [vmem:[#allocation5 + $0x68] ss:$12 sps:$4 sm:$0xff]  }
 0x4b3   : > { %v6924_v29 = vld [vmem:[#allocation4 + $0xf2] sm:$0xff]  ;;  %v13366_v54 = vpop.permute.xlu0 %4979 }
 0x4b4   : > { %v6668_v26 = vld [vmem:[#allocation4 + $0xf0] sm:$0xff]  ;;  %v9549_v61 = vpack.c.bf16 %v6924_v29, %v6924_v29  ;;  %5389 = vperm.xlu0 %9752, %v13051_v49  }
 0x4b5   : > { %v6796_v63 = vld [vmem:[#allocation4 + $0xf1] sm:$0xff]  ;;  %v13368_v25 = vpack.c.bf16 %v6668_v26, %v6668_v26  ;;  %v13372_v40 = vpop.permute.xlu1 %4974 }
 0x4b6   : > { %v13370_v16 = vpack.c.bf16 %v6796_v63, %v6796_v63  ;;  %v9759_v28 = vld [vmem:[#allocation5 + $0x50] ss:$12 sps:$4 sm:$0xff]   ;;  %5270 = vperm.xlu1 %9753, %v13364_v0   ;;  %7004 = vst.msk [vmem:[#allocation5 + $0x8c] sm:$0xf] %vm6028_vm13, %v9549_v61 }
 0x4b7   : > { %14810 = vst [vmem:[#allocation27_spill] sm:$0xff] %v13368_v25  ;;  %6042 = vst.msk [vmem:[#allocation5 + $0x9c] sm:$0xf] %vm6028_vm13, %v13368_v25  ;;  %9725 = vmatmul.mubr.msk.bf16.gmra.mxu1 %vm807_vm3, %v9759_v28  ;;  %v13382_v23 = vpop.permute.xlu0 %5102  ;;  %v6660_v61 = vld [vmem:[#allocation4 + $0x50] sm:$0xff] }
 0x4b8   : > { %14811 = vst [vmem:[#allocation28_spill] sm:$0xff] %v13370_v16  ;;  %6524 = vst.msk [vmem:[#allocation5 + $0x94] sm:$0xf] %vm6028_vm13, %v13370_v16  ;;  %9728 = vmatprep.mubr.msk.bf16.mxu1 %vm807_vm3, %v9760_v11  ;;  %5399 = vperm.xlu0 %9752, %v5324_v46   ;;  %v9509_v28 = vpack.c.bf16 %v6660_v61, %v6660_v61  ;;  %v14845_v25 = vld [vmem:[#allocation33_spill] sm:$0xff] }
 0x4b9   : > { %v13385_v49 = vpop.permute.xlu1 %4984 }
 0x4ba   : > { %5394 = vperm.xlu1 %9753, %v13062_v2   ;;  %v5458_v2 = vld [vmem:[#allocation2 + $0x351] sm:$0xff] }
 0x4bb   : > { %v13388_v17 = vpop.permute.xlu0 %5112 }
 0x4bc   : > { %5522 = vperm.xlu0 %9752, %v13282_v41   ;;  %v9492_v41 = vpack.c.bf16 %v6530_v48, %v6530_v48 }
 0x4bd   : > { %v13390_v3 = vpop.permute.xlu1 %5107  ;;  %v9761_v14 = vld [vmem:[#allocation5 + $0x80] ss:$12 sps:$4 sm:$0xff]  }
 0x4be   : > { %5404 = vperm.xlu1 %9753, %v5325_v55  }
 0x4bf   : > { %9729 = vmatmul.mubr.msk.bf16.gmra.mxu1 %vm807_vm3, %v9761_v14  ;;  %v13394_v30 = vpop.permute.xlu0 %4589  ;;  %v5591_v14 = vld [vmem:[#allocation2 + $0x352] sm:$0xff] }
 0x4c0   : > { %14812 = vst [vmem:[#allocation29_spill] sm:$0xff] %v13394_v30  ;;  %5532 = vperm.xlu0 %9752, %v5457_v37  }
 0x4c1   : > { %v13396_v5 = vpop.permute.xlu1 %5117 }
 0x4c2   : > { %5527 = vperm.xlu1 %9753, %v13294_v21  }
 0x4c3   : > { %v13399_v35 = vpop.permute.xlu0 %4599 }
 0x4c4   : > { %14813 = vst [vmem:[#allocation84_spill] sm:$0xff] %v13399_v35  ;;  %6113 = vrot.lane.b32.xlu0 %v14808_v51, %s9892_s11  ;;  %v9508_v51 = vpack.c.bf16 %v6659_v10, %v6659_v10  ;;  %v6663_v35 = vld [vmem:[#allocation4 + $0x80] sm:$0xff] }
 0x4c5   : > { %v13401_v47 = vpop.permute.xlu1 %4594 }
 0x4c6   : > { %14814 = vst [vmem:[#allocation59_spill] sm:$0xff] %v13401_v47  ;;  %5537 = vperm.xlu1 %9753, %v5458_v2  }
 0x4c7   : > { %v13405_v56 = vpop.permute.xlu0 %4722 }
 0x4c8   : > { %14815 = vst [vmem:[#allocation85_spill] sm:$0xff] %v13405_v56  ;;  %6596 = vrot.lane.b32.xlu0 %v9492_v41, %s9892_s11  ;;  %v14844_v56 = vld [vmem:[#allocation20_spill] sm:$0xff] }
 0x4c9   : > { %v13407_v58 = vpop.permute.xlu1 %4604 }
 0x4ca   : > { %14816 = vst [vmem:[#allocation86_spill] sm:$0xff] %v13407_v58  ;;  %6115 = vrot.lane.b32.xlu1 %v13324_v50, %s9892_s11  ;;  %v6928_v58 = vld [vmem:[#allocation4 + $0x132] sm:$0xff] }
 0x4cb   : > { %v13412_v21 = vpop.permute.xlu0 %4732 }
 0x4cc   : > { %14817 = vst [vmem:[#allocation75_spill] sm:$0xff] %v13412_v21  ;;  %6242 = vrot.lane.b32.xlu0 %v13078_v33, %s9893_s12  ;;  %v5590_v33 = vld [vmem:[#allocation2 + $0x34a] sm:$0xff] }
 0x4cd   : > { %v13414_v29 = vpop.permute.xlu1 %4727  ;;  %v14839_v21 = vld [vmem:[#allocation9_spill] sm:$0xff] }
 0x4ce   : > { %14818 = vst [vmem:[#allocation81_spill] sm:$0xff] %v13414_v29  ;;  %6598 = vrot.lane.b32.xlu1 %v9493_v22, %s9892_s11  ;;  %v14838_v29 = vld [vmem:[#allocation82_spill] sm:$0xff] }
 0x4cf   : > { %v13419_v26 = vpop.permute.xlu0 %5235 }
 0x4d0   : > { %6725 = vrot.lane.b32.xlu0 %v9508_v51, %s9893_s12 }
 0x4d1   : > { %v13421_v63 = vpop.permute.xlu1 %4737 }
 0x4d2   : > { %14819 = vst [vmem:[#allocation48_spill] sm:$0xff] %v13421_v63  ;;  %6244 = vrot.lane.b32.xlu1 %v9492_v41, %s9893_s12  ;;  %v14824_v41 = vld [vmem:[#allocation31_spill] sm:$0xff] }
 0x4d3   : > { %v13425_v50 = vpop.permute.xlu0 %5245 }
 0x4d4   : > { %5655 = vperm.xlu0 %9752, %v13352_v31  }
 0x4d5   : > { %v13427_v11 = vpop.permute.xlu1 %5240 }
 0x4d6   : > { %6727 = vrot.lane.b32.xlu1 %v9509_v28, %s9893_s12 }
 0x4d7   : > { %v13431_v46 = vpop.permute.xlu0 %4855 }
 0x4d8   : > { %14820 = vst [vmem:[#allocation50_spill] sm:$0xff] %v13431_v46  ;;  %5665 = vperm.xlu0 %9752, %v5590_v33   ;;  %v14843_v46 = vld [vmem:[#allocation46_spill] sm:$0xff] }
 0x4d9   : > { %v13433_v55 = vpop.permute.xlu1 %5250 }
 0x4da   : > { %5660 = vperm.xlu1 %9753, %v13364_v0   ;;  %v6532_v0 = vld [vmem:[#allocation4 + $0x52] sm:$0xff] }
 0x4db   : > { %v13436_v37 = vpop.permute.xlu0 %4865  ;;  %v9494_v61 = vpack.c.bf16 %v6532_v0, %v6532_v0 }
 0x4dc   : > { %14821 = vst [vmem:[#allocation57_spill] sm:$0xff] %v13436_v37  ;;  %6371 = vrot.lane.b32.xlu0 %v13091_v60, %s9894_s13  ;;  %v14825_v60 = vld [vmem:[#allocation94_spill] sm:$0xff]  ;;  %v14837_v37 = vld [vmem:[#allocation56_spill] sm:$0xff] }
 0x4dd   : > { %v13438_v2 = vpop.permute.xlu1 %4860 }
 0x4de   : > { %14822 = vst [vmem:[#allocation40_spill] sm:$0xff] %v13438_v2  ;;  %5670 = vperm.xlu1 %9753, %v5591_v14  }
 0x4df   : > { %v13442_v31 = vpop.permute.xlu0 %5369 }
 0x4e0   : > { %6853 = vrot.lane.b32.xlu0 %v14824_v41, %s9894_s13 }
 0x4e1   : > { %v13444_v48 = vpop.permute.xlu1 %4870 }
 0x4e2   : > { %14823 = vst [vmem:[#allocation79_spill] sm:$0xff] %v13444_v48  ;;  %6373 = vrot.lane.b32.xlu1 %v9508_v51, %s9894_s13 }
 0x4e3   : > { %v13449_v15 = vpop.permute.xlu0 %5379 }
 0x4e4   : > { %6117 = vrot.lane.b32.xlu0 %v14824_v41, %s9892_s11 }
 0x4e5   : > { %v13451_v10 = vpop.permute.xlu1 %5374 }
 0x4e6   : > { %6855 = vrot.lane.b32.xlu1 %v14825_v60, %s9894_s13 }
 0x4e7   : > { %v13457_v33 = vpop.permute.xlu0 %4989 }
 0x4e8   : > { %14826 = vst [vmem:[#allocation70_spill] sm:$0xff] %v13457_v33  ;;  %6600 = vrot.lane.b32.xlu0 %v9494_v61, %s9892_s11  ;;  %v4074_v33 = vmul.f32 %v13201_v32, %v14838_v29 }
 0x4e9   : > { %v13459_v14 = vpop.permute.xlu1 %5384 }
 0x4ea   : > { %14827 = vst [vmem:[#allocation42_spill] sm:$0xff] %v13459_v14  ;;  %6119 = vrot.lane.b32.xlu1 %v14825_v60, %s9892_s11 }
 0x4eb   : > { %v13464_v51 = vpop.permute.xlu0 %4999 }
 0x4ec   : > { %14828 = vst [vmem:[#allocation25_spill] sm:$0xff] %v13464_v51  ;;  %6246 = vrot.lane.b32.xlu0 %v9493_v22, %s9893_s12  ;;  %v9553_v22 = vpack.c.bf16 %v6928_v58, %v6928_v58  ;;  %v14835_v51 = vld [vmem:[#allocation55_spill] sm:$0xff] }
 0x4ed   : > { %v13466_v48 = vpop.permute.xlu1 %4994  ;;  %v3941_v2 = vmul.f32 %v13183_v62, %v14835_v51  ;;  %v14840_v51 = vld [vmem:[#allocation67_spill] sm:$0xff] }
 0x4ee   : > { %14829 = vst [vmem:[#allocation95_spill] sm:$0xff] %v13466_v48  ;;  %6602 = vrot.lane.b32.xlu1 %v13121_v4, %s9892_s11  ;;  %7008 = vst.msk [vmem:[#allocation5 + $0xbc] sm:$0xf] %vm6028_vm13, %v9553_v22  ;;  %v14832_v22 = vld [vmem:[#allocation64_spill] sm:$0xff] }
 0x4ef   : > { %v6110_v41 = vpop.permute.xlu0 %6109 }
 0x4f0   : > { %6158 = vst.msk [vmem:[#allocation5] sm:$0xf] %vm6157_vm0, %v6110_v41  ;;  %6729 = vrot.lane.b32.xlu0 %v13123_v6, %s9893_s12 }
 0x4f1   : > { %v13472_v0 = vpop.permute.xlu1 %5004 }
 0x4f2   : > { %14830 = vst [vmem:[#allocation49_spill] sm:$0xff] %v13472_v0  ;;  %6248 = vrot.lane.b32.xlu1 %v9494_v61, %s9893_s12 }
 0x4f3   : > { %v6593_v60 = vpop.permute.xlu0 %6592 }
 0x4f4   : > { %6640 = vst.msk [vmem:[#allocation5 + $0x4] sm:$0xf] %vm6157_vm0, %v6593_v60  ;;  %6375 = vrot.lane.b32.xlu0 %v9509_v28, %s9894_s13 }
 0x4f5   : > { %v6112_v48 = vpop.permute.xlu1 %6111 }
 0x4f6   : > { %6159 = vst.msk [vmem:[#allocation5 + $0xc] sm:$0xf] %vm6157_vm0, %v6112_v48  ;;  %6731 = vrot.lane.b32.xlu1 %v13224_v44, %s9893_s12  ;;  %v14831_v48 = vld [vmem:[#allocation53_spill] sm:$0xff] }
 0x4f7   : > { %v13483_v41 = vpop.permute.xlu0 %5502  ;;  %v3939_v61 = vmul.f32 %v13183_v62, %v14831_v48  ;;  %v14836_v48 = vld [vmem:[#allocation72_spill] sm:$0xff] }
 0x4f8   : > { %6857 = vrot.lane.b32.xlu0 %v13125_v36, %s9894_s13  ;;  %v4206_v47 = vmul.f32 %v13193_v34, %v14836_v48  ;;  %v9512_v48 = vpack.c.bf16 %v6663_v35, %v6663_v35 }
 0x4f9   : > { %v6595_v0 = vpop.permute.xlu1 %6594 }
 0x4fa   : > { %6641 = vst.msk [vmem:[#allocation5 + $0x10] sm:$0xf] %vm6157_vm0, %v6595_v0  ;;  %6377 = vrot.lane.b32.xlu1 %v13123_v6, %s9894_s13  ;;  %v4072_v0 = vmul.f32 %v13201_v32, %v14832_v22  ;;  %v3940_v22 = vmul.f32 %v13183_v62, %v14837_v37 }
 0x4fb   : > { %v13490_v28 = vpop.permute.xlu0 %5512 }
 0x4fc   : > { %6121 = vrot.lane.b32.xlu0 %v13125_v36, %s9892_s11  ;;  %v14834_v36 = vld [vmem:[#allocation26_spill] sm:$0xff]  ;;  %v3956_v30 = vadd.f32 %v3940_v22, %v14843_v46  ;;  %v14848_v22 = vld [vmem:[#allocation76_spill] sm:$0xff] }
 0x4fd   : > { %v13492_v58 = vpop.permute.xlu1 %5507  ;;  %v3955_v63 = vadd.f32 %v3939_v61, %v14834_v36  ;;  %v4073_v36 = vmul.f32 %v13201_v32, %v14840_v51  ;;  %v4207_v51 = vmul.f32 %v13193_v34, %v14845_v25 }
 0x4fe   : > { %6859 = vrot.lane.b32.xlu1 %v13226_v24, %s9894_s13 }
 0x4ff   : > { %v6239_v60 = vpop.permute.xlu0 %6238  ;;  %v4088_v16 = vadd.f32 %v4072_v0, %v3955_v63  ;;  %v14841_v63 = vld [vmem:[#allocation45_spill] sm:$0xff]  ;;  %v14842_v0 = vld [vmem:[#allocation87_spill] sm:$0xff]  ;;  %v4089_v35 = vadd.f32 %v4073_v36, %v3956_v30 }
 0x500   : > { %6287 = vst.msk [vmem:[#allocation5] sm:$0xf] %vm6286_vm7, %v6239_v60  ;;  %6604 = vrot.lane.b32.xlu0 %v13222_v45, %s9892_s11  ;;  %v3957_v37 = vadd.f32 %v3941_v2, %v14841_v63  ;;  %v14847_v63 = vld [vmem:[#allocation68_spill] sm:$0xff] }
 0x501   : > { %v13503_v6 = vpop.permute.xlu1 %5517  ;;  %v4222_v29 = vadd.f32 %v4206_v47, %v4088_v16  ;;  %v4075_v46 = vmul.f32 %v13201_v32, %v14847_v63 }
 0x502   : > { %14833 = vst [vmem:[#allocation41_spill] sm:$0xff] %v13503_v6  ;;  %6123 = vrot.lane.b32.xlu1 %v13226_v24, %s9892_s11  ;;  %v4339_v24 = vmul.f32 %v13216_v1, %v14839_v21  ;;  %v4208_v21 = vmul.f32 %v13193_v34, %v14842_v0  ;;  %v4090_v6 = vadd.f32 %v4074_v33, %v3957_v37  ;;  %v14849_v37 = vld [vmem:[#allocation47_spill] sm:$0xff] }
 0x503   : > { %v6722_v60 = vpop.permute.xlu0 %6721  ;;  %v4223_v0 = vadd.f32 %v4207_v51, %v4089_v35  ;;  %v5956_v51 = vld [vmem:[#allocation4 + $0xa0] sm:$0xff] }
 0x504   : > { %6769 = vst.msk [vmem:[#allocation5 + $0x4] sm:$0xf] %vm6286_vm7, %v6722_v60  ;;  %6250 = vrot.lane.b32.xlu0 %v13121_v4, %s9893_s12  ;;  %v6664_v60 = vld [vmem:[#allocation4 + $0x90] sm:$0xff]  ;;  %v3942_v4 = vmul.f32 %v13183_v62, %v14844_v56  ;;  %v4355_v14 = vadd.f32 %v4339_v24, %v4222_v29  ;;  %v4340_v56 = vmul.f32 %v13216_v1, %v14848_v22 }
 0x505   : > { %v6241_v61 = vpop.permute.xlu1 %6240  ;;  %v9513_v25 = vpack.c.bf16 %v6664_v60, %v6664_v60  ;;  %v4224_v33 = vadd.f32 %v4208_v21, %v4090_v6  ;;  %v9418_v35 = vpack.c.bf16 %v5956_v51, %v5956_v51 }
 0x506   : > { %6288 = vst.msk [vmem:[#allocation5 + $0xc] sm:$0xf] %vm6286_vm7, %v6241_v61  ;;  %6606 = vrot.lane.b32.xlu1 %v13344_v12, %s9892_s11  ;;  %v14846_v12 = vld [vmem:[#allocation92_spill] sm:$0xff]  ;;  %v3958_v29 = vadd.f32 %v3942_v4, %v14849_v37  ;;  %v4356_v6 = vadd.f32 %v4340_v56, %v4223_v0 }
 0x507   : > { %v4439_v61 = vpop.permute.xlu0 %4438  ;;  %v4341_v2 = vmul.f32 %v13216_v1, %v14846_v12  ;;  %v6053_v4 = vld [vmem:[#allocation4 + $0xa1] sm:$0xff]  ;;  %6037 = vst.msk [vmem:[#allocation5 + $0x60] sm:$0xf] %vm6028_vm13, %v9418_v35 }
 0x508   : > { %v4472_v16 = vmul.f32 %v13237_v53, %v4439_v61  ;;  %6733 = vrot.lane.b32.xlu0 %v9512_v48, %s9893_s12  ;;  %v14850_v61 = vld [vmem:[#allocation65_spill] sm:$0xff] }
 0x509   : > { %v6724_v47 = vpop.permute.xlu1 %6723  ;;  %v4209_v30 = vmul.f32 %v13193_v34, %v14850_v61  ;;  %v4357_v12 = vadd.f32 %v4341_v2, %v4224_v33  ;;  %v13573_v61 = vld [vmem:[%s10795_s22] ss:$0 sm:$0xff] }
 0x50a   : > { %6770 = vst.msk [vmem:[#allocation5 + $0x10] sm:$0xf] %vm6286_vm7, %v6724_v47  ;;  %6252 = vrot.lane.b32.xlu1 %v13222_v45, %s9893_s12  ;;  %v4488_v24 = vadd.f32 %v4472_v16, %v4355_v14  ;;  %v4091_v45 = vadd.f32 %v4075_v46, %v3958_v29  ;;  %v14851_v14 = vld [vmem:[#allocation30_spill] sm:$0xff] }
 0x50b   : > { %v4449_v36 = vpop.permute.xlu0 %4448  ;;  %v4342_v21 = vmul.f32 %v13216_v1, %v14851_v14  ;;  %v6792_v16 = vld [vmem:[#allocation4 + $0x91] sm:$0xff] }
 0x50c   : > { %4505 = vst.msk [vmem:[#allocation3 + $0x1a0] sm:$0xff] %vm807_vm3, %v4488_v24  ;;  %v4474_v63 = vmul.f32 %v13237_v53, %v4449_v36  ;;  %6379 = vrot.lane.b32.xlu0 %v13224_v44, %s9894_s13  ;;  %v4225_v22 = vadd.f32 %v4209_v30, %v4091_v45  ;;  %v13561_v44 = vld [vmem:[%s10795_s22 + $0x1] ss:$0 sm:$0xff]  ;;  %v9529_v0 = vpack.c.bf16 %v6792_v16, %v6792_v16  ;;  %v13578_v30 = vld [vmem:[%s10795_s22 + $0x2] ss:$0 sm:$0xff] }
 0x50d   : > { %v4444_v47 = vpop.permute.xlu1 %4443  ;;  %v4752_v46 = vmul.f32 %v13561_v44, %v13307_v43  ;;  %v4619_v43 = vmul.f32 %v13573_v61, %v13286_v13  ;;  %v4754_v36 = vmul.f32 %v13561_v44, %v13322_v7  ;;  %v4621_v13 = vmul.f32 %v13573_v61, %v13297_v8 }
 0x50e   : > { %v4473_v60 = vmul.f32 %v13237_v53, %v4444_v47  ;;  %6735 = vrot.lane.b32.xlu1 %v9513_v25, %s9893_s12  ;;  %v4490_v2 = vadd.f32 %v4474_v63, %v4357_v12  ;;  %v9434_v25 = vpack.c.bf16 %v6053_v4, %v6053_v4  ;;  %v4358_v37 = vadd.f32 %v4342_v21, %v4225_v22  ;;  %v6536_v47 = vld [vmem:[#allocation4 + $0xb2] sm:$0xff] }
 0x50f   : > { %v13558_v24 = vpop.permute.xlu0 %5122  ;;  %v4768_v45 = vadd.f32 %v4752_v46, %v4619_v43  ;;  %v4753_v7 = vmul.f32 %v13561_v44, %v13327_v38  ;;  %v4887_v21 = vmul.f32 %v13578_v30, %v13342_v19  ;;  %v5152_v8 = vmul.f32 %v13183_v62, %v13382_v23 }
 0x510   : > { %v4489_v33 = vadd.f32 %v4473_v60, %v4356_v6  ;;  %4507 = vst.msk [vmem:[#allocation3 + $0x1b0] sm:$0xff] %vm807_vm3, %v4490_v2  ;;  %6861 = vrot.lane.b32.xlu0 %v13346_v18, %s9894_s13  ;;  %v4885_v18 = vmul.f32 %v13578_v30, %v13333_v39  ;;  %v4755_v39 = vmul.f32 %v13561_v44, %v13336_v52 }
 0x511   : > { %v4454_v56 = vpop.permute.xlu1 %4453  ;;  %v4620_v60 = vmul.f32 %v13573_v61, %v13300_v42  ;;  %v9498_v51 = vpack.c.bf16 %v6536_v47, %v6536_v47  ;;  %v4622_v38 = vmul.f32 %v13573_v61, %v13310_v57  ;;  %v4770_v52 = vadd.f32 %v4754_v36, %v4621_v13 }
 0x512   : > { %4506 = vst.msk [vmem:[#allocation3 + $0x1a8] sm:$0xff] %vm807_vm3, %v4489_v33  ;;  %v4475_v29 = vmul.f32 %v13237_v53, %v4454_v56  ;;  %6381 = vrot.lane.b32.xlu1 %v9512_v48, %s9894_s13  ;;  %v13587_v48 = vld [vmem:[%s10795_s22 + $0x4] ss:$0 sm:$0xff]  ;;  %v4901_v4 = vadd.f32 %v4885_v18, %v4768_v45  ;;  %v4886_v19 = vmul.f32 %v13578_v30, %v13348_v27 }
 0x513   : > { %v13584_v63 = vpop.permute.xlu0 %5132  ;;  %v5019_v6 = vmul.f32 %v13587_v48, %v13358_v9  ;;  %v6182_v9 = vld [vmem:[#allocation4 + $0xa2] sm:$0xff]  ;;  %v4888_v2 = vmul.f32 %v13578_v30, %v13360_v59  ;;  %v5021_v42 = vmul.f32 %v13587_v48, %v13366_v54  ;;  %v5285_v22 = vmul.f32 %v13201_v32, %v13419_v26 }
 0x514   : > { %v4491_v12 = vadd.f32 %v4475_v29, %v4358_v37  ;;  %6125 = vrot.lane.b32.xlu0 %v9434_v25, %s9892_s11  ;;  %v9450_v57 = vpack.c.bf16 %v6182_v9, %v6182_v9  ;;  %v4769_v33 = vadd.f32 %v4753_v7, %v4620_v60  ;;  %v4771_v27 = vadd.f32 %v4755_v39, %v4622_v38  ;;  %v14852_v56 = vld [vmem:[#allocation19_spill] sm:$0xff] }
 0x515   : > { %v13591_v14 = vpop.permute.xlu1 %5127  ;;  %v5035_v35 = vadd.f32 %v5019_v6, %v4901_v4  ;;  %v4903_v46 = vadd.f32 %v4887_v21, %v4770_v52  ;;  %v5020_v59 = vmul.f32 %v13587_v48, %v13372_v40  ;;  %v5022_v26 = vmul.f32 %v13587_v48, %v13385_v49 }
 0x516   : > { %4508 = vst.msk [vmem:[#allocation3 + $0x1b8] sm:$0xff] %vm807_vm3, %v4491_v12  ;;  %6863 = vrot.lane.b32.xlu1 %v9529_v0, %s9894_s13  ;;  %v5154_v25 = vmul.f32 %v13183_v62, %v13388_v17  ;;  %v5419_v37 = vmul.f32 %v13193_v34, %v13442_v31  ;;  %v4902_v43 = vadd.f32 %v4886_v19, %v4769_v33 }
 0x517   : > { %v6368_v16 = vpop.permute.xlu0 %6367  ;;  %v5168_v54 = vadd.f32 %v5152_v8, %v5035_v35  ;;  %v4904_v18 = vadd.f32 %v4888_v2, %v4771_v27  ;;  %v5153_v40 = vmul.f32 %v13183_v62, %v13390_v3  ;;  %v5037_v12 = vadd.f32 %v5021_v42, %v4903_v46  ;;  %v14855_v46 = vld [vmem:[#allocation42_spill] sm:$0xff] }
 0x518   : > { %6416 = vst.msk [vmem:[#allocation5] sm:$0xf] %vm6415_vm9, %v6368_v16  ;;  %6608 = vrot.lane.b32.xlu0 %v9498_v51, %s9892_s11  ;;  %v5287_v45 = vmul.f32 %v13201_v32, %v13425_v50  ;;  %v5552_v49 = vmul.f32 %v13216_v1, %v13483_v41  ;;  %v5036_v13 = vadd.f32 %v5020_v59, %v4902_v43  ;;  %v14853_v50 = vld [vmem:[#allocation22_spill] sm:$0xff] }
 0x519   : > { %v13619_v23 = vpop.permute.xlu1 %5137  ;;  %v5857_v29 = vld [vmem:[#allocation3 + $0x1a0] ss:$2 sm:$0xff]  ;;  %v5889_v0 = vld [vmem:[#allocation3 + $0x1a1] ss:$2 sm:$0xff]  ;;  %v5301_v47 = vadd.f32 %v5285_v22, %v5168_v54  ;;  %v5286_v3 = vmul.f32 %v13201_v32, %v13427_v11  ;;  %v5038_v21 = vadd.f32 %v5022_v26, %v4904_v18  ;;  %v5170_v41 = vadd.f32 %v5154_v25, %v5037_v12  ;;  %v14857_v25 = vld [vmem:[#allocation41_spill] sm:$0xff] }
 0x51a   : > { %6127 = vrot.lane.b32.xlu1 %v14852_v56, %s9892_s11  ;;  %v5910_v7 = vmax.f32 %v5857_v29, %v5889_v0  ;;  %v5421_v60 = vmul.f32 %v13193_v34, %v13449_v15  ;;  %v5169_v4 = vadd.f32 %v5153_v40, %v5036_v13  ;;  %v5155_v8 = vmul.f32 %v13183_v62, %v13396_v5  ;;  %v14854_v22 = vld [vmem:[#allocation23_spill] sm:$0xff]  ;;  %v14859_v12 = vld [vmem:[#allocation24_spill] sm:$0xff] }
 0x51b   : > { %v6850_v36 = vpop.permute.xlu0 %6849  ;;  %v5435_v9 = vadd.f32 %v5419_v37, %v5301_v47  ;;  %v5420_v11 = vmul.f32 %v13193_v34, %v13451_v10  ;;  %v5303_v19 = vadd.f32 %v5287_v45, %v5170_v41  ;;  %v5554_v16 = vmul.f32 %v13216_v1, %v13490_v28 }
 0x51c   : > { %6897 = vst.msk [vmem:[#allocation5 + $0x4] sm:$0xf] %vm6415_vm9, %v6850_v36  ;;  %6254 = vrot.lane.b32.xlu0 %v9450_v57, %s9893_s12  ;;  %v5302_v15 = vadd.f32 %v5286_v3, %v5169_v4  ;;  %v5288_v62 = vmul.f32 %v13201_v32, %v13433_v55  ;;  %v5553_v5 = vmul.f32 %v13216_v1, %v13492_v58  ;;  %v14861_v4 = vld [vmem:[#allocation32_spill] sm:$0xff] }
 0x51d   : > { %v5859_v17 = vld [vmem:[#allocation3 + $0x1b0] ss:$2 sm:$0xff]  ;;  %v5891_v6 = vld [vmem:[#allocation3 + $0x1b1] ss:$2 sm:$0xff]  ;;  %v6370_v31 = vpop.permute.xlu1 %6369  ;;  %v5568_v2 = vadd.f32 %v5552_v49, %v5435_v9  ;;  %v5437_v28 = vadd.f32 %v5421_v60, %v5303_v19  ;;  %v5171_v33 = vadd.f32 %v5155_v8, %v5038_v21  ;;  %v5422_v59 = vmul.f32 %v13193_v34, %v14855_v46 }
 0x51e   : > { %v5911_v39 = vmax.f32 %v5859_v17, %v5891_v6  ;;  %6417 = vst.msk [vmem:[#allocation5 + $0xc] sm:$0xf] %vm6415_vm9, %v6370_v31  ;;  %6610 = vrot.lane.b32.xlu1 %v14853_v50, %s9892_s11  ;;  %v5436_v27 = vadd.f32 %v5420_v11, %v5302_v15  ;;  %v5555_v37 = vmul.f32 %v13216_v1, %v14857_v25  ;;  %v14858_v34 = vld [vmem:[#allocation34_spill] sm:$0xff] }
 0x51f   : > { %v5636_v52 = vpop.permute.xlu0 %5635  ;;  %v5570_v32 = vadd.f32 %v5554_v16, %v5437_v28  ;;  %v5304_v54 = vadd.f32 %v5288_v62, %v5171_v33 }
 0x520   : > { %v5921_v38 = vmax.f32 %v5910_v7, %v5911_v39  ;;  %v5685_v35 = vmul.f32 %v13237_v53, %v5636_v52  ;;  %6737 = vrot.lane.b32.xlu0 %v14854_v22, %s9893_s12  ;;  %v5569_v26 = vadd.f32 %v5553_v5, %v5436_v27  ;;  %v14863_v5 = vld [vmem:[#allocation38_spill] sm:$0xff]  ;;  %v14865_v27 = vld [vmem:[#allocation85_spill] sm:$0xff] }
 0x521   : > { %v6852_v42 = vpop.permute.xlu1 %6851  ;;  %v5438_v43 = vadd.f32 %v5422_v59, %v5304_v54  ;;  %v4756_v46 = vmul.f32 %v13561_v44, %v14865_v27  ;;  %v14866_v59 = vld [vmem:[#allocation39_spill] sm:$0xff]  ;;  %v14877_v27 = vld [vmem:[#allocation25_spill] sm:$0xff] }
 0x522   : > { %6898 = vst.msk [vmem:[#allocation5 + $0x10] sm:$0xf] %vm6415_vm9, %v6852_v42  ;;  %6256 = vrot.lane.b32.xlu1 %v9498_v51, %s9893_s12  ;;  %v5936_v10 = vadd.f32 %v13315_v20, %v5921_v38  ;;  %v5701_v57 = vadd.f32 %v5685_v35, %v5568_v2  ;;  %v14856_v51 = vld [vmem:[#allocation21_spill] sm:$0xff] }
 0x523   : > { %v5646_v56 = vpop.permute.xlu0 %5645  ;;  %v5571_v49 = vadd.f32 %v5555_v37, %v5438_v43  ;;  %v14862_v42 = vld [vmem:[#allocation37_spill] sm:$0xff] }
 0x524   : > { %5945 = vst.msk [vmem:[#allocation4 + $0x101] sm:$0xff] %vm807_vm3, %v5936_v10  ;;  %5718 = vst.msk [vmem:[#allocation3 + $0x1c0] sm:$0xff] %vm807_vm3, %v5701_v57  ;;  %v5687_v55 = vmul.f32 %v13237_v53, %v5646_v56  ;;  %6383 = vrot.lane.b32.xlu0 %v14856_v51, %s9894_s13  ;;  %v14864_v57 = vld [vmem:[#allocation27_spill] sm:$0xff]  ;;  %v6540_v56 = vld [vmem:[#allocation4 + $0xf2] sm:$0xff] }
 0x525   : > { %v5641_v58 = vpop.permute.xlu1 %5640  ;;  %v9778_v47 = vld [vmem:[#allocation5] ss:$12 sps:$4 sm:$0xff]  }
 0x526   : > { %v5686_v29 = vmul.f32 %v13237_v53, %v5641_v58  ;;  %6739 = vrot.lane.b32.xlu1 %v14858_v34, %s9893_s12  ;;  %v5703_v0 = vadd.f32 %v5687_v55, %v5570_v32  ;;  %v14867_v32 = vld [vmem:[#allocation29_spill] sm:$0xff]  ;;  %v14868_v58 = vld [vmem:[#allocation50_spill] sm:$0xff] }
 0x527   : > { %v13675_v40 = vpop.permute.xlu0 %5255  ;;  %v4623_v55 = vmul.f32 %v13573_v61, %v14867_v32  ;;  %v4889_v51 = vmul.f32 %v13578_v30, %v14868_v58 }
 0x528   : > { %v5702_v18 = vadd.f32 %v5686_v29, %v5569_v26  ;;  %5720 = vst.msk [vmem:[#allocation3 + $0x1d0] sm:$0xff] %vm807_vm3, %v5703_v0  ;;  %6865 = vrot.lane.b32.xlu0 %v14859_v12, %s9894_s13 }
 0x529   : > { %v5651_v36 = vpop.permute.xlu1 %5650  ;;  %v9780_v45 = vld [vmem:[#allocation5 + $0x4] ss:$12 sps:$4 sm:$0xff]   ;;  %v4772_v43 = vadd.f32 %v4756_v46, %v4623_v55  ;;  %v5025_v46 = vmul.f32 %v13587_v48, %v14877_v27  ;;  %v14878_v55 = vld [vmem:[#allocation48_spill] sm:$0xff] }
 0x52a   : > { %5719 = vst.msk [vmem:[#allocation3 + $0x1c8] sm:$0xff] %vm807_vm3, %v5702_v18  ;;  %v5688_v1 = vmul.f32 %v13237_v53, %v5651_v36  ;;  %6385 = vrot.lane.b32.xlu1 %v14854_v22, %s9894_s13  ;;  %7361 = vmatprep.mubr.bf16.mxu0 %v9780_v45  ;;  %v14860_v53 = vld [vmem:[#allocation35_spill] sm:$0xff]  ;;  %v4759_v58 = vmul.f32 %v13561_v44, %v14878_v55 }
 0x52b   : > { %v6541_v17 = vld [vmem:[#allocation4 + $0x102] sm:$0xff]  ;;  %v13684_v3 = vpop.permute.xlu0 %5265  ;;  %7362 = vmatmul.mubr.bf16.vlgmr.msra.gmra.mxu0 %v9778_v47 }
 0x52c   : > { %v6669_v6 = vld [vmem:[#allocation4 + $0x100] sm:$0xff]  ;;  %v5704_v13 = vadd.f32 %v5688_v1, %v5571_v49  ;;  %v13686_v7 = vpack.c.bf16 %v6541_v17, %v6541_v17  ;;  %6129 = vrot.lane.b32.xlu0 %v14859_v12, %s9892_s11  ;;  %v14870_v12 = vld [vmem:[#allocation70_spill] sm:$0xff]  ;;  %v14871_v49 = vld [vmem:[#allocation81_spill] sm:$0xff] }
 0x52d   : > { %v6797_v31 = vld [vmem:[#allocation4 + $0x101] sm:$0xff]  ;;  %v13688_v39 = vpack.c.bf16 %v6669_v6, %v6669_v6  ;;  %v13692_v41 = vpop.permute.xlu1 %5260  ;;  %v5023_v47 = vmul.f32 %v13587_v48, %v14870_v12  ;;  %v4757_v1 = vmul.f32 %v13561_v44, %v14871_v49  ;;  %v13770_v6 = vpack.c.bf16 %v6540_v56, %v6540_v56 }
 0x52e   : > { %v13690_v21 = vpack.c.bf16 %v6797_v31, %v6797_v31  ;;  %5721 = vst.msk [vmem:[#allocation3 + $0x1d8] sm:$0xff] %vm807_vm3, %v5704_v13  ;;  %6867 = vrot.lane.b32.xlu1 %v14860_v53, %s9894_s13  ;;  %v14869_v18 = vld [vmem:[#allocation75_spill] sm:$0xff]  ;;  %v14872_v17 = vld [vmem:[#allocation28_spill] sm:$0xff] }
 0x52f   : > { %7005 = vst.msk [vmem:[#allocation5 + $0x98] sm:$0xf] %vm6028_vm13, %v13686_v7  ;;  %6043 = vst.msk [vmem:[#allocation5 + $0xa8] sm:$0xf] %vm6028_vm13, %v13688_v39  ;;  %v13705_v9 = vpop.permute.xlu0 %5389  ;;  %v4758_v36 = vmul.f32 %v13561_v44, %v14869_v18  ;;  %v14873_v31 = vld [vmem:[#allocation84_spill] sm:$0xff] }
 0x530   : > { %6525 = vst.msk [vmem:[#allocation5 + $0xa0] sm:$0xf] %vm6028_vm13, %v13690_v21  ;;  %6612 = vrot.lane.b32.xlu0 %v14861_v4, %s9892_s11  ;;  %v4625_v13 = vmul.f32 %v13573_v61, %v14873_v31 }
 0x531   : > { %v13707_v60 = vpop.permute.xlu1 %5270  ;;  %v5861_v8 = vld [vmem:[#allocation3 + $0x1c0] ss:$2 sm:$0xff]  ;;  %v5893_v11 = vld [vmem:[#allocation3 + $0x1c1] ss:$2 sm:$0xff] }
 0x532   : > { %6131 = vrot.lane.b32.xlu1 %v14860_v53, %s9892_s11  ;;  %v5912_v16 = vmax.f32 %v5861_v8, %v5893_v11  ;;  %v4905_v53 = vadd.f32 %v4889_v51, %v4772_v43  ;;  %v9876_v11 = vld [vmem:[%s10795_s22 + $0x5] ss:$0 sm:$0xff]  ;;  %v9878_v43 = vld [vmem:[%s10795_s22 + $0x8] ss:$0 sm:$0xff] }
 0x533   : > { %v13713_v38 = vpop.permute.xlu0 %5399  ;;  %v14879_v51 = vld [vmem:[#allocation95_spill] sm:$0xff]  ;;  %v5423_v18 = vmul.f32 %v9878_v43, %v13705_v9  ;;  %v5157_v49 = vmul.f32 %v9876_v11, %v13591_v14 }
 0x534   : > { %6258 = vrot.lane.b32.xlu0 %v14853_v50, %s9893_s12 }
 0x535   : > { %v5863_v52 = vld [vmem:[#allocation3 + $0x1d0] ss:$2 sm:$0xff]  ;;  %v5895_v19 = vld [vmem:[#allocation3 + $0x1d1] ss:$2 sm:$0xff]  ;;  %v13715_v2 = vpop.permute.xlu1 %5394 }
 0x536   : > { %v5913_v35 = vmax.f32 %v5863_v52, %v5895_v19  ;;  %6614 = vrot.lane.b32.xlu1 %v14862_v42, %s9892_s11  ;;  %v5156_v52 = vmul.f32 %v9876_v11, %v13558_v24  ;;  %v6186_v19 = vld [vmem:[#allocation4 + $0xe2] sm:$0xff] }
 0x537   : > { %v13721_v15 = vpop.permute.xlu0 %5522  ;;  %v14876_v42 = vld [vmem:[#allocation40_spill] sm:$0xff] }
 0x538   : > { %v5922_v22 = vmax.f32 %v5912_v16, %v5913_v35  ;;  %6741 = vrot.lane.b32.xlu0 %v14863_v5, %s9893_s12  ;;  %v14875_v16 = vld [vmem:[#allocation59_spill] sm:$0xff] }
 0x539   : > { %v13723_v62 = vpop.permute.xlu1 %5404  ;;  %v4624_v35 = vmul.f32 %v13573_v61, %v14875_v16 }
 0x53a   : > { %v5937_v10 = vadd.f32 %v13315_v20, %v5922_v22  ;;  %6260 = vrot.lane.b32.xlu1 %v14861_v4, %s9893_s12  ;;  %v14874_v4 = vld [vmem:[#allocation57_spill] sm:$0xff]  ;;  %v4890_v22 = vmul.f32 %v13578_v30, %v14876_v42  ;;  %v5159_v42 = vmul.f32 %v9876_v11, %v13619_v23  ;;  %v5426_v55 = vmul.f32 %v9878_v43, %v13723_v62 }
 0x53b   : > { %v13731_v50 = vpop.permute.xlu0 %5532  ;;  %v4891_v8 = vmul.f32 %v13578_v30, %v14874_v4  ;;  %v4773_v32 = vadd.f32 %v4757_v1, %v4624_v35 }
 0x53c   : > { %5946 = vst.msk [vmem:[#allocation4 + $0x111] sm:$0xff] %vm807_vm3, %v5937_v10  ;;  %6387 = vrot.lane.b32.xlu0 %v14858_v34, %s9894_s13  ;;  %v4774_v10 = vadd.f32 %v4758_v36, %v4625_v13  ;;  %v14880_v36 = vld [vmem:[#allocation86_spill] sm:$0xff] }
 0x53d   : > { %v13733_v28 = vpop.permute.xlu1 %5527  ;;  %v4626_v44 = vmul.f32 %v13573_v61, %v14880_v36  ;;  %v4906_v12 = vadd.f32 %v4890_v22, %v4773_v32 }
 0x53e   : > { %6743 = vrot.lane.b32.xlu1 %v14864_v57, %s9893_s12 }
 0x53f   : > { %v6114_v33 = vpop.permute.xlu0 %6113  ;;  %v4775_v4 = vadd.f32 %v4759_v58, %v4626_v44 }
 0x540   : > { %6160 = vst.msk [vmem:[#allocation5 + $0x18] sm:$0xf] %vm6157_vm0, %v6114_v33  ;;  %6869 = vrot.lane.b32.xlu0 %v14866_v59, %s9894_s13  ;;  %v5039_v33 = vadd.f32 %v5023_v47, %v4905_v53  ;;  %v14881_v47 = vld [vmem:[#allocation79_spill] sm:$0xff]  ;;  %v9879_v53 = vld [vmem:[%s10795_s22 + $0x9] ss:$0 sm:$0xff] }
 0x541   : > { %v13742_v20 = vpop.permute.xlu1 %5537  ;;  %v5557_v32 = vmul.f32 %v9879_v53, %v13733_v28 }
 0x542   : > { %6389 = vrot.lane.b32.xlu1 %v14863_v5, %s9894_s13 }
 0x543   : > { %v6926_v54 = vld [vmem:[#allocation4 + $0x112] sm:$0xff]  ;;  %v6597_v37 = vpop.permute.xlu0 %6596 }
 0x544   : > { %v6670_v26 = vld [vmem:[#allocation4 + $0x110] sm:$0xff]  ;;  %v13752_v29 = vpack.c.bf16 %v6926_v54, %v6926_v54  ;;  %6642 = vst.msk [vmem:[#allocation5 + $0x1c] sm:$0xf] %vm6157_vm0, %v6597_v37  ;;  %6133 = vrot.lane.b32.xlu0 %v14866_v59, %s9892_s11  ;;  %v9877_v59 = vld [vmem:[%s10795_s22 + $0x6] ss:$0 sm:$0xff]  ;;  %v5024_v54 = vmul.f32 %v13587_v48, %v14879_v51  ;;  %v5158_v37 = vmul.f32 %v9876_v11, %v13584_v63 }
 0x545   : > { %v6798_v25 = vld [vmem:[#allocation4 + $0x111] sm:$0xff]  ;;  %v13754_v34 = vpack.c.bf16 %v6670_v26, %v6670_v26  ;;  %v6116_v45 = vpop.permute.xlu1 %6115  ;;  %v5289_v56 = vmul.f32 %v9877_v59, %v13675_v40  ;;  %v9454_v40 = vpack.c.bf16 %v6186_v19, %v6186_v19  ;;  %v4907_v26 = vadd.f32 %v4891_v8, %v4774_v10 }
 0x546   : > { %v13756_v0 = vpack.c.bf16 %v6798_v25, %v6798_v25  ;;  %6161 = vst.msk [vmem:[#allocation5 + $0x24] sm:$0xf] %vm6157_vm0, %v6116_v45  ;;  %6871 = vrot.lane.b32.xlu1 %v14872_v17, %s9894_s13  ;;  %v5172_v25 = vadd.f32 %v5156_v52, %v5039_v33  ;;  %v4892_v45 = vmul.f32 %v13578_v30, %v14881_v47  ;;  %v14882_v52 = vld [vmem:[#allocation49_spill] sm:$0xff]  ;;  %v9880_v33 = vld [vmem:[%s10795_s22 + $0xa] ss:$0 sm:$0xff]  ;;  %s453_s22 = scalar_lea.vmem %s14186_s7, %s14884_s10 }
 0x547   : > { %7006 = vst.msk [vmem:[#allocation5 + $0xa4] sm:$0xf] %vm6028_vm13, %v13752_v29  ;;  %6044 = vst.msk [vmem:[#allocation5 + $0xb4] sm:$0xf] %vm6028_vm13, %v13754_v34  ;;  %v6243_v5 = vpop.permute.xlu0 %6242  ;;  %v5041_v31 = vadd.f32 %v5025_v46, %v4907_v26  ;;  %v5291_v13 = vmul.f32 %v9877_v59, %v13684_v3  ;;  %v5556_v63 = vmul.f32 %v9879_v53, %v13721_v15 }
 0x548   : > { %6526 = vst.msk [vmem:[#allocation5 + $0xac] sm:$0xf] %vm6028_vm13, %v13756_v0  ;;  %6616 = vrot.lane.b32.xlu0 %v13770_v6, %s9892_s11  ;;  %v5040_v8 = vadd.f32 %v5024_v54, %v4906_v12  ;;  %v5026_v30 = vmul.f32 %v13587_v48, %v14882_v52  ;;  %v5290_v14 = vmul.f32 %v9877_v59, %v13692_v41 }
 0x549   : > { %6289 = vst.msk [vmem:[#allocation5 + $0x18] sm:$0xf] %vm6286_vm7, %v6243_v5  ;;  %v6599_v24 = vpop.permute.xlu1 %6598  ;;  %v5174_v3 = vadd.f32 %v5158_v37, %v5041_v31  ;;  %v5425_v19 = vmul.f32 %v9878_v43, %v13713_v38  ;;  %v4908_v16 = vadd.f32 %v4892_v45, %v4775_v4  ;;  %v5424_v48 = vmul.f32 %v9878_v43, %v13715_v2 }
 0x54a   : > { %6643 = vst.msk [vmem:[#allocation5 + $0x28] sm:$0xf] %vm6157_vm0, %v6599_v24  ;;  %6135 = vrot.lane.b32.xlu1 %v14872_v17, %s9892_s11  ;;  %v5305_v17 = vadd.f32 %v5289_v56, %v5172_v25  ;;  %v5173_v35 = vadd.f32 %v5157_v49, %v5040_v8  ;;  %v5558_v10 = vmul.f32 %v9879_v53, %v13731_v50  ;;  %v9881_v8 = vld [vmem:[%s11182_s25] ss:$0 sm:$0xff]  ;;  %s456_s25 = scalar_lea.vmem %s14187_s8, %s14884_s10 }
 0x54b   : > { %v6726_v1 = vpop.permute.xlu0 %6725  ;;  %v5307_v5 = vadd.f32 %v5291_v13, %v5174_v3  ;;  %v5042_v38 = vadd.f32 %v5026_v30, %v4908_v16  ;;  %v5292_v24 = vmul.f32 %v9877_v59, %v13707_v60  ;;  %v5559_v59 = vmul.f32 %v9879_v53, %v13742_v20 }
 0x54c   : > { %6771 = vst.msk [vmem:[#allocation5 + $0x1c] sm:$0xf] %vm6286_vm7, %v6726_v1  ;;  %6262 = vrot.lane.b32.xlu0 %v9454_v40, %s9893_s12  ;;  %v5439_v15 = vadd.f32 %v5423_v18, %v5305_v17  ;;  %v5306_v56 = vadd.f32 %v5290_v14, %v5173_v35 }
 0x54d   : > { %v6245_v9 = vpop.permute.xlu1 %6244  ;;  %v5441_v23 = vadd.f32 %v5425_v19, %v5307_v5  ;;  %v5175_v50 = vadd.f32 %v5159_v42, %v5042_v38 }
 0x54e   : > { %v9781_v61 = vld [vmem:[#allocation5 + $0x98] ss:$12 sps:$4 sm:$0xff]   ;;  %6290 = vst.msk [vmem:[#allocation5 + $0x24] sm:$0xf] %vm6286_vm7, %v6245_v9  ;;  %6618 = vrot.lane.b32.xlu1 %v13686_v7, %s9892_s11  ;;  %v5572_v41 = vadd.f32 %v5556_v63, %v5439_v15  ;;  %v5440_v11 = vadd.f32 %v5424_v48, %v5306_v56 }
 0x54f   : > { %9732 = vmatprep.mubr.msk.bf16.mxu1 %vm807_vm3, %v9781_v61  ;;  %v5656_v22 = vpop.permute.xlu0 %5655  ;;  %v5574_v51 = vadd.f32 %v5558_v10, %v5441_v23  ;;  %v5308_v60 = vadd.f32 %v5292_v24, %v5175_v50  ;;  %v6672_v10 = vld [vmem:[#allocation4 + $0x130] sm:$0xff] }
 0x550   : > { %v5689_v27 = vmul.f32 %v9880_v33, %v5656_v22  ;;  %6745 = vrot.lane.b32.xlu0 %v13688_v39, %s9893_s12  ;;  %v5573_v28 = vadd.f32 %v5557_v32, %v5440_v11  ;;  %v6800_v32 = vld [vmem:[#allocation4 + $0x131] sm:$0xff] }
 0x551   : > { %v6728_v46 = vpop.permute.xlu1 %6727  ;;  %v5442_v25 = vadd.f32 %v5426_v55, %v5308_v60  ;;  %v9537_v55 = vpack.c.bf16 %v6800_v32, %v6800_v32 }
 0x552   : > { %6772 = vst.msk [vmem:[#allocation5 + $0x28] sm:$0xf] %vm6286_vm7, %v6728_v46  ;;  %6264 = vrot.lane.b32.xlu1 %v13770_v6, %s9893_s12  ;;  %v5705_v2 = vadd.f32 %v5689_v27, %v5572_v41  ;;  %v9521_v46 = vpack.c.bf16 %v6672_v10, %v6672_v10 }
 0x553   : > { %v5666_v58 = vpop.permute.xlu0 %5665 }
 0x554   : > { %5722 = vst.msk [vmem:[#allocation3 + $0x1e0] sm:$0xff] %vm807_vm3, %v5705_v2  ;;  %v5691_v54 = vmul.f32 %v9880_v33, %v5666_v58  ;;  %6391 = vrot.lane.b32.xlu0 %v14864_v57, %s9894_s13  ;;  %v5575_v57 = vadd.f32 %v5559_v59, %v5442_v25 }
 0x555   : > { %v5661_v40 = vpop.permute.xlu1 %5660 }
 0x556   : > { %v5690_v6 = vmul.f32 %v9880_v33, %v5661_v40  ;;  %6747 = vrot.lane.b32.xlu1 %v13754_v34, %s9893_s12  ;;  %v5707_v26 = vadd.f32 %v5691_v54, %v5574_v51 }
 0x557   : > { %v6372_v37 = vpop.permute.xlu0 %6371 }
 0x558   : > { %v5706_v62 = vadd.f32 %v5690_v6, %v5573_v28  ;;  %5724 = vst.msk [vmem:[#allocation3 + $0x1f0] sm:$0xff] %vm807_vm3, %v5707_v26  ;;  %6873 = vrot.lane.b32.xlu0 %v13690_v21, %s9894_s13 }
 0x559   : > { %6418 = vst.msk [vmem:[#allocation5 + $0x18] sm:$0xf] %vm6415_vm9, %v6372_v37  ;;  %v5671_v43 = vpop.permute.xlu1 %5670 }
 0x55a   : > { %5723 = vst.msk [vmem:[#allocation3 + $0x1e8] sm:$0xff] %vm807_vm3, %v5706_v62  ;;  %v5692_v20 = vmul.f32 %v9880_v33, %v5671_v43  ;;  %6393 = vrot.lane.b32.xlu1 %v13688_v39, %s9894_s13 }
 0x55b   : > { %v6854_v36 = vpop.permute.xlu0 %6853 }
 0x55c   : > { %v5708_v18 = vadd.f32 %v5692_v20, %v5575_v57  ;;  %6899 = vst.msk [vmem:[#allocation5 + $0x1c] sm:$0xf] %vm6415_vm9, %v6854_v36  ;;  %6137 = vrot.lane.b32.xlu0 %v13690_v21, %s9892_s11 }
 0x55d   : > { %v6374_v44 = vpop.permute.xlu1 %6373 }
 0x55e   : > { %5725 = vst.msk [vmem:[#allocation3 + $0x1f8] sm:$0xff] %vm807_vm3, %v5708_v18  ;;  %6875 = vrot.lane.b32.xlu1 %v13756_v0, %s9894_s13 }
 0x55f   : > { %6419 = vst.msk [vmem:[#allocation5 + $0x24] sm:$0xf] %vm6415_vm9, %v6374_v44  ;;  %v6118_v12 = vpop.permute.xlu0 %6117 }
 0x560   : > { %6162 = vst.msk [vmem:[#allocation5 + $0x30] sm:$0xf] %vm6157_vm0, %v6118_v12  ;;  %6620 = vrot.lane.b32.xlu0 %v13752_v29, %s9892_s11 }
 0x561   : > { %v6856_v47 = vpop.permute.xlu1 %6855  ;;  %v5865_v39 = vld [vmem:[#allocation3 + $0x1e0] ss:$2 sm:$0xff]  ;;  %v5897_v21 = vld [vmem:[#allocation3 + $0x1e1] ss:$2 sm:$0xff] }
 0x562   : > { %6900 = vst.msk [vmem:[#allocation5 + $0x28] sm:$0xf] %vm6415_vm9, %v6856_v47  ;;  %6139 = vrot.lane.b32.xlu1 %v13756_v0, %s9892_s11  ;;  %v5914_v17 = vmax.f32 %v5865_v39, %v5897_v21 }
 0x563   : > { %v6601_v45 = vpop.permute.xlu0 %6600  ;;  %v7013_v9 = vld [vmem:[#allocation5 + $0x18] sm:$0xff] }
 0x564   : > { %6644 = vst.msk [vmem:[#allocation5 + $0x34] sm:$0xf] %vm6157_vm0, %v6601_v45  ;;  %6266 = vrot.lane.b32.xlu0 %v13686_v7, %s9893_s12 }
 0x565   : > { %v5867_v49 = vld [vmem:[#allocation3 + $0x1f0] ss:$2 sm:$0xff]  ;;  %v5899_v1 = vld [vmem:[#allocation3 + $0x1f1] ss:$2 sm:$0xff]  ;;  %v6120_v31 = vpop.permute.xlu1 %6119 }
 0x566   : > { %v5915_v13 = vmax.f32 %v5867_v49, %v5899_v1  ;;  %6163 = vst.msk [vmem:[#allocation5 + $0x3c] sm:$0xf] %vm6157_vm0, %v6120_v31 }
 0x567   : > { %v6247_v63 = vpop.permute.xlu0 %6246 }
 0x568   : > { %v5923_v53 = vmax.f32 %v5914_v17, %v5915_v13  ;;  %6291 = vst.msk [vmem:[#allocation5 + $0x30] sm:$0xf] %vm6286_vm7, %v6247_v63 }
 0x569   : > { %v6603_v0 = vpop.permute.xlu1 %6602  ;;  %v7015_v61 = vld [vmem:[#allocation5 + $0x24] sm:$0xff] }
 0x56a   : > { %v9782_v4 = vld [vmem:[#allocation5 + $0x1c] ss:$12 sps:$4 sm:$0xff]   ;;  %v5938_v52 = vadd.f32 %v9881_v8, %v5923_v53  ;;  %6645 = vst.msk [vmem:[#allocation5 + $0x40] sm:$0xf] %vm6157_vm0, %v6603_v0  ;;  %v9259_v30 = vcombine.low %v7013_v9, %v7015_v61 }
 0x56b   : > { %7369 = vmatprep.mubr.bf16.mxu0 %v9782_v4  ;;  %v6730_v7 = vpop.permute.xlu0 %6729 }
 0x56c   : > { %5947 = vst.msk [vmem:[#allocation4 + $0x121] sm:$0xff] %vm807_vm3, %v5938_v52  ;;  %7370 = vmatmul.mubr.bf16.gmra.mxu0 %v9259_v30 }
 0x56d   : > { %6773 = vst.msk [vmem:[#allocation5 + $0x34] sm:$0xf] %vm6286_vm7, %v6730_v7  ;;  %v6249_v14 = vpop.permute.xlu1 %6248 }
 0x56e   : > { %6292 = vst.msk [vmem:[#allocation5 + $0x3c] sm:$0xf] %vm6286_vm7, %v6249_v14 }
 0x56f   : > { %v6376_v3 = vpop.permute.xlu0 %6375 }
 0x570   : > { %6420 = vst.msk [vmem:[#allocation5 + $0x30] sm:$0xf] %vm6415_vm9, %v6376_v3 }
 0x571   : > { %v6732_v15 = vpop.permute.xlu1 %6731 }
 0x572   : > { %6774 = vst.msk [vmem:[#allocation5 + $0x40] sm:$0xf] %vm6286_vm7, %v6732_v15 }
 0x573   : > { %v6671_v19 = vld [vmem:[#allocation4 + $0x120] sm:$0xff]  ;;  %v6858_v42 = vpop.permute.xlu0 %6857 }
 0x574   : > { %v6543_v16 = vld [vmem:[#allocation4 + $0x122] sm:$0xff]  ;;  %v9520_v48 = vpack.c.bf16 %v6671_v19, %v6671_v19  ;;  %6901 = vst.msk [vmem:[#allocation5 + $0x34] sm:$0xf] %vm6415_vm9, %v6858_v42 }
 0x575   : > { %v6799_v35 = vld [vmem:[#allocation4 + $0x121] sm:$0xff]  ;;  %v9505_v22 = vpack.c.bf16 %v6543_v16, %v6543_v16  ;;  %v6378_v41 = vpop.permute.xlu1 %6377 }
 0x576   : > { %v9536_v5 = vpack.c.bf16 %v6799_v35, %v6799_v35  ;;  %6421 = vst.msk [vmem:[#allocation5 + $0x3c] sm:$0xf] %vm6415_vm9, %v6378_v41  ;;  %6749 = vrot.lane.b32.xlu0 %v9520_v48, %s9893_s12 }
 0x577   : > { %6622 = vrot.lane.b32.xlu1 %v9505_v22, %s9892_s11  ;;  %7007 = vst.msk [vmem:[#allocation5 + $0xb0] sm:$0xf] %vm6028_vm13, %v9505_v22  ;;  %v6122_v33 = vpop.permute.xlu0 %6121 }
 0x578   : > { %6527 = vst.msk [vmem:[#allocation5 + $0xb8] sm:$0xf] %vm6028_vm13, %v9536_v5  ;;  %vm7650_vm13 = vcmask 519168  }
 0x579   : > { %6164 = vst.msk [vmem:[#allocation5 + $0x48] sm:$0xf] %vm6157_vm0, %v6122_v33  ;;  %v6860_v27 = vpop.permute.xlu1 %6859 }
 0x57a   : > { %6902 = vst.msk [vmem:[#allocation5 + $0x40] sm:$0xf] %vm6415_vm9, %v6860_v27  ;;  %6395 = vrot.lane.b32.xlu0 %v13754_v34, %s9894_s13 }
 0x57b   : > { %6268 = vrot.lane.b32.xlu1 %v13752_v29, %s9893_s12  ;;  %v6605_v38 = vpop.permute.xlu0 %6604  ;;  %v7017_v29 = vld [vmem:[#allocation5 + $0x30] sm:$0xff] }
 0x57c   : > { %6646 = vst.msk [vmem:[#allocation5 + $0x4c] sm:$0xf] %vm6157_vm0, %v6605_v38 }
 0x57d   : > { %v6124_v56 = vpop.permute.xlu1 %6123 }
 0x57e   : > { %v9784_v24 = vld [vmem:[#allocation5 + $0xb0] ss:$12 sps:$4 sm:$0xff]   ;;  %6165 = vst.msk [vmem:[#allocation5 + $0x54] sm:$0xf] %vm6157_vm0, %v6124_v56  ;;  %6877 = vrot.lane.b32.xlu0 %v9536_v5, %s9894_s13 }
 0x57f   : > { %6751 = vrot.lane.b32.xlu1 %v9521_v46, %s9893_s12  ;;  %9733 = vmatmul.mubr.msk.bf16.gmra.mxu1 %vm807_vm3, %v9784_v24  ;;  %v6251_v23 = vpop.permute.xlu0 %6250  ;;  %vm7546_vm3 = vcmask 523264  }
 0x580   : > { %6293 = vst.msk [vmem:[#allocation5 + $0x48] sm:$0xf] %vm6286_vm7, %v6251_v23 }
 0x581   : > { %v6607_v34 = vpop.permute.xlu1 %6606  ;;  %v7019_v2 = vld [vmem:[#allocation5 + $0x3c] sm:$0xff] }
 0x582   : > { %v9785_v50 = vld [vmem:[#allocation5 + $0x34] ss:$12 sps:$4 sm:$0xff]   ;;  %6647 = vst.msk [vmem:[#allocation5 + $0x58] sm:$0xf] %vm6157_vm0, %v6607_v34  ;;  %v9262_v11 = vcombine.low %v7017_v29, %v7019_v2 }
 0x583   : > { %6397 = vrot.lane.b32.xlu1 %v9520_v48, %s9894_s13  ;;  %7377 = vmatprep.mubr.bf16.mxu0 %v9785_v50  ;;  %v6734_v58 = vpop.permute.xlu0 %6733 }
 0x584   : > { %7378 = vmatmul.mubr.bf16.gmra.mxu0 %v9262_v11  ;;  %6775 = vst.msk [vmem:[#allocation5 + $0x4c] sm:$0xf] %vm6286_vm7, %v6734_v58 }
 0x585   : > { %v6253_v51 = vpop.permute.xlu1 %6252 }
 0x586   : > { %6294 = vst.msk [vmem:[#allocation5 + $0x54] sm:$0xf] %vm6286_vm7, %v6253_v51 }
 0x587   : > { %6879 = vrot.lane.b32.xlu1 %v9537_v55, %s9894_s13  ;;  %v6380_v54 = vpop.permute.xlu0 %6379  ;;  %v9722_v55 = vpop.f32.mrf.mxu1 }
 0x588   : > { %6422 = vst.msk [vmem:[#allocation5 + $0x48] sm:$0xf] %vm6415_vm9, %v6380_v54 }
 0x589   : > { %v6736_v40 = vpop.permute.xlu1 %6735  ;;  %v7460_v54 = vpop.f32.mrf.mxu1 }
 0x58a   : > { %6776 = vst.msk [vmem:[#allocation5 + $0x58] sm:$0xf] %vm6286_vm7, %v6736_v40 }
 0x58b   : > { %v6862_v60 = vpop.permute.xlu0 %6861 }
 0x58c   : > { %6903 = vst.msk [vmem:[#allocation5 + $0x4c] sm:$0xf] %vm6415_vm9, %v6862_v60 }
 0x58d   : > { %v6382_v28 = vpop.permute.xlu1 %6381 }
 0x58e   : > { %6423 = vst.msk [vmem:[#allocation5 + $0x54] sm:$0xf] %vm6415_vm9, %v6382_v28 }
 0x58f   : > { %v6126_v59 = vpop.permute.xlu0 %6125 }
 0x590   : > { %6166 = vst.msk [vmem:[#allocation5 + $0x60] sm:$0xf] %vm6157_vm0, %v6126_v59 }
 0x591   : > { %v6864_v6 = vpop.permute.xlu1 %6863 }
 0x592   : > { %6904 = vst.msk [vmem:[#allocation5 + $0x58] sm:$0xf] %vm6415_vm9, %v6864_v6 }
 0x593   : > { %v6609_v26 = vpop.permute.xlu0 %6608  ;;  %v7021_v43 = vld [vmem:[#allocation5 + $0x48] sm:$0xff] }
 0x594   : > { %6648 = vst.msk [vmem:[#allocation5 + $0x64] sm:$0xf] %vm6157_vm0, %v6609_v26  ;;  %v9723_v26 = vpop.f32.mrf.mxu1 }
 0x595   : > { %v6128_v25 = vpop.permute.xlu1 %6127 }
 0x596   : > { %6167 = vst.msk [vmem:[#allocation5 + $0x6c] sm:$0xf] %vm6157_vm0, %v6128_v25  ;;  %v13949_v25 = vld [vmem:[%s442_s16] ss:$0 sm:$0xff] }
 0x597   : > { %v6255_v62 = vpop.permute.xlu0 %6254 }
 0x598   : > { %6295 = vst.msk [vmem:[#allocation5 + $0x60] sm:$0xf] %vm6286_vm7, %v6255_v62 }
 0x599   : > { %v6611_v37 = vpop.permute.xlu1 %6610  ;;  %v7023_v57 = vld [vmem:[#allocation5 + $0x54] sm:$0xff] }
 0x59a   : > { %v9787_v20 = vld [vmem:[#allocation5 + $0x4c] ss:$12 sps:$4 sm:$0xff]   ;;  %6649 = vst.msk [vmem:[#allocation5 + $0x70] sm:$0xf] %vm6157_vm0, %v6611_v37  ;;  %v9265_v18 = vcombine.low %v7021_v43, %v7023_v57 }
 0x59b   : > { %7385 = vmatprep.mubr.bf16.mxu0 %v9787_v20  ;;  %v6738_v36 = vpop.permute.xlu0 %6737 }
 0x59c   : > { %7386 = vmatmul.mubr.bf16.gmra.mxu0 %v9265_v18  ;;  %6777 = vst.msk [vmem:[#allocation5 + $0x64] sm:$0xf] %vm6286_vm7, %v6738_v36  ;;  %v7463_v36 = vpop.f32.mrf.mxu1 }
 0x59d   : > { %v6257_v44 = vpop.permute.xlu1 %6256 }
 0x59e   : > { %6296 = vst.msk [vmem:[#allocation5 + $0x6c] sm:$0xf] %vm6286_vm7, %v6257_v44 }
 0x59f   : > { %v6384_v12 = vpop.permute.xlu0 %6383 }
 0x5a0   : > { %6424 = vst.msk [vmem:[#allocation5 + $0x60] sm:$0xf] %vm6415_vm9, %v6384_v12 }
 0x5a1   : > { %v6740_v47 = vpop.permute.xlu1 %6739 }
 0x5a2   : > { %6778 = vst.msk [vmem:[#allocation5 + $0x70] sm:$0xf] %vm6286_vm7, %v6740_v47 }
 0x5a3   : > { %v6866_v39 = vpop.permute.xlu0 %6865 }
 0x5a4   : > { %6905 = vst.msk [vmem:[#allocation5 + $0x64] sm:$0xf] %vm6415_vm9, %v6866_v39 }
 0x5a5   : > { %v6386_v21 = vpop.permute.xlu1 %6385 }
 0x5a6   : > { %6425 = vst.msk [vmem:[#allocation5 + $0x6c] sm:$0xf] %vm6415_vm9, %v6386_v21 }
 0x5a7   : > { %v6130_v45 = vpop.permute.xlu0 %6129 }
 0x5a8   : > { %6168 = vst.msk [vmem:[#allocation5 + $0x78] sm:$0xf] %vm6157_vm0, %v6130_v45 }
 0x5a9   : > { %v6868_v49 = vpop.permute.xlu1 %6867 }
 0x5aa   : > { %6906 = vst.msk [vmem:[#allocation5 + $0x70] sm:$0xf] %vm6415_vm9, %v6868_v49 }
 0x5ab   : > { %v6613_v1 = vpop.permute.xlu0 %6612  ;;  %v7025_v53 = vld [vmem:[#allocation5 + $0x60] sm:$0xff] }
 0x5ac   : > { %6650 = vst.msk [vmem:[#allocation5 + $0x7c] sm:$0xf] %vm6157_vm0, %v6613_v1 }
 0x5ad   : > { %v6132_v31 = vpop.permute.xlu1 %6131 }
 0x5ae   : > { %6169 = vst.msk [vmem:[#allocation5 + $0x84] sm:$0xf] %vm6157_vm0, %v6132_v31 }
 0x5af   : > { %v6259_v17 = vpop.permute.xlu0 %6258 }
 0x5b0   : > { %6297 = vst.msk [vmem:[#allocation5 + $0x78] sm:$0xf] %vm6286_vm7, %v6259_v17 }
 0x5b1   : > { %v6615_v13 = vpop.permute.xlu1 %6614  ;;  %v7027_v63 = vld [vmem:[#allocation5 + $0x6c] sm:$0xff] }
 0x5b2   : > { %v9789_v0 = vld [vmem:[#allocation5 + $0x64] ss:$12 sps:$4 sm:$0xff]   ;;  %6651 = vst.msk [vmem:[#allocation5 + $0x88] sm:$0xf] %vm6157_vm0, %v6615_v13  ;;  %v9268_v9 = vcombine.low %v7025_v53, %v7027_v63 }
 0x5b3   : > { %7393 = vmatprep.mubr.bf16.mxu0 %v9789_v0  ;;  %v6742_v61 = vpop.permute.xlu0 %6741 }
 0x5b4   : > { %7394 = vmatmul.mubr.bf16.gmra.mxu0 %v9268_v9  ;;  %6779 = vst.msk [vmem:[#allocation5 + $0x7c] sm:$0xf] %vm6286_vm7, %v6742_v61 }
 0x5b5   : > { %v6261_v4 = vpop.permute.xlu1 %6260 }
 0x5b6   : > { %6298 = vst.msk [vmem:[#allocation5 + $0x84] sm:$0xf] %vm6286_vm7, %v6261_v4 }
 0x5b7   : > { %v6388_v8 = vpop.permute.xlu0 %6387 }
 0x5b8   : > { %6426 = vst.msk [vmem:[#allocation5 + $0x78] sm:$0xf] %vm6415_vm9, %v6388_v8 }
 0x5b9   : > { %v6744_v52 = vpop.permute.xlu1 %6743 }
 0x5ba   : > { %6780 = vst.msk [vmem:[#allocation5 + $0x88] sm:$0xf] %vm6286_vm7, %v6744_v52 }
 0x5bb   : > { %v6870_v30 = vpop.permute.xlu0 %6869 }
 0x5bc   : > { %6907 = vst.msk [vmem:[#allocation5 + $0x7c] sm:$0xf] %vm6415_vm9, %v6870_v30 }
 0x5bd   : > { %v6390_v7 = vpop.permute.xlu1 %6389 }
 0x5be   : > { %6427 = vst.msk [vmem:[#allocation5 + $0x84] sm:$0xf] %vm6415_vm9, %v6390_v7 }
 0x5bf   : > { %v6134_v14 = vpop.permute.xlu0 %6133 }
 0x5c0   : > { %6170 = vst.msk [vmem:[#allocation5 + $0x90] sm:$0xf] %vm6157_vm0, %v6134_v14 }
 0x5c1   : > { %v6872_v3 = vpop.permute.xlu1 %6871 }
 0x5c2   : > { %6908 = vst.msk [vmem:[#allocation5 + $0x88] sm:$0xf] %vm6415_vm9, %v6872_v3 }
 0x5c3   : > { %v6617_v15 = vpop.permute.xlu0 %6616  ;;  %v7029_v42 = vld [vmem:[#allocation5 + $0x78] sm:$0xff] }
 0x5c4   : > { %6652 = vst.msk [vmem:[#allocation5 + $0x94] sm:$0xf] %vm6157_vm0, %v6617_v15 }
 0x5c5   : > { %v6136_v19 = vpop.permute.xlu1 %6135 }
 0x5c6   : > { %6171 = vst.msk [vmem:[#allocation5 + $0x9c] sm:$0xf] %vm6157_vm0, %v6136_v19  ;;  %v9726_v19 = vpop.f32.mrf.mxu1 }
 0x5c7   : > { %v6263_v16 = vpop.permute.xlu0 %6262 }
 0x5c8   : > { %6299 = vst.msk [vmem:[#allocation5 + $0x90] sm:$0xf] %vm6286_vm7, %v6263_v16 }
 0x5c9   : > { %v6619_v35 = vpop.permute.xlu1 %6618  ;;  %v7031_v48 = vld [vmem:[#allocation5 + $0x84] sm:$0xff] }
 0x5ca   : > { %v9791_v22 = vld [vmem:[#allocation5 + $0x7c] ss:$12 sps:$4 sm:$0xff]   ;;  %6653 = vst.msk [vmem:[#allocation5 + $0xa0] sm:$0xf] %vm6157_vm0, %v6619_v35  ;;  %v9271_v5 = vcombine.low %v7029_v42, %v7031_v48 }
 0x5cb   : > { %7401 = vmatprep.mubr.bf16.mxu0 %v9791_v22  ;;  %v6746_v41 = vpop.permute.xlu0 %6745 }
 0x5cc   : > { %7402 = vmatmul.mubr.bf16.gmra.mxu0 %v9271_v5  ;;  %6781 = vst.msk [vmem:[#allocation5 + $0x94] sm:$0xf] %vm6286_vm7, %v6746_v41  ;;  %v7476_v5 = vpop.f32.mrf.mxu1 }
 0x5cd   : > { %v6265_v10 = vpop.permute.xlu1 %6264 }
 0x5ce   : > { %6300 = vst.msk [vmem:[#allocation5 + $0x9c] sm:$0xf] %vm6286_vm7, %v6265_v10 }
 0x5cf   : > { %v6392_v33 = vpop.permute.xlu0 %6391 }
 0x5d0   : > { %6428 = vst.msk [vmem:[#allocation5 + $0x90] sm:$0xf] %vm6415_vm9, %v6392_v33 }
 0x5d1   : > { %v6748_v27 = vpop.permute.xlu1 %6747 }
 0x5d2   : > { %6782 = vst.msk [vmem:[#allocation5 + $0xa0] sm:$0xf] %vm6286_vm7, %v6748_v27  ;;  %v9727_v27 = vpop.f32.mrf.mxu1 }
 0x5d3   : > { %v6874_v46 = vpop.permute.xlu0 %6873 }
 0x5d4   : > { %6909 = vst.msk [vmem:[#allocation5 + $0x94] sm:$0xf] %vm6415_vm9, %v6874_v46 }
 0x5d5   : > { %v6394_v38 = vpop.permute.xlu1 %6393 }
 0x5d6   : > { %6429 = vst.msk [vmem:[#allocation5 + $0x9c] sm:$0xf] %vm6415_vm9, %v6394_v38 }
 0x5d7   : > { %v6138_v56 = vpop.permute.xlu0 %6137 }
 0x5d8   : > { %6172 = vst.msk [vmem:[#allocation5 + $0xa8] sm:$0xf] %vm6157_vm0, %v6138_v56 }
 0x5d9   : > { %v6876_v24 = vpop.permute.xlu1 %6875 }
 0x5da   : > { %6910 = vst.msk [vmem:[#allocation5 + $0xa0] sm:$0xf] %vm6415_vm9, %v6876_v24 }
 0x5db   : > { %v6621_v32 = vpop.permute.xlu0 %6620 }
 0x5dc   : > { %6654 = vst.msk [vmem:[#allocation5 + $0xac] sm:$0xf] %vm6157_vm0, %v6621_v32 }
 0x5dd   : > { %v6140_v23 = vpop.permute.xlu1 %6139  ;;  %v9795_v2 = vld [vmem:[#allocation5 + $0x90] ss:$12 sps:$4 sm:$0xff]  }
 0x5de   : > { %6173 = vst.msk [vmem:[#allocation5 + $0xb4] sm:$0xf] %vm6157_vm0, %v6140_v23  ;;  %v7479_v23 = vpop.f32.mrf.mxu1 }
 0x5df   : > { %v6267_v34 = vpop.permute.xlu0 %6266 }
 0x5e0   : > { %6301 = vst.msk [vmem:[#allocation5 + $0xa8] sm:$0xf] %vm6286_vm7, %v6267_v34 }
 0x5e1   : > { %v9793_v29 = vld [vmem:[#allocation5 + $0x94] ss:$12 sps:$4 sm:$0xff]  }
 0x5e2   : > { %7409 = vmatprep.mubr.bf16.mxu0 %v9793_v29 }
 0x5e3   : > { %7410 = vmatmul.mubr.bf16.gmra.mxu0 %v9795_v2 }
 0x5e8   : > { %v6750_v50 = vpop.permute.xlu0 %6749 }
 0x5e9   : > { %v6623_v11 = vpop.permute.xlu1 %6622  ;;  %6783 = vst.msk [vmem:[#allocation5 + $0xac] sm:$0xf] %vm6286_vm7, %v6750_v50 }
 0x5ea   : > { %6655 = vst.msk [vmem:[#allocation5 + $0xb8] sm:$0xf] %vm6157_vm0, %v6623_v11 }
 0x5eb   : > { %v9570_v40 = vpop.f32.mrf.mxu0 }
 0x5ec   : > { %v6396_v58 = vpop.permute.xlu0 %6395 }
 0x5ed   : > { %v6269_v51 = vpop.permute.xlu1 %6268  ;;  %6430 = vst.msk [vmem:[#allocation5 + $0xa8] sm:$0xf] %vm6415_vm9, %v6396_v58  ;;  %v9571_v60 = vpop.f32.mrf.mxu0 }
 0x5ee   : > { %6302 = vst.msk [vmem:[#allocation5 + $0xb4] sm:$0xf] %vm6286_vm7, %v6269_v51  ;;  %v9572_v28 = vadd.f32 %v9571_v60, %v9570_v40 }
 0x5ef   : > { %v9573_v62 = vpop.f32.mrf.mxu0 }
 0x5f0   : > { %v6878_v59 = vpop.permute.xlu0 %6877  ;;  %v7461_v37 = vadd.f32 %v9572_v28, %v7460_v54 }
 0x5f1   : > { %v6752_v6 = vpop.permute.xlu1 %6751  ;;  %6911 = vst.msk [vmem:[#allocation5 + $0xac] sm:$0xf] %vm6415_vm9, %v6878_v59  ;;  %v9574_v43 = vpop.f32.mrf.mxu0 }
 0x5f2   : > { %6784 = vst.msk [vmem:[#allocation5 + $0xb8] sm:$0xf] %vm6286_vm7, %v6752_v6  ;;  %v7530_v57 = vadd.f32 %v13949_v25, %v7461_v37  ;;  %v9575_v20 = vadd.f32 %v9574_v43, %v9573_v62 }
 0x5f4   : > { %7547 = vst.msk [vmem:[#allocation6] sm:$0xff] %vm7546_vm3, %v7530_v57  ;;  %v7464_v44 = vadd.f32 %v9575_v20, %v7463_v36  ;;  %v9730_v36 = vpop.f32.mrf.mxu1 }
 0x5f5   : > { %v6398_v18 = vpop.permute.xlu1 %6397 }
 0x5f6   : > { %6431 = vst.msk [vmem:[#allocation5 + $0xb4] sm:$0xf] %vm6415_vm9, %v6398_v18  ;;  %v7531_v12 = vadd.f32 %v13949_v25, %v7464_v44 }
 0x5f8   : > { %7548 = vst.msk [vmem:[#allocation6 + $0x8] sm:$0xff] %vm7546_vm3, %v7531_v12 }
 0x5f9   : > { %v6880_v47 = vpop.permute.xlu1 %6879 }
 0x5fa   : > { %6912 = vst.msk [vmem:[#allocation5 + $0xb8] sm:$0xf] %vm6415_vm9, %v6880_v47 }
 0x5fb   : > { %v7563_v39 = vld [vmem:[#allocation6] ss:$2 sm:$0xf]  ;;  %v7595_v21 = vld [vmem:[#allocation6 + $0x1] ss:$2 sm:$0xf] }
 0x5fc   : > { %v7626_v17 = vmax.f32 %v7563_v39, %v7595_v21 }
 0x5fd   : > { %v9798_v49 = vld [vmem:[#allocation5 + $0xa8] ss:$12 sps:$4 sm:$0xff]  }
 0x5ff   : > { %v7565_v1 = vld [vmem:[#allocation6 + $0x8] ss:$2 sm:$0xf]  ;;  %v7597_v31 = vld [vmem:[#allocation6 + $0x9] ss:$2 sm:$0xf] }
 0x600   : > { %v7627_v13 = vmax.f32 %v7565_v1, %v7597_v31 }
 0x601   : > { %v9796_v45 = vld [vmem:[#allocation5 + $0xac] ss:$12 sps:$4 sm:$0xff]  }
 0x602   : > { %7417 = vmatprep.mubr.bf16.mxu0 %v9796_v45  ;;  %v7642_v53 = vmax.f32 %v7626_v17, %v7627_v13  ;;  %v7492_v45 = vpop.f32.mrf.mxu1 }
 0x603   : > { %7418 = vmatmul.mubr.bf16.gmra.mxu0 %v9798_v49 }
 0x604   : > { %7651 = vst.msk [vmem:[#allocation7] sm:$0xf] %vm7650_vm13, %v7642_v53  ;;  %v9731_v17 = vpop.f32.mrf.mxu1 }
 0x62c   : > { %v9576_v63 = vpop.f32.mrf.mxu0 }
 0x62e   : > { %v9577_v0 = vpop.f32.mrf.mxu0 }
 0x62f   : > { %v9578_v9 = vadd.f32 %v9577_v0, %v9576_v63 }
 0x630   : > { %v9579_v61 = vpop.f32.mrf.mxu0 }
 0x631   : > { %v7469_v4 = vadd.f32 %v9722_v55, %v9578_v9 }
 0x632   : > { %v9580_v8 = vpop.f32.mrf.mxu0 }
 0x633   : > { %v7532_v52 = vadd.f32 %v13949_v25, %v7469_v4  ;;  %v9581_v30 = vadd.f32 %v9580_v8, %v9579_v61  ;;  %v7495_v61 = vpop.f32.mrf.mxu1 }
 0x635   : > { %7549 = vst.msk [vmem:[#allocation6 + $0x10] sm:$0xff] %vm7546_vm3, %v7532_v52  ;;  %v7472_v7 = vadd.f32 %v9723_v26, %v9581_v30 }
 0x637   : > { %v7533_v14 = vadd.f32 %v13949_v25, %v7472_v7 }
 0x639   : > { %7550 = vst.msk [vmem:[#allocation6 + $0x18] sm:$0xff] %vm7546_vm3, %v7533_v14 }
 0x63c   : > { %v7567_v3 = vld [vmem:[#allocation6 + $0x10] ss:$2 sm:$0xf]  ;;  %v7599_v15 = vld [vmem:[#allocation6 + $0x11] ss:$2 sm:$0xf] }
 0x63d   : > { %v7628_v42 = vmax.f32 %v7567_v3, %v7599_v15 }
 0x640   : > { %v7569_v16 = vld [vmem:[#allocation6 + $0x18] ss:$2 sm:$0xf]  ;;  %v7601_v35 = vld [vmem:[#allocation6 + $0x19] ss:$2 sm:$0xf] }
 0x641   : > { %v7629_v48 = vmax.f32 %v7569_v16, %v7601_v35 }
 0x643   : > { %v7643_v22 = vmax.f32 %v7628_v42, %v7629_v48  ;;  %v9799_v48 = vld [vmem:[%s10170_s18 + $0x78] sm:$0xff]  }
 0x644   : > { %v9582_v41 = vpop.f32.mrf.mxu0  ;;  %9628 = vmatprep.subr.bf16.mxu1 %v9799_v48  ;;  %v9815_v48 = vld [vmem:[%s10170_s18 + $0x178] sm:$0xff]  }
 0x645   : > { %7652 = vst.msk [vmem:[#allocation7 + $0x4] sm:$0xf] %vm7650_vm13, %v7643_v22  ;;  %v9800_v22 = vld [vmem:[%s10170_s18 + $0x38] sm:$0xff]   ;;  %9672 = vmatprep.subr.bf16.mxu0 %v9815_v48 }
 0x646   : > { %v9583_v10 = vpop.f32.mrf.mxu0  ;;  %9629 = vmatpush3.bf16.msra.mxu1 %v9800_v22  ;;  %v9816_v22 = vld [vmem:[%s10170_s18 + $0x138] sm:$0xff]  }
 0x647   : > { %v9584_v33 = vadd.f32 %v9583_v10, %v9582_v41  ;;  %9673 = vmatpush3.bf16.msra.mxu0 %v9816_v22 }
 0x648   : > { %v9585_v46 = vpop.f32.mrf.mxu0 }
 0x649   : > { %v7477_v38 = vadd.f32 %v9584_v33, %v7476_v5  ;;  %v9801_v5 = vld [vmem:[%s10170_s18 + $0x70] sm:$0xff]  }
 0x64a   : > { %v9586_v56 = vpop.f32.mrf.mxu0  ;;  %9630 = vmatprep.subr.bf16.mxu1 %v9801_v5 }
 0x64b   : > { %v7534_v24 = vadd.f32 %v13949_v25, %v7477_v38  ;;  %v9587_v32 = vadd.f32 %v9586_v56, %v9585_v46  ;;  %v9803_v56 = vld [vmem:[%s10170_s18 + $0x68] sm:$0xff]  }
 0x64d   : > { %7551 = vst.msk [vmem:[#allocation6 + $0x20] sm:$0xff] %vm7546_vm3, %v7534_v24  ;;  %v7480_v34 = vadd.f32 %v9587_v32, %v7479_v23  ;;  %v9313_v24 = vld.sshfl [vmem:[#allocation7 + $0x3] sm:$0x1 pattern:$0x76325410] }
 0x64f   : > { %v7535_v29 = vadd.f32 %v13949_v25, %v7480_v34 }
 0x651   : > { %7552 = vst.msk [vmem:[#allocation6 + $0x28] sm:$0xff] %vm7546_vm3, %v7535_v29  ;;  %v9309_v29 = vld.sshfl [vmem:[#allocation7 + $0x1] sm:$0x1 pattern:$0x76325410] }
 0x654   : > { %v7571_v2 = vld [vmem:[#allocation6 + $0x20] ss:$2 sm:$0xf]  ;;  %v7603_v50 = vld [vmem:[#allocation6 + $0x21] ss:$2 sm:$0xf] }
 0x655   : > { %v7630_v58 = vmax.f32 %v7571_v2, %v7603_v50 }
 0x658   : > { %v7573_v11 = vld [vmem:[#allocation6 + $0x28] ss:$2 sm:$0xf]  ;;  %v7605_v55 = vld [vmem:[#allocation6 + $0x29] ss:$2 sm:$0xf] }
 0x659   : > { %v7631_v51 = vmax.f32 %v7573_v11, %v7605_v55  ;;  %v9804_v55 = vld [vmem:[%s10170_s18 + $0x28] sm:$0xff]  }
 0x65b   : > { %v7644_v54 = vmax.f32 %v7630_v58, %v7631_v51 }
 0x65c   : > { %v9588_v40 = vpop.f32.mrf.mxu0 }
 0x65d   : > { %7653 = vst.msk [vmem:[#allocation7 + $0x8] sm:$0xf] %vm7650_vm13, %v7644_v54 }
 0x65e   : > { %v9589_v60 = vpop.f32.mrf.mxu0 }
 0x65f   : > { %v9590_v28 = vadd.f32 %v9589_v60, %v9588_v40  ;;  %v9805_v60 = vld [vmem:[%s10170_s18 + $0x60] sm:$0xff]  }
 0x660   : > { %v9591_v59 = vpop.f32.mrf.mxu0 }
 0x661   : > { %v7485_v6 = vadd.f32 %v9726_v19, %v9590_v28 }
 0x662   : > { %v9592_v26 = vpop.f32.mrf.mxu0 }
 0x663   : > { %v7536_v62 = vadd.f32 %v13949_v25, %v7485_v6  ;;  %v9593_v37 = vadd.f32 %v9592_v26, %v9591_v59  ;;  %v9307_v6 = vld.sshfl [vmem:[#allocation7] sm:$0x1 pattern:$0x76325410] }
 0x665   : > { %7553 = vst.msk [vmem:[#allocation6 + $0x30] sm:$0xff] %vm7546_vm3, %v7536_v62  ;;  %v7488_v43 = vadd.f32 %v9727_v27, %v9593_v37  ;;  %v9802_v27 = vld [vmem:[%s10170_s18 + $0x30] sm:$0xff]  }
 0x666   : > { %9631 = vmatpush3.bf16.msra.mxu1 %v9802_v27  ;;  %v9813_v27 = vld [vmem:[%s10170_s18 + $0x40] sm:$0xff]  }
 0x667   : > { %v7537_v57 = vadd.f32 %v13949_v25, %v7488_v43  ;;  %9632 = vmatprep.subr.bf16.mxu1 %v9803_v56 }
 0x669   : > { %7554 = vst.msk [vmem:[#allocation6 + $0x38] sm:$0xff] %vm7546_vm3, %v7537_v57  ;;  %v9311_v57 = vld.sshfl [vmem:[#allocation7 + $0x2] sm:$0x1 pattern:$0x76325410] }
 0x66a   : > { %9633 = vmatpush3.bf16.msra.mxu1 %v9804_v55 }
 0x66b   : > { %9634 = vmatprep.subr.bf16.mxu1 %v9805_v60  ;;  %v9315_v60 = vld.sshfl [vmem:[#allocation7 + $0x4] sm:$0x1 pattern:$0x76325410] }
 0x66c   : > { %v7575_v20 = vld [vmem:[#allocation6 + $0x30] ss:$2 sm:$0xf]  ;;  %v7607_v18 = vld [vmem:[#allocation6 + $0x31] ss:$2 sm:$0xf] }
 0x66d   : > { %v7632_v47 = vmax.f32 %v7575_v20, %v7607_v18 }
 0x670   : > { %v7577_v44 = vld [vmem:[#allocation6 + $0x38] ss:$2 sm:$0xf]  ;;  %v7609_v12 = vld [vmem:[#allocation6 + $0x39] ss:$2 sm:$0xf] }
 0x671   : > { %v7633_v39 = vmax.f32 %v7577_v44, %v7609_v12  ;;  %v9806_v12 = vld [vmem:[%s10170_s18 + $0x20] sm:$0xff]  }
 0x672   : > { %9635 = vmatpush3.bf16.msra.mxu1 %v9806_v12 }
 0x673   : > { %v7645_v21 = vmax.f32 %v7632_v47, %v7633_v39 }
 0x674   : > { %v9594_v49 = vpop.f32.mrf.mxu0 }
 0x675   : > { %7654 = vst.msk [vmem:[#allocation7 + $0xc] sm:$0xf] %vm7650_vm13, %v7645_v21 }
 0x676   : > { %v9595_v1 = vpop.f32.mrf.mxu0 }
 0x677   : > { %v9596_v31 = vadd.f32 %v9595_v1, %v9594_v49 }
 0x678   : > { %v9597_v13 = vpop.f32.mrf.mxu0 }
 0x679   : > { %v7493_v53 = vadd.f32 %v9596_v31, %v7492_v45  ;;  %v9807_v45 = vld [vmem:[%s10170_s18 + $0x58] sm:$0xff]  }
 0x67a   : > { %v9598_v63 = vpop.f32.mrf.mxu0  ;;  %9636 = vmatprep.subr.bf16.mxu1 %v9807_v45 }
 0x67b   : > { %v7538_v0 = vadd.f32 %v13949_v25, %v7493_v53  ;;  %v9599_v9 = vadd.f32 %v9598_v63, %v9597_v13  ;;  %v14014_v63 = vpop.f32.mrf.mxu1 }
 0x67d   : > { %7555 = vst.msk [vmem:[#allocation6 + $0x40] sm:$0xff] %vm7546_vm3, %v7538_v0  ;;  %v7496_v4 = vadd.f32 %v9599_v9, %v7495_v61 }
 0x67f   : > { %v7539_v8 = vadd.f32 %v13949_v25, %v7496_v4 }
 0x681   : > { %7556 = vst.msk [vmem:[#allocation6 + $0x48] sm:$0xff] %vm7546_vm3, %v7539_v8 }
 0x684   : > { %v7579_v52 = vld [vmem:[#allocation6 + $0x40] ss:$2 sm:$0xf]  ;;  %v7611_v30 = vld [vmem:[#allocation6 + $0x41] ss:$2 sm:$0xf] }
 0x685   : > { %v7634_v3 = vmax.f32 %v7579_v52, %v7611_v30  ;;  %v7508_v52 = vpop.f32.mrf.mxu1 }
 0x688   : > { %v7581_v7 = vld [vmem:[#allocation6 + $0x48] ss:$2 sm:$0xf]  ;;  %v7613_v14 = vld [vmem:[#allocation6 + $0x49] ss:$2 sm:$0xf] }
 0x689   : > { %v7635_v15 = vmax.f32 %v7581_v7, %v7613_v14 }
 0x68b   : > { %v7646_v19 = vmax.f32 %v7634_v3, %v7635_v15  ;;  %v9809_v3 = vld [vmem:[%s10170_s18 + $0x50] sm:$0xff]  }
 0x68c   : > { %v9600_v16 = vpop.f32.mrf.mxu0  ;;  %v9810_v15 = vld [vmem:[%s10170_s18 + $0x10] sm:$0xff]  }
 0x68d   : > { %7655 = vst.msk [vmem:[#allocation7 + $0x10] sm:$0xf] %vm7650_vm13, %v7646_v19  ;;  %v9811_v19 = vld [vmem:[%s10170_s18 + $0x48] sm:$0xff]  }
 0x68e   : > { %v9601_v35 = vpop.f32.mrf.mxu0 }
 0x68f   : > { %v9602_v42 = vadd.f32 %v9601_v35, %v9600_v16  ;;  %v14020_v16 = vpop.f32.mrf.mxu1 }
 0x690   : > { %v9603_v41 = vpop.f32.mrf.mxu0 }
 0x691   : > { %v7501_v10 = vadd.f32 %v9730_v36, %v9602_v42 }
 0x692   : > { %v9604_v33 = vpop.f32.mrf.mxu0 }
 0x693   : > { %v7540_v46 = vadd.f32 %v13949_v25, %v7501_v10  ;;  %v9605_v38 = vadd.f32 %v9604_v33, %v9603_v41  ;;  %v9812_v41 = vld [vmem:[%s10170_s18 + $0x8] sm:$0xff]  }
 0x694   : > { %v9314_v32 = vld.sshfl [vmem:[#allocation7 + $0x13] sm:$0x1 pattern:$0x76325410] }
 0x695   : > { %7557 = vst.msk [vmem:[#allocation6 + $0x50] sm:$0xff] %vm7546_vm3, %v7540_v46  ;;  %v7504_v23 = vadd.f32 %v9731_v17, %v9605_v38  ;;  %v7770_v34 = vrot.slane %v9314_v32, 7  ;;  %v9310_v2 = vld.sshfl [vmem:[#allocation7 + $0x11] sm:$0x1 pattern:$0x76325410]  ;;  %v7511_v46 = vpop.f32.mrf.mxu1 }
 0x696   : > { %v7713_v50 = vrot.slane %v9310_v2, 7  ;;  %v9308_v11 = vld.sshfl [vmem:[#allocation7 + $0x10] sm:$0x1 pattern:$0x76325410]  ;;  %v9808_v17 = vld [vmem:[%s10170_s18 + $0x18] sm:$0xff]  }
 0x697   : > { %v7541_v58 = vadd.f32 %v13949_v25, %v7504_v23  ;;  %v7771_v51 = vsel %vm7682_vm10, %v7770_v34, %v9313_v24  ;;  %v7681_v54 = vrot.slane %v9308_v11, 7  ;;  %v9312_v40 = vld.sshfl [vmem:[#allocation7 + $0x12] sm:$0x1 pattern:$0x76325410]  ;;  %9637 = vmatpush3.bf16.msra.mxu1 %v9808_v17 }
 0x698   : > { %v7772_v28 = vsel %vm7684_vm11, %v7770_v34, %v7771_v51  ;;  %v7714_v59 = vsel %vm7682_vm10, %v7713_v50, %v9309_v29  ;;  %v7743_v26 = vrot.slane %v9312_v40, 7  ;;  %9638 = vmatprep.subr.bf16.mxu1 %v9809_v3  ;;  %v9321_v38 = vld.sshfl [vmem:[#allocation7 + $0x7] sm:$0x1 pattern:$0x76325410] }
 0x699   : > { %7558 = vst.msk [vmem:[#allocation6 + $0x58] sm:$0xff] %vm7546_vm3, %v7541_v58  ;;  %v7773_v62 = vsel %vm7686_vm12, %v7770_v34, %v7772_v28  ;;  %v7715_v37 = vsel %vm7684_vm11, %v7713_v50, %v7714_v59  ;;  %v7683_v43 = vsel %vm7682_vm10, %v7681_v54, %v9307_v6  ;;  %v9317_v23 = vld.sshfl [vmem:[#allocation7 + $0x5] sm:$0x1 pattern:$0x76325410] }
 0x69a   : > { %v7774_v20 = vsel %vm7688_vm14, %v7770_v34, %v7773_v62  ;;  %v7716_v18 = vsel %vm7686_vm12, %v7713_v50, %v7715_v37  ;;  %v7685_v36 = vsel %vm7684_vm11, %v7681_v54, %v7683_v43  ;;  %v7744_v44 = vsel %vm7682_vm10, %v7743_v26, %v9311_v57  ;;  %v9319_v62 = vld.sshfl [vmem:[#allocation7 + $0x6] sm:$0x1 pattern:$0x76325410] }
 0x69b   : > { %7775 = vrot.lane.b32.xlu1 %v7774_v20, %s9893_s12  ;;  %v7717_v47 = vsel %vm7688_vm14, %v7713_v50, %v7716_v18  ;;  %v7687_v39 = vsel %vm7686_vm12, %v7681_v54, %v7685_v36  ;;  %v7745_v21 = vsel %vm7684_vm11, %v7743_v26, %v7744_v44  ;;  %9639 = vmatpush3.bf16.msra.mxu1 %v9810_v15  ;;  %v9814_v50 = vld [vmem:[%s10170_s18] sm:$0xff]   ;;  %v9325_v3 = vld.sshfl [vmem:[#allocation7 + $0x9] sm:$0x1 pattern:$0x76325410] }
 0x69c   : > { %7718 = vrot.lane.b32.xlu0 %v7717_v47, %s9893_s12  ;;  %v7689_v49 = vsel %vm7688_vm14, %v7681_v54, %v7687_v39  ;;  %v7746_v1 = vsel %vm7686_vm12, %v7743_v26, %v7745_v21  ;;  %v7583_v13 = vld [vmem:[#allocation6 + $0x50] ss:$2 sm:$0xf]  ;;  %v7615_v53 = vld [vmem:[#allocation6 + $0x51] ss:$2 sm:$0xf]  ;;  %9640 = vmatprep.subr.bf16.mxu1 %v9811_v19 }
 0x69d   : > { %7692 = vst.msk [vmem:[#allocation8] sm:$0x3] %vm7691_vm15, %v7689_v49  ;;  %v7747_v31 = vsel %vm7688_vm14, %v7743_v26, %v7746_v1  ;;  %v7636_v61 = vmax.f32 %v7583_v13, %v7615_v53  ;;  %v9817_v21 = vld [vmem:[%s10170_s18 + $0xf8] sm:$0xff]  }
 0x69e   : > { %7749 = vst.msk [vmem:[#allocation8 + $0x2] sm:$0x3] %vm7691_vm15, %v7747_v31 }
 0x69f   : > { %9641 = vmatpush3.bf16.msra.mxu1 %v9812_v41 }
 0x6a0   : > { %v7585_v0 = vld [vmem:[#allocation6 + $0x58] ss:$2 sm:$0xf]  ;;  %v7617_v9 = vld [vmem:[#allocation6 + $0x59] ss:$2 sm:$0xf]  ;;  %9642 = vmatprep.subr.bf16.mxu1 %v9813_v27 }
 0x6a1   : > { %v7637_v4 = vmax.f32 %v7585_v0, %v7617_v9  ;;  %v9822_v0 = vld [vmem:[%s10170_s18 + $0x170] sm:$0xff]  }
 0x6a2   : > { %v9823_v9 = vld [vmem:[%s10170_s18 + $0x130] sm:$0xff]   ;;  %9674 = vmatprep.subr.bf16.mxu0 %v9822_v0 }
 0x6a3   : > { %v7647_v8 = vmax.f32 %v7636_v61, %v7637_v4  ;;  %v9606_v30 = vpop.f32.mrf.mxu0  ;;  %9643 = vmatpush3.bf16.msra.mxu1 %v9814_v50  ;;  %9675 = vmatpush3.bf16.msra.mxu0 %v9823_v9  ;;  %v9828_v4 = vld [vmem:[%s10170_s18 + $0x168] sm:$0xff]  }
 0x6a4   : > { %9650 = vmatprep.subr.bf16.mxu1 %v9817_v21  ;;  %9676 = vmatprep.subr.bf16.mxu0 %v9828_v4  ;;  %v9327_v50 = vld.sshfl [vmem:[#allocation7 + $0xa] sm:$0x1 pattern:$0x76325410] }
 0x6a5   : > { %7656 = vst.msk [vmem:[#allocation7 + $0x14] sm:$0xf] %vm7650_vm13, %v7647_v8  ;;  %v9607_v7 = vpop.f32.mrf.mxu0  ;;  %v9829_v8 = vld [vmem:[%s10170_s18 + $0x128] sm:$0xff]  }
 0x6a6   : > { %v9608_v14 = vadd.f32 %v9607_v7, %v9606_v30  ;;  %v9337_v21 = vld.sshfl [vmem:[#allocation7 + $0xf] sm:$0x1 pattern:$0x76325410] }
 0x6a7   : > { %v9609_v35 = vpop.f32.mrf.mxu0  ;;  %9677 = vmatpush3.bf16.msra.mxu0 %v9829_v8 }
 0x6a8   : > { %v7509_v42 = vadd.f32 %v9608_v14, %v7508_v52  ;;  %v9329_v52 = vld.sshfl [vmem:[#allocation7 + $0xb] sm:$0x1 pattern:$0x76325410] }
 0x6a9   : > { %v9610_v5 = vpop.f32.mrf.mxu0 }
 0x6aa   : > { %v7542_v10 = vadd.f32 %v13949_v25, %v7509_v42  ;;  %v9611_v33 = vadd.f32 %v9610_v5, %v9609_v35 }
 0x6ac   : > { %v9322_v56 = vld.sshfl [vmem:[#allocation7 + $0x17] sm:$0x1 pattern:$0x76325410]  ;;  %7559 = vst.msk [vmem:[#allocation6 + $0x60] sm:$0xff] %vm7546_vm3, %v7542_v10  ;;  %v7512_v24 = vadd.f32 %v9611_v33, %v7511_v46 }
 0x6ad   : > { %v7883_v32 = vrot.slane %v9322_v56, 7  ;;  %v9318_v34 = vld.sshfl [vmem:[#allocation7 + $0x15] sm:$0x1 pattern:$0x76325410] }
 0x6ae   : > { %v7827_v29 = vrot.slane %v9318_v34, 7  ;;  %v9316_v2 = vld.sshfl [vmem:[#allocation7 + $0x14] sm:$0x1 pattern:$0x76325410]  ;;  %v7543_v11 = vadd.f32 %v13949_v25, %v7512_v24 }
 0x6af   : > { %v7884_v55 = vsel %vm7682_vm10, %v7883_v32, %v9321_v38  ;;  %v7800_v58 = vrot.slane %v9316_v2, 7  ;;  %v9320_v51 = vld.sshfl [vmem:[#allocation7 + $0x16] sm:$0x1 pattern:$0x76325410] }
 0x6b0   : > { %v7885_v54 = vsel %vm7684_vm11, %v7883_v32, %v7884_v55  ;;  %v7828_v40 = vsel %vm7682_vm10, %v7827_v29, %v9317_v23  ;;  %v7856_v28 = vrot.slane %v9320_v51, 7  ;;  %7560 = vst.msk [vmem:[#allocation6 + $0x68] sm:$0xff] %vm7546_vm3, %v7543_v11  ;;  %v9323_v46 = vld.sshfl [vmem:[#allocation7 + $0x8] sm:$0x1 pattern:$0x76325410] }
 0x6b1   : > { %v7886_v59 = vsel %vm7686_vm12, %v7883_v32, %v7885_v54  ;;  %v7829_v6 = vsel %vm7684_vm11, %v7827_v29, %v7828_v40  ;;  %v7801_v26 = vsel %vm7682_vm10, %v7800_v58, %v9315_v60  ;;  %v9834_v51 = vld [vmem:[%s10170_s18 + $0x160] sm:$0xff]  }
 0x6b2   : > { %v7887_v37 = vsel %vm7688_vm14, %v7883_v32, %v7886_v59  ;;  %v7830_v43 = vsel %vm7686_vm12, %v7827_v29, %v7829_v6  ;;  %v7802_v57 = vsel %vm7684_vm11, %v7800_v58, %v7801_v26  ;;  %v7857_v20 = vsel %vm7682_vm10, %v7856_v28, %v9319_v62  ;;  %v9835_v54 = vld [vmem:[%s10170_s18 + $0x120] sm:$0xff]   ;;  %9678 = vmatprep.subr.bf16.mxu0 %v9834_v51 }
 0x6b3   : > { %7888 = vrot.lane.b32.xlu1 %v7887_v37, %s9893_s12  ;;  %v7831_v18 = vsel %vm7688_vm14, %v7827_v29, %v7830_v43  ;;  %v7803_v36 = vsel %vm7686_vm12, %v7800_v58, %v7802_v57  ;;  %v7858_v44 = vsel %vm7684_vm11, %v7856_v28, %v7857_v20  ;;  %v7587_v45 = vld [vmem:[#allocation6 + $0x60] ss:$2 sm:$0xf]  ;;  %v7619_v49 = vld [vmem:[#allocation6 + $0x61] ss:$2 sm:$0xf]  ;;  %9679 = vmatpush3.bf16.msra.mxu0 %v9835_v54 }
 0x6b4   : > { %7832 = vrot.lane.b32.xlu0 %v7831_v18, %s9893_s12  ;;  %v7804_v12 = vsel %vm7688_vm14, %v7800_v58, %v7803_v36  ;;  %v7859_v47 = vsel %vm7686_vm12, %v7856_v28, %v7858_v44  ;;  %v7638_v17 = vmax.f32 %v7587_v45, %v7619_v49  ;;  %v9841_v37 = vld [vmem:[%s10170_s18 + $0x118] sm:$0xff]   ;;  %v9845_v44 = vld [vmem:[%s10170_s18 + $0x150] sm:$0xff]   ;;  %v9853_v49 = vld [vmem:[%s10170_s18 + $0x108] sm:$0xff]  }
 0x6b5   : > { %7806 = vst.msk [vmem:[#allocation8 + $0x4] sm:$0x3] %vm7691_vm15, %v7804_v12  ;;  %v7860_v39 = vsel %vm7688_vm14, %v7856_v28, %v7859_v47  ;;  %v9847_v47 = vld [vmem:[%s10170_s18 + $0x110] sm:$0xff]  }
 0x6b6   : > { %7862 = vst.msk [vmem:[#allocation8 + $0x6] sm:$0x3] %vm7691_vm15, %v7860_v39  ;;  %v9851_v39 = vld [vmem:[%s10170_s18 + $0x148] sm:$0xff]  }
 0x6b7   : > { %v7589_v1 = vld [vmem:[#allocation6 + $0x68] ss:$2 sm:$0xf]  ;;  %v7621_v31 = vld [vmem:[#allocation6 + $0x69] ss:$2 sm:$0xf] }
 0x6b8   : > { %v7639_v13 = vmax.f32 %v7589_v1, %v7621_v31  ;;  %v9333_v31 = vld.sshfl [vmem:[#allocation7 + $0xd] sm:$0x1 pattern:$0x76325410] }
 0x6ba   : > { %v7648_v53 = vmax.f32 %v7638_v17, %v7639_v13 }
 0x6bc   : > { %7657 = vst.msk [vmem:[#allocation7 + $0x18] sm:$0xf] %vm7650_vm13, %v7648_v53 }
 0x6c3   : > { %v9612_v61 = vpop.f32.mrf.mxu0  ;;  %v9330_v30 = vld.sshfl [vmem:[#allocation7 + $0x1b] sm:$0x1 pattern:$0x76325410] }
 0x6c4   : > { %v7996_v14 = vrot.slane %v9330_v30, 7  ;;  %v9326_v15 = vld.sshfl [vmem:[#allocation7 + $0x19] sm:$0x1 pattern:$0x76325410] }
 0x6c5   : > { %v9613_v7 = vpop.f32.mrf.mxu0  ;;  %v7940_v35 = vrot.slane %v9326_v15, 7  ;;  %v9324_v42 = vld.sshfl [vmem:[#allocation7 + $0x18] sm:$0x1 pattern:$0x76325410] }
 0x6c6   : > { %v9614_v19 = vadd.f32 %v9613_v7, %v9612_v61  ;;  %v7997_v22 = vsel %vm7682_vm10, %v7996_v14, %v9329_v52  ;;  %v7913_v5 = vrot.slane %v9324_v42, 7  ;;  %v9328_v41 = vld.sshfl [vmem:[#allocation7 + $0x1a] sm:$0x1 pattern:$0x76325410]  ;;  %v9856_v7 = vld [vmem:[%s10170_s18 + $0x140] sm:$0xff]  }
 0x6c7   : > { %v9615_v48 = vpop.f32.mrf.mxu0  ;;  %v7998_v33 = vsel %vm7684_vm11, %v7996_v14, %v7997_v22  ;;  %v7941_v27 = vsel %vm7682_vm10, %v7940_v35, %v9325_v3  ;;  %v7969_v38 = vrot.slane %v9328_v41, 7  ;;  %v9331_v52 = vld.sshfl [vmem:[#allocation7 + $0xc] sm:$0x1 pattern:$0x76325410] }
 0x6c8   : > { %v7517_v10 = vadd.f32 %v14014_v63, %v9614_v19  ;;  %v7999_v24 = vsel %vm7686_vm12, %v7996_v14, %v7998_v33  ;;  %v7942_v32 = vsel %vm7684_vm11, %v7940_v35, %v7941_v27  ;;  %v7914_v23 = vsel %vm7682_vm10, %v7913_v5, %v9323_v46  ;;  %v9335_v19 = vld.sshfl [vmem:[#allocation7 + $0xe] sm:$0x1 pattern:$0x76325410] }
 0x6c9   : > { %v9616_v56 = vpop.f32.mrf.mxu0  ;;  %v8000_v63 = vsel %vm7688_vm14, %v7996_v14, %v7999_v24  ;;  %v7943_v2 = vsel %vm7686_vm12, %v7940_v35, %v7942_v32  ;;  %v7915_v55 = vsel %vm7684_vm11, %v7913_v5, %v7914_v23  ;;  %v7970_v58 = vsel %vm7682_vm10, %v7969_v38, %v9327_v50 }
 0x6ca   : > { %v7544_v34 = vadd.f32 %v13949_v25, %v7517_v10  ;;  %v9617_v29 = vadd.f32 %v9616_v56, %v9615_v48  ;;  %8001 = vrot.lane.b32.xlu1 %v8000_v63, %s9893_s12  ;;  %v7944_v11 = vsel %vm7688_vm14, %v7940_v35, %v7943_v2  ;;  %v7916_v60 = vsel %vm7686_vm12, %v7913_v5, %v7915_v55  ;;  %v9858_v35 = vld [vmem:[%s10170_s18 + $0x100] sm:$0xff]  }
 0x6cb   : > { %7945 = vrot.lane.b32.xlu0 %v7944_v11, %s9893_s12  ;;  %v7971_v28 = vsel %vm7684_vm11, %v7969_v38, %v7970_v58  ;;  %v7917_v59 = vsel %vm7688_vm14, %v7913_v5, %v7916_v60  ;;  %v9895_v32 = vmov 1983009808  }
 0x6cc   : > { %7561 = vst.msk [vmem:[#allocation6 + $0x70] sm:$0xff] %vm7546_vm3, %v7544_v34  ;;  %v7520_v40 = vadd.f32 %v14020_v16, %v9617_v29  ;;  %v7972_v6 = vsel %vm7686_vm12, %v7969_v38, %v7971_v28  ;;  %v9840_v16 = vld [vmem:[%s10170_s18 + $0x158] sm:$0xff]   ;;  %v8124_v23 = vunpack.c.l.s4 %v9895_v32  ;;  %v8126_v34 = vlaneseq }
 0x6cd   : > { %7919 = vst.msk [vmem:[#allocation8 + $0x8] sm:$0x3] %vm7691_vm15, %v7917_v59  ;;  %v7973_v62 = vsel %vm7688_vm14, %v7969_v38, %v7972_v6  ;;  %9680 = vmatprep.subr.bf16.mxu0 %v9840_v16  ;;  %v9818_v28 = vld [vmem:[%s10170_s18 + $0xb8] sm:$0xff]   ;;  %v9821_v16 = vld [vmem:[%s10170_s18 + $0xb0] sm:$0xff]  }
 0x6ce   : > { %v7545_v26 = vadd.f32 %v13949_v25, %v7520_v40  ;;  %7975 = vst.msk [vmem:[#allocation8 + $0xa] sm:$0x3] %vm7691_vm15, %v7973_v62  ;;  %9681 = vmatpush3.bf16.msra.mxu0 %v9841_v37  ;;  %v8125_v2 = vunpack.c.0.s8 %v8124_v23  ;;  %v8127_v50 = vshrl.u32 %v8126_v34, 7  ;;  %v9824_v37 = vld [vmem:[%s10170_s18 + $0xe8] sm:$0xff]  }
 0x6cf   : > { %9682 = vmatprep.subr.bf16.mxu0 %v9845_v44  ;;  %v9831_v44 = vld [vmem:[%s10170_s18 + $0x98] sm:$0xff]  }
 0x6d0   : > { %7562 = vst.msk [vmem:[#allocation6 + $0x78] sm:$0xff] %vm7546_vm3, %v7545_v26  ;;  %v14118_v11 = vsub.s32 %v8125_v2, %v8127_v50  ;;  %v9820_v26 = vld [vmem:[%s10170_s18 + $0xf0] sm:$0xff]  }
 0x6d2   : > { %9683 = vmatpush3.bf16.msra.mxu0 %v9847_v47  ;;  %v9833_v47 = vld [vmem:[%s10170_s18 + $0x90] sm:$0xff]  }
 0x6d3   : > { %v7591_v43 = vld [vmem:[#allocation6 + $0x70] ss:$2 sm:$0xf]  ;;  %v7623_v57 = vld [vmem:[#allocation6 + $0x71] ss:$2 sm:$0xf]  ;;  %9684 = vmatprep.subr.bf16.mxu0 %v9851_v39 }
 0x6d4   : > { %v7640_v18 = vmax.f32 %v7591_v43, %v7623_v57  ;;  %v9825_v43 = vld [vmem:[%s10170_s18 + $0xa8] sm:$0xff]   ;;  %v9826_v57 = vld [vmem:[%s10170_s18 + $0xe0] sm:$0xff]  }
 0x6d5   : > { %v9836_v39 = vld [vmem:[%s10170_s18 + $0xc8] sm:$0xff]  }
 0x6d6   : > { %9685 = vmatpush3.bf16.msra.mxu0 %v9853_v49  ;;  %v9839_v49 = vld [vmem:[%s10170_s18 + $0x80] sm:$0xff]  }
 0x6d7   : > { %v7593_v20 = vld [vmem:[#allocation6 + $0x78] ss:$2 sm:$0xf]  ;;  %v7625_v25 = vld [vmem:[#allocation6 + $0x79] ss:$2 sm:$0xf]  ;;  %9686 = vmatprep.subr.bf16.mxu0 %v9856_v7 }
 0x6d8   : > { %v7641_v36 = vmax.f32 %v7593_v20, %v7625_v25  ;;  %v9855_v7 = vld [vmem:[%s10170_s18 + $0x198] sm:$0xff]  }
 0x6da   : > { %v7649_v12 = vmax.f32 %v7640_v18, %v7641_v36  ;;  %9687 = vmatpush3.bf16.msra.mxu0 %v9858_v35  ;;  %v9827_v18 = vld [vmem:[%s10170_s18 + $0xa0] sm:$0xff]   ;;  %v9830_v36 = vld [vmem:[%s10170_s18 + $0xd8] sm:$0xff]   ;;  %v9859_v35 = vld [vmem:[%s10170_s18 + $0x190] sm:$0xff]  }
 0x6dc   : > { %7658 = vst.msk [vmem:[#allocation7 + $0x1c] sm:$0xf] %vm7650_vm13, %v7649_v12  ;;  %v9832_v12 = vld [vmem:[%s10170_s18 + $0xd0] sm:$0xff]  }
 0x6e3   : > { %v9338_v45 = vld.sshfl [vmem:[#allocation7 + $0x1f] sm:$0x1 pattern:$0x76325410] }
 0x6e4   : > { %v8109_v1 = vrot.slane %v9338_v45, 7  ;;  %v9334_v17 = vld.sshfl [vmem:[#allocation7 + $0x1d] sm:$0x1 pattern:$0x76325410]  ;;  %v9838_v45 = vld [vmem:[%s10170_s18 + $0xc0] sm:$0xff]  }
 0x6e5   : > { %v8053_v13 = vrot.slane %v9334_v17, 7  ;;  %v9332_v53 = vld.sshfl [vmem:[#allocation7 + $0x1c] sm:$0x1 pattern:$0x76325410] }
 0x6e6   : > { %v8110_v0 = vsel %vm7682_vm10, %v8109_v1, %v9337_v21  ;;  %v8026_v9 = vrot.slane %v9332_v53, 7  ;;  %v9336_v61 = vld.sshfl [vmem:[#allocation7 + $0x1e] sm:$0x1 pattern:$0x76325410]  ;;  %v9837_v21 = vld [vmem:[%s10170_s18 + $0x88] sm:$0xff]  }
 0x6e7   : > { %v8111_v4 = vsel %vm7684_vm11, %v8109_v1, %v8110_v0  ;;  %v8054_v8 = vsel %vm7682_vm10, %v8053_v13, %v9333_v31  ;;  %v8082_v30 = vrot.slane %v9336_v61, 7  ;;  %v9843_v31 = vld [vmem:[%s10170_s18 + $0x1b8] sm:$0xff]   ;;  %v9846_v53 = vld [vmem:[%s10170_s18 + $0x1b0] sm:$0xff]   ;;  %v9848_v0 = vld [vmem:[%s10170_s18 + $0x1e8] sm:$0xff]  }
 0x6e8   : > { %v8112_v14 = vsel %vm7686_vm12, %v8109_v1, %v8111_v4  ;;  %v8055_v3 = vsel %vm7684_vm11, %v8053_v13, %v8054_v8  ;;  %v8027_v15 = vsel %vm7682_vm10, %v8026_v9, %v9331_v52  ;;  %v9850_v4 = vld [vmem:[%s10170_s18 + $0x1e0] sm:$0xff]  }
 0x6e9   : > { %v8113_v42 = vsel %vm7688_vm14, %v8109_v1, %v8112_v14  ;;  %v8056_v48 = vsel %vm7686_vm12, %v8053_v13, %v8055_v3  ;;  %v8028_v22 = vsel %vm7684_vm11, %v8026_v9, %v8027_v15  ;;  %v8083_v5 = vsel %vm7682_vm10, %v8082_v30, %v9335_v19  ;;  %v9842_v1 = vld [vmem:[%s10170_s18 + $0x1f8] sm:$0xff]   ;;  %v9852_v52 = vld [vmem:[%s10170_s18 + $0x1a0] sm:$0xff]   ;;  %v9857_v14 = vld [vmem:[%s10170_s18 + $0x1d0] sm:$0xff]  }
 0x6ea   : > { %8114 = vrot.lane.b32.xlu1 %v8113_v42, %s9893_s12  ;;  %v8057_v41 = vsel %vm7688_vm14, %v8053_v13, %v8056_v48  ;;  %v8029_v10 = vsel %vm7686_vm12, %v8026_v9, %v8028_v22  ;;  %v8084_v33 = vsel %vm7684_vm11, %v8082_v30, %v8083_v5  ;;  %v9844_v13 = vld [vmem:[%s10170_s18 + $0x1f0] sm:$0xff]   ;;  %v9860_v48 = vld [vmem:[%s10170_s18 + $0x1c8] sm:$0xff]  }
 0x6eb   : > { %8058 = vrot.lane.b32.xlu0 %v8057_v41, %s9893_s12  ;;  %v8030_v27 = vsel %vm7688_vm14, %v8026_v9, %v8029_v10  ;;  %v8085_v46 = vsel %vm7686_vm12, %v8082_v30, %v8084_v33  ;;  %v9849_v9 = vld [vmem:[%s10170_s18 + $0x1a8] sm:$0xff]  }
 0x6ec   : > { %8032 = vst.msk [vmem:[#allocation8 + $0xc] sm:$0x3] %vm7691_vm15, %v8030_v27  ;;  %v8086_v38 = vsel %vm7688_vm14, %v8082_v30, %v8085_v46  ;;  %v9854_v30 = vld [vmem:[%s10170_s18 + $0x1d8] sm:$0xff]   ;;  %v9861_v33 = vld [vmem:[%s10170_s18 + $0x188] sm:$0xff]   ;;  %v9863_v46 = vld [vmem:[%s10170_s18 + $0x1c0] sm:$0xff]  }
 0x6ed   : > { %8088 = vst.msk [vmem:[#allocation8 + $0xe] sm:$0x3] %vm7691_vm15, %v8086_v38  ;;  %v9864_v38 = vld [vmem:[%s10170_s18 + $0x180] sm:$0xff]  }
 0x70d   : > { %v7776_v56 = vpop.permute.xlu1 %7775 }
 0x70e   : > { %v7719_v24 = vpop.permute.xlu0 %7718  ;;  %7778 = vst.msk [vmem:[#allocation8 + $0x2] sm:$0x3] %vm7721_vm1, %v7776_v56 }
 0x70f   : > { %7722 = vst.msk [vmem:[#allocation8] sm:$0x3] %vm7721_vm1, %v7719_v24 }
 0x725   : > { %v7889_v29 = vpop.permute.xlu1 %7888 }
 0x726   : > { %v7833_v63 = vpop.permute.xlu0 %7832  ;;  %7891 = vst.msk [vmem:[#allocation8 + $0x6] sm:$0x3] %vm7721_vm1, %v7889_v29 }
 0x727   : > { %7835 = vst.msk [vmem:[#allocation8 + $0x4] sm:$0x3] %vm7721_vm1, %v7833_v63 }
 0x72e   : > { %v8118_v55 = vld [vmem:[#allocation8] sm:$0xff] }
 0x72f   : > { %v8129_v58 = vrot.slane %v8118_v55, %v14118_v11  ;;  %v8122_v51 = vcombine.high %v8118_v55, %v8118_v55 }
 0x731   : > { %v8137_v54 = vcombine.high %v8129_v58, %v8129_v58  ;;  %v8136_v40 = vrot.slane %v8122_v51, %v14118_v11  ;;  %v8164_v6 = vpack.c.bf16 %v8129_v58, %v8129_v58 }
 0x733   : > { %v8165_v60 = vpack.c.bf16 %v8137_v54, %v8137_v54  ;;  %v8138_v59 = vcombine.high %v8136_v40, %v8136_v40  ;;  %v8166_v17 = vpack.c.bf16 %v8136_v40, %v8136_v40  ;;  %v9339_v54 = vld [vmem:[%s450_s20] ss:$0 sm:$0xff] }
 0x735   : > { %8723 = vmatprep.mubr.bf16.mxu1 %v8165_v60  ;;  %v8167_v62 = vpack.c.bf16 %v8138_v59, %v8138_v59 }
 0x736   : > { %8724 = vmatmul.mubr.bf16.vlgmr.msra.gmra.mxu1 %v8164_v6 }
 0x737   : > { %9651 = vmatpush3.bf16.msra.mxu1 %v9818_v28  ;;  %8763 = vmatprep.mubr.bf16.mxu1 %v8167_v62 }
 0x738   : > { %9652 = vmatprep.subr.bf16.mxu1 %v9820_v26 }
 0x73b   : > { %9653 = vmatpush3.bf16.msra.mxu1 %v9821_v16 }
 0x73c   : > { %9654 = vmatprep.subr.bf16.mxu1 %v9824_v37  ;;  %v8002_v20 = vpop.permute.xlu1 %8001 }
 0x73d   : > { %v7946_v25 = vpop.permute.xlu0 %7945  ;;  %8004 = vst.msk [vmem:[#allocation8 + $0xa] sm:$0x3] %vm7721_vm1, %v8002_v20 }
 0x73e   : > { %7948 = vst.msk [vmem:[#allocation8 + $0x8] sm:$0x3] %vm7721_vm1, %v7946_v25  ;;  %v9404_v25 = vld [vmem:[%s453_s22] ss:$0 sm:$0xff] }
 0x73f   : > { %9655 = vmatpush3.bf16.msra.mxu1 %v9825_v43 }
 0x740   : > { %9656 = vmatprep.subr.bf16.mxu1 %v9826_v57 }
 0x743   : > { %9657 = vmatpush3.bf16.msra.mxu1 %v9827_v18 }
 0x744   : > { %9658 = vmatprep.subr.bf16.mxu1 %v9830_v36 }
 0x747   : > { %9659 = vmatpush3.bf16.msra.mxu1 %v9831_v44 }
 0x748   : > { %9660 = vmatprep.subr.bf16.mxu1 %v9832_v12  ;;  %v9405_v12 = vld [vmem:[%s456_s25] ss:$0 sm:$0xff] }
 0x74b   : > { %9661 = vmatpush3.bf16.msra.mxu1 %v9833_v47 }
 0x74c   : > { %9662 = vmatprep.subr.bf16.mxu1 %v9836_v39 }
 0x74f   : > { %9663 = vmatpush3.bf16.msra.mxu1 %v9837_v21 }
 0x750   : > { %9664 = vmatprep.subr.bf16.mxu1 %v9838_v45 }
 0x753   : > { %9665 = vmatpush3.bf16.msra.mxu1 %v9839_v49 }
 0x754   : > { %9694 = vmatprep.subr.bf16.mxu1 %v9842_v1 }
 0x756   : > { %8764 = vmatmul.mubr.bf16.vlgmr.msra.gmra.mxu1 %v8166_v17 }
 0x757   : > { %9695 = vmatpush3.bf16.msra.mxu1 %v9843_v31 }
 0x758   : > { %9696 = vmatprep.subr.bf16.mxu1 %v9844_v13 }
 0x75b   : > { %9697 = vmatpush3.bf16.msra.mxu1 %v9846_v53 }
 0x75c   : > { %9698 = vmatprep.subr.bf16.mxu1 %v9848_v0  ;;  %v8115_v61 = vpop.permute.xlu1 %8114 }
 0x75d   : > { %v8059_v8 = vpop.permute.xlu0 %8058  ;;  %8117 = vst.msk [vmem:[#allocation8 + $0xe] sm:$0x3] %vm7721_vm1, %v8115_v61 }
 0x75e   : > { %8061 = vst.msk [vmem:[#allocation8 + $0xc] sm:$0x3] %vm7721_vm1, %v8059_v8 }
 0x75f   : > { %9699 = vmatpush3.bf16.msra.mxu1 %v9849_v9 }
 0x760   : > { %9700 = vmatprep.subr.bf16.mxu1 %v9850_v4 }
 0x763   : > { %9701 = vmatpush3.bf16.msra.mxu1 %v9852_v52 }
 0x764   : > { %9702 = vmatprep.subr.bf16.mxu1 %v9854_v30 }
 0x765   : > { %v8119_v3 = vld [vmem:[#allocation8 + $0x8] sm:$0xff] }
 0x766   : > { %v8146_v15 = vrot.slane %v8119_v3, %v14118_v11  ;;  %v8139_v19 = vcombine.high %v8119_v3, %v8119_v3 }
 0x767   : > { %9703 = vmatpush3.bf16.msra.mxu1 %v9855_v7 }
 0x768   : > { %9704 = vmatprep.subr.bf16.mxu1 %v9857_v14  ;;  %v8154_v42 = vcombine.high %v8146_v15, %v8146_v15  ;;  %v8153_v22 = vrot.slane %v8139_v19, %v14118_v11  ;;  %v8168_v10 = vpack.c.bf16 %v8146_v15, %v8146_v15 }
 0x76a   : > { %v8169_v5 = vpack.c.bf16 %v8154_v42, %v8154_v42  ;;  %v8155_v41 = vcombine.high %v8153_v22, %v8153_v22  ;;  %v8170_v56 = vpack.c.bf16 %v8153_v22, %v8153_v22 }
 0x76b   : > { %9705 = vmatpush3.bf16.msra.mxu1 %v9859_v35 }
 0x76c   : > { %8803 = vmatprep.mubr.bf16.mxu0 %v8169_v5  ;;  %9706 = vmatprep.subr.bf16.mxu1 %v9860_v48  ;;  %v8171_v27 = vpack.c.bf16 %v8155_v41, %v8155_v41 }
 0x76d   : > { %8804 = vmatmul.mubr.bf16.vlgmr.msra.gmra.mxu0 %v8168_v10 }
 0x76e   : > { %8843 = vmatprep.mubr.bf16.mxu1 %v8171_v27 }
 0x76f   : > { %9707 = vmatpush3.bf16.msra.mxu1 %v9861_v33 }
 0x770   : > { %9708 = vmatprep.subr.bf16.mxu1 %v9863_v46 }
 0x773   : > { %9709 = vmatpush3.bf16.msra.mxu1 %v9864_v38 }
 0x776   : > { %8844 = vmatmul.mubr.bf16.vlgmr.msra.gmra.mxu1 %v8170_v56 }
 0x7f6   : > { %v9644_v24 = vpop.f32.mrf.mxu1 }
 0x7f8   : > { %v9645_v32 = vpop.f32.mrf.mxu1 }
 0x7f9   : > { %v9646_v58 = vadd.f32 %v9645_v32, %v9644_v24 }
 0x7fa   : > { %v9647_v23 = vpop.f32.mrf.mxu1 }
 0x7fb   : > { %v8726_v28 = vadd.f32 %v9646_v58, %v9339_v54 }
 0x7fc   : > { %v9648_v34 = vpop.f32.mrf.mxu1 }
 0x816   : > { %v9666_v29 = vpop.f32.mrf.mxu1 }
 0x818   : > { %v9667_v63 = vpop.f32.mrf.mxu1 }
 0x819   : > { %v9668_v40 = vadd.f32 %v9667_v63, %v9666_v29 }
 0x81a   : > { %v9669_v2 = vpop.f32.mrf.mxu1 }
 0x81b   : > { %v8766_v26 = vadd.f32 %v9668_v40, %v8726_v28 }
 0x81c   : > { %v9670_v50 = vpop.f32.mrf.mxu1 }
 0x82d   : > { %v9688_v11 = vpop.f32.mrf.mxu0 }
 0x82f   : > { %v9689_v55 = vpop.f32.mrf.mxu0 }
 0x830   : > { %v9690_v59 = vadd.f32 %v9689_v55, %v9688_v11 }
 0x831   : > { %v9691_v51 = vpop.f32.mrf.mxu0 }
 0x832   : > { %v8806_v16 = vadd.f32 %v9690_v59, %v8766_v26 }
 0x833   : > { %v9692_v60 = vpop.f32.mrf.mxu0 }
 0x836   : > { %v9710_v6 = vpop.f32.mrf.mxu1 }
 0x838   : > { %v9711_v62 = vpop.f32.mrf.mxu1 }
 0x839   : > { %v9712_v37 = vadd.f32 %v9711_v62, %v9710_v6 }
 0x83a   : > { %v9713_v43 = vpop.f32.mrf.mxu1 }
 0x83b   : > { %v8846_v57 = vadd.f32 %v9712_v37, %v8806_v16 }
 0x83c   : > { %v9714_v20 = vpop.f32.mrf.mxu1 }
 0x83d   : > { %v8851_v18 = vmax.f32 %v8846_v57, 0.0 }
 0x83f   : > { %v8859_v36 = vmul.f32 %v9404_v25, %v8851_v18 }
 0x841   : > { %v8861_v44 = vsel %vm8860_vm4, %v8859_v36, 0.0 }
 0x842   : > { %8862 = vadd.xlane.f32.xlu0 %v8861_v44 }
 0x8cb   : > { %v8863_v47 = vpop.xlane.xlu0 %8862 }
 0x8cc   : > { %v8871_v39 = vadd.f32 %v9405_v12, %v8863_v47 }
 0x8ce   : > { %8872 = vst.msk [vmem:[%s460_s29] sm:$0x3] %vm722_vm2, %v8871_v39 }
 0x8cf PF: > { %s19_s30 = sadd.s32 1, %s9888_s30  }
 0x8d0   : > { %p16_p4 = scmp.ge.s32.totalorder %s19_s30, 6  }
 0x8d2   :  { %18 = sbr.rel (!%p16_p4) target bundleno = 1 (0x1), region = 227 }

</bundles_post_ra>
